<compile_context>
chip_gen: v7x
topology: tpu7x:2x2x1
jax: 0.10.0
libtpu: 0.0.40
codegen_flags: <defaults>
</compile_context>

<pallas_src>
import functools
import math

import jax
import jax.numpy as jnp
from jax import lax
from jax.experimental import pallas as pl
from jax.experimental.pallas import tpu as pltpu


# ----------------------------------------------------------------------------
# In-kernel helpers (traced jnp values inside the fused kernels)
# ----------------------------------------------------------------------------

def _mxu_dot(a, b):
    """MXU matmul: bf16 operands, f32 accumulation (VPU math stays f32)."""
    return jnp.dot(a.astype(jnp.bfloat16), b.astype(jnp.bfloat16),
                   preferred_element_type=jnp.float32)


def _layernorm(x, g, b, eps):
    mu = jnp.mean(x, axis=-1, keepdims=True)
    var = jnp.mean((x - mu) ** 2, axis=-1, keepdims=True)
    return (x - mu) * lax.rsqrt(var + eps) * g + b


def _softmax_rows(s):
    m = jnp.max(s, axis=-1, keepdims=True)
    p = jnp.exp(s - m)
    return p * pl.reciprocal(jnp.sum(p, axis=-1, keepdims=True), approx=True)


def _attn_heads(q, k, v, wo_ref, bo, nhead):
    """Multi-head attention + output projection, no concat, no transposes.

    q: (Lq, D) f32, k/v: (Lk, D) f32, wo_ref: (nhead, hd, D) bf16 VMEM ref,
    bo: (1, D) f32.  Scale 1/sqrt(hd) is pre-folded into Wq/bq.  Per head:
    scores via dot_general contracting last dims (no .T / XLU transpose), then
    accumulate (p @ v_h) @ Wo_h into one f32 accumulator.
    """
    Lq, D = q.shape
    Dout = wo_ref.shape[-1]
    hd = D // nhead
    qb = q.astype(jnp.bfloat16)
    kb = k.astype(jnp.bfloat16)
    vb = v.astype(jnp.bfloat16)
    acc = jnp.zeros((Lq, Dout), jnp.float32)
    # TODO(synk): switch to lax.fori_loop over a head axis if bundle dump shows spills.
    for h in range(nhead):
        sl = slice(h * hd, (h + 1) * hd)
        s = lax.dot_general(qb[:, sl], kb[:, sl],
                            dimension_numbers=(((1,), (1,)), ((), ())),
                            preferred_element_type=jnp.float32)      # (Lq, Lk)
        p = _softmax_rows(s)
        pv = jnp.dot(p.astype(jnp.bfloat16), vb[:, sl],
                     preferred_element_type=jnp.float32)              # (Lq, hd)
        acc = acc + jnp.dot(pv.astype(jnp.bfloat16), wo_ref[h],
                            preferred_element_type=jnp.float32)       # (Lq, D)
    return acc + bo


# ----------------------------------------------------------------------------
# Fused per-layer Pallas kernels (grid over batch)
# ----------------------------------------------------------------------------
# cst row layouts (f32, packed constants per layer):
#   first layer (8, D):  0 ca_bq  1 ca_bv  2 ca_bo  3 f_b2
#                        4 ln1_g  5 ln2_g  6 ln1_b  7 ln2_b
#   decoder layer (13,D):0 sa_bq  1 sa_bv  2 sa_bo  3 ca_bq  4 ca_bv  5 ca_bo
#                        6 f_b2   7-9 ln{1,2,3}_g   10-12 ln{1,2,3}_b

def _first_layer_kernel(memk_ref, mem_ref, qp_ref,
                        ca_wq_ref, ca_wk_ref, ca_wv_ref, ca_wo_ref,
                        f_w1_ref, f_w2_ref, cst_ref, bff_ref,
                        out_ref, *, nhead, eps):
    """Bootstrap layer: cross-attn(query_pos -> memory) + FFN (post-norm)."""
    cst = cst_ref[...]
    qp = qp_ref[...]

    # cross-attention: q = query_pos, k = memory+pos (no bk), v = memory
    q = _mxu_dot(qp, ca_wq_ref[...]) + cst[0:1, :]
    k = _mxu_dot(memk_ref[...], ca_wk_ref[...])
    v = _mxu_dot(mem_ref[...], ca_wv_ref[...]) + cst[1:2, :]
    a = _attn_heads(q, k, v, ca_wo_ref, cst[2:3, :], nhead)
    tgt = _layernorm(a, cst[4:5, :], cst[6:7, :], eps)

    # FFN + residual + norm
    h = jnp.maximum(_mxu_dot(tgt, f_w1_ref[...]) + bff_ref[...], 0.0)
    y = _mxu_dot(h, f_w2_ref[...]) + cst[3:4, :]
    tgt = _layernorm(tgt + y, cst[5:6, :], cst[7:8, :], eps)

    out_ref[...] = tgt.astype(out_ref.dtype)


def _decoder_layer_kernel(tgt_ref, memk_ref, mem_ref, qp_ref,
                          sa_wqk_ref, sa_wv_ref, sa_wo_ref,
                          ca_wq_ref, ca_wk_ref, ca_wv_ref, ca_wo_ref,
                          f_w1_ref, f_w2_ref, cst_ref, bff_ref,
                          *rest, nhead, eps, final_norm):
    """Standard DETR post-norm decoder layer, fully fused (one batch element).

    If `final_norm` the decoder's final LayerNorm is fused in (extra (2, D)
    input holding gamma/beta), so no extra pallas_call / HBM round trip.
    """
    if final_norm:
        fin_ref, out_ref = rest
    else:
        (out_ref,) = rest
    D = out_ref.shape[-1]
    tgt = tgt_ref[...]                       # (Nq, D) f32 residual stream
    qp = qp_ref[...]                         # (Nq, D) bf16
    cst = cst_ref[...]                       # (13, D) f32

    # ---- self-attention: q = k = tgt + query_pos (packed Wq|Wk, bk dropped) ----
    x = tgt + qp
    qk = _mxu_dot(x, sa_wqk_ref[...])        # (Nq, 2D)
    q = qk[:, :D] + cst[0:1, :]
    k = qk[:, D:]                            # K bias dropped (softmax-invariant)
    v = _mxu_dot(tgt, sa_wv_ref[...]) + cst[1:2, :]
    a = _attn_heads(q, k, v, sa_wo_ref, cst[2:3, :], nhead)
    tgt = _layernorm(tgt + a, cst[7:8, :], cst[10:11, :], eps)

    # ---- cross-attention: q = tgt + query_pos, k = memory+pos (no bk), v = memory ----
    q = _mxu_dot(tgt + qp, ca_wq_ref[...]) + cst[3:4, :]
    k = _mxu_dot(memk_ref[...], ca_wk_ref[...])
    v = _mxu_dot(mem_ref[...], ca_wv_ref[...]) + cst[4:5, :]
    a = _attn_heads(q, k, v, ca_wo_ref, cst[5:6, :], nhead)
    tgt = _layernorm(tgt + a, cst[8:9, :], cst[11:12, :], eps)

    # ---- FFN + residual + norm ----
    h = jnp.maximum(_mxu_dot(tgt, f_w1_ref[...]) + bff_ref[...], 0.0)
    y = _mxu_dot(h, f_w2_ref[...]) + cst[6:7, :]
    tgt = _layernorm(tgt + y, cst[9:10, :], cst[12:13, :], eps)

    if final_norm:
        fin = rest[0][...]
        tgt = _layernorm(tgt, fin[0:1, :], fin[1:2, :], eps)

    out_ref[...] = tgt.astype(out_ref.dtype)


# ----------------------------------------------------------------------------
# pallas_call wrappers
# ----------------------------------------------------------------------------

def _batched_spec(L, D):
    # batch dim is gridded (squeezed); (L, D) block equals full last-two dims
    return pl.BlockSpec((None, L, D), lambda b: (b, 0, 0))


def _full_spec(shape):
    n = len(shape)
    return pl.BlockSpec(shape, lambda b: (0,) * n)


_COMPILER_PARAMS = pltpu.CompilerParams(
    dimension_semantics=("parallel",),        # v7x: batches shard across 2 TCs
    vmem_limit_bytes=64 * 1024 * 1024,        # above v5e/v6e scoped default, <= v7x physical
)


def first_decoder_layer(memk, mem, qp, p, *, nhead, eps=1e-5):
    """memk/mem: (B, S, D) bf16; qp: (B, Nq, D) bf16 -> (B, Nq, D) f32."""
    B, Nq, D = qp.shape
    S = mem.shape[1]
    weights = [p["ca_wq"], p["ca_wk"], p["ca_wv"], p["ca_wo_h"],
               p["f_w1"], p["f_w2"], p["cst"], p["b_ff"]]
    in_specs = ([_batched_spec(S, D), _batched_spec(S, D), _batched_spec(Nq, D)]
                + [_full_spec(w.shape) for w in weights])
    return pl.pallas_call(
        functools.partial(_first_layer_kernel, nhead=nhead, eps=eps),
        out_shape=jax.ShapeDtypeStruct((B, Nq, D), jnp.float32),
        grid=(B,),
        in_specs=in_specs,
        out_specs=_batched_spec(Nq, D),
        compiler_params=_COMPILER_PARAMS,
    )(memk, mem, qp, *weights)


def decoder_layer(tgt, memk, mem, qp, p, *, nhead, eps=1e-5, final_ln=None):
    """tgt: (B, Nq, D) f32; memk/mem: (B, S, D) bf16; qp: (B, Nq, D) bf16."""
    B, Nq, D = tgt.shape
    S = mem.shape[1]
    weights = [p["sa_wqk"], p["sa_wv"], p["sa_wo_h"],
               p["ca_wq"], p["ca_wk"], p["ca_wv"], p["ca_wo_h"],
               p["f_w1"], p["f_w2"], p["cst"], p["b_ff"]]
    fuse = final_ln is not None
    if fuse:
        weights.append(jnp.stack([final_ln["g"], final_ln["b"]]).astype(jnp.float32))
    in_specs = ([_batched_spec(Nq, D), _batched_spec(S, D), _batched_spec(S, D),
                 _batched_spec(Nq, D)]
                + [_full_spec(w.shape) for w in weights])
    return pl.pallas_call(
        functools.partial(_decoder_layer_kernel, nhead=nhead, eps=eps,
                          final_norm=fuse),
        out_shape=jax.ShapeDtypeStruct((B, Nq, D), jnp.float32),
        grid=(B,),
        in_specs=in_specs,
        out_specs=_batched_spec(Nq, D),
        compiler_params=_COMPILER_PARAMS,
    )(tgt, memk, mem, qp, *weights)


def _layernorm_jnp(x, g, b, eps):
    mu = jnp.mean(x, axis=-1, keepdims=True)
    var = jnp.mean((x - mu) ** 2, axis=-1, keepdims=True)
    return (x - mu) * lax.rsqrt(var + eps) * g + b


# ----------------------------------------------------------------------------
# Parameter preparation (scale folding, Wq|Wk packing, Wo head-split, bf16 cast)
# ----------------------------------------------------------------------------

def _prep_mha(p, nhead, d):
    scale = 1.0 / math.sqrt(d // nhead)
    return dict(
        wq=(p["wq"] * scale).astype(jnp.bfloat16),     # fold 1/sqrt(hd) into Wq, bq
        bq=(p["bq"] * scale).astype(jnp.float32),
        wk=p["wk"].astype(jnp.bfloat16),               # bk dropped (softmax-invariant)
        wv=p["wv"].astype(jnp.bfloat16),
        bv=p["bv"].astype(jnp.float32),
        wo_h=p["wo"].reshape(nhead, d // nhead, d).astype(jnp.bfloat16),
        bo=p["bo"].astype(jnp.float32),
    )


def _prep_layer(p, nhead, d):
    sa = _prep_mha(p["self_attn"], nhead, d)
    ca = _prep_mha(p["cross_attn"], nhead, d)
    f = p["ffn"]
    cst = jnp.stack([
        sa["bq"], sa["bv"], sa["bo"],
        ca["bq"], ca["bv"], ca["bo"],
        f["b2"],
        p["norm1"]["g"], p["norm2"]["g"], p["norm3"]["g"],
        p["norm1"]["b"], p["norm2"]["b"], p["norm3"]["b"],
    ]).astype(jnp.float32)                                           # (13, D)
    return dict(
        sa_wqk=jnp.concatenate([sa["wq"], sa["wk"]], axis=1),        # (D, 2D)
        sa_wv=sa["wv"], sa_wo_h=sa["wo_h"],
        ca_wq=ca["wq"], ca_wk=ca["wk"], ca_wv=ca["wv"], ca_wo_h=ca["wo_h"],
        f_w1=f["w1"].astype(jnp.bfloat16), f_w2=f["w2"].astype(jnp.bfloat16),
        cst=cst, b_ff=f["b1"].astype(jnp.float32).reshape(1, -1),
    )


def _prep_first_layer(p, nhead, d):
    ca = _prep_mha(p["cross_attn"], nhead, d)
    f = p["ffn"]
    cst = jnp.stack([
        ca["bq"], ca["bv"], ca["bo"], f["b2"],
        p["norm1"]["g"], p["norm2"]["g"],
        p["norm1"]["b"], p["norm2"]["b"],
    ]).astype(jnp.float32)                                           # (8, D)
    return dict(
        ca_wq=ca["wq"], ca_wk=ca["wk"], ca_wv=ca["wv"], ca_wo_h=ca["wo_h"],
        f_w1=f["w1"].astype(jnp.bfloat16), f_w2=f["w2"].astype(jnp.bfloat16),
        cst=cst, b_ff=f["b1"].astype(jnp.float32).reshape(1, -1),
    )


def prepare_decoder_params(raw, nhead, d):
    return dict(
        first_layer=_prep_first_layer(raw["first_layer"], nhead, d),
        layers=[_prep_layer(p, nhead, d) for p in raw["layers"]],
        norm={"g": raw["norm"]["g"].astype(jnp.float32),
              "b": raw["norm"]["b"].astype(jnp.float32)} if raw["norm"] is not None else None,
    )


# ----------------------------------------------------------------------------
# Decoder forward (mirrors TransformerDecoder.forward, masks None, eval mode)
# ----------------------------------------------------------------------------

def transformer_decoder(memory, pos, query_pos, prep_params, nhead,
                        return_intermediate=False, eps=1e-5):
    """memory/pos: (S, B, D), query_pos: (Nq, B, D) -> (Nq, B, D) (seq-first)."""
    # Hoist loop-invariant memory+pos; batch-first for the per-batch grid.
    # These tensors only feed MXU dots -> store bf16 in HBM (halves the DMA).
    mem_f32 = jnp.transpose(memory, (1, 0, 2))
    memk_b = (mem_f32 + jnp.transpose(pos, (1, 0, 2))).astype(jnp.bfloat16)
    mem_b = mem_f32.astype(jnp.bfloat16)
    qp_b = jnp.transpose(query_pos, (1, 0, 2)).astype(jnp.bfloat16)

    norm = prep_params["norm"]
    layers = prep_params["layers"]
    n_layers = len(layers)

    output = first_decoder_layer(memk_b, mem_b, qp_b,
                                 prep_params["first_layer"], nhead=nhead, eps=eps)
    intermediate = []
    for li, lp in enumerate(layers):
        fuse = (norm is not None) and (li == n_layers - 1)  # fuse final LN in last layer
        output = decoder_layer(output, memk_b, mem_b, qp_b, lp, nhead=nhead,
                               eps=eps, final_ln=(norm if fuse else None))
        if return_intermediate:
            if fuse or norm is None:
                intermediate.append(output)
            else:
                # cheap (Nq, D) norm for intermediates: plain XLA, no extra pallas_call
                intermediate.append(_layernorm_jnp(output, norm["g"], norm["b"], eps))

    if norm is not None and n_layers == 0:
        output = _layernorm_jnp(output, norm["g"], norm["b"], eps)

    if return_intermediate:
        return jnp.stack([jnp.transpose(t, (1, 0, 2)) for t in intermediate])
    return jnp.transpose(output, (1, 0, 2))                 # back to (Nq, B, D)


# ----------------------------------------------------------------------------
# Deterministic parameter init (PyTorch-like layout, then prepared/packed)
# ----------------------------------------------------------------------------

def _init_linear(key, fan_in, fan_out):
    k1, k2 = jax.random.split(key)
    w = jax.random.normal(k1, (fan_in, fan_out), jnp.float32) / math.sqrt(fan_in)
    b = 0.01 * jax.random.normal(k2, (fan_out,), jnp.float32)
    return w, b


def _init_mha(key, d):
    ks = jax.random.split(key, 4)
    wq, bq = _init_linear(ks[0], d, d)
    wk, bk = _init_linear(ks[1], d, d)
    wv, bv = _init_linear(ks[2], d, d)
    wo, bo = _init_linear(ks[3], d, d)
    return dict(wq=wq, bq=bq, wk=wk, bk=bk, wv=wv, bv=bv, wo=wo, bo=bo)


def _init_norm(d):
    return dict(g=jnp.ones((d,), jnp.float32), b=jnp.zeros((d,), jnp.float32))


def _init_ffn(key, d, dff):
    k1, k2 = jax.random.split(key)
    w1, b1 = _init_linear(k1, d, dff)
    w2, b2 = _init_linear(k2, dff, d)
    return dict(w1=w1, b1=b1, w2=w2, b2=b2)


def _init_first_layer(key, d, dff):
    k1, k2 = jax.random.split(key)
    return dict(cross_attn=_init_mha(k1, d), ffn=_init_ffn(k2, d, dff),
                norm1=_init_norm(d), norm2=_init_norm(d))


def _init_layer(key, d, dff):
    k1, k2, k3 = jax.random.split(key, 3)
    return dict(self_attn=_init_mha(k1, d), cross_attn=_init_mha(k2, d),
                ffn=_init_ffn(k3, d, dff),
                norm1=_init_norm(d), norm2=_init_norm(d), norm3=_init_norm(d))


def init_decoder_params(key, d, dff, num_layers):
    keys = jax.random.split(key, num_layers + 1)
    return dict(
        first_layer=_init_first_layer(keys[0], d, dff),
        layers=[_init_layer(keys[i + 1], d, dff) for i in range(num_layers)],
        norm=_init_norm(d),
    )


# ----------------------------------------------------------------------------
# Main
# ----------------------------------------------------------------------------

if __name__ == "__main__":
    # memory/pos: (S, B, D), query_pos: (Nq, B, D) — seq-first like PyTorch MHA.
    # NOTE: small demo dims; production D/DFF should be multiples of 128 for
    # lane-dense stores (see perf notes), and B should be even for v7x.
    S, Nq, B, D, NHEAD, DFF, NUM_LAYERS = 16, 8, 2, 32, 4, 64, 2

    key = jax.random.PRNGKey(0)
    k_mem, k_pos, k_qpos, k_params = jax.random.split(key, 4)

    memory = jax.random.normal(k_mem, (S, B, D), jnp.float32)
    pos = jax.random.normal(k_pos, (S, B, D), jnp.float32)
    query_pos = jax.random.normal(k_qpos, (Nq, B, D), jnp.float32)

    raw_params = init_decoder_params(k_params, D, DFF, NUM_LAYERS)
    params = prepare_decoder_params(raw_params, NHEAD, D)

    fwd = jax.jit(functools.partial(transformer_decoder, nhead=NHEAD,
                                    return_intermediate=False))
    out = fwd(memory, pos, query_pos, params)
    out = jax.block_until_ready(out)

    assert out.shape == (Nq, B, D), out.shape
    assert jnp.all(jnp.isfinite(out))
    print("KERNEL_OK")
</pallas_src>

<mosaic_0001>
module attributes {stable_mosaic.version = 11 : i64} {
  func.func @_first_layer_kernel(%arg0: i32, %arg1: memref<1x16x32xbf16, #tpu.memory_space<vmem>>, %arg2: memref<1x16x32xbf16, #tpu.memory_space<vmem>>, %arg3: memref<1x8x32xbf16, #tpu.memory_space<vmem>>, %arg4: memref<32x32xbf16, #tpu.memory_space<vmem>>, %arg5: memref<32x32xbf16, #tpu.memory_space<vmem>>, %arg6: memref<32x32xbf16, #tpu.memory_space<vmem>>, %arg7: memref<4x8x32xbf16, #tpu.memory_space<vmem>>, %arg8: memref<32x64xbf16, #tpu.memory_space<vmem>>, %arg9: memref<64x32xbf16, #tpu.memory_space<vmem>>, %arg10: memref<8x32xf32, #tpu.memory_space<vmem>>, %arg11: memref<1x64xf32, #tpu.memory_space<vmem>>, %arg12: memref<1x8x32xf32, #tpu.memory_space<vmem>>) attributes {dimension_semantics = [#tpu.dimension_semantics<parallel>], iteration_bounds = array<i64: 2>, scalar_prefetch = 0 : i64, scratch_operands = 0 : i64, tpu.core_type = #tpu.core_type<tc>, window_params = [{transform_indices = @transform_0, window_bounds = array<i64: 1, 16, 32>}, {transform_indices = @transform_1, window_bounds = array<i64: 1, 16, 32>}, {transform_indices = @transform_2, window_bounds = array<i64: 1, 8, 32>}, {pipeline_mode = #tpu.pipeline_mode<synchronous>, transform_indices = @transform_3, window_bounds = array<i64: 32, 32>}, {pipeline_mode = #tpu.pipeline_mode<synchronous>, transform_indices = @transform_4, window_bounds = array<i64: 32, 32>}, {pipeline_mode = #tpu.pipeline_mode<synchronous>, transform_indices = @transform_5, window_bounds = array<i64: 32, 32>}, {pipeline_mode = #tpu.pipeline_mode<synchronous>, transform_indices = @transform_6, window_bounds = array<i64: 4, 8, 32>}, {pipeline_mode = #tpu.pipeline_mode<synchronous>, transform_indices = @transform_7, window_bounds = array<i64: 32, 64>}, {pipeline_mode = #tpu.pipeline_mode<synchronous>, transform_indices = @transform_8, window_bounds = array<i64: 64, 32>}, {pipeline_mode = #tpu.pipeline_mode<synchronous>, transform_indices = @transform_9, window_bounds = array<i64: 8, 32>}, {pipeline_mode = #tpu.pipeline_mode<synchronous>, transform_indices = @transform_10, window_bounds = array<i64: 1, 64>}, {transform_indices = @transform_11, window_bounds = array<i64: 1, 8, 32>}]} {
    %c0 = arith.constant 0 : index
    %c0_0 = arith.constant 0 : index
    %0 = vector.load %arg10[%c0, %c0_0] : memref<8x32xf32, #tpu.memory_space<vmem>>, vector<8x32xf32>
    %c0_1 = arith.constant 0 : index
    %c0_2 = arith.constant 0 : index
    %c0_3 = arith.constant 0 : index
    %1 = vector.load %arg3[%c0_1, %c0_2, %c0_3] : memref<1x8x32xbf16, #tpu.memory_space<vmem>>, vector<1x8x32xbf16>
    %2 = vector.shape_cast %1 : vector<1x8x32xbf16> to vector<8x32xbf16>
    %c0_4 = arith.constant 0 : index
    %c0_5 = arith.constant 0 : index
    %3 = vector.load %arg4[%c0_4, %c0_5] : memref<32x32xbf16, #tpu.memory_space<vmem>>, vector<32x32xbf16>
    %cst = arith.constant dense<0.000000e+00> : vector<8x32xf32>
    %4 = tpu.matmul %2, %3, %cst {dimension_numbers = #tpu.dot_dimension_numbers<[1], [0], [0], [1], [0, 0, 1, 1], [], []>} : vector<8x32xbf16>, vector<32x32xbf16>, vector<8x32xf32> -> vector<8x32xf32>
    %5 = vector.extract_strided_slice %0 {offsets = [0, 0], sizes = [1, 32], strides = [1, 1]} : vector<8x32xf32> to vector<1x32xf32>
    %6 = vector.broadcast %5 : vector<1x32xf32> to vector<8x32xf32>
    %7 = arith.addf %4, %6 : vector<8x32xf32>
    %c0_6 = arith.constant 0 : index
    %c0_7 = arith.constant 0 : index
    %c0_8 = arith.constant 0 : index
    %8 = vector.load %arg1[%c0_6, %c0_7, %c0_8] : memref<1x16x32xbf16, #tpu.memory_space<vmem>>, vector<1x16x32xbf16>
    %9 = vector.shape_cast %8 : vector<1x16x32xbf16> to vector<16x32xbf16>
    %c0_9 = arith.constant 0 : index
    %c0_10 = arith.constant 0 : index
    %10 = vector.load %arg5[%c0_9, %c0_10] : memref<32x32xbf16, #tpu.memory_space<vmem>>, vector<32x32xbf16>
    %cst_11 = arith.constant dense<0.000000e+00> : vector<16x32xf32>
    %11 = tpu.matmul %9, %10, %cst_11 {dimension_numbers = #tpu.dot_dimension_numbers<[1], [0], [0], [1], [0, 0, 1, 1], [], []>} : vector<16x32xbf16>, vector<32x32xbf16>, vector<16x32xf32> -> vector<16x32xf32>
    %c0_12 = arith.constant 0 : index
    %c0_13 = arith.constant 0 : index
    %c0_14 = arith.constant 0 : index
    %12 = vector.load %arg2[%c0_12, %c0_13, %c0_14] : memref<1x16x32xbf16, #tpu.memory_space<vmem>>, vector<1x16x32xbf16>
    %13 = vector.shape_cast %12 : vector<1x16x32xbf16> to vector<16x32xbf16>
    %c0_15 = arith.constant 0 : index
    %c0_16 = arith.constant 0 : index
    %14 = vector.load %arg6[%c0_15, %c0_16] : memref<32x32xbf16, #tpu.memory_space<vmem>>, vector<32x32xbf16>
    %cst_17 = arith.constant dense<0.000000e+00> : vector<16x32xf32>
    %15 = tpu.matmul %13, %14, %cst_17 {dimension_numbers = #tpu.dot_dimension_numbers<[1], [0], [0], [1], [0, 0, 1, 1], [], []>} : vector<16x32xbf16>, vector<32x32xbf16>, vector<16x32xf32> -> vector<16x32xf32>
    %16 = vector.extract_strided_slice %0 {offsets = [1, 0], sizes = [1, 32], strides = [1, 1]} : vector<8x32xf32> to vector<1x32xf32>
    %17 = vector.broadcast %16 : vector<1x32xf32> to vector<16x32xf32>
    %18 = arith.addf %15, %17 : vector<16x32xf32>
    %19 = vector.extract_strided_slice %0 {offsets = [2, 0], sizes = [1, 32], strides = [1, 1]} : vector<8x32xf32> to vector<1x32xf32>
    %20 = arith.truncf %7 : vector<8x32xf32> to vector<8x32xbf16>
    %21 = arith.truncf %11 : vector<16x32xf32> to vector<16x32xbf16>
    %22 = arith.truncf %18 : vector<16x32xf32> to vector<16x32xbf16>
    %cst_18 = arith.constant 0.000000e+00 : f32
    %23 = vector.broadcast %cst_18 : f32 to vector<8x32xf32>
    %24 = vector.extract_strided_slice %20 {offsets = [0, 0], sizes = [8, 8], strides = [1, 1]} : vector<8x32xbf16> to vector<8x8xbf16>
    %25 = vector.extract_strided_slice %21 {offsets = [0, 0], sizes = [16, 8], strides = [1, 1]} : vector<16x32xbf16> to vector<16x8xbf16>
    %cst_19 = arith.constant dense<0.000000e+00> : vector<8x16xf32>
    %26 = tpu.matmul %24, %25, %cst_19 {dimension_numbers = #tpu.dot_dimension_numbers<[1], [1], [0], [0], [0, 0, 1, 0], [], []>} : vector<8x8xbf16>, vector<16x8xbf16>, vector<8x16xf32> -> vector<8x16xf32>
    %cst_20 = arith.constant dense<0xFF800000> : vector<8xf32>
    %27 = vector.multi_reduction <maximumf>, %26, %cst_20 [1] : vector<8x16xf32> to vector<8xf32>
    %28 = vector.shape_cast %27 : vector<8xf32> to vector<8x1xf32>
    %29 = vector.broadcast %28 : vector<8x1xf32> to vector<8x16xf32>
    %30 = arith.subf %26, %29 : vector<8x16xf32>
    %31 = math.exp %30 : vector<8x16xf32>
    %cst_21 = arith.constant dense<0.000000e+00> : vector<8xf32>
    %32 = vector.multi_reduction <add>, %31, %cst_21 [1] : vector<8x16xf32> to vector<8xf32>
    %33 = vector.shape_cast %32 : vector<8xf32> to vector<8x1xf32>
    %34 = tpu.reciprocal %33 {approx = true} : vector<8x1xf32> -> vector<8x1xf32>
    %35 = vector.broadcast %34 : vector<8x1xf32> to vector<8x16xf32>
    %36 = arith.mulf %31, %35 : vector<8x16xf32>
    %37 = arith.truncf %36 : vector<8x16xf32> to vector<8x16xbf16>
    %38 = vector.extract_strided_slice %22 {offsets = [0, 0], sizes = [16, 8], strides = [1, 1]} : vector<16x32xbf16> to vector<16x8xbf16>
    %cst_22 = arith.constant dense<0.000000e+00> : vector<8x8xf32>
    %39 = tpu.matmul %37, %38, %cst_22 {dimension_numbers = #tpu.dot_dimension_numbers<[1], [0], [0], [1], [0, 0, 1, 1], [], []>} : vector<8x16xbf16>, vector<16x8xbf16>, vector<8x8xf32> -> vector<8x8xf32>
    %40 = arith.truncf %39 : vector<8x8xf32> to vector<8x8xbf16>
    %c0_23 = arith.constant 0 : index
    %c0_24 = arith.constant 0 : index
    %c0_25 = arith.constant 0 : index
    %41 = vector.load %arg7[%c0_23, %c0_24, %c0_25] : memref<4x8x32xbf16, #tpu.memory_space<vmem>>, vector<1x8x32xbf16>
    %42 = vector.shape_cast %41 : vector<1x8x32xbf16> to vector<8x32xbf16>
    %cst_26 = arith.constant dense<0.000000e+00> : vector<8x32xf32>
    %43 = tpu.matmul %40, %42, %cst_26 {dimension_numbers = #tpu.dot_dimension_numbers<[1], [0], [0], [1], [0, 0, 1, 1], [], []>} : vector<8x8xbf16>, vector<8x32xbf16>, vector<8x32xf32> -> vector<8x32xf32>
    %44 = arith.addf %23, %43 : vector<8x32xf32>
    %45 = vector.extract_strided_slice %20 {offsets = [0, 8], sizes = [8, 8], strides = [1, 1]} : vector<8x32xbf16> to vector<8x8xbf16>
    %46 = vector.extract_strided_slice %21 {offsets = [0, 8], sizes = [16, 8], strides = [1, 1]} : vector<16x32xbf16> to vector<16x8xbf16>
    %cst_27 = arith.constant dense<0.000000e+00> : vector<8x16xf32>
    %47 = tpu.matmul %45, %46, %cst_27 {dimension_numbers = #tpu.dot_dimension_numbers<[1], [1], [0], [0], [0, 0, 1, 0], [], []>} : vector<8x8xbf16>, vector<16x8xbf16>, vector<8x16xf32> -> vector<8x16xf32>
    %cst_28 = arith.constant dense<0xFF800000> : vector<8xf32>
    %48 = vector.multi_reduction <maximumf>, %47, %cst_28 [1] : vector<8x16xf32> to vector<8xf32>
    %49 = vector.shape_cast %48 : vector<8xf32> to vector<8x1xf32>
    %50 = vector.broadcast %49 : vector<8x1xf32> to vector<8x16xf32>
    %51 = arith.subf %47, %50 : vector<8x16xf32>
    %52 = math.exp %51 : vector<8x16xf32>
    %cst_29 = arith.constant dense<0.000000e+00> : vector<8xf32>
    %53 = vector.multi_reduction <add>, %52, %cst_29 [1] : vector<8x16xf32> to vector<8xf32>
    %54 = vector.shape_cast %53 : vector<8xf32> to vector<8x1xf32>
    %55 = tpu.reciprocal %54 {approx = true} : vector<8x1xf32> -> vector<8x1xf32>
    %56 = vector.broadcast %55 : vector<8x1xf32> to vector<8x16xf32>
    %57 = arith.mulf %52, %56 : vector<8x16xf32>
    %58 = arith.truncf %57 : vector<8x16xf32> to vector<8x16xbf16>
    %59 = vector.extract_strided_slice %22 {offsets = [0, 8], sizes = [16, 8], strides = [1, 1]} : vector<16x32xbf16> to vector<16x8xbf16>
    %cst_30 = arith.constant dense<0.000000e+00> : vector<8x8xf32>
    %60 = tpu.matmul %58, %59, %cst_30 {dimension_numbers = #tpu.dot_dimension_numbers<[1], [0], [0], [1], [0, 0, 1, 1], [], []>} : vector<8x16xbf16>, vector<16x8xbf16>, vector<8x8xf32> -> vector<8x8xf32>
    %61 = arith.truncf %60 : vector<8x8xf32> to vector<8x8xbf16>
    %c1 = arith.constant 1 : index
    %c0_31 = arith.constant 0 : index
    %c0_32 = arith.constant 0 : index
    %62 = vector.load %arg7[%c1, %c0_31, %c0_32] : memref<4x8x32xbf16, #tpu.memory_space<vmem>>, vector<1x8x32xbf16>
    %63 = vector.shape_cast %62 : vector<1x8x32xbf16> to vector<8x32xbf16>
    %cst_33 = arith.constant dense<0.000000e+00> : vector<8x32xf32>
    %64 = tpu.matmul %61, %63, %cst_33 {dimension_numbers = #tpu.dot_dimension_numbers<[1], [0], [0], [1], [0, 0, 1, 1], [], []>} : vector<8x8xbf16>, vector<8x32xbf16>, vector<8x32xf32> -> vector<8x32xf32>
    %65 = arith.addf %44, %64 : vector<8x32xf32>
    %66 = vector.extract_strided_slice %20 {offsets = [0, 16], sizes = [8, 8], strides = [1, 1]} : vector<8x32xbf16> to vector<8x8xbf16>
    %67 = vector.extract_strided_slice %21 {offsets = [0, 16], sizes = [16, 8], strides = [1, 1]} : vector<16x32xbf16> to vector<16x8xbf16>
    %cst_34 = arith.constant dense<0.000000e+00> : vector<8x16xf32>
    %68 = tpu.matmul %66, %67, %cst_34 {dimension_numbers = #tpu.dot_dimension_numbers<[1], [1], [0], [0], [0, 0, 1, 0], [], []>} : vector<8x8xbf16>, vector<16x8xbf16>, vector<8x16xf32> -> vector<8x16xf32>
    %cst_35 = arith.constant dense<0xFF800000> : vector<8xf32>
    %69 = vector.multi_reduction <maximumf>, %68, %cst_35 [1] : vector<8x16xf32> to vector<8xf32>
    %70 = vector.shape_cast %69 : vector<8xf32> to vector<8x1xf32>
    %71 = vector.broadcast %70 : vector<8x1xf32> to vector<8x16xf32>
    %72 = arith.subf %68, %71 : vector<8x16xf32>
    %73 = math.exp %72 : vector<8x16xf32>
    %cst_36 = arith.constant dense<0.000000e+00> : vector<8xf32>
    %74 = vector.multi_reduction <add>, %73, %cst_36 [1] : vector<8x16xf32> to vector<8xf32>
    %75 = vector.shape_cast %74 : vector<8xf32> to vector<8x1xf32>
    %76 = tpu.reciprocal %75 {approx = true} : vector<8x1xf32> -> vector<8x1xf32>
    %77 = vector.broadcast %76 : vector<8x1xf32> to vector<8x16xf32>
    %78 = arith.mulf %73, %77 : vector<8x16xf32>
    %79 = arith.truncf %78 : vector<8x16xf32> to vector<8x16xbf16>
    %80 = vector.extract_strided_slice %22 {offsets = [0, 16], sizes = [16, 8], strides = [1, 1]} : vector<16x32xbf16> to vector<16x8xbf16>
    %cst_37 = arith.constant dense<0.000000e+00> : vector<8x8xf32>
    %81 = tpu.matmul %79, %80, %cst_37 {dimension_numbers = #tpu.dot_dimension_numbers<[1], [0], [0], [1], [0, 0, 1, 1], [], []>} : vector<8x16xbf16>, vector<16x8xbf16>, vector<8x8xf32> -> vector<8x8xf32>
    %82 = arith.truncf %81 : vector<8x8xf32> to vector<8x8xbf16>
    %c2 = arith.constant 2 : index
    %c0_38 = arith.constant 0 : index
    %c0_39 = arith.constant 0 : index
    %83 = vector.load %arg7[%c2, %c0_38, %c0_39] : memref<4x8x32xbf16, #tpu.memory_space<vmem>>, vector<1x8x32xbf16>
    %84 = vector.shape_cast %83 : vector<1x8x32xbf16> to vector<8x32xbf16>
    %cst_40 = arith.constant dense<0.000000e+00> : vector<8x32xf32>
    %85 = tpu.matmul %82, %84, %cst_40 {dimension_numbers = #tpu.dot_dimension_numbers<[1], [0], [0], [1], [0, 0, 1, 1], [], []>} : vector<8x8xbf16>, vector<8x32xbf16>, vector<8x32xf32> -> vector<8x32xf32>
    %86 = arith.addf %65, %85 : vector<8x32xf32>
    %87 = vector.extract_strided_slice %20 {offsets = [0, 24], sizes = [8, 8], strides = [1, 1]} : vector<8x32xbf16> to vector<8x8xbf16>
    %88 = vector.extract_strided_slice %21 {offsets = [0, 24], sizes = [16, 8], strides = [1, 1]} : vector<16x32xbf16> to vector<16x8xbf16>
    %cst_41 = arith.constant dense<0.000000e+00> : vector<8x16xf32>
    %89 = tpu.matmul %87, %88, %cst_41 {dimension_numbers = #tpu.dot_dimension_numbers<[1], [1], [0], [0], [0, 0, 1, 0], [], []>} : vector<8x8xbf16>, vector<16x8xbf16>, vector<8x16xf32> -> vector<8x16xf32>
    %cst_42 = arith.constant dense<0xFF800000> : vector<8xf32>
    %90 = vector.multi_reduction <maximumf>, %89, %cst_42 [1] : vector<8x16xf32> to vector<8xf32>
    %91 = vector.shape_cast %90 : vector<8xf32> to vector<8x1xf32>
    %92 = vector.broadcast %91 : vector<8x1xf32> to vector<8x16xf32>
    %93 = arith.subf %89, %92 : vector<8x16xf32>
    %94 = math.exp %93 : vector<8x16xf32>
    %cst_43 = arith.constant dense<0.000000e+00> : vector<8xf32>
    %95 = vector.multi_reduction <add>, %94, %cst_43 [1] : vector<8x16xf32> to vector<8xf32>
    %96 = vector.shape_cast %95 : vector<8xf32> to vector<8x1xf32>
    %97 = tpu.reciprocal %96 {approx = true} : vector<8x1xf32> -> vector<8x1xf32>
    %98 = vector.broadcast %97 : vector<8x1xf32> to vector<8x16xf32>
    %99 = arith.mulf %94, %98 : vector<8x16xf32>
    %100 = arith.truncf %99 : vector<8x16xf32> to vector<8x16xbf16>
    %101 = vector.extract_strided_slice %22 {offsets = [0, 24], sizes = [16, 8], strides = [1, 1]} : vector<16x32xbf16> to vector<16x8xbf16>
    %cst_44 = arith.constant dense<0.000000e+00> : vector<8x8xf32>
    %102 = tpu.matmul %100, %101, %cst_44 {dimension_numbers = #tpu.dot_dimension_numbers<[1], [0], [0], [1], [0, 0, 1, 1], [], []>} : vector<8x16xbf16>, vector<16x8xbf16>, vector<8x8xf32> -> vector<8x8xf32>
    %103 = arith.truncf %102 : vector<8x8xf32> to vector<8x8xbf16>
    %c3 = arith.constant 3 : index
    %c0_45 = arith.constant 0 : index
    %c0_46 = arith.constant 0 : index
    %104 = vector.load %arg7[%c3, %c0_45, %c0_46] : memref<4x8x32xbf16, #tpu.memory_space<vmem>>, vector<1x8x32xbf16>
    %105 = vector.shape_cast %104 : vector<1x8x32xbf16> to vector<8x32xbf16>
    %cst_47 = arith.constant dense<0.000000e+00> : vector<8x32xf32>
    %106 = tpu.matmul %103, %105, %cst_47 {dimension_numbers = #tpu.dot_dimension_numbers<[1], [0], [0], [1], [0, 0, 1, 1], [], []>} : vector<8x8xbf16>, vector<8x32xbf16>, vector<8x32xf32> -> vector<8x32xf32>
    %107 = arith.addf %86, %106 : vector<8x32xf32>
    %108 = vector.broadcast %19 : vector<1x32xf32> to vector<8x32xf32>
    %109 = arith.addf %107, %108 : vector<8x32xf32>
    %110 = vector.extract_strided_slice %0 {offsets = [4, 0], sizes = [1, 32], strides = [1, 1]} : vector<8x32xf32> to vector<1x32xf32>
    %111 = vector.extract_strided_slice %0 {offsets = [6, 0], sizes = [1, 32], strides = [1, 1]} : vector<8x32xf32> to vector<1x32xf32>
    %cst_48 = arith.constant dense<0.000000e+00> : vector<8xf32>
    %112 = vector.multi_reduction <add>, %109, %cst_48 [1] : vector<8x32xf32> to vector<8xf32>
    %113 = vector.shape_cast %112 : vector<8xf32> to vector<8x1xf32>
    %cst_49 = arith.constant 3.200000e+01 : f32
    %114 = vector.broadcast %cst_49 : f32 to vector<8x1xf32>
    %115 = arith.divf %113, %114 : vector<8x1xf32>
    %116 = vector.broadcast %115 : vector<8x1xf32> to vector<8x32xf32>
    %117 = arith.subf %109, %116 : vector<8x32xf32>
    %118 = arith.mulf %117, %117 : vector<8x32xf32>
    %cst_50 = arith.constant dense<0.000000e+00> : vector<8xf32>
    %119 = vector.multi_reduction <add>, %118, %cst_50 [1] : vector<8x32xf32> to vector<8xf32>
    %120 = vector.shape_cast %119 : vector<8xf32> to vector<8x1xf32>
    %cst_51 = arith.constant 3.200000e+01 : f32
    %121 = vector.broadcast %cst_51 : f32 to vector<8x1xf32>
    %122 = arith.divf %120, %121 : vector<8x1xf32>
    %123 = vector.broadcast %115 : vector<8x1xf32> to vector<8x32xf32>
    %124 = arith.subf %109, %123 : vector<8x32xf32>
    %cst_52 = arith.constant 9.99999974E-6 : f32
    %125 = vector.broadcast %cst_52 : f32 to vector<8x1xf32>
    %126 = arith.addf %122, %125 : vector<8x1xf32>
    %127 = math.rsqrt %126 : vector<8x1xf32>
    %128 = vector.broadcast %127 : vector<8x1xf32> to vector<8x32xf32>
    %129 = arith.mulf %124, %128 : vector<8x32xf32>
    %130 = vector.broadcast %110 : vector<1x32xf32> to vector<8x32xf32>
    %131 = arith.mulf %129, %130 : vector<8x32xf32>
    %132 = vector.broadcast %111 : vector<1x32xf32> to vector<8x32xf32>
    %133 = arith.addf %131, %132 : vector<8x32xf32>
    %c0_53 = arith.constant 0 : index
    %c0_54 = arith.constant 0 : index
    %134 = vector.load %arg8[%c0_53, %c0_54] : memref<32x64xbf16, #tpu.memory_space<vmem>>, vector<32x64xbf16>
    %135 = arith.truncf %133 : vector<8x32xf32> to vector<8x32xbf16>
    %cst_55 = arith.constant dense<0.000000e+00> : vector<8x64xf32>
    %136 = tpu.matmul %135, %134, %cst_55 {dimension_numbers = #tpu.dot_dimension_numbers<[1], [0], [0], [1], [0, 0, 1, 1], [], []>} : vector<8x32xbf16>, vector<32x64xbf16>, vector<8x64xf32> -> vector<8x64xf32>
    %c0_56 = arith.constant 0 : index
    %c0_57 = arith.constant 0 : index
    %137 = vector.load %arg11[%c0_56, %c0_57] : memref<1x64xf32, #tpu.memory_space<vmem>>, vector<1x64xf32>
    %138 = vector.broadcast %137 : vector<1x64xf32> to vector<8x64xf32>
    %139 = arith.addf %136, %138 : vector<8x64xf32>
    %cst_58 = arith.constant 0.000000e+00 : f32
    %140 = vector.broadcast %cst_58 : f32 to vector<8x64xf32>
    %141 = arith.maximumf %139, %140 : vector<8x64xf32>
    %c0_59 = arith.constant 0 : index
    %c0_60 = arith.constant 0 : index
    %142 = vector.load %arg9[%c0_59, %c0_60] : memref<64x32xbf16, #tpu.memory_space<vmem>>, vector<64x32xbf16>
    %143 = arith.truncf %141 : vector<8x64xf32> to vector<8x64xbf16>
    %cst_61 = arith.constant dense<0.000000e+00> : vector<8x32xf32>
    %144 = tpu.matmul %143, %142, %cst_61 {dimension_numbers = #tpu.dot_dimension_numbers<[1], [0], [0], [1], [0, 0, 1, 1], [], []>} : vector<8x64xbf16>, vector<64x32xbf16>, vector<8x32xf32> -> vector<8x32xf32>
    %145 = vector.extract_strided_slice %0 {offsets = [3, 0], sizes = [1, 32], strides = [1, 1]} : vector<8x32xf32> to vector<1x32xf32>
    %146 = vector.broadcast %145 : vector<1x32xf32> to vector<8x32xf32>
    %147 = arith.addf %144, %146 : vector<8x32xf32>
    %148 = arith.addf %133, %147 : vector<8x32xf32>
    %149 = vector.extract_strided_slice %0 {offsets = [5, 0], sizes = [1, 32], strides = [1, 1]} : vector<8x32xf32> to vector<1x32xf32>
    %150 = vector.extract_strided_slice %0 {offsets = [7, 0], sizes = [1, 32], strides = [1, 1]} : vector<8x32xf32> to vector<1x32xf32>
    %cst_62 = arith.constant dense<0.000000e+00> : vector<8xf32>
    %151 = vector.multi_reduction <add>, %148, %cst_62 [1] : vector<8x32xf32> to vector<8xf32>
    %152 = vector.shape_cast %151 : vector<8xf32> to vector<8x1xf32>
    %cst_63 = arith.constant 3.200000e+01 : f32
    %153 = vector.broadcast %cst_63 : f32 to vector<8x1xf32>
    %154 = arith.divf %152, %153 : vector<8x1xf32>
    %155 = vector.broadcast %154 : vector<8x1xf32> to vector<8x32xf32>
    %156 = arith.subf %148, %155 : vector<8x32xf32>
    %157 = arith.mulf %156, %156 : vector<8x32xf32>
    %cst_64 = arith.constant dense<0.000000e+00> : vector<8xf32>
    %158 = vector.multi_reduction <add>, %157, %cst_64 [1] : vector<8x32xf32> to vector<8xf32>
    %159 = vector.shape_cast %158 : vector<8xf32> to vector<8x1xf32>
    %cst_65 = arith.constant 3.200000e+01 : f32
    %160 = vector.broadcast %cst_65 : f32 to vector<8x1xf32>
    %161 = arith.divf %159, %160 : vector<8x1xf32>
    %162 = vector.broadcast %154 : vector<8x1xf32> to vector<8x32xf32>
    %163 = arith.subf %148, %162 : vector<8x32xf32>
    %cst_66 = arith.constant 9.99999974E-6 : f32
    %164 = vector.broadcast %cst_66 : f32 to vector<8x1xf32>
    %165 = arith.addf %161, %164 : vector<8x1xf32>
    %166 = math.rsqrt %165 : vector<8x1xf32>
    %167 = vector.broadcast %166 : vector<8x1xf32> to vector<8x32xf32>
    %168 = arith.mulf %163, %167 : vector<8x32xf32>
    %169 = vector.broadcast %149 : vector<1x32xf32> to vector<8x32xf32>
    %170 = arith.mulf %168, %169 : vector<8x32xf32>
    %171 = vector.broadcast %150 : vector<1x32xf32> to vector<8x32xf32>
    %172 = arith.addf %170, %171 : vector<8x32xf32>
    %c0_67 = arith.constant 0 : index
    %c0_68 = arith.constant 0 : index
    %c0_69 = arith.constant 0 : index
    %173 = vector.load %arg12[%c0_67, %c0_68, %c0_69] : memref<1x8x32xf32, #tpu.memory_space<vmem>>, vector<1x8x32xf32>
    %174 = vector.shape_cast %173 : vector<1x8x32xf32> to vector<8x32xf32>
    %175 = vector.shape_cast %172 : vector<8x32xf32> to vector<1x8x32xf32>
    tpu.vector_store %arg12[%c0_67, %c0_68, %c0_69], %175 {strides = array<i32>} : memref<1x8x32xf32, #tpu.memory_space<vmem>>, vector<1x8x32xf32>,
    return
  }
  func.func @transform_0(%arg0: i32) -> (i32, i32, i32) {
    %c0_i32 = arith.constant 0 : i32
    %c0_i32_0 = arith.constant 0 : i32
    %c0_i32_1 = arith.constant 0 : i32
    return %arg0, %c0_i32, %c0_i32_0 : i32, i32, i32
  }
  func.func @transform_1(%arg0: i32) -> (i32, i32, i32) {
    %c0_i32 = arith.constant 0 : i32
    %c0_i32_0 = arith.constant 0 : i32
    %c0_i32_1 = arith.constant 0 : i32
    return %arg0, %c0_i32, %c0_i32_0 : i32, i32, i32
  }
  func.func @transform_2(%arg0: i32) -> (i32, i32, i32) {
    %c0_i32 = arith.constant 0 : i32
    %c0_i32_0 = arith.constant 0 : i32
    %c0_i32_1 = arith.constant 0 : i32
    return %arg0, %c0_i32, %c0_i32_0 : i32, i32, i32
  }
  func.func @transform_3(%arg0: i32) -> (i32, i32) {
    %c0_i32 = arith.constant 0 : i32
    %c0_i32_0 = arith.constant 0 : i32
    %c0_i32_1 = arith.constant 0 : i32
    return %c0_i32, %c0_i32_0 : i32, i32
  }
  func.func @transform_4(%arg0: i32) -> (i32, i32) {
    %c0_i32 = arith.constant 0 : i32
    %c0_i32_0 = arith.constant 0 : i32
    %c0_i32_1 = arith.constant 0 : i32
    return %c0_i32, %c0_i32_0 : i32, i32
  }
  func.func @transform_5(%arg0: i32) -> (i32, i32) {
    %c0_i32 = arith.constant 0 : i32
    %c0_i32_0 = arith.constant 0 : i32
    %c0_i32_1 = arith.constant 0 : i32
    return %c0_i32, %c0_i32_0 : i32, i32
  }
  func.func @transform_6(%arg0: i32) -> (i32, i32, i32) {
    %c0_i32 = arith.constant 0 : i32
    %c0_i32_0 = arith.constant 0 : i32
    %c0_i32_1 = arith.constant 0 : i32
    %c0_i32_2 = arith.constant 0 : i32
    return %c0_i32, %c0_i32_0, %c0_i32_1 : i32, i32, i32
  }
  func.func @transform_7(%arg0: i32) -> (i32, i32) {
    %c0_i32 = arith.constant 0 : i32
    %c0_i32_0 = arith.constant 0 : i32
    %c0_i32_1 = arith.constant 0 : i32
    return %c0_i32, %c0_i32_0 : i32, i32
  }
  func.func @transform_8(%arg0: i32) -> (i32, i32) {
    %c0_i32 = arith.constant 0 : i32
    %c0_i32_0 = arith.constant 0 : i32
    %c0_i32_1 = arith.constant 0 : i32
    return %c0_i32, %c0_i32_0 : i32, i32
  }
  func.func @transform_9(%arg0: i32) -> (i32, i32) {
    %c0_i32 = arith.constant 0 : i32
    %c0_i32_0 = arith.constant 0 : i32
    %c0_i32_1 = arith.constant 0 : i32
    return %c0_i32, %c0_i32_0 : i32, i32
  }
  func.func @transform_10(%arg0: i32) -> (i32, i32) {
    %c0_i32 = arith.constant 0 : i32
    %c0_i32_0 = arith.constant 0 : i32
    %c0_i32_1 = arith.constant 0 : i32
    return %c0_i32, %c0_i32_0 : i32, i32
  }
  func.func @transform_11(%arg0: i32) -> (i32, i32, i32) {
    %c0_i32 = arith.constant 0 : i32
    %c0_i32_0 = arith.constant 0 : i32
    %c0_i32_1 = arith.constant 0 : i32
    return %arg0, %c0_i32, %c0_i32_0 : i32, i32, i32
  }
}

module attributes {stable_mosaic.version = 11 : i64} {
  func.func @_decoder_layer_kernel(%arg0: i32, %arg1: memref<1x8x32xf32, #tpu.memory_space<vmem>>, %arg2: memref<1x16x32xbf16, #tpu.memory_space<vmem>>, %arg3: memref<1x16x32xbf16, #tpu.memory_space<vmem>>, %arg4: memref<1x8x32xbf16, #tpu.memory_space<vmem>>, %arg5: memref<32x64xbf16, #tpu.memory_space<vmem>>, %arg6: memref<32x32xbf16, #tpu.memory_space<vmem>>, %arg7: memref<4x8x32xbf16, #tpu.memory_space<vmem>>, %arg8: memref<32x32xbf16, #tpu.memory_space<vmem>>, %arg9: memref<32x32xbf16, #tpu.memory_space<vmem>>, %arg10: memref<32x32xbf16, #tpu.memory_space<vmem>>, %arg11: memref<4x8x32xbf16, #tpu.memory_space<vmem>>, %arg12: memref<32x64xbf16, #tpu.memory_space<vmem>>, %arg13: memref<64x32xbf16, #tpu.memory_space<vmem>>, %arg14: memref<13x32xf32, #tpu.memory_space<vmem>>, %arg15: memref<1x64xf32, #tpu.memory_space<vmem>>, %arg16: memref<1x8x32xf32, #tpu.memory_space<vmem>>) attributes {dimension_semantics = [#tpu.dimension_semantics<parallel>], iteration_bounds = array<i64: 2>, scalar_prefetch = 0 : i64, scratch_operands = 0 : i64, tpu.core_type = #tpu.core_type<tc>, window_params = [{transform_indices = @transform_0, window_bounds = array<i64: 1, 8, 32>}, {transform_indices = @transform_1, window_bounds = array<i64: 1, 16, 32>}, {transform_indices = @transform_2, window_bounds = array<i64: 1, 16, 32>}, {transform_indices = @transform_3, window_bounds = array<i64: 1, 8, 32>}, {pipeline_mode = #tpu.pipeline_mode<synchronous>, transform_indices = @transform_4, window_bounds = array<i64: 32, 64>}, {pipeline_mode = #tpu.pipeline_mode<synchronous>, transform_indices = @transform_5, window_bounds = array<i64: 32, 32>}, {pipeline_mode = #tpu.pipeline_mode<synchronous>, transform_indices = @transform_6, window_bounds = array<i64: 4, 8, 32>}, {pipeline_mode = #tpu.pipeline_mode<synchronous>, transform_indices = @transform_7, window_bounds = array<i64: 32, 32>}, {pipeline_mode = #tpu.pipeline_mode<synchronous>, transform_indices = @transform_8, window_bounds = array<i64: 32, 32>}, {pipeline_mode = #tpu.pipeline_mode<synchronous>, transform_indices = @transform_9, window_bounds = array<i64: 32, 32>}, {pipeline_mode = #tpu.pipeline_mode<synchronous>, transform_indices = @transform_10, window_bounds = array<i64: 4, 8, 32>}, {pipeline_mode = #tpu.pipeline_mode<synchronous>, transform_indices = @transform_11, window_bounds = array<i64: 32, 64>}, {pipeline_mode = #tpu.pipeline_mode<synchronous>, transform_indices = @transform_12, window_bounds = array<i64: 64, 32>}, {pipeline_mode = #tpu.pipeline_mode<synchronous>, transform_indices = @transform_13, window_bounds = array<i64: 13, 32>}, {pipeline_mode = #tpu.pipeline_mode<synchronous>, transform_indices = @transform_14, window_bounds = array<i64: 1, 64>}, {transform_indices = @transform_15, window_bounds = array<i64: 1, 8, 32>}]} {
    %c0 = arith.constant 0 : index
    %c0_0 = arith.constant 0 : index
    %c0_1 = arith.constant 0 : index
    %0 = vector.load %arg1[%c0, %c0_0, %c0_1] : memref<1x8x32xf32, #tpu.memory_space<vmem>>, vector<1x8x32xf32>
    %1 = vector.shape_cast %0 : vector<1x8x32xf32> to vector<8x32xf32>
    %c0_2 = arith.constant 0 : index
    %c0_3 = arith.constant 0 : index
    %c0_4 = arith.constant 0 : index
    %2 = vector.load %arg4[%c0_2, %c0_3, %c0_4] : memref<1x8x32xbf16, #tpu.memory_space<vmem>>, vector<1x8x32xbf16>
    %3 = vector.shape_cast %2 : vector<1x8x32xbf16> to vector<8x32xbf16>
    %c0_5 = arith.constant 0 : index
    %c0_6 = arith.constant 0 : index
    %4 = vector.load %arg14[%c0_5, %c0_6] : memref<13x32xf32, #tpu.memory_space<vmem>>, vector<13x32xf32>
    %5 = arith.extf %3 : vector<8x32xbf16> to vector<8x32xf32>
    %6 = arith.addf %1, %5 : vector<8x32xf32>
    %c0_7 = arith.constant 0 : index
    %c0_8 = arith.constant 0 : index
    %7 = vector.load %arg5[%c0_7, %c0_8] : memref<32x64xbf16, #tpu.memory_space<vmem>>, vector<32x64xbf16>
    %8 = arith.truncf %6 : vector<8x32xf32> to vector<8x32xbf16>
    %cst = arith.constant dense<0.000000e+00> : vector<8x64xf32>
    %9 = tpu.matmul %8, %7, %cst {dimension_numbers = #tpu.dot_dimension_numbers<[1], [0], [0], [1], [0, 0, 1, 1], [], []>} : vector<8x32xbf16>, vector<32x64xbf16>, vector<8x64xf32> -> vector<8x64xf32>
    %10 = vector.extract_strided_slice %9 {offsets = [0, 0], sizes = [8, 32], strides = [1, 1]} : vector<8x64xf32> to vector<8x32xf32>
    %11 = vector.extract_strided_slice %4 {offsets = [0, 0], sizes = [1, 32], strides = [1, 1]} : vector<13x32xf32> to vector<1x32xf32>
    %12 = vector.broadcast %11 : vector<1x32xf32> to vector<8x32xf32>
    %13 = arith.addf %10, %12 : vector<8x32xf32>
    %14 = vector.extract_strided_slice %9 {offsets = [0, 32], sizes = [8, 32], strides = [1, 1]} : vector<8x64xf32> to vector<8x32xf32>
    %c0_9 = arith.constant 0 : index
    %c0_10 = arith.constant 0 : index
    %15 = vector.load %arg6[%c0_9, %c0_10] : memref<32x32xbf16, #tpu.memory_space<vmem>>, vector<32x32xbf16>
    %16 = arith.truncf %1 : vector<8x32xf32> to vector<8x32xbf16>
    %cst_11 = arith.constant dense<0.000000e+00> : vector<8x32xf32>
    %17 = tpu.matmul %16, %15, %cst_11 {dimension_numbers = #tpu.dot_dimension_numbers<[1], [0], [0], [1], [0, 0, 1, 1], [], []>} : vector<8x32xbf16>, vector<32x32xbf16>, vector<8x32xf32> -> vector<8x32xf32>
    %18 = vector.extract_strided_slice %4 {offsets = [1, 0], sizes = [1, 32], strides = [1, 1]} : vector<13x32xf32> to vector<1x32xf32>
    %19 = vector.broadcast %18 : vector<1x32xf32> to vector<8x32xf32>
    %20 = arith.addf %17, %19 : vector<8x32xf32>
    %21 = vector.extract_strided_slice %4 {offsets = [2, 0], sizes = [1, 32], strides = [1, 1]} : vector<13x32xf32> to vector<1x32xf32>
    %22 = arith.truncf %13 : vector<8x32xf32> to vector<8x32xbf16>
    %23 = arith.truncf %14 : vector<8x32xf32> to vector<8x32xbf16>
    %24 = arith.truncf %20 : vector<8x32xf32> to vector<8x32xbf16>
    %cst_12 = arith.constant 0.000000e+00 : f32
    %25 = vector.broadcast %cst_12 : f32 to vector<8x32xf32>
    %26 = vector.extract_strided_slice %22 {offsets = [0, 0], sizes = [8, 8], strides = [1, 1]} : vector<8x32xbf16> to vector<8x8xbf16>
    %27 = vector.extract_strided_slice %23 {offsets = [0, 0], sizes = [8, 8], strides = [1, 1]} : vector<8x32xbf16> to vector<8x8xbf16>
    %cst_13 = arith.constant dense<0.000000e+00> : vector<8x8xf32>
    %28 = tpu.matmul %26, %27, %cst_13 {dimension_numbers = #tpu.dot_dimension_numbers<[1], [1], [0], [0], [0, 0, 1, 0], [], []>} : vector<8x8xbf16>, vector<8x8xbf16>, vector<8x8xf32> -> vector<8x8xf32>
    %cst_14 = arith.constant dense<0xFF800000> : vector<8xf32>
    %29 = vector.multi_reduction <maximumf>, %28, %cst_14 [1] : vector<8x8xf32> to vector<8xf32>
    %30 = vector.shape_cast %29 : vector<8xf32> to vector<8x1xf32>
    %31 = vector.broadcast %30 : vector<8x1xf32> to vector<8x8xf32>
    %32 = arith.subf %28, %31 : vector<8x8xf32>
    %33 = math.exp %32 : vector<8x8xf32>
    %cst_15 = arith.constant dense<0.000000e+00> : vector<8xf32>
    %34 = vector.multi_reduction <add>, %33, %cst_15 [1] : vector<8x8xf32> to vector<8xf32>
    %35 = vector.shape_cast %34 : vector<8xf32> to vector<8x1xf32>
    %36 = tpu.reciprocal %35 {approx = true} : vector<8x1xf32> -> vector<8x1xf32>
    %37 = vector.broadcast %36 : vector<8x1xf32> to vector<8x8xf32>
    %38 = arith.mulf %33, %37 : vector<8x8xf32>
    %39 = arith.truncf %38 : vector<8x8xf32> to vector<8x8xbf16>
    %40 = vector.extract_strided_slice %24 {offsets = [0, 0], sizes = [8, 8], strides = [1, 1]} : vector<8x32xbf16> to vector<8x8xbf16>
    %cst_16 = arith.constant dense<0.000000e+00> : vector<8x8xf32>
    %41 = tpu.matmul %39, %40, %cst_16 {dimension_numbers = #tpu.dot_dimension_numbers<[1], [0], [0], [1], [0, 0, 1, 1], [], []>} : vector<8x8xbf16>, vector<8x8xbf16>, vector<8x8xf32> -> vector<8x8xf32>
    %42 = arith.truncf %41 : vector<8x8xf32> to vector<8x8xbf16>
    %c0_17 = arith.constant 0 : index
    %c0_18 = arith.constant 0 : index
    %c0_19 = arith.constant 0 : index
    %43 = vector.load %arg7[%c0_17, %c0_18, %c0_19] : memref<4x8x32xbf16, #tpu.memory_space<vmem>>, vector<1x8x32xbf16>
    %44 = vector.shape_cast %43 : vector<1x8x32xbf16> to vector<8x32xbf16>
    %cst_20 = arith.constant dense<0.000000e+00> : vector<8x32xf32>
    %45 = tpu.matmul %42, %44, %cst_20 {dimension_numbers = #tpu.dot_dimension_numbers<[1], [0], [0], [1], [0, 0, 1, 1], [], []>} : vector<8x8xbf16>, vector<8x32xbf16>, vector<8x32xf32> -> vector<8x32xf32>
    %46 = arith.addf %25, %45 : vector<8x32xf32>
    %47 = vector.extract_strided_slice %22 {offsets = [0, 8], sizes = [8, 8], strides = [1, 1]} : vector<8x32xbf16> to vector<8x8xbf16>
    %48 = vector.extract_strided_slice %23 {offsets = [0, 8], sizes = [8, 8], strides = [1, 1]} : vector<8x32xbf16> to vector<8x8xbf16>
    %cst_21 = arith.constant dense<0.000000e+00> : vector<8x8xf32>
    %49 = tpu.matmul %47, %48, %cst_21 {dimension_numbers = #tpu.dot_dimension_numbers<[1], [1], [0], [0], [0, 0, 1, 0], [], []>} : vector<8x8xbf16>, vector<8x8xbf16>, vector<8x8xf32> -> vector<8x8xf32>
    %cst_22 = arith.constant dense<0xFF800000> : vector<8xf32>
    %50 = vector.multi_reduction <maximumf>, %49, %cst_22 [1] : vector<8x8xf32> to vector<8xf32>
    %51 = vector.shape_cast %50 : vector<8xf32> to vector<8x1xf32>
    %52 = vector.broadcast %51 : vector<8x1xf32> to vector<8x8xf32>
    %53 = arith.subf %49, %52 : vector<8x8xf32>
    %54 = math.exp %53 : vector<8x8xf32>
    %cst_23 = arith.constant dense<0.000000e+00> : vector<8xf32>
    %55 = vector.multi_reduction <add>, %54, %cst_23 [1] : vector<8x8xf32> to vector<8xf32>
    %56 = vector.shape_cast %55 : vector<8xf32> to vector<8x1xf32>
    %57 = tpu.reciprocal %56 {approx = true} : vector<8x1xf32> -> vector<8x1xf32>
    %58 = vector.broadcast %57 : vector<8x1xf32> to vector<8x8xf32>
    %59 = arith.mulf %54, %58 : vector<8x8xf32>
    %60 = arith.truncf %59 : vector<8x8xf32> to vector<8x8xbf16>
    %61 = vector.extract_strided_slice %24 {offsets = [0, 8], sizes = [8, 8], strides = [1, 1]} : vector<8x32xbf16> to vector<8x8xbf16>
    %cst_24 = arith.constant dense<0.000000e+00> : vector<8x8xf32>
    %62 = tpu.matmul %60, %61, %cst_24 {dimension_numbers = #tpu.dot_dimension_numbers<[1], [0], [0], [1], [0, 0, 1, 1], [], []>} : vector<8x8xbf16>, vector<8x8xbf16>, vector<8x8xf32> -> vector<8x8xf32>
    %63 = arith.truncf %62 : vector<8x8xf32> to vector<8x8xbf16>
    %c1 = arith.constant 1 : index
    %c0_25 = arith.constant 0 : index
    %c0_26 = arith.constant 0 : index
    %64 = vector.load %arg7[%c1, %c0_25, %c0_26] : memref<4x8x32xbf16, #tpu.memory_space<vmem>>, vector<1x8x32xbf16>
    %65 = vector.shape_cast %64 : vector<1x8x32xbf16> to vector<8x32xbf16>
    %cst_27 = arith.constant dense<0.000000e+00> : vector<8x32xf32>
    %66 = tpu.matmul %63, %65, %cst_27 {dimension_numbers = #tpu.dot_dimension_numbers<[1], [0], [0], [1], [0, 0, 1, 1], [], []>} : vector<8x8xbf16>, vector<8x32xbf16>, vector<8x32xf32> -> vector<8x32xf32>
    %67 = arith.addf %46, %66 : vector<8x32xf32>
    %68 = vector.extract_strided_slice %22 {offsets = [0, 16], sizes = [8, 8], strides = [1, 1]} : vector<8x32xbf16> to vector<8x8xbf16>
    %69 = vector.extract_strided_slice %23 {offsets = [0, 16], sizes = [8, 8], strides = [1, 1]} : vector<8x32xbf16> to vector<8x8xbf16>
    %cst_28 = arith.constant dense<0.000000e+00> : vector<8x8xf32>
    %70 = tpu.matmul %68, %69, %cst_28 {dimension_numbers = #tpu.dot_dimension_numbers<[1], [1], [0], [0], [0, 0, 1, 0], [], []>} : vector<8x8xbf16>, vector<8x8xbf16>, vector<8x8xf32> -> vector<8x8xf32>
    %cst_29 = arith.constant dense<0xFF800000> : vector<8xf32>
    %71 = vector.multi_reduction <maximumf>, %70, %cst_29 [1] : vector<8x8xf32> to vector<8xf32>
    %72 = vector.shape_cast %71 : vector<8xf32> to vector<8x1xf32>
    %73 = vector.broadcast %72 : vector<8x1xf32> to vector<8x8xf32>
    %74 = arith.subf %70, %73 : vector<8x8xf32>
    %75 = math.exp %74 : vector<8x8xf32>
    %cst_30 = arith.constant dense<0.000000e+00> : vector<8xf32>
    %76 = vector.multi_reduction <add>, %75, %cst_30 [1] : vector<8x8xf32> to vector<8xf32>
    %77 = vector.shape_cast %76 : vector<8xf32> to vector<8x1xf32>
    %78 = tpu.reciprocal %77 {approx = true} : vector<8x1xf32> -> vector<8x1xf32>
    %79 = vector.broadcast %78 : vector<8x1xf32> to vector<8x8xf32>
    %80 = arith.mulf %75, %79 : vector<8x8xf32>
    %81 = arith.truncf %80 : vector<8x8xf32> to vector<8x8xbf16>
    %82 = vector.extract_strided_slice %24 {offsets = [0, 16], sizes = [8, 8], strides = [1, 1]} : vector<8x32xbf16> to vector<8x8xbf16>
    %cst_31 = arith.constant dense<0.000000e+00> : vector<8x8xf32>
    %83 = tpu.matmul %81, %82, %cst_31 {dimension_numbers = #tpu.dot_dimension_numbers<[1], [0], [0], [1], [0, 0, 1, 1], [], []>} : vector<8x8xbf16>, vector<8x8xbf16>, vector<8x8xf32> -> vector<8x8xf32>
    %84 = arith.truncf %83 : vector<8x8xf32> to vector<8x8xbf16>
    %c2 = arith.constant 2 : index
    %c0_32 = arith.constant 0 : index
    %c0_33 = arith.constant 0 : index
    %85 = vector.load %arg7[%c2, %c0_32, %c0_33] : memref<4x8x32xbf16, #tpu.memory_space<vmem>>, vector<1x8x32xbf16>
    %86 = vector.shape_cast %85 : vector<1x8x32xbf16> to vector<8x32xbf16>
    %cst_34 = arith.constant dense<0.000000e+00> : vector<8x32xf32>
    %87 = tpu.matmul %84, %86, %cst_34 {dimension_numbers = #tpu.dot_dimension_numbers<[1], [0], [0], [1], [0, 0, 1, 1], [], []>} : vector<8x8xbf16>, vector<8x32xbf16>, vector<8x32xf32> -> vector<8x32xf32>
    %88 = arith.addf %67, %87 : vector<8x32xf32>
    %89 = vector.extract_strided_slice %22 {offsets = [0, 24], sizes = [8, 8], strides = [1, 1]} : vector<8x32xbf16> to vector<8x8xbf16>
    %90 = vector.extract_strided_slice %23 {offsets = [0, 24], sizes = [8, 8], strides = [1, 1]} : vector<8x32xbf16> to vector<8x8xbf16>
    %cst_35 = arith.constant dense<0.000000e+00> : vector<8x8xf32>
    %91 = tpu.matmul %89, %90, %cst_35 {dimension_numbers = #tpu.dot_dimension_numbers<[1], [1], [0], [0], [0, 0, 1, 0], [], []>} : vector<8x8xbf16>, vector<8x8xbf16>, vector<8x8xf32> -> vector<8x8xf32>
    %cst_36 = arith.constant dense<0xFF800000> : vector<8xf32>
    %92 = vector.multi_reduction <maximumf>, %91, %cst_36 [1] : vector<8x8xf32> to vector<8xf32>
    %93 = vector.shape_cast %92 : vector<8xf32> to vector<8x1xf32>
    %94 = vector.broadcast %93 : vector<8x1xf32> to vector<8x8xf32>
    %95 = arith.subf %91, %94 : vector<8x8xf32>
    %96 = math.exp %95 : vector<8x8xf32>
    %cst_37 = arith.constant dense<0.000000e+00> : vector<8xf32>
    %97 = vector.multi_reduction <add>, %96, %cst_37 [1] : vector<8x8xf32> to vector<8xf32>
    %98 = vector.shape_cast %97 : vector<8xf32> to vector<8x1xf32>
    %99 = tpu.reciprocal %98 {approx = true} : vector<8x1xf32> -> vector<8x1xf32>
    %100 = vector.broadcast %99 : vector<8x1xf32> to vector<8x8xf32>
    %101 = arith.mulf %96, %100 : vector<8x8xf32>
    %102 = arith.truncf %101 : vector<8x8xf32> to vector<8x8xbf16>
    %103 = vector.extract_strided_slice %24 {offsets = [0, 24], sizes = [8, 8], strides = [1, 1]} : vector<8x32xbf16> to vector<8x8xbf16>
    %cst_38 = arith.constant dense<0.000000e+00> : vector<8x8xf32>
    %104 = tpu.matmul %102, %103, %cst_38 {dimension_numbers = #tpu.dot_dimension_numbers<[1], [0], [0], [1], [0, 0, 1, 1], [], []>} : vector<8x8xbf16>, vector<8x8xbf16>, vector<8x8xf32> -> vector<8x8xf32>
    %105 = arith.truncf %104 : vector<8x8xf32> to vector<8x8xbf16>
    %c3 = arith.constant 3 : index
    %c0_39 = arith.constant 0 : index
    %c0_40 = arith.constant 0 : index
    %106 = vector.load %arg7[%c3, %c0_39, %c0_40] : memref<4x8x32xbf16, #tpu.memory_space<vmem>>, vector<1x8x32xbf16>
    %107 = vector.shape_cast %106 : vector<1x8x32xbf16> to vector<8x32xbf16>
    %cst_41 = arith.constant dense<0.000000e+00> : vector<8x32xf32>
    %108 = tpu.matmul %105, %107, %cst_41 {dimension_numbers = #tpu.dot_dimension_numbers<[1], [0], [0], [1], [0, 0, 1, 1], [], []>} : vector<8x8xbf16>, vector<8x32xbf16>, vector<8x32xf32> -> vector<8x32xf32>
    %109 = arith.addf %88, %108 : vector<8x32xf32>
    %110 = vector.broadcast %21 : vector<1x32xf32> to vector<8x32xf32>
    %111 = arith.addf %109, %110 : vector<8x32xf32>
    %112 = arith.addf %1, %111 : vector<8x32xf32>
    %113 = vector.extract_strided_slice %4 {offsets = [7, 0], sizes = [1, 32], strides = [1, 1]} : vector<13x32xf32> to vector<1x32xf32>
    %114 = vector.extract_strided_slice %4 {offsets = [10, 0], sizes = [1, 32], strides = [1, 1]} : vector<13x32xf32> to vector<1x32xf32>
    %cst_42 = arith.constant dense<0.000000e+00> : vector<8xf32>
    %115 = vector.multi_reduction <add>, %112, %cst_42 [1] : vector<8x32xf32> to vector<8xf32>
    %116 = vector.shape_cast %115 : vector<8xf32> to vector<8x1xf32>
    %cst_43 = arith.constant 3.200000e+01 : f32
    %117 = vector.broadcast %cst_43 : f32 to vector<8x1xf32>
    %118 = arith.divf %116, %117 : vector<8x1xf32>
    %119 = vector.broadcast %118 : vector<8x1xf32> to vector<8x32xf32>
    %120 = arith.subf %112, %119 : vector<8x32xf32>
    %121 = arith.mulf %120, %120 : vector<8x32xf32>
    %cst_44 = arith.constant dense<0.000000e+00> : vector<8xf32>
    %122 = vector.multi_reduction <add>, %121, %cst_44 [1] : vector<8x32xf32> to vector<8xf32>
    %123 = vector.shape_cast %122 : vector<8xf32> to vector<8x1xf32>
    %cst_45 = arith.constant 3.200000e+01 : f32
    %124 = vector.broadcast %cst_45 : f32 to vector<8x1xf32>
    %125 = arith.divf %123, %124 : vector<8x1xf32>
    %126 = vector.broadcast %118 : vector<8x1xf32> to vector<8x32xf32>
    %127 = arith.subf %112, %126 : vector<8x32xf32>
    %cst_46 = arith.constant 9.99999974E-6 : f32
    %128 = vector.broadcast %cst_46 : f32 to vector<8x1xf32>
    %129 = arith.addf %125, %128 : vector<8x1xf32>
    %130 = math.rsqrt %129 : vector<8x1xf32>
    %131 = vector.broadcast %130 : vector<8x1xf32> to vector<8x32xf32>
    %132 = arith.mulf %127, %131 : vector<8x32xf32>
    %133 = vector.broadcast %113 : vector<1x32xf32> to vector<8x32xf32>
    %134 = arith.mulf %132, %133 : vector<8x32xf32>
    %135 = vector.broadcast %114 : vector<1x32xf32> to vector<8x32xf32>
    %136 = arith.addf %134, %135 : vector<8x32xf32>
    %137 = arith.extf %3 : vector<8x32xbf16> to vector<8x32xf32>
    %138 = arith.addf %136, %137 : vector<8x32xf32>
    %c0_47 = arith.constant 0 : index
    %c0_48 = arith.constant 0 : index
    %139 = vector.load %arg8[%c0_47, %c0_48] : memref<32x32xbf16, #tpu.memory_space<vmem>>, vector<32x32xbf16>
    %140 = arith.truncf %138 : vector<8x32xf32> to vector<8x32xbf16>
    %cst_49 = arith.constant dense<0.000000e+00> : vector<8x32xf32>
    %141 = tpu.matmul %140, %139, %cst_49 {dimension_numbers = #tpu.dot_dimension_numbers<[1], [0], [0], [1], [0, 0, 1, 1], [], []>} : vector<8x32xbf16>, vector<32x32xbf16>, vector<8x32xf32> -> vector<8x32xf32>
    %142 = vector.extract_strided_slice %4 {offsets = [3, 0], sizes = [1, 32], strides = [1, 1]} : vector<13x32xf32> to vector<1x32xf32>
    %143 = vector.broadcast %142 : vector<1x32xf32> to vector<8x32xf32>
    %144 = arith.addf %141, %143 : vector<8x32xf32>
    %c0_50 = arith.constant 0 : index
    %c0_51 = arith.constant 0 : index
    %c0_52 = arith.constant 0 : index
    %145 = vector.load %arg2[%c0_50, %c0_51, %c0_52] : memref<1x16x32xbf16, #tpu.memory_space<vmem>>, vector<1x16x32xbf16>
    %146 = vector.shape_cast %145 : vector<1x16x32xbf16> to vector<16x32xbf16>
    %c0_53 = arith.constant 0 : index
    %c0_54 = arith.constant 0 : index
    %147 = vector.load %arg9[%c0_53, %c0_54] : memref<32x32xbf16, #tpu.memory_space<vmem>>, vector<32x32xbf16>
    %cst_55 = arith.constant dense<0.000000e+00> : vector<16x32xf32>
    %148 = tpu.matmul %146, %147, %cst_55 {dimension_numbers = #tpu.dot_dimension_numbers<[1], [0], [0], [1], [0, 0, 1, 1], [], []>} : vector<16x32xbf16>, vector<32x32xbf16>, vector<16x32xf32> -> vector<16x32xf32>
    %c0_56 = arith.constant 0 : index
    %c0_57 = arith.constant 0 : index
    %c0_58 = arith.constant 0 : index
    %149 = vector.load %arg3[%c0_56, %c0_57, %c0_58] : memref<1x16x32xbf16, #tpu.memory_space<vmem>>, vector<1x16x32xbf16>
    %150 = vector.shape_cast %149 : vector<1x16x32xbf16> to vector<16x32xbf16>
    %c0_59 = arith.constant 0 : index
    %c0_60 = arith.constant 0 : index
    %151 = vector.load %arg10[%c0_59, %c0_60] : memref<32x32xbf16, #tpu.memory_space<vmem>>, vector<32x32xbf16>
    %cst_61 = arith.constant dense<0.000000e+00> : vector<16x32xf32>
    %152 = tpu.matmul %150, %151, %cst_61 {dimension_numbers = #tpu.dot_dimension_numbers<[1], [0], [0], [1], [0, 0, 1, 1], [], []>} : vector<16x32xbf16>, vector<32x32xbf16>, vector<16x32xf32> -> vector<16x32xf32>
    %153 = vector.extract_strided_slice %4 {offsets = [4, 0], sizes = [1, 32], strides = [1, 1]} : vector<13x32xf32> to vector<1x32xf32>
    %154 = vector.broadcast %153 : vector<1x32xf32> to vector<16x32xf32>
    %155 = arith.addf %152, %154 : vector<16x32xf32>
    %156 = vector.extract_strided_slice %4 {offsets = [5, 0], sizes = [1, 32], strides = [1, 1]} : vector<13x32xf32> to vector<1x32xf32>
    %157 = arith.truncf %144 : vector<8x32xf32> to vector<8x32xbf16>
    %158 = arith.truncf %148 : vector<16x32xf32> to vector<16x32xbf16>
    %159 = arith.truncf %155 : vector<16x32xf32> to vector<16x32xbf16>
    %cst_62 = arith.constant 0.000000e+00 : f32
    %160 = vector.broadcast %cst_62 : f32 to vector<8x32xf32>
    %161 = vector.extract_strided_slice %157 {offsets = [0, 0], sizes = [8, 8], strides = [1, 1]} : vector<8x32xbf16> to vector<8x8xbf16>
    %162 = vector.extract_strided_slice %158 {offsets = [0, 0], sizes = [16, 8], strides = [1, 1]} : vector<16x32xbf16> to vector<16x8xbf16>
    %cst_63 = arith.constant dense<0.000000e+00> : vector<8x16xf32>
    %163 = tpu.matmul %161, %162, %cst_63 {dimension_numbers = #tpu.dot_dimension_numbers<[1], [1], [0], [0], [0, 0, 1, 0], [], []>} : vector<8x8xbf16>, vector<16x8xbf16>, vector<8x16xf32> -> vector<8x16xf32>
    %cst_64 = arith.constant dense<0xFF800000> : vector<8xf32>
    %164 = vector.multi_reduction <maximumf>, %163, %cst_64 [1] : vector<8x16xf32> to vector<8xf32>
    %165 = vector.shape_cast %164 : vector<8xf32> to vector<8x1xf32>
    %166 = vector.broadcast %165 : vector<8x1xf32> to vector<8x16xf32>
    %167 = arith.subf %163, %166 : vector<8x16xf32>
    %168 = math.exp %167 : vector<8x16xf32>
    %cst_65 = arith.constant dense<0.000000e+00> : vector<8xf32>
    %169 = vector.multi_reduction <add>, %168, %cst_65 [1] : vector<8x16xf32> to vector<8xf32>
    %170 = vector.shape_cast %169 : vector<8xf32> to vector<8x1xf32>
    %171 = tpu.reciprocal %170 {approx = true} : vector<8x1xf32> -> vector<8x1xf32>
    %172 = vector.broadcast %171 : vector<8x1xf32> to vector<8x16xf32>
    %173 = arith.mulf %168, %172 : vector<8x16xf32>
    %174 = arith.truncf %173 : vector<8x16xf32> to vector<8x16xbf16>
    %175 = vector.extract_strided_slice %159 {offsets = [0, 0], sizes = [16, 8], strides = [1, 1]} : vector<16x32xbf16> to vector<16x8xbf16>
    %cst_66 = arith.constant dense<0.000000e+00> : vector<8x8xf32>
    %176 = tpu.matmul %174, %175, %cst_66 {dimension_numbers = #tpu.dot_dimension_numbers<[1], [0], [0], [1], [0, 0, 1, 1], [], []>} : vector<8x16xbf16>, vector<16x8xbf16>, vector<8x8xf32> -> vector<8x8xf32>
    %177 = arith.truncf %176 : vector<8x8xf32> to vector<8x8xbf16>
    %c0_67 = arith.constant 0 : index
    %c0_68 = arith.constant 0 : index
    %c0_69 = arith.constant 0 : index
    %178 = vector.load %arg11[%c0_67, %c0_68, %c0_69] : memref<4x8x32xbf16, #tpu.memory_space<vmem>>, vector<1x8x32xbf16>
    %179 = vector.shape_cast %178 : vector<1x8x32xbf16> to vector<8x32xbf16>
    %cst_70 = arith.constant dense<0.000000e+00> : vector<8x32xf32>
    %180 = tpu.matmul %177, %179, %cst_70 {dimension_numbers = #tpu.dot_dimension_numbers<[1], [0], [0], [1], [0, 0, 1, 1], [], []>} : vector<8x8xbf16>, vector<8x32xbf16>, vector<8x32xf32> -> vector<8x32xf32>
    %181 = arith.addf %160, %180 : vector<8x32xf32>
    %182 = vector.extract_strided_slice %157 {offsets = [0, 8], sizes = [8, 8], strides = [1, 1]} : vector<8x32xbf16> to vector<8x8xbf16>
    %183 = vector.extract_strided_slice %158 {offsets = [0, 8], sizes = [16, 8], strides = [1, 1]} : vector<16x32xbf16> to vector<16x8xbf16>
    %cst_71 = arith.constant dense<0.000000e+00> : vector<8x16xf32>
    %184 = tpu.matmul %182, %183, %cst_71 {dimension_numbers = #tpu.dot_dimension_numbers<[1], [1], [0], [0], [0, 0, 1, 0], [], []>} : vector<8x8xbf16>, vector<16x8xbf16>, vector<8x16xf32> -> vector<8x16xf32>
    %cst_72 = arith.constant dense<0xFF800000> : vector<8xf32>
    %185 = vector.multi_reduction <maximumf>, %184, %cst_72 [1] : vector<8x16xf32> to vector<8xf32>
    %186 = vector.shape_cast %185 : vector<8xf32> to vector<8x1xf32>
    %187 = vector.broadcast %186 : vector<8x1xf32> to vector<8x16xf32>
    %188 = arith.subf %184, %187 : vector<8x16xf32>
    %189 = math.exp %188 : vector<8x16xf32>
    %cst_73 = arith.constant dense<0.000000e+00> : vector<8xf32>
    %190 = vector.multi_reduction <add>, %189, %cst_73 [1] : vector<8x16xf32> to vector<8xf32>
    %191 = vector.shape_cast %190 : vector<8xf32> to vector<8x1xf32>
    %192 = tpu.reciprocal %191 {approx = true} : vector<8x1xf32> -> vector<8x1xf32>
    %193 = vector.broadcast %192 : vector<8x1xf32> to vector<8x16xf32>
    %194 = arith.mulf %189, %193 : vector<8x16xf32>
    %195 = arith.truncf %194 : vector<8x16xf32> to vector<8x16xbf16>
    %196 = vector.extract_strided_slice %159 {offsets = [0, 8], sizes = [16, 8], strides = [1, 1]} : vector<16x32xbf16> to vector<16x8xbf16>
    %cst_74 = arith.constant dense<0.000000e+00> : vector<8x8xf32>
    %197 = tpu.matmul %195, %196, %cst_74 {dimension_numbers = #tpu.dot_dimension_numbers<[1], [0], [0], [1], [0, 0, 1, 1], [], []>} : vector<8x16xbf16>, vector<16x8xbf16>, vector<8x8xf32> -> vector<8x8xf32>
    %198 = arith.truncf %197 : vector<8x8xf32> to vector<8x8xbf16>
    %c1_75 = arith.constant 1 : index
    %c0_76 = arith.constant 0 : index
    %c0_77 = arith.constant 0 : index
    %199 = vector.load %arg11[%c1_75, %c0_76, %c0_77] : memref<4x8x32xbf16, #tpu.memory_space<vmem>>, vector<1x8x32xbf16>
    %200 = vector.shape_cast %199 : vector<1x8x32xbf16> to vector<8x32xbf16>
    %cst_78 = arith.constant dense<0.000000e+00> : vector<8x32xf32>
    %201 = tpu.matmul %198, %200, %cst_78 {dimension_numbers = #tpu.dot_dimension_numbers<[1], [0], [0], [1], [0, 0, 1, 1], [], []>} : vector<8x8xbf16>, vector<8x32xbf16>, vector<8x32xf32> -> vector<8x32xf32>
    %202 = arith.addf %181, %201 : vector<8x32xf32>
    %203 = vector.extract_strided_slice %157 {offsets = [0, 16], sizes = [8, 8], strides = [1, 1]} : vector<8x32xbf16> to vector<8x8xbf16>
    %204 = vector.extract_strided_slice %158 {offsets = [0, 16], sizes = [16, 8], strides = [1, 1]} : vector<16x32xbf16> to vector<16x8xbf16>
    %cst_79 = arith.constant dense<0.000000e+00> : vector<8x16xf32>
    %205 = tpu.matmul %203, %204, %cst_79 {dimension_numbers = #tpu.dot_dimension_numbers<[1], [1], [0], [0], [0, 0, 1, 0], [], []>} : vector<8x8xbf16>, vector<16x8xbf16>, vector<8x16xf32> -> vector<8x16xf32>
    %cst_80 = arith.constant dense<0xFF800000> : vector<8xf32>
    %206 = vector.multi_reduction <maximumf>, %205, %cst_80 [1] : vector<8x16xf32> to vector<8xf32>
    %207 = vector.shape_cast %206 : vector<8xf32> to vector<8x1xf32>
    %208 = vector.broadcast %207 : vector<8x1xf32> to vector<8x16xf32>
    %209 = arith.subf %205, %208 : vector<8x16xf32>
    %210 = math.exp %209 : vector<8x16xf32>
    %cst_81 = arith.constant dense<0.000000e+00> : vector<8xf32>
    %211 = vector.multi_reduction <add>, %210, %cst_81 [1] : vector<8x16xf32> to vector<8xf32>
    %212 = vector.shape_cast %211 : vector<8xf32> to vector<8x1xf32>
    %213 = tpu.reciprocal %212 {approx = true} : vector<8x1xf32> -> vector<8x1xf32>
    %214 = vector.broadcast %213 : vector<8x1xf32> to vector<8x16xf32>
    %215 = arith.mulf %210, %214 : vector<8x16xf32>
    %216 = arith.truncf %215 : vector<8x16xf32> to vector<8x16xbf16>
    %217 = vector.extract_strided_slice %159 {offsets = [0, 16], sizes = [16, 8], strides = [1, 1]} : vector<16x32xbf16> to vector<16x8xbf16>
    %cst_82 = arith.constant dense<0.000000e+00> : vector<8x8xf32>
    %218 = tpu.matmul %216, %217, %cst_82 {dimension_numbers = #tpu.dot_dimension_numbers<[1], [0], [0], [1], [0, 0, 1, 1], [], []>} : vector<8x16xbf16>, vector<16x8xbf16>, vector<8x8xf32> -> vector<8x8xf32>
    %219 = arith.truncf %218 : vector<8x8xf32> to vector<8x8xbf16>
    %c2_83 = arith.constant 2 : index
    %c0_84 = arith.constant 0 : index
    %c0_85 = arith.constant 0 : index
    %220 = vector.load %arg11[%c2_83, %c0_84, %c0_85] : memref<4x8x32xbf16, #tpu.memory_space<vmem>>, vector<1x8x32xbf16>
    %221 = vector.shape_cast %220 : vector<1x8x32xbf16> to vector<8x32xbf16>
    %cst_86 = arith.constant dense<0.000000e+00> : vector<8x32xf32>
    %222 = tpu.matmul %219, %221, %cst_86 {dimension_numbers = #tpu.dot_dimension_numbers<[1], [0], [0], [1], [0, 0, 1, 1], [], []>} : vector<8x8xbf16>, vector<8x32xbf16>, vector<8x32xf32> -> vector<8x32xf32>
    %223 = arith.addf %202, %222 : vector<8x32xf32>
    %224 = vector.extract_strided_slice %157 {offsets = [0, 24], sizes = [8, 8], strides = [1, 1]} : vector<8x32xbf16> to vector<8x8xbf16>
    %225 = vector.extract_strided_slice %158 {offsets = [0, 24], sizes = [16, 8], strides = [1, 1]} : vector<16x32xbf16> to vector<16x8xbf16>
    %cst_87 = arith.constant dense<0.000000e+00> : vector<8x16xf32>
    %226 = tpu.matmul %224, %225, %cst_87 {dimension_numbers = #tpu.dot_dimension_numbers<[1], [1], [0], [0], [0, 0, 1, 0], [], []>} : vector<8x8xbf16>, vector<16x8xbf16>, vector<8x16xf32> -> vector<8x16xf32>
    %cst_88 = arith.constant dense<0xFF800000> : vector<8xf32>
    %227 = vector.multi_reduction <maximumf>, %226, %cst_88 [1] : vector<8x16xf32> to vector<8xf32>
    %228 = vector.shape_cast %227 : vector<8xf32> to vector<8x1xf32>
    %229 = vector.broadcast %228 : vector<8x1xf32> to vector<8x16xf32>
    %230 = arith.subf %226, %229 : vector<8x16xf32>
    %231 = math.exp %230 : vector<8x16xf32>
    %cst_89 = arith.constant dense<0.000000e+00> : vector<8xf32>
    %232 = vector.multi_reduction <add>, %231, %cst_89 [1] : vector<8x16xf32> to vector<8xf32>
    %233 = vector.shape_cast %232 : vector<8xf32> to vector<8x1xf32>
    %234 = tpu.reciprocal %233 {approx = true} : vector<8x1xf32> -> vector<8x1xf32>
    %235 = vector.broadcast %234 : vector<8x1xf32> to vector<8x16xf32>
    %236 = arith.mulf %231, %235 : vector<8x16xf32>
    %237 = arith.truncf %236 : vector<8x16xf32> to vector<8x16xbf16>
    %238 = vector.extract_strided_slice %159 {offsets = [0, 24], sizes = [16, 8], strides = [1, 1]} : vector<16x32xbf16> to vector<16x8xbf16>
    %cst_90 = arith.constant dense<0.000000e+00> : vector<8x8xf32>
    %239 = tpu.matmul %237, %238, %cst_90 {dimension_numbers = #tpu.dot_dimension_numbers<[1], [0], [0], [1], [0, 0, 1, 1], [], []>} : vector<8x16xbf16>, vector<16x8xbf16>, vector<8x8xf32> -> vector<8x8xf32>
    %240 = arith.truncf %239 : vector<8x8xf32> to vector<8x8xbf16>
    %c3_91 = arith.constant 3 : index
    %c0_92 = arith.constant 0 : index
    %c0_93 = arith.constant 0 : index
    %241 = vector.load %arg11[%c3_91, %c0_92, %c0_93] : memref<4x8x32xbf16, #tpu.memory_space<vmem>>, vector<1x8x32xbf16>
    %242 = vector.shape_cast %241 : vector<1x8x32xbf16> to vector<8x32xbf16>
    %cst_94 = arith.constant dense<0.000000e+00> : vector<8x32xf32>
    %243 = tpu.matmul %240, %242, %cst_94 {dimension_numbers = #tpu.dot_dimension_numbers<[1], [0], [0], [1], [0, 0, 1, 1], [], []>} : vector<8x8xbf16>, vector<8x32xbf16>, vector<8x32xf32> -> vector<8x32xf32>
    %244 = arith.addf %223, %243 : vector<8x32xf32>
    %245 = vector.broadcast %156 : vector<1x32xf32> to vector<8x32xf32>
    %246 = arith.addf %244, %245 : vector<8x32xf32>
    %247 = arith.addf %136, %246 : vector<8x32xf32>
    %248 = vector.extract_strided_slice %4 {offsets = [8, 0], sizes = [1, 32], strides = [1, 1]} : vector<13x32xf32> to vector<1x32xf32>
    %249 = vector.extract_strided_slice %4 {offsets = [11, 0], sizes = [1, 32], strides = [1, 1]} : vector<13x32xf32> to vector<1x32xf32>
    %cst_95 = arith.constant dense<0.000000e+00> : vector<8xf32>
    %250 = vector.multi_reduction <add>, %247, %cst_95 [1] : vector<8x32xf32> to vector<8xf32>
    %251 = vector.shape_cast %250 : vector<8xf32> to vector<8x1xf32>
    %cst_96 = arith.constant 3.200000e+01 : f32
    %252 = vector.broadcast %cst_96 : f32 to vector<8x1xf32>
    %253 = arith.divf %251, %252 : vector<8x1xf32>
    %254 = vector.broadcast %253 : vector<8x1xf32> to vector<8x32xf32>
    %255 = arith.subf %247, %254 : vector<8x32xf32>
    %256 = arith.mulf %255, %255 : vector<8x32xf32>
    %cst_97 = arith.constant dense<0.000000e+00> : vector<8xf32>
    %257 = vector.multi_reduction <add>, %256, %cst_97 [1] : vector<8x32xf32> to vector<8xf32>
    %258 = vector.shape_cast %257 : vector<8xf32> to vector<8x1xf32>
    %cst_98 = arith.constant 3.200000e+01 : f32
    %259 = vector.broadcast %cst_98 : f32 to vector<8x1xf32>
    %260 = arith.divf %258, %259 : vector<8x1xf32>
    %261 = vector.broadcast %253 : vector<8x1xf32> to vector<8x32xf32>
    %262 = arith.subf %247, %261 : vector<8x32xf32>
    %cst_99 = arith.constant 9.99999974E-6 : f32
    %263 = vector.broadcast %cst_99 : f32 to vector<8x1xf32>
    %264 = arith.addf %260, %263 : vector<8x1xf32>
    %265 = math.rsqrt %264 : vector<8x1xf32>
    %266 = vector.broadcast %265 : vector<8x1xf32> to vector<8x32xf32>
    %267 = arith.mulf %262, %266 : vector<8x32xf32>
    %268 = vector.broadcast %248 : vector<1x32xf32> to vector<8x32xf32>
    %269 = arith.mulf %267, %268 : vector<8x32xf32>
    %270 = vector.broadcast %249 : vector<1x32xf32> to vector<8x32xf32>
    %271 = arith.addf %269, %270 : vector<8x32xf32>
    %c0_100 = arith.constant 0 : index
    %c0_101 = arith.constant 0 : index
    %272 = vector.load %arg12[%c0_100, %c0_101] : memref<32x64xbf16, #tpu.memory_space<vmem>>, vector<32x64xbf16>
    %273 = arith.truncf %271 : vector<8x32xf32> to vector<8x32xbf16>
    %cst_102 = arith.constant dense<0.000000e+00> : vector<8x64xf32>
    %274 = tpu.matmul %273, %272, %cst_102 {dimension_numbers = #tpu.dot_dimension_numbers<[1], [0], [0], [1], [0, 0, 1, 1], [], []>} : vector<8x32xbf16>, vector<32x64xbf16>, vector<8x64xf32> -> vector<8x64xf32>
    %c0_103 = arith.constant 0 : index
    %c0_104 = arith.constant 0 : index
    %275 = vector.load %arg15[%c0_103, %c0_104] : memref<1x64xf32, #tpu.memory_space<vmem>>, vector<1x64xf32>
    %276 = vector.broadcast %275 : vector<1x64xf32> to vector<8x64xf32>
    %277 = arith.addf %274, %276 : vector<8x64xf32>
    %cst_105 = arith.constant 0.000000e+00 : f32
    %278 = vector.broadcast %cst_105 : f32 to vector<8x64xf32>
    %279 = arith.maximumf %277, %278 : vector<8x64xf32>
    %c0_106 = arith.constant 0 : index
    %c0_107 = arith.constant 0 : index
    %280 = vector.load %arg13[%c0_106, %c0_107] : memref<64x32xbf16, #tpu.memory_space<vmem>>, vector<64x32xbf16>
    %281 = arith.truncf %279 : vector<8x64xf32> to vector<8x64xbf16>
    %cst_108 = arith.constant dense<0.000000e+00> : vector<8x32xf32>
    %282 = tpu.matmul %281, %280, %cst_108 {dimension_numbers = #tpu.dot_dimension_numbers<[1], [0], [0], [1], [0, 0, 1, 1], [], []>} : vector<8x64xbf16>, vector<64x32xbf16>, vector<8x32xf32> -> vector<8x32xf32>
    %283 = vector.extract_strided_slice %4 {offsets = [6, 0], sizes = [1, 32], strides = [1, 1]} : vector<13x32xf32> to vector<1x32xf32>
    %284 = vector.broadcast %283 : vector<1x32xf32> to vector<8x32xf32>
    %285 = arith.addf %282, %284 : vector<8x32xf32>
    %286 = arith.addf %271, %285 : vector<8x32xf32>
    %287 = vector.extract_strided_slice %4 {offsets = [9, 0], sizes = [1, 32], strides = [1, 1]} : vector<13x32xf32> to vector<1x32xf32>
    %288 = vector.extract_strided_slice %4 {offsets = [12, 0], sizes = [1, 32], strides = [1, 1]} : vector<13x32xf32> to vector<1x32xf32>
    %cst_109 = arith.constant dense<0.000000e+00> : vector<8xf32>
    %289 = vector.multi_reduction <add>, %286, %cst_109 [1] : vector<8x32xf32> to vector<8xf32>
    %290 = vector.shape_cast %289 : vector<8xf32> to vector<8x1xf32>
    %cst_110 = arith.constant 3.200000e+01 : f32
    %291 = vector.broadcast %cst_110 : f32 to vector<8x1xf32>
    %292 = arith.divf %290, %291 : vector<8x1xf32>
    %293 = vector.broadcast %292 : vector<8x1xf32> to vector<8x32xf32>
    %294 = arith.subf %286, %293 : vector<8x32xf32>
    %295 = arith.mulf %294, %294 : vector<8x32xf32>
    %cst_111 = arith.constant dense<0.000000e+00> : vector<8xf32>
    %296 = vector.multi_reduction <add>, %295, %cst_111 [1] : vector<8x32xf32> to vector<8xf32>
    %297 = vector.shape_cast %296 : vector<8xf32> to vector<8x1xf32>
    %cst_112 = arith.constant 3.200000e+01 : f32
    %298 = vector.broadcast %cst_112 : f32 to vector<8x1xf32>
    %299 = arith.divf %297, %298 : vector<8x1xf32>
    %300 = vector.broadcast %292 : vector<8x1xf32> to vector<8x32xf32>
    %301 = arith.subf %286, %300 : vector<8x32xf32>
    %cst_113 = arith.constant 9.99999974E-6 : f32
    %302 = vector.broadcast %cst_113 : f32 to vector<8x1xf32>
    %303 = arith.addf %299, %302 : vector<8x1xf32>
    %304 = math.rsqrt %303 : vector<8x1xf32>
    %305 = vector.broadcast %304 : vector<8x1xf32> to vector<8x32xf32>
    %306 = arith.mulf %301, %305 : vector<8x32xf32>
    %307 = vector.broadcast %287 : vector<1x32xf32> to vector<8x32xf32>
    %308 = arith.mulf %306, %307 : vector<8x32xf32>
    %309 = vector.broadcast %288 : vector<1x32xf32> to vector<8x32xf32>
    %310 = arith.addf %308, %309 : vector<8x32xf32>
    %c0_114 = arith.constant 0 : index
    %c0_115 = arith.constant 0 : index
    %c0_116 = arith.constant 0 : index
    %311 = vector.load %arg16[%c0_114, %c0_115, %c0_116] : memref<1x8x32xf32, #tpu.memory_space<vmem>>, vector<1x8x32xf32>
    %312 = vector.shape_cast %311 : vector<1x8x32xf32> to vector<8x32xf32>
    %313 = vector.shape_cast %310 : vector<8x32xf32> to vector<1x8x32xf32>
    tpu.vector_store %arg16[%c0_114, %c0_115, %c0_116], %313 {strides = array<i32>} : memref<1x8x32xf32, #tpu.memory_space<vmem>>, vector<1x8x32xf32>,
    return
  }
  func.func @transform_0(%arg0: i32) -> (i32, i32, i32) {
    %c0_i32 = arith.constant 0 : i32
    %c0_i32_0 = arith.constant 0 : i32
    %c0_i32_1 = arith.constant 0 : i32
    return %arg0, %c0_i32, %c0_i32_0 : i32, i32, i32
  }
  func.func @transform_1(%arg0: i32) -> (i32, i32, i32) {
    %c0_i32 = arith.constant 0 : i32
    %c0_i32_0 = arith.constant 0 : i32
    %c0_i32_1 = arith.constant 0 : i32
    return %arg0, %c0_i32, %c0_i32_0 : i32, i32, i32
  }
  func.func @transform_2(%arg0: i32) -> (i32, i32, i32) {
    %c0_i32 = arith.constant 0 : i32
    %c0_i32_0 = arith.constant 0 : i32
    %c0_i32_1 = arith.constant 0 : i32
    return %arg0, %c0_i32, %c0_i32_0 : i32, i32, i32
  }
  func.func @transform_3(%arg0: i32) -> (i32, i32, i32) {
    %c0_i32 = arith.constant 0 : i32
    %c0_i32_0 = arith.constant 0 : i32
    %c0_i32_1 = arith.constant 0 : i32
    return %arg0, %c0_i32, %c0_i32_0 : i32, i32, i32
  }
  func.func @transform_4(%arg0: i32) -> (i32, i32) {
    %c0_i32 = arith.constant 0 : i32
    %c0_i32_0 = arith.constant 0 : i32
    %c0_i32_1 = arith.constant 0 : i32
    return %c0_i32, %c0_i32_0 : i32, i32
  }
  func.func @transform_5(%arg0: i32) -> (i32, i32) {
    %c0_i32 = arith.constant 0 : i32
    %c0_i32_0 = arith.constant 0 : i32
    %c0_i32_1 = arith.constant 0 : i32
    return %c0_i32, %c0_i32_0 : i32, i32
  }
  func.func @transform_6(%arg0: i32) -> (i32, i32, i32) {
    %c0_i32 = arith.constant 0 : i32
    %c0_i32_0 = arith.constant 0 : i32
    %c0_i32_1 = arith.constant 0 : i32
    %c0_i32_2 = arith.constant 0 : i32
    return %c0_i32, %c0_i32_0, %c0_i32_1 : i32, i32, i32
  }
  func.func @transform_7(%arg0: i32) -> (i32, i32) {
    %c0_i32 = arith.constant 0 : i32
    %c0_i32_0 = arith.constant 0 : i32
    %c0_i32_1 = arith.constant 0 : i32
    return %c0_i32, %c0_i32_0 : i32, i32
  }
  func.func @transform_8(%arg0: i32) -> (i32, i32) {
    %c0_i32 = arith.constant 0 : i32
    %c0_i32_0 = arith.constant 0 : i32
    %c0_i32_1 = arith.constant 0 : i32
    return %c0_i32, %c0_i32_0 : i32, i32
  }
  func.func @transform_9(%arg0: i32) -> (i32, i32) {
    %c0_i32 = arith.constant 0 : i32
    %c0_i32_0 = arith.constant 0 : i32
    %c0_i32_1 = arith.constant 0 : i32
    return %c0_i32, %c0_i32_0 : i32, i32
  }
  func.func @transform_10(%arg0: i32) -> (i32, i32, i32) {
    %c0_i32 = arith.constant 0 : i32
    %c0_i32_0 = arith.constant 0 : i32
    %c0_i32_1 = arith.constant 0 : i32
    %c0_i32_2 = arith.constant 0 : i32
    return %c0_i32, %c0_i32_0, %c0_i32_1 : i32, i32, i32
  }
  func.func @transform_11(%arg0: i32) -> (i32, i32) {
    %c0_i32 = arith.constant 0 : i32
    %c0_i32_0 = arith.constant 0 : i32
    %c0_i32_1 = arith.constant 0 : i32
    return %c0_i32, %c0_i32_0 : i32, i32
  }
  func.func @transform_12(%arg0: i32) -> (i32, i32) {
    %c0_i32 = arith.constant 0 : i32
    %c0_i32_0 = arith.constant 0 : i32
    %c0_i32_1 = arith.constant 0 : i32
    return %c0_i32, %c0_i32_0 : i32, i32
  }
  func.func @transform_13(%arg0: i32) -> (i32, i32) {
    %c0_i32 = arith.constant 0 : i32
    %c0_i32_0 = arith.constant 0 : i32
    %c0_i32_1 = arith.constant 0 : i32
    return %c0_i32, %c0_i32_0 : i32, i32
  }
  func.func @transform_14(%arg0: i32) -> (i32, i32) {
    %c0_i32 = arith.constant 0 : i32
    %c0_i32_0 = arith.constant 0 : i32
    %c0_i32_1 = arith.constant 0 : i32
    return %c0_i32, %c0_i32_0 : i32, i32
  }
  func.func @transform_15(%arg0: i32) -> (i32, i32, i32) {
    %c0_i32 = arith.constant 0 : i32
    %c0_i32_0 = arith.constant 0 : i32
    %c0_i32_1 = arith.constant 0 : i32
    return %arg0, %c0_i32, %c0_i32_0 : i32, i32, i32
  }
}

module attributes {stable_mosaic.version = 11 : i64} {
  func.func @_decoder_layer_kernel(%arg0: i32, %arg1: memref<1x8x32xf32, #tpu.memory_space<vmem>>, %arg2: memref<1x16x32xbf16, #tpu.memory_space<vmem>>, %arg3: memref<1x16x32xbf16, #tpu.memory_space<vmem>>, %arg4: memref<1x8x32xbf16, #tpu.memory_space<vmem>>, %arg5: memref<32x64xbf16, #tpu.memory_space<vmem>>, %arg6: memref<32x32xbf16, #tpu.memory_space<vmem>>, %arg7: memref<4x8x32xbf16, #tpu.memory_space<vmem>>, %arg8: memref<32x32xbf16, #tpu.memory_space<vmem>>, %arg9: memref<32x32xbf16, #tpu.memory_space<vmem>>, %arg10: memref<32x32xbf16, #tpu.memory_space<vmem>>, %arg11: memref<4x8x32xbf16, #tpu.memory_space<vmem>>, %arg12: memref<32x64xbf16, #tpu.memory_space<vmem>>, %arg13: memref<64x32xbf16, #tpu.memory_space<vmem>>, %arg14: memref<13x32xf32, #tpu.memory_space<vmem>>, %arg15: memref<1x64xf32, #tpu.memory_space<vmem>>, %arg16: memref<2x32xf32, #tpu.memory_space<vmem>>, %arg17: memref<1x8x32xf32, #tpu.memory_space<vmem>>) attributes {dimension_semantics = [#tpu.dimension_semantics<parallel>], iteration_bounds = array<i64: 2>, scalar_prefetch = 0 : i64, scratch_operands = 0 : i64, tpu.core_type = #tpu.core_type<tc>, window_params = [{transform_indices = @transform_0, window_bounds = array<i64: 1, 8, 32>}, {transform_indices = @transform_1, window_bounds = array<i64: 1, 16, 32>}, {transform_indices = @transform_2, window_bounds = array<i64: 1, 16, 32>}, {transform_indices = @transform_3, window_bounds = array<i64: 1, 8, 32>}, {pipeline_mode = #tpu.pipeline_mode<synchronous>, transform_indices = @transform_4, window_bounds = array<i64: 32, 64>}, {pipeline_mode = #tpu.pipeline_mode<synchronous>, transform_indices = @transform_5, window_bounds = array<i64: 32, 32>}, {pipeline_mode = #tpu.pipeline_mode<synchronous>, transform_indices = @transform_6, window_bounds = array<i64: 4, 8, 32>}, {pipeline_mode = #tpu.pipeline_mode<synchronous>, transform_indices = @transform_7, window_bounds = array<i64: 32, 32>}, {pipeline_mode = #tpu.pipeline_mode<synchronous>, transform_indices = @transform_8, window_bounds = array<i64: 32, 32>}, {pipeline_mode = #tpu.pipeline_mode<synchronous>, transform_indices = @transform_9, window_bounds = array<i64: 32, 32>}, {pipeline_mode = #tpu.pipeline_mode<synchronous>, transform_indices = @transform_10, window_bounds = array<i64: 4, 8, 32>}, {pipeline_mode = #tpu.pipeline_mode<synchronous>, transform_indices = @transform_11, window_bounds = array<i64: 32, 64>}, {pipeline_mode = #tpu.pipeline_mode<synchronous>, transform_indices = @transform_12, window_bounds = array<i64: 64, 32>}, {pipeline_mode = #tpu.pipeline_mode<synchronous>, transform_indices = @transform_13, window_bounds = array<i64: 13, 32>}, {pipeline_mode = #tpu.pipeline_mode<synchronous>, transform_indices = @transform_14, window_bounds = array<i64: 1, 64>}, {pipeline_mode = #tpu.pipeline_mode<synchronous>, transform_indices = @transform_15, window_bounds = array<i64: 2, 32>}, {transform_indices = @transform_16, window_bounds = array<i64: 1, 8, 32>}]} {
    %c0 = arith.constant 0 : index
    %c0_0 = arith.constant 0 : index
    %c0_1 = arith.constant 0 : index
    %0 = vector.load %arg1[%c0, %c0_0, %c0_1] : memref<1x8x32xf32, #tpu.memory_space<vmem>>, vector<1x8x32xf32>
    %1 = vector.shape_cast %0 : vector<1x8x32xf32> to vector<8x32xf32>
    %c0_2 = arith.constant 0 : index
    %c0_3 = arith.constant 0 : index
    %c0_4 = arith.constant 0 : index
    %2 = vector.load %arg4[%c0_2, %c0_3, %c0_4] : memref<1x8x32xbf16, #tpu.memory_space<vmem>>, vector<1x8x32xbf16>
    %3 = vector.shape_cast %2 : vector<1x8x32xbf16> to vector<8x32xbf16>
    %c0_5 = arith.constant 0 : index
    %c0_6 = arith.constant 0 : index
    %4 = vector.load %arg14[%c0_5, %c0_6] : memref<13x32xf32, #tpu.memory_space<vmem>>, vector<13x32xf32>
    %5 = arith.extf %3 : vector<8x32xbf16> to vector<8x32xf32>
    %6 = arith.addf %1, %5 : vector<8x32xf32>
    %c0_7 = arith.constant 0 : index
    %c0_8 = arith.constant 0 : index
    %7 = vector.load %arg5[%c0_7, %c0_8] : memref<32x64xbf16, #tpu.memory_space<vmem>>, vector<32x64xbf16>
    %8 = arith.truncf %6 : vector<8x32xf32> to vector<8x32xbf16>
    %cst = arith.constant dense<0.000000e+00> : vector<8x64xf32>
    %9 = tpu.matmul %8, %7, %cst {dimension_numbers = #tpu.dot_dimension_numbers<[1], [0], [0], [1], [0, 0, 1, 1], [], []>} : vector<8x32xbf16>, vector<32x64xbf16>, vector<8x64xf32> -> vector<8x64xf32>
    %10 = vector.extract_strided_slice %9 {offsets = [0, 0], sizes = [8, 32], strides = [1, 1]} : vector<8x64xf32> to vector<8x32xf32>
    %11 = vector.extract_strided_slice %4 {offsets = [0, 0], sizes = [1, 32], strides = [1, 1]} : vector<13x32xf32> to vector<1x32xf32>
    %12 = vector.broadcast %11 : vector<1x32xf32> to vector<8x32xf32>
    %13 = arith.addf %10, %12 : vector<8x32xf32>
    %14 = vector.extract_strided_slice %9 {offsets = [0, 32], sizes = [8, 32], strides = [1, 1]} : vector<8x64xf32> to vector<8x32xf32>
    %c0_9 = arith.constant 0 : index
    %c0_10 = arith.constant 0 : index
    %15 = vector.load %arg6[%c0_9, %c0_10] : memref<32x32xbf16, #tpu.memory_space<vmem>>, vector<32x32xbf16>
    %16 = arith.truncf %1 : vector<8x32xf32> to vector<8x32xbf16>
    %cst_11 = arith.constant dense<0.000000e+00> : vector<8x32xf32>
    %17 = tpu.matmul %16, %15, %cst_11 {dimension_numbers = #tpu.dot_dimension_numbers<[1], [0], [0], [1], [0, 0, 1, 1], [], []>} : vector<8x32xbf16>, vector<32x32xbf16>, vector<8x32xf32> -> vector<8x32xf32>
    %18 = vector.extract_strided_slice %4 {offsets = [1, 0], sizes = [1, 32], strides = [1, 1]} : vector<13x32xf32> to vector<1x32xf32>
    %19 = vector.broadcast %18 : vector<1x32xf32> to vector<8x32xf32>
    %20 = arith.addf %17, %19 : vector<8x32xf32>
    %21 = vector.extract_strided_slice %4 {offsets = [2, 0], sizes = [1, 32], strides = [1, 1]} : vector<13x32xf32> to vector<1x32xf32>
    %22 = arith.truncf %13 : vector<8x32xf32> to vector<8x32xbf16>
    %23 = arith.truncf %14 : vector<8x32xf32> to vector<8x32xbf16>
    %24 = arith.truncf %20 : vector<8x32xf32> to vector<8x32xbf16>
    %cst_12 = arith.constant 0.000000e+00 : f32
    %25 = vector.broadcast %cst_12 : f32 to vector<8x32xf32>
    %26 = vector.extract_strided_slice %22 {offsets = [0, 0], sizes = [8, 8], strides = [1, 1]} : vector<8x32xbf16> to vector<8x8xbf16>
    %27 = vector.extract_strided_slice %23 {offsets = [0, 0], sizes = [8, 8], strides = [1, 1]} : vector<8x32xbf16> to vector<8x8xbf16>
    %cst_13 = arith.constant dense<0.000000e+00> : vector<8x8xf32>
    %28 = tpu.matmul %26, %27, %cst_13 {dimension_numbers = #tpu.dot_dimension_numbers<[1], [1], [0], [0], [0, 0, 1, 0], [], []>} : vector<8x8xbf16>, vector<8x8xbf16>, vector<8x8xf32> -> vector<8x8xf32>
    %cst_14 = arith.constant dense<0xFF800000> : vector<8xf32>
    %29 = vector.multi_reduction <maximumf>, %28, %cst_14 [1] : vector<8x8xf32> to vector<8xf32>
    %30 = vector.shape_cast %29 : vector<8xf32> to vector<8x1xf32>
    %31 = vector.broadcast %30 : vector<8x1xf32> to vector<8x8xf32>
    %32 = arith.subf %28, %31 : vector<8x8xf32>
    %33 = math.exp %32 : vector<8x8xf32>
    %cst_15 = arith.constant dense<0.000000e+00> : vector<8xf32>
    %34 = vector.multi_reduction <add>, %33, %cst_15 [1] : vector<8x8xf32> to vector<8xf32>
    %35 = vector.shape_cast %34 : vector<8xf32> to vector<8x1xf32>
    %36 = tpu.reciprocal %35 {approx = true} : vector<8x1xf32> -> vector<8x1xf32>
    %37 = vector.broadcast %36 : vector<8x1xf32> to vector<8x8xf32>
    %38 = arith.mulf %33, %37 : vector<8x8xf32>
    %39 = arith.truncf %38 : vector<8x8xf32> to vector<8x8xbf16>
    %40 = vector.extract_strided_slice %24 {offsets = [0, 0], sizes = [8, 8], strides = [1, 1]} : vector<8x32xbf16> to vector<8x8xbf16>
    %cst_16 = arith.constant dense<0.000000e+00> : vector<8x8xf32>
    %41 = tpu.matmul %39, %40, %cst_16 {dimension_numbers = #tpu.dot_dimension_numbers<[1], [0], [0], [1], [0, 0, 1, 1], [], []>} : vector<8x8xbf16>, vector<8x8xbf16>, vector<8x8xf32> -> vector<8x8xf32>
    %42 = arith.truncf %41 : vector<8x8xf32> to vector<8x8xbf16>
    %c0_17 = arith.constant 0 : index
    %c0_18 = arith.constant 0 : index
    %c0_19 = arith.constant 0 : index
    %43 = vector.load %arg7[%c0_17, %c0_18, %c0_19] : memref<4x8x32xbf16, #tpu.memory_space<vmem>>, vector<1x8x32xbf16>
    %44 = vector.shape_cast %43 : vector<1x8x32xbf16> to vector<8x32xbf16>
    %cst_20 = arith.constant dense<0.000000e+00> : vector<8x32xf32>
    %45 = tpu.matmul %42, %44, %cst_20 {dimension_numbers = #tpu.dot_dimension_numbers<[1], [0], [0], [1], [0, 0, 1, 1], [], []>} : vector<8x8xbf16>, vector<8x32xbf16>, vector<8x32xf32> -> vector<8x32xf32>
    %46 = arith.addf %25, %45 : vector<8x32xf32>
    %47 = vector.extract_strided_slice %22 {offsets = [0, 8], sizes = [8, 8], strides = [1, 1]} : vector<8x32xbf16> to vector<8x8xbf16>
    %48 = vector.extract_strided_slice %23 {offsets = [0, 8], sizes = [8, 8], strides = [1, 1]} : vector<8x32xbf16> to vector<8x8xbf16>
    %cst_21 = arith.constant dense<0.000000e+00> : vector<8x8xf32>
    %49 = tpu.matmul %47, %48, %cst_21 {dimension_numbers = #tpu.dot_dimension_numbers<[1], [1], [0], [0], [0, 0, 1, 0], [], []>} : vector<8x8xbf16>, vector<8x8xbf16>, vector<8x8xf32> -> vector<8x8xf32>
    %cst_22 = arith.constant dense<0xFF800000> : vector<8xf32>
    %50 = vector.multi_reduction <maximumf>, %49, %cst_22 [1] : vector<8x8xf32> to vector<8xf32>
    %51 = vector.shape_cast %50 : vector<8xf32> to vector<8x1xf32>
    %52 = vector.broadcast %51 : vector<8x1xf32> to vector<8x8xf32>
    %53 = arith.subf %49, %52 : vector<8x8xf32>
    %54 = math.exp %53 : vector<8x8xf32>
    %cst_23 = arith.constant dense<0.000000e+00> : vector<8xf32>
    %55 = vector.multi_reduction <add>, %54, %cst_23 [1] : vector<8x8xf32> to vector<8xf32>
    %56 = vector.shape_cast %55 : vector<8xf32> to vector<8x1xf32>
    %57 = tpu.reciprocal %56 {approx = true} : vector<8x1xf32> -> vector<8x1xf32>
    %58 = vector.broadcast %57 : vector<8x1xf32> to vector<8x8xf32>
    %59 = arith.mulf %54, %58 : vector<8x8xf32>
    %60 = arith.truncf %59 : vector<8x8xf32> to vector<8x8xbf16>
    %61 = vector.extract_strided_slice %24 {offsets = [0, 8], sizes = [8, 8], strides = [1, 1]} : vector<8x32xbf16> to vector<8x8xbf16>
    %cst_24 = arith.constant dense<0.000000e+00> : vector<8x8xf32>
    %62 = tpu.matmul %60, %61, %cst_24 {dimension_numbers = #tpu.dot_dimension_numbers<[1], [0], [0], [1], [0, 0, 1, 1], [], []>} : vector<8x8xbf16>, vector<8x8xbf16>, vector<8x8xf32> -> vector<8x8xf32>
    %63 = arith.truncf %62 : vector<8x8xf32> to vector<8x8xbf16>
    %c1 = arith.constant 1 : index
    %c0_25 = arith.constant 0 : index
    %c0_26 = arith.constant 0 : index
    %64 = vector.load %arg7[%c1, %c0_25, %c0_26] : memref<4x8x32xbf16, #tpu.memory_space<vmem>>, vector<1x8x32xbf16>
    %65 = vector.shape_cast %64 : vector<1x8x32xbf16> to vector<8x32xbf16>
    %cst_27 = arith.constant dense<0.000000e+00> : vector<8x32xf32>
    %66 = tpu.matmul %63, %65, %cst_27 {dimension_numbers = #tpu.dot_dimension_numbers<[1], [0], [0], [1], [0, 0, 1, 1], [], []>} : vector<8x8xbf16>, vector<8x32xbf16>, vector<8x32xf32> -> vector<8x32xf32>
    %67 = arith.addf %46, %66 : vector<8x32xf32>
    %68 = vector.extract_strided_slice %22 {offsets = [0, 16], sizes = [8, 8], strides = [1, 1]} : vector<8x32xbf16> to vector<8x8xbf16>
    %69 = vector.extract_strided_slice %23 {offsets = [0, 16], sizes = [8, 8], strides = [1, 1]} : vector<8x32xbf16> to vector<8x8xbf16>
    %cst_28 = arith.constant dense<0.000000e+00> : vector<8x8xf32>
    %70 = tpu.matmul %68, %69, %cst_28 {dimension_numbers = #tpu.dot_dimension_numbers<[1], [1], [0], [0], [0, 0, 1, 0], [], []>} : vector<8x8xbf16>, vector<8x8xbf16>, vector<8x8xf32> -> vector<8x8xf32>
    %cst_29 = arith.constant dense<0xFF800000> : vector<8xf32>
    %71 = vector.multi_reduction <maximumf>, %70, %cst_29 [1] : vector<8x8xf32> to vector<8xf32>
    %72 = vector.shape_cast %71 : vector<8xf32> to vector<8x1xf32>
    %73 = vector.broadcast %72 : vector<8x1xf32> to vector<8x8xf32>
    %74 = arith.subf %70, %73 : vector<8x8xf32>
    %75 = math.exp %74 : vector<8x8xf32>
    %cst_30 = arith.constant dense<0.000000e+00> : vector<8xf32>
    %76 = vector.multi_reduction <add>, %75, %cst_30 [1] : vector<8x8xf32> to vector<8xf32>
    %77 = vector.shape_cast %76 : vector<8xf32> to vector<8x1xf32>
    %78 = tpu.reciprocal %77 {approx = true} : vector<8x1xf32> -> vector<8x1xf32>
    %79 = vector.broadcast %78 : vector<8x1xf32> to vector<8x8xf32>
    %80 = arith.mulf %75, %79 : vector<8x8xf32>
    %81 = arith.truncf %80 : vector<8x8xf32> to vector<8x8xbf16>
    %82 = vector.extract_strided_slice %24 {offsets = [0, 16], sizes = [8, 8], strides = [1, 1]} : vector<8x32xbf16> to vector<8x8xbf16>
    %cst_31 = arith.constant dense<0.000000e+00> : vector<8x8xf32>
    %83 = tpu.matmul %81, %82, %cst_31 {dimension_numbers = #tpu.dot_dimension_numbers<[1], [0], [0], [1], [0, 0, 1, 1], [], []>} : vector<8x8xbf16>, vector<8x8xbf16>, vector<8x8xf32> -> vector<8x8xf32>
    %84 = arith.truncf %83 : vector<8x8xf32> to vector<8x8xbf16>
    %c2 = arith.constant 2 : index
    %c0_32 = arith.constant 0 : index
    %c0_33 = arith.constant 0 : index
    %85 = vector.load %arg7[%c2, %c0_32, %c0_33] : memref<4x8x32xbf16, #tpu.memory_space<vmem>>, vector<1x8x32xbf16>
    %86 = vector.shape_cast %85 : vector<1x8x32xbf16> to vector<8x32xbf16>
    %cst_34 = arith.constant dense<0.000000e+00> : vector<8x32xf32>
    %87 = tpu.matmul %84, %86, %cst_34 {dimension_numbers = #tpu.dot_dimension_numbers<[1], [0], [0], [1], [0, 0, 1, 1], [], []>} : vector<8x8xbf16>, vector<8x32xbf16>, vector<8x32xf32> -> vector<8x32xf32>
    %88 = arith.addf %67, %87 : vector<8x32xf32>
    %89 = vector.extract_strided_slice %22 {offsets = [0, 24], sizes = [8, 8], strides = [1, 1]} : vector<8x32xbf16> to vector<8x8xbf16>
    %90 = vector.extract_strided_slice %23 {offsets = [0, 24], sizes = [8, 8], strides = [1, 1]} : vector<8x32xbf16> to vector<8x8xbf16>
    %cst_35 = arith.constant dense<0.000000e+00> : vector<8x8xf32>
    %91 = tpu.matmul %89, %90, %cst_35 {dimension_numbers = #tpu.dot_dimension_numbers<[1], [1], [0], [0], [0, 0, 1, 0], [], []>} : vector<8x8xbf16>, vector<8x8xbf16>, vector<8x8xf32> -> vector<8x8xf32>
    %cst_36 = arith.constant dense<0xFF800000> : vector<8xf32>
    %92 = vector.multi_reduction <maximumf>, %91, %cst_36 [1] : vector<8x8xf32> to vector<8xf32>
    %93 = vector.shape_cast %92 : vector<8xf32> to vector<8x1xf32>
    %94 = vector.broadcast %93 : vector<8x1xf32> to vector<8x8xf32>
    %95 = arith.subf %91, %94 : vector<8x8xf32>
    %96 = math.exp %95 : vector<8x8xf32>
    %cst_37 = arith.constant dense<0.000000e+00> : vector<8xf32>
    %97 = vector.multi_reduction <add>, %96, %cst_37 [1] : vector<8x8xf32> to vector<8xf32>
    %98 = vector.shape_cast %97 : vector<8xf32> to vector<8x1xf32>
    %99 = tpu.reciprocal %98 {approx = true} : vector<8x1xf32> -> vector<8x1xf32>
    %100 = vector.broadcast %99 : vector<8x1xf32> to vector<8x8xf32>
    %101 = arith.mulf %96, %100 : vector<8x8xf32>
    %102 = arith.truncf %101 : vector<8x8xf32> to vector<8x8xbf16>
    %103 = vector.extract_strided_slice %24 {offsets = [0, 24], sizes = [8, 8], strides = [1, 1]} : vector<8x32xbf16> to vector<8x8xbf16>
    %cst_38 = arith.constant dense<0.000000e+00> : vector<8x8xf32>
    %104 = tpu.matmul %102, %103, %cst_38 {dimension_numbers = #tpu.dot_dimension_numbers<[1], [0], [0], [1], [0, 0, 1, 1], [], []>} : vector<8x8xbf16>, vector<8x8xbf16>, vector<8x8xf32> -> vector<8x8xf32>
    %105 = arith.truncf %104 : vector<8x8xf32> to vector<8x8xbf16>
    %c3 = arith.constant 3 : index
    %c0_39 = arith.constant 0 : index
    %c0_40 = arith.constant 0 : index
    %106 = vector.load %arg7[%c3, %c0_39, %c0_40] : memref<4x8x32xbf16, #tpu.memory_space<vmem>>, vector<1x8x32xbf16>
    %107 = vector.shape_cast %106 : vector<1x8x32xbf16> to vector<8x32xbf16>
    %cst_41 = arith.constant dense<0.000000e+00> : vector<8x32xf32>
    %108 = tpu.matmul %105, %107, %cst_41 {dimension_numbers = #tpu.dot_dimension_numbers<[1], [0], [0], [1], [0, 0, 1, 1], [], []>} : vector<8x8xbf16>, vector<8x32xbf16>, vector<8x32xf32> -> vector<8x32xf32>
    %109 = arith.addf %88, %108 : vector<8x32xf32>
    %110 = vector.broadcast %21 : vector<1x32xf32> to vector<8x32xf32>
    %111 = arith.addf %109, %110 : vector<8x32xf32>
    %112 = arith.addf %1, %111 : vector<8x32xf32>
    %113 = vector.extract_strided_slice %4 {offsets = [7, 0], sizes = [1, 32], strides = [1, 1]} : vector<13x32xf32> to vector<1x32xf32>
    %114 = vector.extract_strided_slice %4 {offsets = [10, 0], sizes = [1, 32], strides = [1, 1]} : vector<13x32xf32> to vector<1x32xf32>
    %cst_42 = arith.constant dense<0.000000e+00> : vector<8xf32>
    %115 = vector.multi_reduction <add>, %112, %cst_42 [1] : vector<8x32xf32> to vector<8xf32>
    %116 = vector.shape_cast %115 : vector<8xf32> to vector<8x1xf32>
    %cst_43 = arith.constant 3.200000e+01 : f32
    %117 = vector.broadcast %cst_43 : f32 to vector<8x1xf32>
    %118 = arith.divf %116, %117 : vector<8x1xf32>
    %119 = vector.broadcast %118 : vector<8x1xf32> to vector<8x32xf32>
    %120 = arith.subf %112, %119 : vector<8x32xf32>
    %121 = arith.mulf %120, %120 : vector<8x32xf32>
    %cst_44 = arith.constant dense<0.000000e+00> : vector<8xf32>
    %122 = vector.multi_reduction <add>, %121, %cst_44 [1] : vector<8x32xf32> to vector<8xf32>
    %123 = vector.shape_cast %122 : vector<8xf32> to vector<8x1xf32>
    %cst_45 = arith.constant 3.200000e+01 : f32
    %124 = vector.broadcast %cst_45 : f32 to vector<8x1xf32>
    %125 = arith.divf %123, %124 : vector<8x1xf32>
    %126 = vector.broadcast %118 : vector<8x1xf32> to vector<8x32xf32>
    %127 = arith.subf %112, %126 : vector<8x32xf32>
    %cst_46 = arith.constant 9.99999974E-6 : f32
    %128 = vector.broadcast %cst_46 : f32 to vector<8x1xf32>
    %129 = arith.addf %125, %128 : vector<8x1xf32>
    %130 = math.rsqrt %129 : vector<8x1xf32>
    %131 = vector.broadcast %130 : vector<8x1xf32> to vector<8x32xf32>
    %132 = arith.mulf %127, %131 : vector<8x32xf32>
    %133 = vector.broadcast %113 : vector<1x32xf32> to vector<8x32xf32>
    %134 = arith.mulf %132, %133 : vector<8x32xf32>
    %135 = vector.broadcast %114 : vector<1x32xf32> to vector<8x32xf32>
    %136 = arith.addf %134, %135 : vector<8x32xf32>
    %137 = arith.extf %3 : vector<8x32xbf16> to vector<8x32xf32>
    %138 = arith.addf %136, %137 : vector<8x32xf32>
    %c0_47 = arith.constant 0 : index
    %c0_48 = arith.constant 0 : index
    %139 = vector.load %arg8[%c0_47, %c0_48] : memref<32x32xbf16, #tpu.memory_space<vmem>>, vector<32x32xbf16>
    %140 = arith.truncf %138 : vector<8x32xf32> to vector<8x32xbf16>
    %cst_49 = arith.constant dense<0.000000e+00> : vector<8x32xf32>
    %141 = tpu.matmul %140, %139, %cst_49 {dimension_numbers = #tpu.dot_dimension_numbers<[1], [0], [0], [1], [0, 0, 1, 1], [], []>} : vector<8x32xbf16>, vector<32x32xbf16>, vector<8x32xf32> -> vector<8x32xf32>
    %142 = vector.extract_strided_slice %4 {offsets = [3, 0], sizes = [1, 32], strides = [1, 1]} : vector<13x32xf32> to vector<1x32xf32>
    %143 = vector.broadcast %142 : vector<1x32xf32> to vector<8x32xf32>
    %144 = arith.addf %141, %143 : vector<8x32xf32>
    %c0_50 = arith.constant 0 : index
    %c0_51 = arith.constant 0 : index
    %c0_52 = arith.constant 0 : index
    %145 = vector.load %arg2[%c0_50, %c0_51, %c0_52] : memref<1x16x32xbf16, #tpu.memory_space<vmem>>, vector<1x16x32xbf16>
    %146 = vector.shape_cast %145 : vector<1x16x32xbf16> to vector<16x32xbf16>
    %c0_53 = arith.constant 0 : index
    %c0_54 = arith.constant 0 : index
    %147 = vector.load %arg9[%c0_53, %c0_54] : memref<32x32xbf16, #tpu.memory_space<vmem>>, vector<32x32xbf16>
    %cst_55 = arith.constant dense<0.000000e+00> : vector<16x32xf32>
    %148 = tpu.matmul %146, %147, %cst_55 {dimension_numbers = #tpu.dot_dimension_numbers<[1], [0], [0], [1], [0, 0, 1, 1], [], []>} : vector<16x32xbf16>, vector<32x32xbf16>, vector<16x32xf32> -> vector<16x32xf32>
    %c0_56 = arith.constant 0 : index
    %c0_57 = arith.constant 0 : index
    %c0_58 = arith.constant 0 : index
    %149 = vector.load %arg3[%c0_56, %c0_57, %c0_58] : memref<1x16x32xbf16, #tpu.memory_space<vmem>>, vector<1x16x32xbf16>
    %150 = vector.shape_cast %149 : vector<1x16x32xbf16> to vector<16x32xbf16>
    %c0_59 = arith.constant 0 : index
    %c0_60 = arith.constant 0 : index
    %151 = vector.load %arg10[%c0_59, %c0_60] : memref<32x32xbf16, #tpu.memory_space<vmem>>, vector<32x32xbf16>
    %cst_61 = arith.constant dense<0.000000e+00> : vector<16x32xf32>
    %152 = tpu.matmul %150, %151, %cst_61 {dimension_numbers = #tpu.dot_dimension_numbers<[1], [0], [0], [1], [0, 0, 1, 1], [], []>} : vector<16x32xbf16>, vector<32x32xbf16>, vector<16x32xf32> -> vector<16x32xf32>
    %153 = vector.extract_strided_slice %4 {offsets = [4, 0], sizes = [1, 32], strides = [1, 1]} : vector<13x32xf32> to vector<1x32xf32>
    %154 = vector.broadcast %153 : vector<1x32xf32> to vector<16x32xf32>
    %155 = arith.addf %152, %154 : vector<16x32xf32>
    %156 = vector.extract_strided_slice %4 {offsets = [5, 0], sizes = [1, 32], strides = [1, 1]} : vector<13x32xf32> to vector<1x32xf32>
    %157 = arith.truncf %144 : vector<8x32xf32> to vector<8x32xbf16>
    %158 = arith.truncf %148 : vector<16x32xf32> to vector<16x32xbf16>
    %159 = arith.truncf %155 : vector<16x32xf32> to vector<16x32xbf16>
    %cst_62 = arith.constant 0.000000e+00 : f32
    %160 = vector.broadcast %cst_62 : f32 to vector<8x32xf32>
    %161 = vector.extract_strided_slice %157 {offsets = [0, 0], sizes = [8, 8], strides = [1, 1]} : vector<8x32xbf16> to vector<8x8xbf16>
    %162 = vector.extract_strided_slice %158 {offsets = [0, 0], sizes = [16, 8], strides = [1, 1]} : vector<16x32xbf16> to vector<16x8xbf16>
    %cst_63 = arith.constant dense<0.000000e+00> : vector<8x16xf32>
    %163 = tpu.matmul %161, %162, %cst_63 {dimension_numbers = #tpu.dot_dimension_numbers<[1], [1], [0], [0], [0, 0, 1, 0], [], []>} : vector<8x8xbf16>, vector<16x8xbf16>, vector<8x16xf32> -> vector<8x16xf32>
    %cst_64 = arith.constant dense<0xFF800000> : vector<8xf32>
    %164 = vector.multi_reduction <maximumf>, %163, %cst_64 [1] : vector<8x16xf32> to vector<8xf32>
    %165 = vector.shape_cast %164 : vector<8xf32> to vector<8x1xf32>
    %166 = vector.broadcast %165 : vector<8x1xf32> to vector<8x16xf32>
    %167 = arith.subf %163, %166 : vector<8x16xf32>
    %168 = math.exp %167 : vector<8x16xf32>
    %cst_65 = arith.constant dense<0.000000e+00> : vector<8xf32>
    %169 = vector.multi_reduction <add>, %168, %cst_65 [1] : vector<8x16xf32> to vector<8xf32>
    %170 = vector.shape_cast %169 : vector<8xf32> to vector<8x1xf32>
    %171 = tpu.reciprocal %170 {approx = true} : vector<8x1xf32> -> vector<8x1xf32>
    %172 = vector.broadcast %171 : vector<8x1xf32> to vector<8x16xf32>
    %173 = arith.mulf %168, %172 : vector<8x16xf32>
    %174 = arith.truncf %173 : vector<8x16xf32> to vector<8x16xbf16>
    %175 = vector.extract_strided_slice %159 {offsets = [0, 0], sizes = [16, 8], strides = [1, 1]} : vector<16x32xbf16> to vector<16x8xbf16>
    %cst_66 = arith.constant dense<0.000000e+00> : vector<8x8xf32>
    %176 = tpu.matmul %174, %175, %cst_66 {dimension_numbers = #tpu.dot_dimension_numbers<[1], [0], [0], [1], [0, 0, 1, 1], [], []>} : vector<8x16xbf16>, vector<16x8xbf16>, vector<8x8xf32> -> vector<8x8xf32>
    %177 = arith.truncf %176 : vector<8x8xf32> to vector<8x8xbf16>
    %c0_67 = arith.constant 0 : index
    %c0_68 = arith.constant 0 : index
    %c0_69 = arith.constant 0 : index
    %178 = vector.load %arg11[%c0_67, %c0_68, %c0_69] : memref<4x8x32xbf16, #tpu.memory_space<vmem>>, vector<1x8x32xbf16>
    %179 = vector.shape_cast %178 : vector<1x8x32xbf16> to vector<8x32xbf16>
    %cst_70 = arith.constant dense<0.000000e+00> : vector<8x32xf32>
    %180 = tpu.matmul %177, %179, %cst_70 {dimension_numbers = #tpu.dot_dimension_numbers<[1], [0], [0], [1], [0, 0, 1, 1], [], []>} : vector<8x8xbf16>, vector<8x32xbf16>, vector<8x32xf32> -> vector<8x32xf32>
    %181 = arith.addf %160, %180 : vector<8x32xf32>
    %182 = vector.extract_strided_slice %157 {offsets = [0, 8], sizes = [8, 8], strides = [1, 1]} : vector<8x32xbf16> to vector<8x8xbf16>
    %183 = vector.extract_strided_slice %158 {offsets = [0, 8], sizes = [16, 8], strides = [1, 1]} : vector<16x32xbf16> to vector<16x8xbf16>
    %cst_71 = arith.constant dense<0.000000e+00> : vector<8x16xf32>
    %184 = tpu.matmul %182, %183, %cst_71 {dimension_numbers = #tpu.dot_dimension_numbers<[1], [1], [0], [0], [0, 0, 1, 0], [], []>} : vector<8x8xbf16>, vector<16x8xbf16>, vector<8x16xf32> -> vector<8x16xf32>
    %cst_72 = arith.constant dense<0xFF800000> : vector<8xf32>
    %185 = vector.multi_reduction <maximumf>, %184, %cst_72 [1] : vector<8x16xf32> to vector<8xf32>
    %186 = vector.shape_cast %185 : vector<8xf32> to vector<8x1xf32>
    %187 = vector.broadcast %186 : vector<8x1xf32> to vector<8x16xf32>
    %188 = arith.subf %184, %187 : vector<8x16xf32>
    %189 = math.exp %188 : vector<8x16xf32>
    %cst_73 = arith.constant dense<0.000000e+00> : vector<8xf32>
    %190 = vector.multi_reduction <add>, %189, %cst_73 [1] : vector<8x16xf32> to vector<8xf32>
    %191 = vector.shape_cast %190 : vector<8xf32> to vector<8x1xf32>
    %192 = tpu.reciprocal %191 {approx = true} : vector<8x1xf32> -> vector<8x1xf32>
    %193 = vector.broadcast %192 : vector<8x1xf32> to vector<8x16xf32>
    %194 = arith.mulf %189, %193 : vector<8x16xf32>
    %195 = arith.truncf %194 : vector<8x16xf32> to vector<8x16xbf16>
    %196 = vector.extract_strided_slice %159 {offsets = [0, 8], sizes = [16, 8], strides = [1, 1]} : vector<16x32xbf16> to vector<16x8xbf16>
    %cst_74 = arith.constant dense<0.000000e+00> : vector<8x8xf32>
    %197 = tpu.matmul %195, %196, %cst_74 {dimension_numbers = #tpu.dot_dimension_numbers<[1], [0], [0], [1], [0, 0, 1, 1], [], []>} : vector<8x16xbf16>, vector<16x8xbf16>, vector<8x8xf32> -> vector<8x8xf32>
    %198 = arith.truncf %197 : vector<8x8xf32> to vector<8x8xbf16>
    %c1_75 = arith.constant 1 : index
    %c0_76 = arith.constant 0 : index
    %c0_77 = arith.constant 0 : index
    %199 = vector.load %arg11[%c1_75, %c0_76, %c0_77] : memref<4x8x32xbf16, #tpu.memory_space<vmem>>, vector<1x8x32xbf16>
    %200 = vector.shape_cast %199 : vector<1x8x32xbf16> to vector<8x32xbf16>
    %cst_78 = arith.constant dense<0.000000e+00> : vector<8x32xf32>
    %201 = tpu.matmul %198, %200, %cst_78 {dimension_numbers = #tpu.dot_dimension_numbers<[1], [0], [0], [1], [0, 0, 1, 1], [], []>} : vector<8x8xbf16>, vector<8x32xbf16>, vector<8x32xf32> -> vector<8x32xf32>
    %202 = arith.addf %181, %201 : vector<8x32xf32>
    %203 = vector.extract_strided_slice %157 {offsets = [0, 16], sizes = [8, 8], strides = [1, 1]} : vector<8x32xbf16> to vector<8x8xbf16>
    %204 = vector.extract_strided_slice %158 {offsets = [0, 16], sizes = [16, 8], strides = [1, 1]} : vector<16x32xbf16> to vector<16x8xbf16>
    %cst_79 = arith.constant dense<0.000000e+00> : vector<8x16xf32>
    %205 = tpu.matmul %203, %204, %cst_79 {dimension_numbers = #tpu.dot_dimension_numbers<[1], [1], [0], [0], [0, 0, 1, 0], [], []>} : vector<8x8xbf16>, vector<16x8xbf16>, vector<8x16xf32> -> vector<8x16xf32>
    %cst_80 = arith.constant dense<0xFF800000> : vector<8xf32>
    %206 = vector.multi_reduction <maximumf>, %205, %cst_80 [1] : vector<8x16xf32> to vector<8xf32>
    %207 = vector.shape_cast %206 : vector<8xf32> to vector<8x1xf32>
    %208 = vector.broadcast %207 : vector<8x1xf32> to vector<8x16xf32>
    %209 = arith.subf %205, %208 : vector<8x16xf32>
    %210 = math.exp %209 : vector<8x16xf32>
    %cst_81 = arith.constant dense<0.000000e+00> : vector<8xf32>
    %211 = vector.multi_reduction <add>, %210, %cst_81 [1] : vector<8x16xf32> to vector<8xf32>
    %212 = vector.shape_cast %211 : vector<8xf32> to vector<8x1xf32>
    %213 = tpu.reciprocal %212 {approx = true} : vector<8x1xf32> -> vector<8x1xf32>
    %214 = vector.broadcast %213 : vector<8x1xf32> to vector<8x16xf32>
    %215 = arith.mulf %210, %214 : vector<8x16xf32>
    %216 = arith.truncf %215 : vector<8x16xf32> to vector<8x16xbf16>
    %217 = vector.extract_strided_slice %159 {offsets = [0, 16], sizes = [16, 8], strides = [1, 1]} : vector<16x32xbf16> to vector<16x8xbf16>
    %cst_82 = arith.constant dense<0.000000e+00> : vector<8x8xf32>
    %218 = tpu.matmul %216, %217, %cst_82 {dimension_numbers = #tpu.dot_dimension_numbers<[1], [0], [0], [1], [0, 0, 1, 1], [], []>} : vector<8x16xbf16>, vector<16x8xbf16>, vector<8x8xf32> -> vector<8x8xf32>
    %219 = arith.truncf %218 : vector<8x8xf32> to vector<8x8xbf16>
    %c2_83 = arith.constant 2 : index
    %c0_84 = arith.constant 0 : index
    %c0_85 = arith.constant 0 : index
    %220 = vector.load %arg11[%c2_83, %c0_84, %c0_85] : memref<4x8x32xbf16, #tpu.memory_space<vmem>>, vector<1x8x32xbf16>
    %221 = vector.shape_cast %220 : vector<1x8x32xbf16> to vector<8x32xbf16>
    %cst_86 = arith.constant dense<0.000000e+00> : vector<8x32xf32>
    %222 = tpu.matmul %219, %221, %cst_86 {dimension_numbers = #tpu.dot_dimension_numbers<[1], [0], [0], [1], [0, 0, 1, 1], [], []>} : vector<8x8xbf16>, vector<8x32xbf16>, vector<8x32xf32> -> vector<8x32xf32>
    %223 = arith.addf %202, %222 : vector<8x32xf32>
    %224 = vector.extract_strided_slice %157 {offsets = [0, 24], sizes = [8, 8], strides = [1, 1]} : vector<8x32xbf16> to vector<8x8xbf16>
    %225 = vector.extract_strided_slice %158 {offsets = [0, 24], sizes = [16, 8], strides = [1, 1]} : vector<16x32xbf16> to vector<16x8xbf16>
    %cst_87 = arith.constant dense<0.000000e+00> : vector<8x16xf32>
    %226 = tpu.matmul %224, %225, %cst_87 {dimension_numbers = #tpu.dot_dimension_numbers<[1], [1], [0], [0], [0, 0, 1, 0], [], []>} : vector<8x8xbf16>, vector<16x8xbf16>, vector<8x16xf32> -> vector<8x16xf32>
    %cst_88 = arith.constant dense<0xFF800000> : vector<8xf32>
    %227 = vector.multi_reduction <maximumf>, %226, %cst_88 [1] : vector<8x16xf32> to vector<8xf32>
    %228 = vector.shape_cast %227 : vector<8xf32> to vector<8x1xf32>
    %229 = vector.broadcast %228 : vector<8x1xf32> to vector<8x16xf32>
    %230 = arith.subf %226, %229 : vector<8x16xf32>
    %231 = math.exp %230 : vector<8x16xf32>
    %cst_89 = arith.constant dense<0.000000e+00> : vector<8xf32>
    %232 = vector.multi_reduction <add>, %231, %cst_89 [1] : vector<8x16xf32> to vector<8xf32>
    %233 = vector.shape_cast %232 : vector<8xf32> to vector<8x1xf32>
    %234 = tpu.reciprocal %233 {approx = true} : vector<8x1xf32> -> vector<8x1xf32>
    %235 = vector.broadcast %234 : vector<8x1xf32> to vector<8x16xf32>
    %236 = arith.mulf %231, %235 : vector<8x16xf32>
    %237 = arith.truncf %236 : vector<8x16xf32> to vector<8x16xbf16>
    %238 = vector.extract_strided_slice %159 {offsets = [0, 24], sizes = [16, 8], strides = [1, 1]} : vector<16x32xbf16> to vector<16x8xbf16>
    %cst_90 = arith.constant dense<0.000000e+00> : vector<8x8xf32>
    %239 = tpu.matmul %237, %238, %cst_90 {dimension_numbers = #tpu.dot_dimension_numbers<[1], [0], [0], [1], [0, 0, 1, 1], [], []>} : vector<8x16xbf16>, vector<16x8xbf16>, vector<8x8xf32> -> vector<8x8xf32>
    %240 = arith.truncf %239 : vector<8x8xf32> to vector<8x8xbf16>
    %c3_91 = arith.constant 3 : index
    %c0_92 = arith.constant 0 : index
    %c0_93 = arith.constant 0 : index
    %241 = vector.load %arg11[%c3_91, %c0_92, %c0_93] : memref<4x8x32xbf16, #tpu.memory_space<vmem>>, vector<1x8x32xbf16>
    %242 = vector.shape_cast %241 : vector<1x8x32xbf16> to vector<8x32xbf16>
    %cst_94 = arith.constant dense<0.000000e+00> : vector<8x32xf32>
    %243 = tpu.matmul %240, %242, %cst_94 {dimension_numbers = #tpu.dot_dimension_numbers<[1], [0], [0], [1], [0, 0, 1, 1], [], []>} : vector<8x8xbf16>, vector<8x32xbf16>, vector<8x32xf32> -> vector<8x32xf32>
    %244 = arith.addf %223, %243 : vector<8x32xf32>
    %245 = vector.broadcast %156 : vector<1x32xf32> to vector<8x32xf32>
    %246 = arith.addf %244, %245 : vector<8x32xf32>
    %247 = arith.addf %136, %246 : vector<8x32xf32>
    %248 = vector.extract_strided_slice %4 {offsets = [8, 0], sizes = [1, 32], strides = [1, 1]} : vector<13x32xf32> to vector<1x32xf32>
    %249 = vector.extract_strided_slice %4 {offsets = [11, 0], sizes = [1, 32], strides = [1, 1]} : vector<13x32xf32> to vector<1x32xf32>
    %cst_95 = arith.constant dense<0.000000e+00> : vector<8xf32>
    %250 = vector.multi_reduction <add>, %247, %cst_95 [1] : vector<8x32xf32> to vector<8xf32>
    %251 = vector.shape_cast %250 : vector<8xf32> to vector<8x1xf32>
    %cst_96 = arith.constant 3.200000e+01 : f32
    %252 = vector.broadcast %cst_96 : f32 to vector<8x1xf32>
    %253 = arith.divf %251, %252 : vector<8x1xf32>
    %254 = vector.broadcast %253 : vector<8x1xf32> to vector<8x32xf32>
    %255 = arith.subf %247, %254 : vector<8x32xf32>
    %256 = arith.mulf %255, %255 : vector<8x32xf32>
    %cst_97 = arith.constant dense<0.000000e+00> : vector<8xf32>
    %257 = vector.multi_reduction <add>, %256, %cst_97 [1] : vector<8x32xf32> to vector<8xf32>
    %258 = vector.shape_cast %257 : vector<8xf32> to vector<8x1xf32>
    %cst_98 = arith.constant 3.200000e+01 : f32
    %259 = vector.broadcast %cst_98 : f32 to vector<8x1xf32>
    %260 = arith.divf %258, %259 : vector<8x1xf32>
    %261 = vector.broadcast %253 : vector<8x1xf32> to vector<8x32xf32>
    %262 = arith.subf %247, %261 : vector<8x32xf32>
    %cst_99 = arith.constant 9.99999974E-6 : f32
    %263 = vector.broadcast %cst_99 : f32 to vector<8x1xf32>
    %264 = arith.addf %260, %263 : vector<8x1xf32>
    %265 = math.rsqrt %264 : vector<8x1xf32>
    %266 = vector.broadcast %265 : vector<8x1xf32> to vector<8x32xf32>
    %267 = arith.mulf %262, %266 : vector<8x32xf32>
    %268 = vector.broadcast %248 : vector<1x32xf32> to vector<8x32xf32>
    %269 = arith.mulf %267, %268 : vector<8x32xf32>
    %270 = vector.broadcast %249 : vector<1x32xf32> to vector<8x32xf32>
    %271 = arith.addf %269, %270 : vector<8x32xf32>
    %c0_100 = arith.constant 0 : index
    %c0_101 = arith.constant 0 : index
    %272 = vector.load %arg12[%c0_100, %c0_101] : memref<32x64xbf16, #tpu.memory_space<vmem>>, vector<32x64xbf16>
    %273 = arith.truncf %271 : vector<8x32xf32> to vector<8x32xbf16>
    %cst_102 = arith.constant dense<0.000000e+00> : vector<8x64xf32>
    %274 = tpu.matmul %273, %272, %cst_102 {dimension_numbers = #tpu.dot_dimension_numbers<[1], [0], [0], [1], [0, 0, 1, 1], [], []>} : vector<8x32xbf16>, vector<32x64xbf16>, vector<8x64xf32> -> vector<8x64xf32>
    %c0_103 = arith.constant 0 : index
    %c0_104 = arith.constant 0 : index
    %275 = vector.load %arg15[%c0_103, %c0_104] : memref<1x64xf32, #tpu.memory_space<vmem>>, vector<1x64xf32>
    %276 = vector.broadcast %275 : vector<1x64xf32> to vector<8x64xf32>
    %277 = arith.addf %274, %276 : vector<8x64xf32>
    %cst_105 = arith.constant 0.000000e+00 : f32
    %278 = vector.broadcast %cst_105 : f32 to vector<8x64xf32>
    %279 = arith.maximumf %277, %278 : vector<8x64xf32>
    %c0_106 = arith.constant 0 : index
    %c0_107 = arith.constant 0 : index
    %280 = vector.load %arg13[%c0_106, %c0_107] : memref<64x32xbf16, #tpu.memory_space<vmem>>, vector<64x32xbf16>
    %281 = arith.truncf %279 : vector<8x64xf32> to vector<8x64xbf16>
    %cst_108 = arith.constant dense<0.000000e+00> : vector<8x32xf32>
    %282 = tpu.matmul %281, %280, %cst_108 {dimension_numbers = #tpu.dot_dimension_numbers<[1], [0], [0], [1], [0, 0, 1, 1], [], []>} : vector<8x64xbf16>, vector<64x32xbf16>, vector<8x32xf32> -> vector<8x32xf32>
    %283 = vector.extract_strided_slice %4 {offsets = [6, 0], sizes = [1, 32], strides = [1, 1]} : vector<13x32xf32> to vector<1x32xf32>
    %284 = vector.broadcast %283 : vector<1x32xf32> to vector<8x32xf32>
    %285 = arith.addf %282, %284 : vector<8x32xf32>
    %286 = arith.addf %271, %285 : vector<8x32xf32>
    %287 = vector.extract_strided_slice %4 {offsets = [9, 0], sizes = [1, 32], strides = [1, 1]} : vector<13x32xf32> to vector<1x32xf32>
    %288 = vector.extract_strided_slice %4 {offsets = [12, 0], sizes = [1, 32], strides = [1, 1]} : vector<13x32xf32> to vector<1x32xf32>
    %cst_109 = arith.constant dense<0.000000e+00> : vector<8xf32>
    %289 = vector.multi_reduction <add>, %286, %cst_109 [1] : vector<8x32xf32> to vector<8xf32>
    %290 = vector.shape_cast %289 : vector<8xf32> to vector<8x1xf32>
    %cst_110 = arith.constant 3.200000e+01 : f32
    %291 = vector.broadcast %cst_110 : f32 to vector<8x1xf32>
    %292 = arith.divf %290, %291 : vector<8x1xf32>
    %293 = vector.broadcast %292 : vector<8x1xf32> to vector<8x32xf32>
    %294 = arith.subf %286, %293 : vector<8x32xf32>
    %295 = arith.mulf %294, %294 : vector<8x32xf32>
    %cst_111 = arith.constant dense<0.000000e+00> : vector<8xf32>
    %296 = vector.multi_reduction <add>, %295, %cst_111 [1] : vector<8x32xf32> to vector<8xf32>
    %297 = vector.shape_cast %296 : vector<8xf32> to vector<8x1xf32>
    %cst_112 = arith.constant 3.200000e+01 : f32
    %298 = vector.broadcast %cst_112 : f32 to vector<8x1xf32>
    %299 = arith.divf %297, %298 : vector<8x1xf32>
    %300 = vector.broadcast %292 : vector<8x1xf32> to vector<8x32xf32>
    %301 = arith.subf %286, %300 : vector<8x32xf32>
    %cst_113 = arith.constant 9.99999974E-6 : f32
    %302 = vector.broadcast %cst_113 : f32 to vector<8x1xf32>
    %303 = arith.addf %299, %302 : vector<8x1xf32>
    %304 = math.rsqrt %303 : vector<8x1xf32>
    %305 = vector.broadcast %304 : vector<8x1xf32> to vector<8x32xf32>
    %306 = arith.mulf %301, %305 : vector<8x32xf32>
    %307 = vector.broadcast %287 : vector<1x32xf32> to vector<8x32xf32>
    %308 = arith.mulf %306, %307 : vector<8x32xf32>
    %309 = vector.broadcast %288 : vector<1x32xf32> to vector<8x32xf32>
    %310 = arith.addf %308, %309 : vector<8x32xf32>
    %c0_114 = arith.constant 0 : index
    %c0_115 = arith.constant 0 : index
    %311 = vector.load %arg16[%c0_114, %c0_115] : memref<2x32xf32, #tpu.memory_space<vmem>>, vector<2x32xf32>
    %312 = vector.extract_strided_slice %311 {offsets = [0, 0], sizes = [1, 32], strides = [1, 1]} : vector<2x32xf32> to vector<1x32xf32>
    %313 = vector.extract_strided_slice %311 {offsets = [1, 0], sizes = [1, 32], strides = [1, 1]} : vector<2x32xf32> to vector<1x32xf32>
    %cst_116 = arith.constant dense<0.000000e+00> : vector<8xf32>
    %314 = vector.multi_reduction <add>, %310, %cst_116 [1] : vector<8x32xf32> to vector<8xf32>
    %315 = vector.shape_cast %314 : vector<8xf32> to vector<8x1xf32>
    %cst_117 = arith.constant 3.200000e+01 : f32
    %316 = vector.broadcast %cst_117 : f32 to vector<8x1xf32>
    %317 = arith.divf %315, %316 : vector<8x1xf32>
    %318 = vector.broadcast %317 : vector<8x1xf32> to vector<8x32xf32>
    %319 = arith.subf %310, %318 : vector<8x32xf32>
    %320 = arith.mulf %319, %319 : vector<8x32xf32>
    %cst_118 = arith.constant dense<0.000000e+00> : vector<8xf32>
    %321 = vector.multi_reduction <add>, %320, %cst_118 [1] : vector<8x32xf32> to vector<8xf32>
    %322 = vector.shape_cast %321 : vector<8xf32> to vector<8x1xf32>
    %cst_119 = arith.constant 3.200000e+01 : f32
    %323 = vector.broadcast %cst_119 : f32 to vector<8x1xf32>
    %324 = arith.divf %322, %323 : vector<8x1xf32>
    %325 = vector.broadcast %317 : vector<8x1xf32> to vector<8x32xf32>
    %326 = arith.subf %310, %325 : vector<8x32xf32>
    %cst_120 = arith.constant 9.99999974E-6 : f32
    %327 = vector.broadcast %cst_120 : f32 to vector<8x1xf32>
    %328 = arith.addf %324, %327 : vector<8x1xf32>
    %329 = math.rsqrt %328 : vector<8x1xf32>
    %330 = vector.broadcast %329 : vector<8x1xf32> to vector<8x32xf32>
    %331 = arith.mulf %326, %330 : vector<8x32xf32>
    %332 = vector.broadcast %312 : vector<1x32xf32> to vector<8x32xf32>
    %333 = arith.mulf %331, %332 : vector<8x32xf32>
    %334 = vector.broadcast %313 : vector<1x32xf32> to vector<8x32xf32>
    %335 = arith.addf %333, %334 : vector<8x32xf32>
    %c0_121 = arith.constant 0 : index
    %c0_122 = arith.constant 0 : index
    %c0_123 = arith.constant 0 : index
    %336 = vector.load %arg17[%c0_121, %c0_122, %c0_123] : memref<1x8x32xf32, #tpu.memory_space<vmem>>, vector<1x8x32xf32>
    %337 = vector.shape_cast %336 : vector<1x8x32xf32> to vector<8x32xf32>
    %338 = vector.shape_cast %335 : vector<8x32xf32> to vector<1x8x32xf32>
    tpu.vector_store %arg17[%c0_121, %c0_122, %c0_123], %338 {strides = array<i32>} : memref<1x8x32xf32, #tpu.memory_space<vmem>>, vector<1x8x32xf32>,
    return
  }
  func.func @transform_0(%arg0: i32) -> (i32, i32, i32) {
    %c0_i32 = arith.constant 0 : i32
    %c0_i32_0 = arith.constant 0 : i32
    %c0_i32_1 = arith.constant 0 : i32
    return %arg0, %c0_i32, %c0_i32_0 : i32, i32, i32
  }
  func.func @transform_1(%arg0: i32) -> (i32, i32, i32) {
    %c0_i32 = arith.constant 0 : i32
    %c0_i32_0 = arith.constant 0 : i32
    %c0_i32_1 = arith.constant 0 : i32
    return %arg0, %c0_i32, %c0_i32_0 : i32, i32, i32
  }
  func.func @transform_2(%arg0: i32) -> (i32, i32, i32) {
    %c0_i32 = arith.constant 0 : i32
    %c0_i32_0 = arith.constant 0 : i32
    %c0_i32_1 = arith.constant 0 : i32
    return %arg0, %c0_i32, %c0_i32_0 : i32, i32, i32
  }
  func.func @transform_3(%arg0: i32) -> (i32, i32, i32) {
    %c0_i32 = arith.constant 0 : i32
    %c0_i32_0 = arith.constant 0 : i32
    %c0_i32_1 = arith.constant 0 : i32
    return %arg0, %c0_i32, %c0_i32_0 : i32, i32, i32
  }
  func.func @transform_4(%arg0: i32) -> (i32, i32) {
    %c0_i32 = arith.constant 0 : i32
    %c0_i32_0 = arith.constant 0 : i32
    %c0_i32_1 = arith.constant 0 : i32
    return %c0_i32, %c0_i32_0 : i32, i32
  }
  func.func @transform_5(%arg0: i32) -> (i32, i32) {
    %c0_i32 = arith.constant 0 : i32
    %c0_i32_0 = arith.constant 0 : i32
    %c0_i32_1 = arith.constant 0 : i32
    return %c0_i32, %c0_i32_0 : i32, i32
  }
  func.func @transform_6(%arg0: i32) -> (i32, i32, i32) {
    %c0_i32 = arith.constant 0 : i32
    %c0_i32_0 = arith.constant 0 : i32
    %c0_i32_1 = arith.constant 0 : i32
    %c0_i32_2 = arith.constant 0 : i32
    return %c0_i32, %c0_i32_0, %c0_i32_1 : i32, i32, i32
  }
  func.func @transform_7(%arg0: i32) -> (i32, i32) {
    %c0_i32 = arith.constant 0 : i32
    %c0_i32_0 = arith.constant 0 : i32
    %c0_i32_1 = arith.constant 0 : i32
    return %c0_i32, %c0_i32_0 : i32, i32
  }
  func.func @transform_8(%arg0: i32) -> (i32, i32) {
    %c0_i32 = arith.constant 0 : i32
    %c0_i32_0 = arith.constant 0 : i32
    %c0_i32_1 = arith.constant 0 : i32
    return %c0_i32, %c0_i32_0 : i32, i32
  }
  func.func @transform_9(%arg0: i32) -> (i32, i32) {
    %c0_i32 = arith.constant 0 : i32
    %c0_i32_0 = arith.constant 0 : i32
    %c0_i32_1 = arith.constant 0 : i32
    return %c0_i32, %c0_i32_0 : i32, i32
  }
  func.func @transform_10(%arg0: i32) -> (i32, i32, i32) {
    %c0_i32 = arith.constant 0 : i32
    %c0_i32_0 = arith.constant 0 : i32
    %c0_i32_1 = arith.constant 0 : i32
    %c0_i32_2 = arith.constant 0 : i32
    return %c0_i32, %c0_i32_0, %c0_i32_1 : i32, i32, i32
  }
  func.func @transform_11(%arg0: i32) -> (i32, i32) {
    %c0_i32 = arith.constant 0 : i32
    %c0_i32_0 = arith.constant 0 : i32
    %c0_i32_1 = arith.constant 0 : i32
    return %c0_i32, %c0_i32_0 : i32, i32
  }
  func.func @transform_12(%arg0: i32) -> (i32, i32) {
    %c0_i32 = arith.constant 0 : i32
    %c0_i32_0 = arith.constant 0 : i32
    %c0_i32_1 = arith.constant 0 : i32
    return %c0_i32, %c0_i32_0 : i32, i32
  }
  func.func @transform_13(%arg0: i32) -> (i32, i32) {
    %c0_i32 = arith.constant 0 : i32
    %c0_i32_0 = arith.constant 0 : i32
    %c0_i32_1 = arith.constant 0 : i32
    return %c0_i32, %c0_i32_0 : i32, i32
  }
  func.func @transform_14(%arg0: i32) -> (i32, i32) {
    %c0_i32 = arith.constant 0 : i32
    %c0_i32_0 = arith.constant 0 : i32
    %c0_i32_1 = arith.constant 0 : i32
    return %c0_i32, %c0_i32_0 : i32, i32
  }
  func.func @transform_15(%arg0: i32) -> (i32, i32) {
    %c0_i32 = arith.constant 0 : i32
    %c0_i32_0 = arith.constant 0 : i32
    %c0_i32_1 = arith.constant 0 : i32
    return %c0_i32, %c0_i32_0 : i32, i32
  }
  func.func @transform_16(%arg0: i32) -> (i32, i32, i32) {
    %c0_i32 = arith.constant 0 : i32
    %c0_i32_0 = arith.constant 0 : i32
    %c0_i32_1 = arith.constant 0 : i32
    return %arg0, %c0_i32, %c0_i32_0 : i32, i32, i32
  }
}

</mosaic_0001>

<bundles_post_ra>
// kernel: transformer_decoder.3
= control target key start
LH: loop header
LB: loop body
LE: loop exit
PB: predicated region body
PF: predicated region fallthrough
CT: control target
= control target key end

     0   :  { %s3332_s0 = inlined_call_operand.hbm [shape: bf16[2,16,32], index: 0, kind: input, shape index: {}]   ;;  %s3333_s1 = inlined_call_operand.hbm [shape: bf16[2,16,32], index: 1, kind: input, shape index: {}]   ;;  %s3334_s2 = inlined_call_operand.hbm [shape: bf16[2,8,32], index: 2, kind: input, shape index: {}]   ;;  %s3335_s3 = inlined_call_operand.hbm [shape: bf16[32,32], index: 3, kind: input, shape index: {}]   ;;  %s3336_s4 = inlined_call_operand.hbm [shape: bf16[32,32], index: 4, kind: input, shape index: {}]   ;;  %s3337_s5 = inlined_call_operand.hbm [shape: bf16[32,32], index: 5, kind: input, shape index: {}]   ;;  %s3338_s6 = inlined_call_operand.hbm [shape: bf16[4,8,32], index: 6, kind: input, shape index: {}]   ;;  %s3339_s7 = inlined_call_operand.hbm [shape: bf16[32,64], index: 7, kind: input, shape index: {}]   ;;  %s3340_s8 = inlined_call_operand.hbm [shape: bf16[64,32], index: 8, kind: input, shape index: {}]   ;;  %s3341_s9 = inlined_call_operand.hbm [shape: f32[8,32], index: 9, kind: input, shape index: {}]   ;;  %s3342_s10 = inlined_call_operand.hbm [shape: f32[1,64], index: 10, kind: input, shape index: {}]   ;;  %s3343_s11 = inlined_call_operand.hbm [shape: f32[2,8,32], index: 11, kind: output, shape index: {}]  }
   0x1   :  { %3370 = sst [smem:[#allocation34_spill]] %s3333_s1 }
   0x2   :  { %3371 = sst [smem:[#allocation35_spill]] %s3334_s2 }
   0x3   :  { %3372 = sst [smem:[#allocation36_spill]] %s3335_s3 }
   0x4   :  { %3373 = sst [smem:[#allocation37_spill]] %s3337_s5 }
   0x5   :  { %3374 = sst [smem:[#allocation38_spill]] %s3339_s7 }
   0x6   :  { %3375 = sst [smem:[#allocation39_spill]] %s3341_s9 }
   0x7   :  { %3376 = sst [smem:[#allocation40_spill]] %s3343_s11 }
   0x8   :  { %16 = vsyncpa [#allocation3], 0 }
   0x9   :  { %18 = vsyncpa [#allocation3 + $0x1], 0 }
   0xa   :  { %19 = vsyncpa [#allocation6], 0 }
   0xb   :  { %21 = vsyncpa [#allocation6 + $0x1], 0 }
   0xc   :  { %22 = vsyncpa [#allocation9], 0 }
   0xd   :  { %23 = vsyncpa [#allocation12], 0 }
   0xe   :  { %24 = vsyncpa [#allocation15], 0 }
   0xf   :  { %25 = vsyncpa [#allocation18], 0 }
  0x10   :  { %26 = vsyncpa [#allocation4], 0 }
  0x11   :  { %28 = vsyncpa [#allocation4 + $0x1], 0  ;;  %s2719_s17 = smov 0   ;;  %s2721_s18 = smov 0  }
  0x12   :  { %s2723_s19 = smov 0   ;;  %s2725_s20 = smov 0  }
  0x13 LB: > { %3377 = sst [smem:[#allocation28_spill]] %s2626_s17  ;;  %s2640_s21 = smov [#allocation8]   ;;  %s2638_s20 = sphi %s2725_s20, %s3424_s20   ;;  %s2634_s19 = sphi %s2723_s19, %s3426_s19   ;;  %s2630_s18 = sphi %s2721_s18, %s3428_s18   ;;  %s2626_s17 = sphi %s2719_s17, %s3427_s17  }
  0x14   : > { %3378 = sst [smem:[#allocation29_spill]] %s2634_s19  ;;  %s323_s22 = sshll.u32 %s2640_s21, 4  ;;  %s2745_s22 = int_to_ptr.vmem [resolvable:$true] %s323_s22 }
  0x15   : > { %s2740_s23 = sadd.s32 4294967295, %s2638_s20   ;;  %p1834_p0 = scmp.ge.s32.totalorder %s2638_s20, 1 }
  0x16   : > { %p3347_p1 = scmp.eq.s32.totalorder %s2740_s23, 0  ;;  %p311_p2 = scmp.lt.s32.totalorder %s2638_s20, 3 }
  0x17   : > { %s2641_s25 = smov [#allocation11]   ;;  %s2642_s28 = smov [#allocation14]  }
  0x18   : > { %p2747_p3 = pnand %p1834_p0, %p311_p2  ;;  %s349_s26 = sshll.u32 %s2641_s25, 4  ;;  %s2760_s26 = int_to_ptr.vmem [resolvable:$true] %s349_s26 }
  0x19   : > { %s375_s29 = sshll.u32 %s2642_s28, 4  ;;  %s3382_s3 = sld [smem:[#allocation36_spill]]  ;;  %s2762_s29 = int_to_ptr.vmem [resolvable:$true] %s375_s29 }
  0x1a   : > { %s3379_s24 = scalar_select %p2747_p3, 1, 0 }
  0x1b   : > { %p2100_p5 = pneg %p2747_p3 }
  0x1c   : > { %3380 = sst [smem:[#allocation30_spill]] %s3379_s24 }
  0x1d   : > { %p2756_p6 = pnand %p2100_p5, %p3347_p1 }
  0x1f   : > { %s3381_s27 = scalar_select %p2756_p6, 1, 0 }
  0x20   : > { %s2238_s13 = scalar_lea.hbm %s3382_s3, 256  ;;  %p2772_p8 = pneg %p2756_p6 }
  0x21   : > { %p2239_p7 = scmp.ne.s32.totalorder %s3382_s3, %s2238_s13  ;;  %p2245_p11 = scmp.lt.u32.totalorder %s2238_s13, %s3382_s3 }
  0x22   : > { %s3383_s16 = scalar_select %p2772_p8, 1, 0 }
  0x23   : > { %p2241_p9 = pnand %p2772_p8, %p2239_p7 }
  0x25   : > { %p2242_p10 = pneg %p2241_p9 }
  0x27   : > { %p2247_p12 = pnand %p2245_p11, %p2242_p10 }
  0x29   : > { %2250 = shalt.err (!%p2247_p12)
}
  0x2a   : > { %s2251_s28 = scalar_lea.vmem %s2745_s22, 256  ;;  %p2259_p5 = scmp.lt.s32.totalorder %s2745_s22, %s2745_s22 }
  0x2b   : > { %p2252_p13 = scmp.ne.s32.totalorder %s2745_s22, %s2251_s28  ;;  %p2260_p4 = scmp.lt.s32.totalorder %s2251_s28, %s2251_s28 }
  0x2d   : > { %p2254_p0 = pnand %p2252_p13, %p2772_p8  ;;  %p2261_p7 = por %p2260_p4, %p2259_p5 }
  0x2f   : > { %p2255_p2 = pneg %p2254_p0 }
  0x31   : > { %p2262_p9 = pnand %p2261_p7, %p2255_p2 }
  0x33   : > { %2265 = shalt.err (!%p2262_p9)
}
  0x34   : > { %s3349_s30 = smov 64   ;;  %s3351_s12 = smov 4  }
  0x35   : > { %2103 = dma.hbm_to_vmem [thread:$0]  (!%p2756_p6), %s3382_s3, 256, %s2745_s22, [#allocation9], %s3349_s30, %s3349_s30, %s3351_s12  }
  0x36   : > { %s3384_s5 = sld [smem:[#allocation37_spill]] }
  0x3c   : > { %s2266_s25 = scalar_lea.hbm %s3384_s5, 256 }
  0x3d   : > { %p2267_p4 = scmp.ne.s32.totalorder %s3384_s5, %s2266_s25  ;;  %p2273_p12 = scmp.lt.u32.totalorder %s2266_s25, %s3384_s5 }
  0x3f   : > { %p2269_p10 = pnand %p2267_p4, %p2772_p8 }
  0x41   : > { %p2270_p11 = pneg %p2269_p10 }
  0x43   : > { %p2275_p13 = pnand %p2273_p12, %p2270_p11 }
  0x45   : > { %2278 = shalt.err (!%p2275_p13)
}
  0x46   : > { %s2279_s22 = scalar_lea.vmem %s2760_s26, 256  ;;  %p2287_p7 = scmp.lt.s32.totalorder %s2760_s26, %s2760_s26 }
  0x47   : > { %p2280_p0 = scmp.ne.s32.totalorder %s2760_s26, %s2279_s22  ;;  %p2288_p9 = scmp.lt.s32.totalorder %s2279_s22, %s2279_s22 }
  0x49   : > { %p2282_p2 = pnand %p2280_p0, %p2772_p8  ;;  %p2289_p4 = por %p2288_p9, %p2287_p7 }
  0x4b   : > { %p2283_p5 = pneg %p2282_p2 }
  0x4d   : > { %p2290_p10 = pnand %p2289_p4, %p2283_p5 }
  0x4f   : > { %2293 = shalt.err (!%p2290_p10)
}
  0x50   : > { %2109 = dma.hbm_to_vmem [thread:$0]  (!%p2756_p6), %s3384_s5, 256, %s2760_s26, [#allocation12], %s3349_s30, %s3349_s30, %s3351_s12  }
  0x51   : > { %s3385_s7 = sld [smem:[#allocation38_spill]] }
  0x57   : > { %s2294_s14 = scalar_lea.hbm %s3385_s7, 256 }
  0x58   : > { %p2295_p11 = scmp.ne.s32.totalorder %s3385_s7, %s2294_s14  ;;  %p2301_p0 = scmp.lt.u32.totalorder %s2294_s14, %s3385_s7 }
  0x5a   : > { %p2297_p12 = pnand %p2295_p11, %p2772_p8 }
  0x5c   : > { %p2298_p13 = pneg %p2297_p12 }
  0x5e   : > { %p2303_p2 = pnand %p2301_p0, %p2298_p13 }
  0x60   : > { %2306 = shalt.err (!%p2303_p2)
}
  0x61   : > { %s2307_s26 = scalar_lea.vmem %s2762_s29, 256  ;;  %p2315_p4 = scmp.lt.s32.totalorder %s2762_s29, %s2762_s29 }
  0x62   : > { %p2308_p5 = scmp.ne.s32.totalorder %s2762_s29, %s2307_s26  ;;  %p2316_p10 = scmp.lt.s32.totalorder %s2307_s26, %s2307_s26 }
  0x64   : > { %p2310_p7 = pnand %p2308_p5, %p2772_p8  ;;  %p2317_p11 = por %p2316_p10, %p2315_p4 }
  0x66   : > { %p2311_p9 = pneg %p2310_p7 }
  0x68   : > { %p2318_p12 = pnand %p2317_p11, %p2311_p9 }
  0x6a   : > { %2321 = shalt.err (!%p2318_p12)
}
  0x6b   : > { %2115 = dma.hbm_to_vmem [thread:$0]  (!%p2756_p6), %s3385_s7, 256, %s2762_s29, [#allocation15], %s3349_s30, %s3349_s30, %s3351_s12  }
  0x6c   : > { %s2645_s11 = smov [#allocation17]   ;;  %s3386_s9 = sld [smem:[#allocation39_spill]] }
  0x6d   : > { %s402_s24 = sshll.u32 %s2645_s11, 4  ;;  %s403_s24 = int_to_ptr.vmem [resolvable:$true] %s402_s24 }
  0x72   : > { %s2322_s15 = scalar_lea.hbm %s3386_s9, 128 }
  0x73   : > { %p2323_p13 = scmp.ne.s32.totalorder %s3386_s9, %s2322_s15  ;;  %p2329_p5 = scmp.lt.u32.totalorder %s2322_s15, %s3386_s9 }
  0x75   : > { %p2325_p0 = pnand %p2323_p13, %p2772_p8 }
  0x77   : > { %p2326_p2 = pneg %p2325_p0 }
  0x79   : > { %p2331_p7 = pnand %p2329_p5, %p2326_p2 }
  0x7b   : > { %2334 = shalt.err (!%p2331_p7)
}
  0x7c   : > { %s2335_s29 = scalar_lea.vmem %s403_s24, 128  ;;  %p2343_p11 = scmp.lt.s32.totalorder %s403_s24, %s403_s24 }
  0x7d   : > { %p2336_p9 = scmp.ne.s32.totalorder %s403_s24, %s2335_s29  ;;  %p2344_p12 = scmp.lt.s32.totalorder %s2335_s29, %s2335_s29 }
  0x7f   : > { %p2338_p4 = pnand %p2336_p9, %p2772_p8  ;;  %p2345_p1 = por %p2344_p12, %p2343_p11 }
  0x81   : > { %p2339_p10 = pneg %p2338_p4 }
  0x83   : > { %p2346_p3 = pnand %p2345_p1, %p2339_p10 }
  0x85   : > { %2349 = shalt.err (!%p2346_p3)
}
  0x86   : > { %2121 = dma.hbm_to_vmem [thread:$0]  (!%p2756_p6), %s3386_s9, 128, %s403_s24, [#allocation18]  }
  0x87   : > { %s1833_s11 = sadd.s32 4294967294, %s2638_s20   ;;  %s2868_s13 = sadd.s32 1, %s2638_s20  }
  0x88   : > { %3387 = sst [smem:[#allocation31_spill]] %s2868_s13  ;;  %s38_s14 = ssub.s32 %s2638_s20, %s2868_s13 }
  0x89   : > { %s41_s15 = sadd.s32 1, %s2634_s19  ;;  %p39_p1 = scmp.eq.s32.totalorder %s38_s14, 0 }
  0x8a   : > { %p48_p3 = scmp.ne.s32.totalorder %s2634_s19, %s2630_s18  ;;  %p49_p13 = scmp.eq.s32.totalorder %s2638_s20, 0 }
  0x8b   : > { %p54_p0 = scmp.ne.s32.totalorder %s2630_s18, %s2626_s17  ;;  %p3389_p5 = scmp.eq.s32.totalorder %s2740_s23, 0 }
  0x8c   : > { %s2879_s21 = scalar_select %p39_p1, %s2634_s19, %s41_s15  }
  0x8d   : > { %p50_p2 = por %p49_p13, %p48_p3  ;;  %p2883_p7 = por %p3389_p5, %p54_p0 }
  0x8e   : > { %3388 = sst [smem:[#allocation32_spill]] %s2879_s21  ;;  %p298_p9 = scmp.eq.s32.totalorder %s2740_s23, 1 }
  0x8f   : > { %s3390_s25 = scalar_select %p2883_p7, 1, 0 }
  0x90   : > { %p304_p4 = scmp.eq.s32.totalorder %s1833_s11, 1  ;;  %p2147_p10 = scmp.lt.s32.totalorder %s2638_s20, 2 }
  0x91   : > { %s2890_s24 = sand.u32 1, %s2634_s19   ;;  %p2892_p11 = por %p298_p9, %p48_p3 }
  0x92   : > { %p2896_p12 = por %p304_p4, %p54_p0  ;;  %s3353_s29 = sshll.u32 %s2890_s24, 3 }
  0x93   : > { %s3391_s28 = scalar_select %p2892_p11, 1, 0 }
  0x94   : > { %s3392_s26 = scalar_select %p2896_p12, 1, 0 }
  0x95   : > { %s3354_s22 = sshll.u32 %s2638_s20, 7  ;;  %p2902_p1 = pnand %p2147_p10, %p50_p2 }
  0x96   : > { %3393 = sst [smem:[#allocation33_spill]] %s3392_s26  ;;  %s445_s11 = sand.u32 1, %s2638_s20  }
  0x97   : > { %s3394_s2 = scalar_select %p2902_p1, 1, 0 }
  0x98   : > { %s3395_s1 = sld [smem:[#allocation34_spill]]  ;;  %s449_s12 = scalar_lea.vmem [#allocation5], %s3353_s29 }
  0x99   : > { %s456_s3 = sshll.u32 %s449_s12, 4  ;;  %s2646_s5 = smov [#allocation10]   ;;  %s2916_s3 = int_to_ptr.vmem [resolvable:$true] %s456_s3 }
  0x9a   : > { %s2918_s7 = sshll.u32 %s2646_s5, 4  ;;  %s2920_s9 = scalar_lea.sflag [#allocation6], %s445_s11  ;;  %s337_s7 = int_to_ptr.vmem [resolvable:$true] %s2918_s7 }
  0x9b   : > { %p2926_p13 = pneg %p2902_p1 }
  0x9d   : > { %s3396_s14 = scalar_select %p2926_p13, 1, 0 }
  0x9e   : > { %s2912_s30 = scalar_lea.hbm %s3395_s1, %s3354_s22  ;;  %s2355_s29 = scalar_lea.hbm %s3395_s1, 256 }
  0x9f   : > { %s2350_s21 = scalar_lea.hbm %s2912_s30, 128  ;;  %p2356_p5 = scmp.lt.u32.totalorder %s2912_s30, %s3395_s1 }
  0xa0   : > { %p2351_p3 = scmp.ne.s32.totalorder %s2912_s30, %s2350_s21  ;;  %p2357_p9 = scmp.lt.u32.totalorder %s2355_s29, %s2350_s21 }
  0xa1   : > { %p2359_p10 = scmp.lt.u32.totalorder %s2350_s21, %s2912_s30 }
  0xa2   : > { %p2353_p0 = pnand %p2926_p13, %p2351_p3  ;;  %p2358_p4 = por %p2357_p9, %p2356_p5 }
  0xa4   : > { %p2354_p2 = pneg %p2353_p0  ;;  %p2360_p12 = por %p2359_p10, %p2358_p4 }
  0xa6   : > { %p2361_p11 = pnand %p2360_p12, %p2354_p2 }
  0xa8   : > { %2364 = shalt.err (!%p2361_p11)
}
  0xa9   : > { %s2365_s11 = scalar_lea.vmem %s2916_s3, 128  ;;  %s2647_s15 = smov [#allocation5]  }
  0xaa   : > { %p2366_p3 = scmp.ne.s32.totalorder %s2916_s3, %s2365_s11  ;;  %s2370_s12 = sshll.u32 %s2647_s15, 4  ;;  %s2371_s12 = int_to_ptr.vmem [resolvable:$false] %s2370_s12 }
  0xab   : > { %s2372_s22 = scalar_lea.vmem %s2371_s12, 256  ;;  %p2373_p6 = scmp.lt.s32.totalorder %s2916_s3, %s2371_s12 }
  0xac   : > { %p2368_p0 = pnand %p2366_p3, %p2926_p13  ;;  %p2374_p8 = scmp.lt.s32.totalorder %s2372_s22, %s2365_s11 }
  0xae   : > { %p2369_p7 = pneg %p2368_p0  ;;  %p2375_p5 = por %p2374_p8, %p2373_p6 }
  0xb0   : > { %p2376_p9 = pnand %p2375_p5, %p2369_p7 }
  0xb2   : > { %2379 = shalt.err (!%p2376_p9)
}
  0xb3   : > { %s3397_s21 = smov 4   ;;  %s3398_s29 = smov 64  }
  0xb4   : > { %2131 = dma.hbm_to_vmem [thread:$0]  (!%p2902_p1), %s2912_s30, 128, %s2916_s3, %s2920_s9, %s3398_s29, %s3398_s29, %s3397_s21  }
  0xb5   : > { %s2380_s12 = scalar_lea.hbm %s3336_s4, 256  ;;  %p3399_p8 = scmp.ne.s32.totalorder %s3383_s16, 0 }
  0xb6   : > { %p2381_p6 = scmp.ne.s32.totalorder %s3336_s4, %s2380_s12  ;;  %p2387_p12 = scmp.lt.u32.totalorder %s2380_s12, %s3336_s4 }
  0xb8   : > { %p2383_p7 = pnand %p2381_p6, %p3399_p8 }
  0xba   : > { %p2384_p11 = pneg %p2383_p7 }
  0xbc   : > { %p2389_p2 = pnand %p2387_p12, %p2384_p11 }
  0xbe   : > { %2392 = shalt.err (!%p2389_p2)
}
  0xbf   : > { %s2393_s13 = scalar_lea.vmem %s337_s7, 256  ;;  %p2401_p0 = scmp.lt.s32.totalorder %s337_s7, %s337_s7 }
  0xc0   : > { %p2394_p4 = scmp.ne.s32.totalorder %s337_s7, %s2393_s13  ;;  %p2402_p5 = scmp.lt.s32.totalorder %s2393_s13, %s2393_s13 }
  0xc2   : > { %p2396_p10 = pnand %p2394_p4, %p3399_p8  ;;  %p2403_p9 = por %p2402_p5, %p2401_p0 }
  0xc4   : > { %p2397_p3 = pneg %p2396_p10 }
  0xc6   : > { %p2404_p1 = pnand %p2403_p9, %p2397_p3 }
  0xc8   : > { %2407 = shalt.err (!%p2404_p1)
}
  0xc9   : > { %p3400_p6 = scmp.ne.s32.totalorder %s3381_s27, 0  ;;  %s2648_s19 = smov [#allocation13]  }
  0xca   : > { %s362_s30 = sshll.u32 %s2648_s19, 4  ;;  %s2649_s5 = smov [#allocation16]   ;;  %s363_s30 = int_to_ptr.vmem [resolvable:$true] %s362_s30 }
  0xcb   : > { %2106 = dma.hbm_to_vmem [thread:$0]  (!%p3400_p6), %s3336_s4, 256, %s337_s7, [#allocation9], %s3398_s29, %s3398_s29, %s3397_s21  }
  0xcc   : > { %s388_s15 = sshll.u32 %s2649_s5, 4  ;;  %s2408_s11 = scalar_lea.hbm %s3338_s6, 256  ;;  %s389_s15 = int_to_ptr.vmem [resolvable:$true] %s388_s15 }
  0xcd   : > { %p2409_p1 = scmp.ne.s32.totalorder %s3338_s6, %s2408_s11  ;;  %p2415_p12 = scmp.lt.u32.totalorder %s2408_s11, %s3338_s6 }
  0xcf   : > { %p2411_p7 = pnand %p2409_p1, %p3399_p8 }
  0xd1   : > { %p2412_p11 = pneg %p2411_p7 }
  0xd3   : > { %p2417_p2 = pnand %p2415_p12, %p2412_p11 }
  0xd5   : > { %2420 = shalt.err (!%p2417_p2)
}
  0xd6   : > { %s2421_s7 = scalar_lea.vmem %s363_s30, 256  ;;  %p2429_p0 = scmp.lt.s32.totalorder %s363_s30, %s363_s30 }
  0xd7   : > { %p2422_p4 = scmp.ne.s32.totalorder %s363_s30, %s2421_s7  ;;  %p2430_p5 = scmp.lt.s32.totalorder %s2421_s7, %s2421_s7 }
  0xd9   : > { %p2424_p10 = pnand %p2422_p4, %p3399_p8  ;;  %p2431_p9 = por %p2430_p5, %p2429_p0 }
  0xdb   : > { %p2425_p3 = pneg %p2424_p10 }
  0xdd   : > { %p2432_p13 = pnand %p2431_p9, %p2425_p3 }
  0xdf   : > { %2435 = shalt.err (!%p2432_p13)
}
  0xe0   : > { %2112 = dma.hbm_to_vmem [thread:$0]  (!%p3400_p6), %s3338_s6, 256, %s363_s30, [#allocation12], %s3398_s29, %s3398_s29, %s3397_s21  }
  0xe1   : > { %s2436_s5 = scalar_lea.hbm %s3340_s8, 512 }
  0xe2   : > { %p2437_p1 = scmp.ne.s32.totalorder %s3340_s8, %s2436_s5  ;;  %p2443_p11 = scmp.lt.u32.totalorder %s2436_s5, %s3340_s8 }
  0xe4   : > { %p2439_p13 = pnand %p2437_p1, %p3399_p8 }
  0xe6   : > { %p2440_p7 = pneg %p2439_p13 }
  0xe8   : > { %p2445_p12 = pnand %p2443_p11, %p2440_p7 }
  0xea   : > { %2448 = shalt.err (!%p2445_p12)
}
  0xeb   : > { %s2449_s1 = scalar_lea.vmem %s389_s15, 512  ;;  %p2457_p3 = scmp.lt.s32.totalorder %s389_s15, %s389_s15 }
  0xec   : > { %p2450_p2 = scmp.ne.s32.totalorder %s389_s15, %s2449_s1  ;;  %p2458_p0 = scmp.lt.s32.totalorder %s2449_s1, %s2449_s1 }
  0xee   : > { %p2452_p4 = pnand %p2450_p2, %p3399_p8  ;;  %p2459_p5 = por %p2458_p0, %p2457_p3 }
  0xf0   : > { %p2453_p10 = pneg %p2452_p4 }
  0xf2   : > { %p2460_p9 = pnand %p2459_p5, %p2453_p10 }
  0xf4   : > { %2463 = shalt.err (!%p2460_p9)
}
  0xf5   : > { %2118 = dma.hbm_to_vmem [thread:$0]  (!%p3400_p6), %s3340_s8, 512, %s389_s15, [#allocation15], %s3398_s29, %s3398_s29, %s3397_s21  }
  0xf6   : > { %s2650_s17 = smov [#allocation19]   ;;  %s2464_s5 = scalar_lea.hbm %s3342_s10, 16 }
  0xf7   : > { %s413_s26 = sshll.u32 %s2650_s17, 4  ;;  %p2465_p1 = scmp.ne.s32.totalorder %s3342_s10, %s2464_s5  ;;  %s414_s26 = int_to_ptr.vmem [resolvable:$true] %s413_s26 }
  0xf8   : > { %p2471_p11 = scmp.lt.u32.totalorder %s2464_s5, %s3342_s10 }
  0xf9   : > { %p2467_p13 = pnand %p2465_p1, %p3399_p8 }
  0xfb   : > { %p2468_p7 = pneg %p2467_p13 }
  0xfd   : > { %p2473_p12 = pnand %p2471_p11, %p2468_p7 }
  0xff   : > { %2476 = shalt.err (!%p2473_p12)
}
 0x100   : > { %s2477_s15 = scalar_lea.vmem %s414_s26, 16  ;;  %s2484_s1 = scalar_lea.vmem %s414_s26, 32 }
 0x101   : > { %p2478_p2 = scmp.ne.s32.totalorder %s414_s26, %s2477_s15  ;;  %p2485_p3 = scmp.lt.s32.totalorder %s414_s26, %s414_s26 }
 0x102   : > { %p2486_p0 = scmp.lt.s32.totalorder %s2484_s1, %s2477_s15 }
 0x103   : > { %p2480_p4 = pnand %p2478_p2, %p3399_p8 }
 0x104   : > { %p2487_p5 = por %p2486_p0, %p2485_p3 }
 0x105   : > { %p2481_p10 = pneg %p2480_p4 }
 0x107   : > { %p2488_p9 = pnand %p2487_p5, %p2481_p10 }
 0x109   : > { %2491 = shalt.err (!%p2488_p9)
}
 0x10a   : > { %2124 = dma.hbm_to_vmem [thread:$0]  (!%p3400_p6), %s3342_s10, 16, %s414_s26, [#allocation18]  }
 0x10b   : > { %s3401_s16 = sshll.u32 %s2638_s20, 7  ;;  %s3402_s5 = sshll.u32 %s2890_s24, 3 }
 0x10c   : > { %s3040_s19 = scalar_lea.hbm %s3332_s0, %s3401_s16  ;;  %s428_s27 = scalar_lea.vmem [#allocation2], %s3402_s5 }
 0x10d   : > { %s435_s12 = sshll.u32 %s428_s27, 4  ;;  %s1850_s13 = sshll.u32 %s2890_s24, 2  ;;  %s3044_s12 = int_to_ptr.vmem [resolvable:$true] %s435_s12 }
 0x10e   : > { %s425_s11 = scalar_lea.sflag [#allocation3], %s2890_s24  ;;  %s2492_s22 = scalar_lea.hbm %s3040_s19, 128 }
 0x10f   : > { %p2493_p8 = scmp.ne.s32.totalorder %s3040_s19, %s2492_s22  ;;  %p3403_p6 = scmp.ne.s32.totalorder %s3396_s14, 0 }
 0x110   : > { %s2497_s1 = scalar_lea.hbm %s3332_s0, 256  ;;  %p2498_p7 = scmp.lt.u32.totalorder %s3040_s19, %s3332_s0 }
 0x111   : > { %p2495_p1 = pnand %p2493_p8, %p3403_p6  ;;  %p2499_p11 = scmp.lt.u32.totalorder %s2497_s1, %s2492_s22 }
 0x112   : > { %p2501_p2 = scmp.lt.u32.totalorder %s2492_s22, %s3040_s19 }
 0x113   : > { %p2496_p13 = pneg %p2495_p1  ;;  %p2500_p12 = por %p2499_p11, %p2498_p7 }
 0x115   : > { %p2502_p4 = por %p2501_p2, %p2500_p12 }
 0x117   : > { %p2503_p10 = pnand %p2502_p4, %p2496_p13 }
 0x119   : > { %2506 = shalt.err (!%p2503_p10)
}
 0x11a   : > { %s2507_s16 = scalar_lea.vmem %s3044_s12, 128  ;;  %s2651_s17 = smov [#allocation2]  }
 0x11b   : > { %p2508_p3 = scmp.ne.s32.totalorder %s3044_s12, %s2507_s16  ;;  %s2512_s3 = sshll.u32 %s2651_s17, 4  ;;  %s2513_s3 = int_to_ptr.vmem [resolvable:$false] %s2512_s3 }
 0x11c   : > { %s2514_s5 = scalar_lea.vmem %s2513_s3, 256  ;;  %p2515_p9 = scmp.lt.s32.totalorder %s3044_s12, %s2513_s3 }
 0x11d   : > { %p2510_p0 = pnand %p2508_p3, %p3403_p6  ;;  %p2516_p8 = scmp.lt.s32.totalorder %s2514_s5, %s2507_s16 }
 0x11f   : > { %p2511_p5 = pneg %p2510_p0  ;;  %p2517_p1 = por %p2516_p8, %p2515_p9 }
 0x121   : > { %p2518_p7 = pnand %p2517_p1, %p2511_p5 }
 0x123   : > { %2521 = shalt.err (!%p2518_p7)
}
 0x124   : > { %p3404_p13 = scmp.ne.s32.totalorder %s3394_s2, 0  ;;  %s1851_s27 = sshll.u32 %s2638_s20, 6 }
 0x125   : > { %s3405_s15 = sld [smem:[#allocation35_spill]]  ;;  %s470_s30 = scalar_lea.vmem [#allocation7], %s1850_s13 }
 0x126   : > { %2128 = dma.hbm_to_vmem [thread:$0]  (!%p3404_p13), %s3040_s19, 128, %s3044_s12, %s425_s11, %s3398_s29, %s3398_s29, %s3397_s21  }
 0x127   : > { %s477_s7 = sshll.u32 %s470_s30, 4  ;;  %s478_s7 = int_to_ptr.vmem [resolvable:$true] %s477_s7 }
 0x12b   : > { %s3078_s1 = scalar_lea.hbm %s3405_s15, %s1851_s27  ;;  %s2527_s19 = scalar_lea.hbm %s3405_s15, 128 }
 0x12c   : > { %s2522_s16 = scalar_lea.hbm %s3078_s1, 64  ;;  %p2528_p4 = scmp.lt.u32.totalorder %s3078_s1, %s3405_s15 }
 0x12d   : > { %p2523_p11 = scmp.ne.s32.totalorder %s3078_s1, %s2522_s16  ;;  %p2529_p10 = scmp.lt.u32.totalorder %s2527_s19, %s2522_s16 }
 0x12e   : > { %p2531_p0 = scmp.lt.u32.totalorder %s2522_s16, %s3078_s1 }
 0x12f   : > { %p2525_p12 = pnand %p2523_p11, %p3403_p6  ;;  %p2530_p3 = por %p2529_p10, %p2528_p4 }
 0x131   : > { %p2526_p2 = pneg %p2525_p12  ;;  %p2532_p5 = por %p2531_p0, %p2530_p3 }
 0x133   : > { %p2533_p9 = pnand %p2532_p5, %p2526_p2 }
 0x135   : > { %2536 = shalt.err (!%p2533_p9)
}
 0x136   : > { %s2537_s24 = scalar_lea.vmem %s478_s7, 64  ;;  %s2652_s13 = smov [#allocation7]  }
 0x137   : > { %p2538_p8 = scmp.ne.s32.totalorder %s478_s7, %s2537_s24  ;;  %s2542_s17 = sshll.u32 %s2652_s13, 4  ;;  %s2543_s17 = int_to_ptr.vmem [resolvable:$false] %s2542_s17 }
 0x138   : > { %s2544_s3 = scalar_lea.vmem %s2543_s17, 128  ;;  %p2545_p11 = scmp.lt.s32.totalorder %s478_s7, %s2543_s17 }
 0x139   : > { %p2540_p1 = pnand %p2538_p8, %p3403_p6  ;;  %p2546_p12 = scmp.lt.s32.totalorder %s2544_s3, %s2537_s24 }
 0x13b   : > { %p2541_p7 = pneg %p2540_p1  ;;  %p2547_p13 = por %p2546_p12, %p2545_p11 }
 0x13d   : > { %p2548_p4 = pnand %p2547_p13, %p2541_p7 }
 0x13f   : > { %2551 = shalt.err (!%p2548_p4)
}
 0x140   : > { %p3406_p10 = scmp.ne.s32.totalorder %s3394_s2, 0  ;;  %s3407_s5 = sld [smem:[#allocation30_spill]] }
 0x142   : > { %2134 = dma.hbm_to_vmem [thread:$0]  (!%p3406_p10), %s3078_s1, 64, %s478_s7, %s2920_s9  }
 0x146   : > { %p3408_p2 = scmp.ne.s32.totalorder %s3407_s5, 0 }
 0x147   : > { %s3103_s14 = sand.u32 (!%p3408_p2), 1, %s2630_s18   ;;  %p3409_p6 = scmp.ne.s32.totalorder (!%p3408_p2), %s3390_s25, 0 }
 0x148   : > { %486 = sbr.rel (%p3408_p2) target bundleno = 4029 (0xfbd), region = 64  ;;  %s3106_s27 = sshll.u32 (!%p3408_p2), %s3103_s14, 3 }
 0x149   : > { %s489_s22 = scalar_lea.sflag (!%p3408_p2), [#allocation3], %s3103_s14  ;;  %s492_s26 = scalar_lea.vmem (!%p3408_p2), [#allocation2], %s3106_s27 }
 0x14f   : > { %2597 = dma.done.wait (%p3409_p6), %s489_s22, 128  }
 0x150   : > { %2599 = vsyncadd (%p3409_p6), %s489_s22, 4294967168  ;;  %s497_s9 = sand.u32 1, %s2740_s23   ;;  %s501_s1 = scalar_lea.vmem [#allocation5], %s3106_s27 }
 0x151   : > { %s498_s2 = scalar_lea.sflag [#allocation6], %s497_s9 }
 0x152   : > { %2601 = dma.done.wait (%p3409_p6), %s498_s2, 192  }
 0x153   : > { %2603 = vsyncadd (%p3409_p6), %s498_s2, 4294967104  ;;  %s1855_s30 = sshll.u32 %s3103_s14, 2  ;;  %p3410_p13 = scmp.eq.s32.totalorder %s2740_s23, 0 }
 0x154   : > { %s510_s7 = scalar_lea.vmem [#allocation7], %s1855_s30 }
 0x155   : > { %2605 = dma.done.wait (%p3410_p13), [#allocation9], 512   ;;  %p3411_p3 = pmov %p3410_p13 }
 0x157   : > { %2607 = vsyncadd (%p3411_p3), [#allocation9], 4294966784  ;;  %p3412_p0 = pmov %p3411_p3 }
 0x159   : > { %2609 = dma.done.wait (%p3412_p0), [#allocation12], 512   ;;  %p3413_p5 = pmov %p3412_p0 }
 0x15a   : > { %p3414_p9 = pmov %p3412_p0 }
 0x15b   : > { %2611 = vsyncadd (%p3413_p5), [#allocation12], 4294966784 }
 0x15c   : > { %2613 = dma.done.wait (%p3414_p9), [#allocation15], 768   ;;  %p3415_p8 = pmov %p3412_p0 }
 0x15d   : > { %p3416_p1 = pmov %p3412_p0 }
 0x15e   : > { %2615 = vsyncadd (%p3415_p8), [#allocation15], 4294966528 }
 0x15f   : > { %2617 = dma.done.wait (%p3416_p1), [#allocation18], 144   ;;  %p3417_p7 = pmov %p3412_p0 }
 0x160   : > { %v2653_v0 = vmov 0.0   ;;  %vm2654_vm0 = vmmov 0   ;;  %v2204_v1 = vld [vmem:[#allocation8] sm:$0xff]   ;;  %v2205_v2 = vld [vmem:[#allocation8 + $0x8] sm:$0xff]   ;;  %v593_v3 = vld [vmem:[%s510_s7] sm:$0xf]  ;;  %v598_v7 = vlaneseq }
 0x161   : > { %2619 = vsyncadd (%p3417_p7), [#allocation18], 4294967152  ;;  %1944 = vmatprep.subr.bf16.mxu1 %v2653_v0  ;;  %1948 = vmatprep.mubr.msk.bf16.mxu1 %vm2654_vm0, %v2653_v0  ;;  %vm614_vm1 = vcmask 261120   ;;  %v2206_v4 = vld [vmem:[#allocation10] sm:$0xff]   ;;  %v2207_v5 = vld [vmem:[#allocation10 + $0x8] sm:$0xff]   ;;  %vm799_vm2 = vcmask 64512  }
 0x162   : > { %1960 = vmatprep.subr.bf16.mxu0 %v2653_v0  ;;  %1964 = vmatprep.mubr.msk.bf16.mxu0 %vm2654_vm0, %v2653_v0  ;;  %v2208_v6 = vld [vmem:[%s492_s26] sm:$0xff]   ;;  %v3155_v8 = vshrl.u32 %v598_v7, 7  ;;  %v3158_v14 = vld [vmem:[#allocation17] sm:$0xff]  ;;  %s2655_s25 = smov 120   ;;  %v2210_v25 = vld [vmem:[#allocation11 + $0x8] sm:$0xff]   ;;  %vm846_vm3 = vcmask 130048  }
 0x163   : > { %1945 = vmatpush3.bf16.msra.mxu1 %v2204_v1  ;;  %v2209_v24 = vld [vmem:[#allocation11] sm:$0xff]   ;;  %v2211_v26 = vld [vmem:[%s501_s1] sm:$0xff]   ;;  %s2656_s16 = smov 112   ;;  %vm1021_vm4 = vcmask 1043456   ;;  %s2657_s21 = smov 104   ;;  %vm1561_vm5 = vcmask 523264  }
 0x164   : > { %1946 = vmatprep.subr.bf16.mxu1 %v2653_v0  ;;  %v600_v12 = vsub.s32 0, %v3155_v8  ;;  %1961 = vmatpush3.bf16.msra.mxu0 %v2209_v24  ;;  %v733_v43 = vsub.s32 1, %v3155_v8  ;;  %v1017_v63 = vld [vmem:[#allocation13 + $0x4] sm:$0xf]  ;;  %s1898_s29 = sshll.u32 %s2740_s23, 7  ;;  %s590_s19 = scalar_lea.vmem [#allocation20], %s3106_s27 }
 0x165   : > { %1962 = vmatprep.subr.bf16.mxu0 %v2653_v0  ;;  %v1023_v1 = vsel %vm1021_vm4, %v1017_v63, 0  ;;  %s1644_s12 = sshll.u32 %s590_s19, 4  ;;  %s3418_s13 = sld [smem:[#allocation40_spill]]  ;;  %s3289_s12 = int_to_ptr.vmem [resolvable:$true] %s1644_s12 }
 0x166   : > { %v601_v15 = vrot.slane %v3158_v14, %v600_v12  ;;  %v734_v46 = vrot.slane %v3158_v14, %v733_v43  ;;  %s1631_s3 = scalar_lea.sflag [#allocation4], %s3103_s14  ;;  %s2552_s5 = scalar_lea.vmem %s3289_s12, 128 }
 0x167   : > { %1947 = vmatpush3.bf16.msra.mxu1 %v2205_v2  ;;  %p2553_p11 = scmp.ne.s32.totalorder %s3289_s12, %s2552_s5  ;;  %p3419_p12 = scmp.ne.s32.totalorder %s3391_s28, 0 }
 0x168   : > { %1952 = vmatprep.subr.bf16.mxu1 %v2653_v0  ;;  %1963 = vmatpush3.bf16.msra.mxu0 %v2210_v25  ;;  %s2658_s23 = smov [#allocation20]  }
 0x169   : > { %1974 = vmatprep.subr.bf16.mxu0 %v2653_v0  ;;  %p2554_p4 = pnand %p2553_p11, %p3419_p12  ;;  %s2556_s27 = sshll.u32 %s2658_s23, 4  ;;  %s2557_s27 = int_to_ptr.vmem [resolvable:$false] %s2556_s27 }
 0x16a   : > { %1949 = vmatmul.mubr.msk.bf16.vlgmr.msra.gmra.mrb[0].mxu1 %vm614_vm1, %v593_v3  ;;  %s2558_s22 = scalar_lea.vmem %s2557_s27, 256  ;;  %p2559_p2 = scmp.lt.s32.totalorder %s3289_s12, %s2557_s27 }
 0x16b   : > { %1953 = vmatpush3.bf16.msra.mxu1 %v2206_v4  ;;  %1956 = vmatprep.mubr.msk.bf16.mxu1 %vm2654_vm0, %v2653_v0  ;;  %s3287_s17 = scalar_lea.hbm %s3418_s13, %s1898_s29  ;;  %p2555_p10 = pneg %p2554_p4 }
 0x16c   : > { %1954 = vmatprep.subr.bf16.mxu1 %v2653_v0  ;;  %1965 = vmatmul.mubr.msk.bf16.vlgmr.msra.gmra.mrb[0].mxu0 %vm614_vm1, %v2211_v26  ;;  %p2560_p6 = scmp.lt.s32.totalorder %s2558_s22, %s2552_s5 }
 0x16d   : > { %1976 = vmatprep.mubr.msk.bf16.mxu0 %vm2654_vm0, %v2653_v0 }
 0x16e   : > { %p2561_p13 = por %p2560_p6, %p2559_p2 }
 0x16f   : > { %1955 = vmatpush3.bf16.msra.mxu1 %v2207_v5  ;;  %v903_v5 = vld [vmem:[#allocation13] sm:$0xf] }
 0x170   : > { %1968 = vmatprep.subr.bf16.mxu1 %v2653_v0  ;;  %p2562_p3 = pnand %p2561_p13, %p2555_p10 }
 0x172   : > { %1957 = vmatmul.mubr.msk.bf16.vlgmr.msra.gmra.mrb[4].mxu1 %vm614_vm1, %v2208_v6 }
 0x173   : > { %1970 = vmatprep.mubr.msk.bf16.mxu1 %vm2654_vm0, %v2653_v0 }
 0x23d   : > { %v652_v9 = vpop.f32.mrb[0].mxu1 }
 0x23e   : > { %v1950_v10 = vpop.f32.mrb[1].mxu1  ;;  %v653_v19 = vadd.f32 %v652_v9, %v601_v15  ;;  %v1069_v9 = vsel %vm1021_vm4, %v903_v5, 0 }
 0x23f   : > { %v655_v11 = vpop.f32.mrb[2].mxu1  ;;  %v789_v44 = vpop.f32.mrb[0].mxu0 }
 0x240   : > { %v1951_v13 = vpop.f32.mrb[3].mxu1  ;;  %v3167_v23 = vpack.c.bf16 %v653_v19, %v653_v19  ;;  %v1966_v45 = vpop.f32.mrb[1].mxu0  ;;  %v790_v49 = vadd.f32 %v789_v44, %v734_v46 }
 0x241   : > { %v792_v47 = vpop.f32.mrb[2].mxu0 }
 0x242   : > { %v1967_v48 = vpop.f32.mrb[3].mxu0  ;;  %v793_v50 = vadd.f32 %v792_v47, %v734_v46 }
 0x244   : > { %v3192_v51 = vpack.c.bf16 %v793_v50, %v790_v49 }
 0x245   : > { %v718_v16 = vpop.f32.mrb[4].mxu1 }
 0x246   : > { %v1958_v17 = vpop.f32.mrb[5].mxu1  ;;  %1975 = vmatpush3.bf16.msra.mxu0 %v3192_v51 }
 0x247   : > { %v721_v18 = vpop.f32.mrb[6].mxu1  ;;  %1986 = vmatprep.subr.bf16.mxu0 %v2653_v0 }
 0x248   : > { %v3161_v20 = vpack.c.bf16 %v721_v18, %v718_v16  ;;  %v1959_v21 = vpop.f32.mrb[7].mxu1 }
 0x24a   : > { %908 = vrot.lane.b32.xlu0 %v3161_v20, %s2655_s25  ;;  %v804_v22 = vsel %vm799_vm2, %v3161_v20, 0 }
 0x24b   : > { %1969 = vmatpush3.bf16.xpose.msra.mxu1 %v804_v22 }
 0x24c   : > { %1980 = vmatprep.subr.bf16.mxu1 %v2653_v0 }
 0x24e   : > { %905 = vrot.lane.b32.xlu0 %v3167_v23, %s2655_s25 }
 0x252   : > { %1971 = vmatmul.mubr.msk.bf16.vlgmr.msra.gmra.mrb[8].mxu1 %vm799_vm2, %v3167_v23 }
 0x253   : > { %1982 = vmatprep.mubr.msk.bf16.mxu1 %vm2654_vm0, %v2653_v0 }
 0x2bc   : > { %v909_v27 = vpop.permute.xlu0 %908 }
 0x2bd   : > { %v914_v28 = vsel %vm799_vm2, %v909_v27, 0 }
 0x2be   : > { %1981 = vmatpush3.bf16.xpose.msra.mxu1 %v914_v28 }
 0x2bf   : > { %1992 = vmatprep.subr.bf16.mxu1 %v2653_v0 }
 0x2c0   : > { %v906_v29 = vpop.permute.xlu0 %905 }
 0x2c5   : > { %1983 = vmatmul.mubr.msk.bf16.vlgmr.msra.gmra.mrb[12].mxu1 %vm799_vm2, %v906_v29 }
 0x2c6   : > { %1994 = vmatprep.mubr.msk.bf16.mxu1 %vm2654_vm0, %v2653_v0  ;;  %1993 = vmatpush3.bf16.msra.mxu1 %v1023_v1 }
 0x2c7   : > { %2004 = vmatprep.subr.bf16.mxu1 %v2653_v0 }
 0x325   : > { %v840_v30 = vpop.f32.mrb[8].mxu1 }
 0x326   : > { %v1972_v31 = vpop.f32.mrb[9].mxu1  ;;  %v847_v32 = vsel %vm846_vm3, %v840_v30, -inf }
 0x327   : > { %848 = vmax.xlane.f32.xlu1 %v847_v32  ;;  %v843_v33 = vpop.f32.mrb[10].mxu1 }
 0x328   : > { %v1973_v34 = vpop.f32.mrb[11].mxu1 }
 0x398   : > { %v950_v35 = vpop.f32.mrb[12].mxu1 }
 0x399   : > { %v1984_v36 = vpop.f32.mrb[13].mxu1  ;;  %v956_v37 = vsel %vm846_vm3, %v950_v35, -inf }
 0x39a   : > { %957 = vmax.xlane.f32.xlu1 %v956_v37  ;;  %v953_v38 = vpop.f32.mrb[14].mxu1 }
 0x39b   : > { %v1985_v39 = vpop.f32.mrb[15].mxu1 }
 0x3b4   : > { %v849_v40 = vpop.xlane.xlu1 %848 }
 0x3b5   : > { %v850_v41 = vsub.f32 %v840_v30, %v849_v40 }
 0x3b7   : > { %v851_v42 = vmul.f32 1.442695, %v850_v41 }
 0x3b9   : > { %2218 = vpow2.f32 %v851_v42 }
 0x3c3   : > { %v2219_v52 = vpop.eup %2218 }
 0x3c4   : > { %v853_v53 = vsel %vm846_vm3, %v2219_v52, 0.0 }
 0x3c5   : > { %854 = vadd.xlane.f32.xlu0 %v853_v53 }
 0x3db   : > { %1173 = vrot.lane.b32.xlu0 %v3192_v51, %s2656_s16 }
 0x427   : > { %v958_v54 = vpop.xlane.xlu1 %957 }
 0x428   : > { %v959_v55 = vsub.f32 %v950_v35, %v958_v54 }
 0x42a   : > { %v960_v56 = vmul.f32 1.442695, %v959_v55 }
 0x42c   : > { %2220 = vpow2.f32 %v960_v56 }
 0x436   : > { %v2221_v57 = vpop.eup %2220 }
 0x437   : > { %v962_v58 = vsel %vm846_vm3, %v2221_v57, 0.0 }
 0x438   : > { %963 = vadd.xlane.f32.xlu1 %v962_v58 }
 0x449   : > { %969 = vrot.lane.b32.xlu1 %v3192_v51, %s2655_s25 }
 0x44d   : > { %1113 = vrot.lane.b32.xlu1 %v3161_v20, %s2656_s16 }
 0x451   : > { %1111 = vrot.lane.b32.xlu1 %v3167_v23, %s2656_s16 }
 0x452   : > { %v855_v59 = vpop.xlane.xlu0 %854 }
 0x453   : > { %2222 = vrcp.f32 %v855_v59 }
 0x456   : > { %v1174_v15 = vpop.permute.xlu0 %1173 }
 0x45d   : > { %v2223_v60 = vpop.eup %2222 }
 0x45e   : > { %v857_v61 = vmul.f32 %v2223_v60, %v2219_v52 }
 0x460   : > { %v858_v62 = vpack.c.bf16 %v857_v61, %v857_v61 }
 0x462   : > { %1977 = vmatmul.mubr.msk.bf16.vlgmr.msra.gmra.mrb[4].mxu0 %vm846_vm3, %v858_v62 }
 0x463   : > { %1988 = vmatprep.mubr.msk.bf16.mxu0 %vm2654_vm0, %v2653_v0 }
 0x4c5   : > { %v964_v2 = vpop.xlane.xlu1 %963 }
 0x4c6   : > { %2224 = vrcp.f32 %v964_v2 }
 0x4c9   : > { %v970_v3 = vpop.permute.xlu1 %969 }
 0x4ca   : > { %1987 = vmatpush3.bf16.msra.mxu0 %v970_v3 }
 0x4cb   : > { %1998 = vmatprep.subr.bf16.mxu0 %v2653_v0 }
 0x4cd   : > { %v1114_v17 = vpop.permute.xlu1 %1113 }
 0x4ce   : > { %v1119_v24 = vsel %vm799_vm2, %v1114_v17, 0 }
 0x4d0   : > { %v2225_v4 = vpop.eup %2224 }
 0x4d1   : > { %v966_v6 = vmul.f32 %v2225_v4, %v2221_v57  ;;  %v1112_v26 = vpop.permute.xlu1 %1111 }
 0x4d3   : > { %v967_v7 = vpack.c.bf16 %v966_v6, %v966_v6  ;;  %v1379_v6 = vld [vmem:[#allocation13 + $0xc] sm:$0xf] }
 0x4d5   : > { %1989 = vmatmul.mubr.msk.bf16.vlgmr.msra.gmra.mrb[8].mxu0 %vm846_vm3, %v967_v7  ;;  %v1384_v7 = vsel %vm1021_vm4, %v1379_v6, 0 }
 0x4d6   : > { %1999 = vmatpush3.bf16.msra.mxu0 %v1069_v9  ;;  %2000 = vmatprep.mubr.msk.bf16.mxu0 %vm2654_vm0, %v2653_v0 }
 0x4d7   : > { %2010 = vmatprep.subr.bf16.mxu0 %v2653_v0 }
 0x535   : > { %v896_v10 = vpop.f32.mrb[4].mxu0 }
 0x536   : > { %v902_v11 = vpack.c.bf16 %v896_v10, %v896_v10  ;;  %v1978_v12 = vpop.f32.mrb[5].mxu0 }
 0x537   : > { %v899_v13 = vpop.f32.mrb[6].mxu0 }
 0x538   : > { %v1979_v16 = vpop.f32.mrb[7].mxu0  ;;  %2001 = vmatmul.mubr.msk.bf16.vlgmr.msra.gmra.mrb[12].mxu0 %vm799_vm2, %v902_v11 }
 0x539   : > { %2011 = vmatpush3.bf16.msra.mxu0 %v1174_v15  ;;  %2012 = vmatprep.mubr.msk.bf16.mxu0 %vm2654_vm0, %v2653_v0 }
 0x53a   : > { %2022 = vmatprep.subr.bf16.mxu0 %v2653_v0 }
 0x5a8   : > { %v1009_v18 = vpop.f32.mrb[8].mxu0 }
 0x5a9   : > { %v1015_v19 = vpack.c.bf16 %v1009_v18, %v1009_v18  ;;  %v1990_v21 = vpop.f32.mrb[9].mxu0 }
 0x5aa   : > { %v1012_v22 = vpop.f32.mrb[10].mxu0 }
 0x5ab   : > { %v1991_v25 = vpop.f32.mrb[11].mxu0  ;;  %1995 = vmatmul.mubr.msk.bf16.vlgmr.msra.gmra.mrb[16].mxu1 %vm799_vm2, %v1015_v19 }
 0x5ac   : > { %2005 = vmatpush3.bf16.xpose.msra.mxu1 %v1119_v24  ;;  %2006 = vmatprep.mubr.msk.bf16.mxu1 %vm2654_vm0, %v2653_v0 }
 0x5ad   : > { %2016 = vmatprep.subr.bf16.mxu1 %v2653_v0 }
 0x5b3   : > { %2007 = vmatmul.mubr.msk.bf16.vlgmr.msra.gmra.mrb[20].mxu1 %vm799_vm2, %v1112_v26  ;;  %v1429_v26 = vsub.s32 2, %v3155_v8 }
 0x5b4   : > { %2018 = vmatprep.mubr.msk.bf16.mxu1 %vm2654_vm0, %v2653_v0 }
 0x60b   : > { %v1105_v27 = vpop.f32.mrb[12].mxu0 }
 0x60c   : > { %v2002_v28 = vpop.f32.mrb[13].mxu0 }
 0x60d   : > { %v1108_v29 = vpop.f32.mrb[14].mxu0 }
 0x60e   : > { %v2003_v30 = vpop.f32.mrb[15].mxu0 }
 0x67e   : > { %v1059_v31 = vpop.f32.mrb[16].mxu1 }
 0x67f   : > { %v3226_v32 = vadd.f32 %v1105_v27, %v1059_v31  ;;  %v1996_v33 = vpop.f32.mrb[17].mxu1  ;;  %v1430_v27 = vrot.slane %v3158_v14, %v1429_v26 }
 0x680   : > { %v1062_v34 = vpop.f32.mrb[18].mxu1 }
 0x681   : > { %v1997_v35 = vpop.f32.mrb[19].mxu1 }
 0x686   : > { %v1155_v36 = vpop.f32.mrb[20].mxu1 }
 0x687   : > { %v2008_v37 = vpop.f32.mrb[21].mxu1  ;;  %v1161_v38 = vsel %vm846_vm3, %v1155_v36, -inf }
 0x688   : > { %1162 = vmax.xlane.f32.xlu1 %v1161_v38  ;;  %v1158_v39 = vpop.f32.mrb[22].mxu1 }
 0x689   : > { %v2009_v40 = vpop.f32.mrb[23].mxu1 }
 0x68a   : > { %v2212_v40 = vld [vmem:[#allocation14] sm:$0xff]  }
 0x715   : > { %v1163_v41 = vpop.xlane.xlu1 %1162 }
 0x716   : > { %v1164_v42 = vsub.f32 %v1155_v36, %v1163_v41  ;;  %v2213_v41 = vld [vmem:[#allocation14 + $0x8] sm:$0xff]  }
 0x718   : > { %v1165_v43 = vmul.f32 1.442695, %v1164_v42  ;;  %v2214_v42 = vld [vmem:[#allocation16] sm:$0xff]  }
 0x71a   : > { %2226 = vpow2.f32 %v1165_v43  ;;  %v2215_v43 = vld [vmem:[#allocation16 + $0x8] sm:$0xff]  }
 0x724   : > { %v2227_v44 = vpop.eup %2226 }
 0x725   : > { %v1167_v45 = vsel %vm846_vm3, %v2227_v44, 0.0 }
 0x726   : > { %1168 = vadd.xlane.f32.xlu0 %v1167_v45 }
 0x73c   : > { %1271 = vrot.lane.b32.xlu0 %v3161_v20, %s2657_s21 }
 0x740   : > { %1269 = vrot.lane.b32.xlu0 %v3167_v23, %s2657_s21  ;;  %v1221_v23 = vld [vmem:[#allocation13 + $0x8] sm:$0xf] }
 0x741   : > { %v1226_v53 = vsel %vm1021_vm4, %v1221_v23, 0 }
 0x742   : > { %2017 = vmatpush3.bf16.msra.mxu1 %v1226_v53 }
 0x743   : > { %2028 = vmatprep.subr.bf16.mxu1 %v2653_v0 }
 0x7b3   : > { %v1169_v46 = vpop.xlane.xlu0 %1168 }
 0x7b4   : > { %2228 = vrcp.f32 %v1169_v46 }
 0x7b7   : > { %v1272_v49 = vpop.permute.xlu0 %1271 }
 0x7b8   : > { %v1277_v52 = vsel %vm799_vm2, %v1272_v49, 0 }
 0x7bb   : > { %v1270_v20 = vpop.permute.xlu0 %1269 }
 0x7be   : > { %v2229_v47 = vpop.eup %2228 }
 0x7bf   : > { %v1171_v48 = vmul.f32 %v2229_v47, %v2227_v44  ;;  %v1448_v47 = vsub.s32 4, %v3155_v8 }
 0x7c1   : > { %v1172_v50 = vpack.c.bf16 %v1171_v48, %v1171_v48  ;;  %v1453_v48 = vsub.s32 6, %v3155_v8  ;;  %v1449_v49 = vrot.slane %v3158_v14, %v1448_v47 }
 0x7c3   : > { %2013 = vmatmul.mubr.msk.bf16.vlgmr.msra.gmra.mrb[16].mxu0 %vm846_vm3, %v1172_v50 }
 0x7c4   : > { %2023 = vmatpush3.bf16.xpose.msra.mxu0 %v1277_v52  ;;  %2024 = vmatprep.mubr.msk.bf16.mxu0 %vm2654_vm0, %v2653_v0 }
 0x7c5   : > { %2034 = vmatprep.subr.bf16.mxu0 %v2653_v0 }
 0x7cb   : > { %2025 = vmatmul.mubr.msk.bf16.vlgmr.msra.gmra.mrb[20].mxu0 %vm799_vm2, %v1270_v20  ;;  %v1454_v20 = vrot.slane %v3158_v14, %v1453_v48 }
 0x7cc   : > { %2036 = vmatprep.mubr.msk.bf16.mxu0 %vm2654_vm0, %v2653_v0  ;;  %2035 = vmatpush3.bf16.msra.mxu0 %v1384_v7 }
 0x7cd   : > { %2048 = vmatprep.subr.bf16.mxu0 %v2653_v0 }
 0x896   : > { %v1213_v54 = vpop.f32.mrb[16].mxu0 }
 0x897   : > { %v1219_v55 = vpack.c.bf16 %v1213_v54, %v1213_v54  ;;  %v2014_v56 = vpop.f32.mrb[17].mxu0 }
 0x898   : > { %v1216_v57 = vpop.f32.mrb[18].mxu0  ;;  %v2217_v56 = vld [vmem:[#allocation16 + $0x18] sm:$0xff]  }
 0x899   : > { %v2015_v58 = vpop.f32.mrb[19].mxu0  ;;  %2019 = vmatmul.mubr.msk.bf16.vlgmr.msra.gmra.mrb[24].mxu1 %vm799_vm2, %v1219_v55  ;;  %v2216_v55 = vld [vmem:[#allocation16 + $0x10] sm:$0xff]   ;;  %v1888_v57 = vld [vmem:[#allocation19] ss:$0 sm:$0xff] }
 0x89a   : > { %2030 = vmatprep.mubr.msk.bf16.mxu1 %vm2654_vm0, %v2653_v0 }
 0x89e   : > { %v1313_v59 = vpop.f32.mrb[20].mxu0 }
 0x89f   : > { %v2026_v60 = vpop.f32.mrb[21].mxu0  ;;  %v1319_v61 = vsel %vm846_vm3, %v1313_v59, -inf }
 0x8a0   : > { %1320 = vmax.xlane.f32.xlu0 %v1319_v61  ;;  %v1316_v62 = vpop.f32.mrb[22].mxu0 }
 0x8a1   : > { %v2027_v63 = vpop.f32.mrb[23].mxu0 }
 0x92d   : > { %v1321_v1 = vpop.xlane.xlu0 %1320 }
 0x92e   : > { %v1322_v2 = vsub.f32 %v1313_v59, %v1321_v1 }
 0x930   : > { %v1323_v3 = vmul.f32 1.442695, %v1322_v2  ;;  %v1535_v2 = vsub.s32 3, %v3155_v8 }
 0x932   : > { %2230 = vpow2.f32 %v1323_v3  ;;  %v1536_v3 = vrot.slane %v3158_v14, %v1535_v2 }
 0x93c   : > { %v2231_v4 = vpop.eup %2230 }
 0x93d   : > { %v1325_v5 = vsel %vm846_vm3, %v2231_v4, 0.0 }
 0x93e   : > { %1326 = vadd.xlane.f32.xlu1 %v1325_v5 }
 0x94f   : > { %1331 = vrot.lane.b32.xlu1 %v3192_v51, %s2657_s21 }
 0x96c   : > { %v1262_v9 = vpop.f32.mrb[24].mxu1 }
 0x96d   : > { %v1268_v10 = vadd.f32 %v1262_v9, %v3226_v32  ;;  %v2020_v11 = vpop.f32.mrb[25].mxu1 }
 0x96e   : > { %v1265_v12 = vpop.f32.mrb[26].mxu1 }
 0x96f   : > { %v2021_v13 = vpop.f32.mrb[27].mxu1 }
 0x9cb   : > { %v1327_v15 = vpop.xlane.xlu1 %1326 }
 0x9cc   : > { %2232 = vrcp.f32 %v1327_v15 }
 0x9cf   : > { %v1332_v16 = vpop.permute.xlu1 %1331 }
 0x9d0   : > { %2029 = vmatpush3.bf16.msra.mxu1 %v1332_v16 }
 0x9d1   : > { %2040 = vmatprep.subr.bf16.mxu1 %v2653_v0 }
 0x9d6   : > { %v2233_v17 = vpop.eup %2232 }
 0x9d7   : > { %v1329_v51 = vmul.f32 %v2233_v17, %v2231_v4 }
 0x9d9   : > { %v1330_v18 = vpack.c.bf16 %v1329_v51, %v1329_v51 }
 0x9db   : > { %2031 = vmatmul.mubr.msk.bf16.vlgmr.msra.gmra.mrb[28].mxu1 %vm846_vm3, %v1330_v18 }
 0x9dc   : > { %2044 = vmatprep.mubr.msk.bf16.mxu1 %vm2654_vm0, %v2653_v0  ;;  %2041 = vmatpush3.bf16.msra.mxu1 %v2212_v40 }
 0x9dd   : > { %2042 = vmatprep.subr.bf16.mxu1 %v2653_v0 }
 0x9e0   : > { %2043 = vmatpush3.bf16.msra.mxu1 %v2213_v41 }
 0xaae   : > { %v1371_v19 = vpop.f32.mrb[28].mxu1 }
 0xaaf   : > { %v1377_v21 = vpack.c.bf16 %v1371_v19, %v1371_v19  ;;  %v2032_v22 = vpop.f32.mrb[29].mxu1  ;;  %v1621_v19 = vsub.s32 5, %v3155_v8 }
 0xab0   : > { %v1374_v24 = vpop.f32.mrb[30].mxu1 }
 0xab1   : > { %v2033_v25 = vpop.f32.mrb[31].mxu1  ;;  %2037 = vmatmul.mubr.msk.bf16.vlgmr.msra.gmra.mrb[24].mxu0 %vm799_vm2, %v1377_v21  ;;  %v1626_v21 = vsub.s32 7, %v3155_v8  ;;  %v1622_v22 = vrot.slane %v3158_v14, %v1621_v19 }
 0xab2   : > { %2056 = vmatprep.mubr.msk.bf16.mxu0 %vm2654_vm0, %v2653_v0  ;;  %2049 = vmatpush3.bf16.msra.mxu0 %v2214_v42 }
 0xab3   : > { %2050 = vmatprep.subr.bf16.mxu0 %v2653_v0  ;;  %v1627_v26 = vrot.slane %v3158_v14, %v1626_v21 }
 0xab6   : > { %2051 = vmatpush3.bf16.msra.mxu0 %v2215_v43 }
 0xab7   : > { %2052 = vmatprep.subr.bf16.mxu0 %v2653_v0 }
 0xaba   : > { %2053 = vmatpush3.bf16.msra.mxu0 %v2216_v55 }
 0xabb   : > { %2054 = vmatprep.subr.bf16.mxu0 %v2653_v0 }
 0xabe   : > { %2055 = vmatpush3.bf16.msra.mxu0 %v2217_v56 }
 0xb84   : > { %v1420_v28 = vpop.f32.mrb[24].mxu0 }
 0xb85   : > { %v1426_v29 = vadd.f32 %v1420_v28, %v1268_v10  ;;  %v2038_v30 = vpop.f32.mrb[25].mxu0 }
 0xb86   : > { %v1423_v31 = vpop.f32.mrb[26].mxu0 }
 0xb87   : > { %v2039_v32 = vpop.f32.mrb[27].mxu0  ;;  %v1431_v33 = vadd.f32 %v1430_v27, %v1426_v29 }
 0xb89   : > { %v1432_v34 = vsel %vm614_vm1, %v1431_v33, 0.0 }
 0xb8a   : > { %1433 = vadd.xlane.f32.xlu1 %v1432_v34 }
 0xc17   : > { %v1434_v35 = vpop.xlane.xlu1 %1433 }
 0xc18   : > { %v1436_v36 = vmul.f32 0.03125, %v1434_v35 }
 0xc1a   : > { %v1437_v37 = vsub.f32 %v1431_v33, %v1436_v36 }
 0xc1c   : > { %v1438_v38 = vmul.f32 %v1437_v37, %v1437_v37 }
 0xc1e   : > { %v1439_v39 = vsel %vm614_vm1, %v1438_v38, 0.0 }
 0xc1f   : > { %1440 = vadd.xlane.f32.xlu0 %v1439_v39 }
 0xcac   : > { %v1441_v44 = vpop.xlane.xlu0 %1440 }
 0xcad   : > { %v1442_v45 = vmul.f32 0.03125, %v1441_v44 }
 0xcaf   : > { %v1443_v46 = vadd.f32 1e-05, %v1442_v45 }
 0xcb1   : > { %2234 = vrsqrt.f32 %v1443_v46 }
 0xcbb   : > { %v2235_v50 = vpop.eup %2234 }
 0xcbc   : > { %v1445_v52 = vmul.f32 %v2235_v50, %v1437_v37 }
 0xcbe   : > { %v1450_v23 = vmul.f32 %v1449_v49, %v1445_v52 }
 0xcc0   : > { %v1455_v53 = vadd.f32 %v1454_v20, %v1450_v23 }
 0xcc2   : > { %v1460_v54 = vpack.c.bf16 %v1455_v53, %v1455_v53 }
 0xcc4   : > { %2045 = vmatmul.mubr.msk.bf16.vlgmr.msra.gmra.mrb[32].mxu1 %vm614_vm1, %v1460_v54 }
 0xd97   : > { %v1517_v58 = vpop.f32.mrb[32].mxu1 }
 0xd98   : > { %v1518_v59 = vadd.f32 %v1888_v57, %v1517_v58  ;;  %v2046_v60 = vpop.f32.mrb[33].mxu1 }
 0xd99   : > { %v1520_v61 = vpop.f32.mrb[34].mxu1 }
 0xd9a   : > { %v1523_v62 = vmax.f32 %v1518_v59, 0.0  ;;  %v2047_v63 = vpop.f32.mrb[35].mxu1 }
 0xd9c   : > { %v1532_v1 = vpack.c.bf16 %v1523_v62, %v1523_v62 }
 0xd9e   : > { %2057 = vmatmul.mubr.msk.bf16.vlgmr.msra.gmra.mrb[28].mxu0 %vm1561_vm5, %v1532_v1 }
 0xe71   : > { %v1599_v4 = vpop.f32.mrb[28].mxu0 }
 0xe72   : > { %v1600_v5 = vadd.f32 %v1599_v4, %v1536_v3  ;;  %v2058_v6 = vpop.f32.mrb[29].mxu0 }
 0xe73   : > { %v1602_v0 = vpop.f32.mrb[30].mxu0 }
 0xe74   : > { %v2059_v7 = vpop.f32.mrb[31].mxu0  ;;  %v1605_v9 = vadd.f32 %v1600_v5, %v1455_v53 }
 0xe76   : > { %v1606_v10 = vsel %vm614_vm1, %v1605_v9, 0.0 }
 0xe77   : > { %1607 = vadd.xlane.f32.xlu0 %v1606_v10 }
 0xf04   : > { %v1608_v11 = vpop.xlane.xlu0 %1607 }
 0xf05   : > { %v1609_v12 = vmul.f32 0.03125, %v1608_v11 }
 0xf07   : > { %v1610_v13 = vsub.f32 %v1605_v9, %v1609_v12 }
 0xf09   : > { %v1611_v15 = vmul.f32 %v1610_v13, %v1610_v13 }
 0xf0b   : > { %v1612_v16 = vsel %vm614_vm1, %v1611_v15, 0.0 }
 0xf0c   : > { %1613 = vadd.xlane.f32.xlu0 %v1612_v16 }
 0xf99   : > { %v1614_v17 = vpop.xlane.xlu0 %1613 }
 0xf9a   : > { %v1615_v51 = vmul.f32 0.03125, %v1614_v17 }
 0xf9c   : > { %v1616_v18 = vadd.f32 1e-05, %v1615_v51 }
 0xf9e   : > { %2236 = vrsqrt.f32 %v1616_v18 }
 0xfa8   : > { %v2237_v24 = vpop.eup %2236 }
 0xfa9   : > { %v1618_v25 = vmul.f32 %v2237_v24, %v1610_v13 }
 0xfab   : > { %v1623_v27 = vmul.f32 %v1622_v22, %v1618_v25 }
 0xfad   : > { %v1628_v28 = vadd.f32 %v1627_v26, %v1623_v27 }
 0xfaf   : > { %1629 = vst.msk [vmem:[%s590_s19] sm:$0xff] %vm614_vm1, %v1628_v28 }
 0xfb0   : > { %2565 = shalt.err (!%p2562_p3)
}
 0xfb1   : > { %s2566_s14 = scalar_lea.hbm %s3287_s17, 128  ;;  %s2570_s2 = scalar_lea.hbm %s3418_s13, 256 }
 0xfb2   : > { %p2567_p0 = scmp.ne.s32.totalorder %s3287_s17, %s2566_s14  ;;  %p2571_p8 = scmp.lt.u32.totalorder %s3287_s17, %s3418_s13 }
 0xfb3   : > { %p2572_p1 = scmp.lt.u32.totalorder %s2570_s2, %s2566_s14  ;;  %p2574_p11 = scmp.lt.u32.totalorder %s2566_s14, %s3287_s17 }
 0xfb4   : > { %p2568_p5 = pnand %p2567_p0, %p3419_p12 }
 0xfb5   : > { %p2573_p7 = por %p2572_p1, %p2571_p8 }
 0xfb6   : > { %p2569_p9 = pneg %p2568_p5 }
 0xfb7   : > { %p2575_p4 = por %p2574_p11, %p2573_p7 }
 0xfb9   : > { %p2576_p10 = pnand %p2575_p4, %p2569_p9 }
 0xfbb   : > { %2579 = shalt.err (!%p2576_p10)
}
 0xfbc   : > { %2098 = dma.vmem_to_hbm [thread:$0]  (%p3419_p12), %s3289_s12, 128, %s3287_s17, %s1631_s3  }
 0xfbd PF: > { %s3420_s7 = sld [smem:[#allocation28_spill]]  ;;  %s3421_s25 = sld [smem:[#allocation33_spill]] }
 0xfbe   : > { %p3423_p6 = scmp.ge.s32.totalorder %s2638_s20, 2 }
 0xfc3   : > { %s1656_s16 = sand.u32 1, %s3420_s7   ;;  %p3422_p2 = scmp.ne.s32.totalorder %s3421_s25, 0 }
 0xfc4   : > { %s1657_s21 = scalar_lea.sflag [#allocation4], %s1656_s16 }
 0xfc5   : > { %p2136_p13 = pnand %p3423_p6, %p3422_p2 }
 0xfc7   : > { %2621 = dma.done.wait (!%p2136_p13), %s1657_s21, 128  }
 0xfc8   : > { %2623 = vsyncadd (!%p2136_p13), %s1657_s21, 4294967168  ;;  %s3424_s20 = sld [smem:[#allocation31_spill]]  ;;  %s3425_s29 = sld [smem:[#allocation29_spill]] }
 0xfc9   : > { %s3426_s19 = sld [smem:[#allocation32_spill]]  ;;  %s3427_s17 = smov %s2630_s18 }
 0xfce   : > { %p31_p3 = scmp.ge.s32.totalorder %s3424_s20, 4   ;;  %s3428_s18 = smov %s3425_s29 }
 0xfd0   :  { %33 = sbr.rel (!%p31_p3) target bundleno = 19 (0x13), region = 168 }
 0xfd7   :  { %1662 = vsyncpa [#allocation3], 1 }
 0xfd8   :  { %1664 = vsyncpa [#allocation3 + $0x1], 1 }
 0xfd9   :  { %1665 = vsyncpa [#allocation6], 1 }
 0xfda   :  { %1667 = vsyncpa [#allocation6 + $0x1], 1 }
 0xfdb   :  { %1668 = vsyncpa [#allocation9], 1 }
 0xfdc   :  { %1669 = vsyncpa [#allocation12], 1 }
 0xfdd   :  { %1670 = vsyncpa [#allocation15], 1 }
 0xfde   :  { %1671 = vsyncpa [#allocation18], 1 }
 0xfdf   :  { %1672 = vsyncpa [#allocation4], 1 }
 0xfe0   :  { %1674 = vsyncpa [#allocation4 + $0x1], 1 }

// kernel: transformer_decoder.4
= control target key start
LH: loop header
LB: loop body
LE: loop exit
PB: predicated region body
PF: predicated region fallthrough
CT: control target
= control target key end

     0   :  { %s5001_s0 = inlined_call_operand.hbm [shape: f32[2,8,32], index: 0, kind: input, shape index: {}]   ;;  %s5002_s1 = inlined_call_operand.hbm [shape: bf16[2,16,32], index: 1, kind: input, shape index: {}]   ;;  %s5003_s2 = inlined_call_operand.hbm [shape: bf16[2,16,32], index: 2, kind: input, shape index: {}]   ;;  %s5004_s3 = inlined_call_operand.hbm [shape: bf16[2,8,32], index: 3, kind: input, shape index: {}]   ;;  %s5005_s4 = inlined_call_operand.hbm [shape: bf16[32,64], index: 4, kind: input, shape index: {}]   ;;  %s5006_s5 = inlined_call_operand.hbm [shape: bf16[32,32], index: 5, kind: input, shape index: {}]   ;;  %s5007_s6 = inlined_call_operand.hbm [shape: bf16[4,8,32], index: 6, kind: input, shape index: {}]   ;;  %s5008_s7 = inlined_call_operand.hbm [shape: bf16[32,32], index: 7, kind: input, shape index: {}]   ;;  %s5009_s8 = inlined_call_operand.hbm [shape: bf16[32,32], index: 8, kind: input, shape index: {}]   ;;  %s5010_s9 = inlined_call_operand.hbm [shape: bf16[32,32], index: 9, kind: input, shape index: {}]   ;;  %s5011_s10 = inlined_call_operand.hbm [shape: bf16[4,8,32], index: 10, kind: input, shape index: {}]   ;;  %s5012_s11 = inlined_call_operand.hbm [shape: bf16[32,64], index: 11, kind: input, shape index: {}]   ;;  %s5013_s12 = inlined_call_operand.hbm [shape: bf16[64,32], index: 12, kind: input, shape index: {}]   ;;  %s5014_s13 = inlined_call_operand.hbm [shape: f32[13,32], index: 13, kind: input, shape index: {}]   ;;  %s5015_s14 = inlined_call_operand.hbm [shape: f32[1,64], index: 14, kind: input, shape index: {}]   ;;  %s5016_s15 = inlined_call_operand.hbm [shape: f32[2,8,32], index: 15, kind: output, shape index: {}]  }
   0x1   :  { %5048 = sst [smem:[#allocation43_spill]] %s5001_s0 }
   0x2   :  { %5049 = sst [smem:[#allocation44_spill]] %s5002_s1 }
   0x3   :  { %5050 = sst [smem:[#allocation45_spill]] %s5003_s2 }
   0x4   :  { %5051 = sst [smem:[#allocation46_spill]] %s5004_s3 }
   0x5   :  { %5052 = sst [smem:[#allocation47_spill]] %s5005_s4 }
   0x6   :  { %5053 = sst [smem:[#allocation48_spill]] %s5006_s5 }
   0x7   :  { %5054 = sst [smem:[#allocation49_spill]] %s5007_s6 }
   0x8   :  { %5055 = sst [smem:[#allocation50_spill]] %s5008_s7 }
   0x9   :  { %5056 = sst [smem:[#allocation51_spill]] %s5010_s9 }
   0xa   :  { %5057 = sst [smem:[#allocation52_spill]] %s5012_s11 }
   0xb   :  { %5058 = sst [smem:[#allocation53_spill]] %s5013_s12 }
   0xc   :  { %5059 = sst [smem:[#allocation54_spill]] %s5014_s13 }
   0xd   :  { %5060 = sst [smem:[#allocation55_spill]] %s5015_s14 }
   0xe   :  { %5061 = sst [smem:[#allocation56_spill]] %s5016_s15 }
   0xf   :  { %20 = vsyncpa [#allocation3], 0 }
  0x10   :  { %22 = vsyncpa [#allocation3 + $0x1], 0 }
  0x11   :  { %23 = vsyncpa [#allocation6], 0 }
  0x12   :  { %25 = vsyncpa [#allocation6 + $0x1], 0 }
  0x13   :  { %26 = vsyncpa [#allocation9], 0 }
  0x14   :  { %28 = vsyncpa [#allocation9 + $0x1], 0 }
  0x15   :  { %29 = vsyncpa [#allocation12], 0 }
  0x16   :  { %30 = vsyncpa [#allocation15], 0 }
  0x17   :  { %31 = vsyncpa [#allocation18], 0 }
  0x18   :  { %32 = vsyncpa [#allocation21], 0 }
  0x19   :  { %33 = vsyncpa [#allocation24], 0 }
  0x1a   :  { %34 = vsyncpa [#allocation4], 0 }
  0x1b   :  { %36 = vsyncpa [#allocation4 + $0x1], 0  ;;  %s4129_s18 = smov 0   ;;  %s4131_s19 = smov 0  }
  0x1c   :  { %s4133_s20 = smov 0   ;;  %s4135_s21 = smov 0  }
  0x1d LB: > { %5062 = sst [smem:[#allocation37_spill]] %s4006_s18  ;;  %s4020_s22 = smov [#allocation10]   ;;  %s4018_s21 = sphi %s4135_s21, %s5121_s21   ;;  %s4014_s20 = sphi %s4133_s20, %s5123_s20   ;;  %s4010_s19 = sphi %s4131_s19, %s5125_s19   ;;  %s4006_s18 = sphi %s4129_s18, %s5124_s18  }
  0x1e   : > { %5063 = sst [smem:[#allocation38_spill]] %s4014_s20  ;;  %s420_s23 = sshll.u32 %s4020_s22, 4  ;;  %s4155_s23 = int_to_ptr.vmem [resolvable:$true] %s420_s23 }
  0x1f   : > { %s4150_s24 = sadd.s32 4294967295, %s4018_s21   ;;  %p2879_p0 = scmp.ge.s32.totalorder %s4018_s21, 1 }
  0x20   : > { %p5024_p1 = scmp.eq.s32.totalorder %s4150_s24, 0  ;;  %p408_p2 = scmp.lt.s32.totalorder %s4018_s21, 3 }
  0x21   : > { %s4021_s26 = smov [#allocation11]   ;;  %s4022_s29 = smov [#allocation14]  }
  0x22   : > { %p4157_p3 = pnand %p2879_p0, %p408_p2  ;;  %s433_s27 = sshll.u32 %s4021_s26, 4  ;;  %s4170_s27 = int_to_ptr.vmem [resolvable:$true] %s433_s27 }
  0x23   : > { %s459_s30 = sshll.u32 %s4022_s29, 4  ;;  %s5067_s4 = sld [smem:[#allocation47_spill]]  ;;  %s4172_s30 = int_to_ptr.vmem [resolvable:$true] %s459_s30 }
  0x24   : > { %s5064_s25 = scalar_select %p4157_p3, 1, 0 }
  0x25   : > { %p3304_p5 = pneg %p4157_p3 }
  0x26   : > { %5065 = sst [smem:[#allocation39_spill]] %s5064_s25 }
  0x27   : > { %p4166_p6 = pnand %p3304_p5, %p5024_p1 }
  0x29   : > { %s5066_s28 = scalar_select %p4166_p6, 1, 0 }
  0x2a   : > { %s3492_s22 = scalar_lea.hbm %s5067_s4, 256  ;;  %p4182_p8 = pneg %p4166_p6 }
  0x2b   : > { %p3493_p7 = scmp.ne.s32.totalorder %s5067_s4, %s3492_s22  ;;  %p3499_p11 = scmp.lt.u32.totalorder %s3492_s22, %s5067_s4 }
  0x2c   : > { %s5068_s26 = scalar_select %p4182_p8, 1, 0 }
  0x2d   : > { %p3495_p9 = pnand %p4182_p8, %p3493_p7 }
  0x2f   : > { %p3496_p10 = pneg %p3495_p9 }
  0x31   : > { %p3501_p12 = pnand %p3499_p11, %p3496_p10 }
  0x33   : > { %3504 = shalt.err (!%p3501_p12)
}
  0x34   : > { %s3505_s15 = scalar_lea.vmem %s4155_s23, 256  ;;  %p3513_p5 = scmp.lt.s32.totalorder %s4155_s23, %s4155_s23 }
  0x35   : > { %p3506_p13 = scmp.ne.s32.totalorder %s4155_s23, %s3505_s15  ;;  %p3514_p4 = scmp.lt.s32.totalorder %s3505_s15, %s3505_s15 }
  0x37   : > { %p3508_p0 = pnand %p3506_p13, %p4182_p8  ;;  %p3515_p7 = por %p3514_p4, %p3513_p5 }
  0x39   : > { %p3509_p2 = pneg %p3508_p0 }
  0x3b   : > { %p3516_p9 = pnand %p3515_p7, %p3509_p2 }
  0x3d   : > { %3519 = shalt.err (!%p3516_p9)
}
  0x3e   : > { %s5026_s25 = smov 64   ;;  %s5028_s3 = smov 4  }
  0x3f   : > { %3307 = dma.hbm_to_vmem [thread:$0]  (!%p4166_p6), %s5067_s4, 256, %s4155_s23, [#allocation9], %s5026_s25, %s5026_s25, %s5028_s3  }
  0x40   : > { %s5069_s5 = sld [smem:[#allocation48_spill]] }
  0x46   : > { %s3520_s15 = scalar_lea.hbm %s5069_s5, 256 }
  0x47   : > { %p3521_p4 = scmp.ne.s32.totalorder %s5069_s5, %s3520_s15  ;;  %p3527_p12 = scmp.lt.u32.totalorder %s3520_s15, %s5069_s5 }
  0x49   : > { %p3523_p10 = pnand %p3521_p4, %p4182_p8 }
  0x4b   : > { %p3524_p11 = pneg %p3523_p10 }
  0x4d   : > { %p3529_p13 = pnand %p3527_p12, %p3524_p11 }
  0x4f   : > { %3532 = shalt.err (!%p3529_p13)
}
  0x50   : > { %s3533_s23 = scalar_lea.vmem %s4170_s27, 256  ;;  %p3541_p7 = scmp.lt.s32.totalorder %s4170_s27, %s4170_s27 }
  0x51   : > { %p3534_p0 = scmp.ne.s32.totalorder %s4170_s27, %s3533_s23  ;;  %p3542_p9 = scmp.lt.s32.totalorder %s3533_s23, %s3533_s23 }
  0x53   : > { %p3536_p2 = pnand %p3534_p0, %p4182_p8  ;;  %p3543_p4 = por %p3542_p9, %p3541_p7 }
  0x55   : > { %p3537_p5 = pneg %p3536_p2 }
  0x57   : > { %p3544_p10 = pnand %p3543_p4, %p3537_p5 }
  0x59   : > { %3547 = shalt.err (!%p3544_p10)
}
  0x5a   : > { %3310 = dma.hbm_to_vmem [thread:$0]  (!%p4166_p6), %s5069_s5, 256, %s4170_s27, [#allocation12], %s5026_s25, %s5026_s25, %s5028_s3  }
  0x5b   : > { %s5070_s7 = sld [smem:[#allocation50_spill]] }
  0x61   : > { %s3548_s16 = scalar_lea.hbm %s5070_s7, 256 }
  0x62   : > { %p3549_p11 = scmp.ne.s32.totalorder %s5070_s7, %s3548_s16  ;;  %p3555_p0 = scmp.lt.u32.totalorder %s3548_s16, %s5070_s7 }
  0x64   : > { %p3551_p12 = pnand %p3549_p11, %p4182_p8 }
  0x66   : > { %p3552_p13 = pneg %p3551_p12 }
  0x68   : > { %p3557_p2 = pnand %p3555_p0, %p3552_p13 }
  0x6a   : > { %3560 = shalt.err (!%p3557_p2)
}
  0x6b   : > { %s3561_s27 = scalar_lea.vmem %s4172_s30, 256  ;;  %p3569_p4 = scmp.lt.s32.totalorder %s4172_s30, %s4172_s30 }
  0x6c   : > { %p3562_p5 = scmp.ne.s32.totalorder %s4172_s30, %s3561_s27  ;;  %p3570_p10 = scmp.lt.s32.totalorder %s3561_s27, %s3561_s27 }
  0x6e   : > { %p3564_p7 = pnand %p3562_p5, %p4182_p8  ;;  %p3571_p11 = por %p3570_p10, %p3569_p4 }
  0x70   : > { %p3565_p9 = pneg %p3564_p7 }
  0x72   : > { %p3572_p12 = pnand %p3571_p11, %p3565_p9 }
  0x74   : > { %3575 = shalt.err (!%p3572_p12)
}
  0x75   : > { %3316 = dma.hbm_to_vmem [thread:$0]  (!%p4166_p6), %s5070_s7, 256, %s4172_s30, [#allocation15], %s5026_s25, %s5026_s25, %s5028_s3  }
  0x76   : > { %s4025_s2 = smov [#allocation17]   ;;  %s4026_s14 = smov [#allocation20]  }
  0x77   : > { %s485_s12 = sshll.u32 %s4025_s2, 4  ;;  %s511_s16 = sshll.u32 %s4026_s14, 4  ;;  %s486_s12 = int_to_ptr.vmem [resolvable:$true] %s485_s12  ;;  %s512_s16 = int_to_ptr.vmem [resolvable:$true] %s511_s16 }
  0x78   : > { %s5071_s9 = sld [smem:[#allocation51_spill]] }
  0x7e   : > { %s3576_s29 = scalar_lea.hbm %s5071_s9, 256 }
  0x7f   : > { %p3577_p13 = scmp.ne.s32.totalorder %s5071_s9, %s3576_s29  ;;  %p3583_p5 = scmp.lt.u32.totalorder %s3576_s29, %s5071_s9 }
  0x81   : > { %p3579_p0 = pnand %p3577_p13, %p4182_p8 }
  0x83   : > { %p3580_p2 = pneg %p3579_p0 }
  0x85   : > { %p3585_p7 = pnand %p3583_p5, %p3580_p2 }
  0x87   : > { %3588 = shalt.err (!%p3585_p7)
}
  0x88   : > { %s3589_s30 = scalar_lea.vmem %s486_s12, 256  ;;  %p3597_p11 = scmp.lt.s32.totalorder %s486_s12, %s486_s12 }
  0x89   : > { %p3590_p9 = scmp.ne.s32.totalorder %s486_s12, %s3589_s30  ;;  %p3598_p12 = scmp.lt.s32.totalorder %s3589_s30, %s3589_s30 }
  0x8b   : > { %p3592_p4 = pnand %p3590_p9, %p4182_p8  ;;  %p3599_p1 = por %p3598_p12, %p3597_p11 }
  0x8d   : > { %p3593_p10 = pneg %p3592_p4 }
  0x8f   : > { %p3600_p3 = pnand %p3599_p1, %p3593_p10 }
  0x91   : > { %3603 = shalt.err (!%p3600_p3)
}
  0x92   : > { %3322 = dma.hbm_to_vmem [thread:$0]  (!%p4166_p6), %s5071_s9, 256, %s486_s12, [#allocation18], %s5026_s25, %s5026_s25, %s5028_s3  }
  0x93   : > { %s5072_s11 = sld [smem:[#allocation52_spill]] }
  0x99   : > { %s3604_s17 = scalar_lea.hbm %s5072_s11, 256 }
  0x9a   : > { %p3605_p1 = scmp.ne.s32.totalorder %s5072_s11, %s3604_s17  ;;  %p3611_p0 = scmp.lt.u32.totalorder %s3604_s17, %s5072_s11 }
  0x9c   : > { %p3607_p3 = pnand %p3605_p1, %p4182_p8 }
  0x9e   : > { %p3608_p13 = pneg %p3607_p3 }
  0xa0   : > { %p3613_p2 = pnand %p3611_p0, %p3608_p13 }
  0xa2   : > { %3616 = shalt.err (!%p3613_p2)
}
  0xa3   : > { %s3617_s23 = scalar_lea.vmem %s512_s16, 256  ;;  %p3625_p4 = scmp.lt.s32.totalorder %s512_s16, %s512_s16 }
  0xa4   : > { %p3618_p5 = scmp.ne.s32.totalorder %s512_s16, %s3617_s23  ;;  %p3626_p10 = scmp.lt.s32.totalorder %s3617_s23, %s3617_s23 }
  0xa6   : > { %p3620_p7 = pnand %p3618_p5, %p4182_p8  ;;  %p3627_p11 = por %p3626_p10, %p3625_p4 }
  0xa8   : > { %p3621_p9 = pneg %p3620_p7 }
  0xaa   : > { %p3628_p12 = pnand %p3627_p11, %p3621_p9 }
  0xac   : > { %3631 = shalt.err (!%p3628_p12)
}
  0xad   : > { %3328 = dma.hbm_to_vmem [thread:$0]  (!%p4166_p6), %s5072_s11, 256, %s512_s16, [#allocation21], %s5026_s25, %s5026_s25, %s5028_s3  }
  0xae   : > { %s4027_s4 = smov [#allocation23]   ;;  %s5073_s13 = sld [smem:[#allocation54_spill]] }
  0xaf   : > { %s537_s0 = sshll.u32 %s4027_s4, 4  ;;  %s538_s0 = int_to_ptr.vmem [resolvable:$true] %s537_s0 }
  0xb4   : > { %s3632_s17 = scalar_lea.hbm %s5073_s13, 256 }
  0xb5   : > { %p3633_p1 = scmp.ne.s32.totalorder %s5073_s13, %s3632_s17  ;;  %p3639_p0 = scmp.lt.u32.totalorder %s3632_s17, %s5073_s13 }
  0xb7   : > { %p3635_p3 = pnand %p3633_p1, %p4182_p8 }
  0xb9   : > { %p3636_p13 = pneg %p3635_p3 }
  0xbb   : > { %p3641_p2 = pnand %p3639_p0, %p3636_p13 }
  0xbd   : > { %3644 = shalt.err (!%p3641_p2)
}
  0xbe   : > { %s3645_s16 = scalar_lea.vmem %s538_s0, 256  ;;  %p3653_p4 = scmp.lt.s32.totalorder %s538_s0, %s538_s0 }
  0xbf   : > { %p3646_p5 = scmp.ne.s32.totalorder %s538_s0, %s3645_s16  ;;  %p3654_p10 = scmp.lt.s32.totalorder %s3645_s16, %s3645_s16 }
  0xc1   : > { %p3648_p7 = pnand %p3646_p5, %p4182_p8  ;;  %p3655_p11 = por %p3654_p10, %p3653_p4 }
  0xc3   : > { %p3649_p9 = pneg %p3648_p7 }
  0xc5   : > { %p3656_p12 = pnand %p3655_p11, %p3649_p9 }
  0xc7   : > { %3659 = shalt.err (!%p3656_p12)
}
  0xc8   : > { %s4028_s23 = smov 128   ;;  %s4029_s12 = smov 8  }
  0xc9   : > { %3334 = dma.hbm_to_vmem [thread:$0]  (!%p4166_p6), %s5073_s13, 256, %s538_s0, [#allocation24], %s4028_s23, %s4028_s23, %s4029_s12  }
  0xca   : > { %s2878_s2 = sadd.s32 4294967294, %s4018_s21   ;;  %s4320_s14 = sadd.s32 1, %s4018_s21  }
  0xcb   : > { %5074 = sst [smem:[#allocation40_spill]] %s4320_s14  ;;  %s46_s17 = ssub.s32 %s4018_s21, %s4320_s14 }
  0xcc   : > { %s49_s22 = sadd.s32 1, %s4014_s20  ;;  %p47_p1 = scmp.eq.s32.totalorder %s46_s17, 0 }
  0xcd   : > { %p56_p3 = scmp.ne.s32.totalorder %s4014_s20, %s4010_s19  ;;  %p57_p13 = scmp.eq.s32.totalorder %s4018_s21, 0 }
  0xce   : > { %p62_p0 = scmp.ne.s32.totalorder %s4010_s19, %s4006_s18  ;;  %p5076_p5 = scmp.eq.s32.totalorder %s4150_s24, 0 }
  0xcf   : > { %s4331_s29 = scalar_select %p47_p1, %s4014_s20, %s49_s22  }
  0xd0   : > { %p58_p2 = por %p57_p13, %p56_p3  ;;  %p4335_p7 = por %p5076_p5, %p62_p0 }
  0xd1   : > { %5075 = sst [smem:[#allocation41_spill]] %s4331_s29  ;;  %p395_p9 = scmp.eq.s32.totalorder %s4150_s24, 1 }
  0xd2   : > { %s5077_s15 = scalar_select %p4335_p7, 1, 0 }
  0xd3   : > { %p401_p4 = scmp.eq.s32.totalorder %s2878_s2, 1  ;;  %p3366_p10 = scmp.lt.s32.totalorder %s4018_s21, 2 }
  0xd4   : > { %s4342_s0 = sand.u32 1, %s4014_s20   ;;  %p4344_p11 = por %p395_p9, %p56_p3 }
  0xd5   : > { %p4348_p12 = por %p401_p4, %p62_p0  ;;  %s4353_s23 = sshll.u32 %s4342_s0, 3 }
  0xd6   : > { %s5078_s27 = scalar_select %p4344_p11, 1, 0 }
  0xd7   : > { %s5079_s16 = scalar_select %p4348_p12, 1, 0 }
  0xd8   : > { %s4356_s12 = sshll.u32 %s4018_s21, 7  ;;  %p4358_p1 = pnand %p3366_p10, %p58_p2 }
  0xd9   : > { %5080 = sst [smem:[#allocation42_spill]] %s5079_s16  ;;  %s5031_s4 = sand.u32 1, %s4018_s21  }
  0xda   : > { %s5081_s30 = scalar_select %p4358_p1, 1, 0 }
  0xdb   : > { %s5082_s1 = sld [smem:[#allocation44_spill]]  ;;  %s584_s25 = scalar_lea.vmem [#allocation5], %s4353_s23 }
  0xdc   : > { %s591_s3 = sshll.u32 %s584_s25, 4  ;;  %s4030_s5 = smov [#allocation13]   ;;  %s4370_s3 = int_to_ptr.vmem [resolvable:$true] %s591_s3 }
  0xdd   : > { %s4372_s7 = sshll.u32 %s4030_s5, 4  ;;  %s4376_s9 = scalar_lea.sflag [#allocation6], %s5031_s4  ;;  %s447_s7 = int_to_ptr.vmem [resolvable:$true] %s4372_s7 }
  0xde   : > { %p4382_p13 = pneg %p4358_p1 }
  0xe0   : > { %s5083_s2 = scalar_select %p4382_p13, 1, 0 }
  0xe1   : > { %s4367_s22 = scalar_lea.hbm %s5082_s1, %s4356_s12  ;;  %s3665_s13 = scalar_lea.hbm %s5082_s1, 256 }
  0xe2   : > { %s3660_s11 = scalar_lea.hbm %s4367_s22, 128  ;;  %p3666_p5 = scmp.lt.u32.totalorder %s4367_s22, %s5082_s1 }
  0xe3   : > { %p3661_p3 = scmp.ne.s32.totalorder %s4367_s22, %s3660_s11  ;;  %p3667_p9 = scmp.lt.u32.totalorder %s3665_s13, %s3660_s11 }
  0xe4   : > { %p3669_p10 = scmp.lt.u32.totalorder %s3660_s11, %s4367_s22 }
  0xe5   : > { %p3663_p0 = pnand %p4382_p13, %p3661_p3  ;;  %p3668_p4 = por %p3667_p9, %p3666_p5 }
  0xe7   : > { %p3664_p2 = pneg %p3663_p0  ;;  %p3670_p12 = por %p3669_p10, %p3668_p4 }
  0xe9   : > { %p3671_p11 = pnand %p3670_p12, %p3664_p2 }
  0xeb   : > { %3674 = shalt.err (!%p3671_p11)
}
  0xec   : > { %s3675_s4 = scalar_lea.vmem %s4370_s3, 128  ;;  %s4031_s25 = smov [#allocation5]  }
  0xed   : > { %p3676_p3 = scmp.ne.s32.totalorder %s4370_s3, %s3675_s4  ;;  %s3680_s17 = sshll.u32 %s4031_s25, 4  ;;  %s3681_s17 = int_to_ptr.vmem [resolvable:$false] %s3680_s17 }
  0xee   : > { %s3682_s29 = scalar_lea.vmem %s3681_s17, 256  ;;  %p3683_p6 = scmp.lt.s32.totalorder %s4370_s3, %s3681_s17 }
  0xef   : > { %p3678_p0 = pnand %p3676_p3, %p4382_p13  ;;  %p3684_p8 = scmp.lt.s32.totalorder %s3682_s29, %s3675_s4 }
  0xf1   : > { %p3679_p7 = pneg %p3678_p0  ;;  %p3685_p5 = por %p3684_p8, %p3683_p6 }
  0xf3   : > { %p3686_p9 = pnand %p3685_p5, %p3679_p7 }
  0xf5   : > { %3689 = shalt.err (!%p3686_p9)
}
  0xf6   : > { %s5084_s11 = smov 4   ;;  %s5085_s13 = smov 64  }
  0xf7   : > { %3344 = dma.hbm_to_vmem [thread:$0]  (!%p4358_p1), %s4367_s22, 128, %s4370_s3, %s4376_s9, %s5085_s13, %s5085_s13, %s5084_s11  }
  0xf8   : > { %s5086_s6 = sld [smem:[#allocation49_spill]]  ;;  %p5087_p8 = scmp.ne.s32.totalorder %s5068_s26, 0 }
  0xfe   : > { %s3690_s17 = scalar_lea.hbm %s5086_s6, 256 }
  0xff   : > { %p3691_p6 = scmp.ne.s32.totalorder %s5086_s6, %s3690_s17  ;;  %p3697_p12 = scmp.lt.u32.totalorder %s3690_s17, %s5086_s6 }
 0x101   : > { %p3693_p7 = pnand %p3691_p6, %p5087_p8 }
 0x103   : > { %p3694_p11 = pneg %p3693_p7 }
 0x105   : > { %p3699_p2 = pnand %p3697_p12, %p3694_p11 }
 0x107   : > { %3702 = shalt.err (!%p3699_p2)
}
 0x108   : > { %s3703_s14 = scalar_lea.vmem %s447_s7, 256  ;;  %p3711_p0 = scmp.lt.s32.totalorder %s447_s7, %s447_s7 }
 0x109   : > { %p3704_p4 = scmp.ne.s32.totalorder %s447_s7, %s3703_s14  ;;  %p3712_p5 = scmp.lt.s32.totalorder %s3703_s14, %s3703_s14 }
 0x10b   : > { %p3706_p10 = pnand %p3704_p4, %p5087_p8  ;;  %p3713_p9 = por %p3712_p5, %p3711_p0 }
 0x10d   : > { %p3707_p3 = pneg %p3706_p10 }
 0x10f   : > { %p3714_p1 = pnand %p3713_p9, %p3707_p3 }
 0x111   : > { %3717 = shalt.err (!%p3714_p1)
}
 0x112   : > { %p5088_p6 = scmp.ne.s32.totalorder %s5066_s28, 0  ;;  %s4032_s3 = smov [#allocation16]  }
 0x113   : > { %s472_s22 = sshll.u32 %s4032_s3, 4  ;;  %s4033_s5 = smov [#allocation19]   ;;  %s473_s22 = int_to_ptr.vmem [resolvable:$true] %s472_s22 }
 0x114   : > { %3313 = dma.hbm_to_vmem [thread:$0]  (!%p5088_p6), %s5086_s6, 256, %s447_s7, [#allocation12], %s5085_s13, %s5085_s13, %s5084_s11  }
 0x115   : > { %s498_s25 = sshll.u32 %s4033_s5, 4  ;;  %s3718_s4 = scalar_lea.hbm %s5009_s8, 256  ;;  %s499_s25 = int_to_ptr.vmem [resolvable:$true] %s498_s25 }
 0x116   : > { %p3719_p1 = scmp.ne.s32.totalorder %s5009_s8, %s3718_s4  ;;  %p3725_p12 = scmp.lt.u32.totalorder %s3718_s4, %s5009_s8 }
 0x118   : > { %p3721_p7 = pnand %p3719_p1, %p5087_p8 }
 0x11a   : > { %p3722_p11 = pneg %p3721_p7 }
 0x11c   : > { %p3727_p2 = pnand %p3725_p12, %p3722_p11 }
 0x11e   : > { %3730 = shalt.err (!%p3727_p2)
}
 0x11f   : > { %s3731_s7 = scalar_lea.vmem %s473_s22, 256  ;;  %p3739_p0 = scmp.lt.s32.totalorder %s473_s22, %s473_s22 }
 0x120   : > { %p3732_p4 = scmp.ne.s32.totalorder %s473_s22, %s3731_s7  ;;  %p3740_p5 = scmp.lt.s32.totalorder %s3731_s7, %s3731_s7 }
 0x122   : > { %p3734_p10 = pnand %p3732_p4, %p5087_p8  ;;  %p3741_p9 = por %p3740_p5, %p3739_p0 }
 0x124   : > { %p3735_p3 = pneg %p3734_p10 }
 0x126   : > { %p3742_p13 = pnand %p3741_p9, %p3735_p3 }
 0x128   : > { %3745 = shalt.err (!%p3742_p13)
}
 0x129   : > { %3319 = dma.hbm_to_vmem [thread:$0]  (!%p5088_p6), %s5009_s8, 256, %s473_s22, [#allocation15], %s5085_s13, %s5085_s13, %s5084_s11  }
 0x12a   : > { %s3746_s5 = scalar_lea.hbm %s5011_s10, 256 }
 0x12b   : > { %p3747_p1 = scmp.ne.s32.totalorder %s5011_s10, %s3746_s5  ;;  %p3753_p11 = scmp.lt.u32.totalorder %s3746_s5, %s5011_s10 }
 0x12d   : > { %p3749_p13 = pnand %p3747_p1, %p5087_p8 }
 0x12f   : > { %p3750_p7 = pneg %p3749_p13 }
 0x131   : > { %p3755_p12 = pnand %p3753_p11, %p3750_p7 }
 0x133   : > { %3758 = shalt.err (!%p3755_p12)
}
 0x134   : > { %s3759_s1 = scalar_lea.vmem %s499_s25, 256  ;;  %p3767_p3 = scmp.lt.s32.totalorder %s499_s25, %s499_s25 }
 0x135   : > { %p3760_p2 = scmp.ne.s32.totalorder %s499_s25, %s3759_s1  ;;  %p3768_p0 = scmp.lt.s32.totalorder %s3759_s1, %s3759_s1 }
 0x137   : > { %p3762_p4 = pnand %p3760_p2, %p5087_p8  ;;  %p3769_p5 = por %p3768_p0, %p3767_p3 }
 0x139   : > { %p3763_p10 = pneg %p3762_p4 }
 0x13b   : > { %p3770_p9 = pnand %p3769_p5, %p3763_p10 }
 0x13d   : > { %3773 = shalt.err (!%p3770_p9)
}
 0x13e   : > { %3325 = dma.hbm_to_vmem [thread:$0]  (!%p5088_p6), %s5011_s10, 256, %s499_s25, [#allocation18], %s5085_s13, %s5085_s13, %s5084_s11  }
 0x13f   : > { %s4034_s18 = smov [#allocation22]   ;;  %s4035_s20 = smov [#allocation25]  }
 0x140   : > { %s524_s16 = sshll.u32 %s4034_s18, 4  ;;  %s551_s3 = sshll.u32 %s4035_s20, 4  ;;  %s525_s16 = int_to_ptr.vmem [resolvable:$true] %s524_s16  ;;  %s552_s3 = int_to_ptr.vmem [resolvable:$true] %s551_s3 }
 0x141   : > { %s5089_s14 = sld [smem:[#allocation53_spill]] }
 0x147   : > { %s3774_s4 = scalar_lea.hbm %s5089_s14, 512 }
 0x148   : > { %p3775_p1 = scmp.ne.s32.totalorder %s5089_s14, %s3774_s4  ;;  %p3781_p11 = scmp.lt.u32.totalorder %s3774_s4, %s5089_s14 }
 0x14a   : > { %p3777_p13 = pnand %p3775_p1, %p5087_p8 }
 0x14c   : > { %p3778_p7 = pneg %p3777_p13 }
 0x14e   : > { %p3783_p12 = pnand %p3781_p11, %p3778_p7 }
 0x150   : > { %3786 = shalt.err (!%p3783_p12)
}
 0x151   : > { %s3787_s25 = scalar_lea.vmem %s525_s16, 512  ;;  %p3795_p3 = scmp.lt.s32.totalorder %s525_s16, %s525_s16 }
 0x152   : > { %p3788_p2 = scmp.ne.s32.totalorder %s525_s16, %s3787_s25  ;;  %p3796_p0 = scmp.lt.s32.totalorder %s3787_s25, %s3787_s25 }
 0x154   : > { %p3790_p4 = pnand %p3788_p2, %p5087_p8  ;;  %p3797_p5 = por %p3796_p0, %p3795_p3 }
 0x156   : > { %p3791_p10 = pneg %p3790_p4 }
 0x158   : > { %p3798_p9 = pnand %p3797_p5, %p3791_p10 }
 0x15a   : > { %3801 = shalt.err (!%p3798_p9)
}
 0x15b   : > { %3331 = dma.hbm_to_vmem [thread:$0]  (!%p5088_p6), %s5089_s14, 512, %s525_s16, [#allocation21], %s5085_s13, %s5085_s13, %s5084_s11  }
 0x15c   : > { %s5090_s5 = sld [smem:[#allocation55_spill]] }
 0x162   : > { %s3802_s17 = scalar_lea.hbm %s5090_s5, 16 }
 0x163   : > { %p3803_p1 = scmp.ne.s32.totalorder %s5090_s5, %s3802_s17  ;;  %p3809_p11 = scmp.lt.u32.totalorder %s3802_s17, %s5090_s5 }
 0x165   : > { %p3805_p13 = pnand %p3803_p1, %p5087_p8 }
 0x167   : > { %p3806_p7 = pneg %p3805_p13 }
 0x169   : > { %p3811_p12 = pnand %p3809_p11, %p3806_p7 }
 0x16b   : > { %3814 = shalt.err (!%p3811_p12)
}
 0x16c   : > { %s3815_s25 = scalar_lea.vmem %s552_s3, 16  ;;  %s3822_s16 = scalar_lea.vmem %s552_s3, 32 }
 0x16d   : > { %p3816_p2 = scmp.ne.s32.totalorder %s552_s3, %s3815_s25  ;;  %p3823_p3 = scmp.lt.s32.totalorder %s552_s3, %s552_s3 }
 0x16e   : > { %p3824_p0 = scmp.lt.s32.totalorder %s3822_s16, %s3815_s25 }
 0x16f   : > { %p3818_p4 = pnand %p3816_p2, %p5087_p8 }
 0x170   : > { %p3825_p5 = por %p3824_p0, %p3823_p3 }
 0x171   : > { %p3819_p10 = pneg %p3818_p4 }
 0x173   : > { %p3826_p9 = pnand %p3825_p5, %p3819_p10 }
 0x175   : > { %3829 = shalt.err (!%p3826_p9)
}
 0x176   : > { %3337 = dma.hbm_to_vmem [thread:$0]  (!%p5088_p6), %s5090_s5, 16, %s552_s3, [#allocation24]  }
 0x177   : > { %s5091_s20 = sld [smem:[#allocation43_spill]]  ;;  %s566_s29 = scalar_lea.vmem [#allocation2], %s4353_s23 }
 0x178   : > { %s573_s28 = sshll.u32 %s566_s29, 4  ;;  %s5093_s25 = sld [smem:[#allocation45_spill]]  ;;  %s4519_s28 = int_to_ptr.vmem [resolvable:$true] %s573_s28 }
 0x179   : > { %s563_s6 = scalar_lea.sflag [#allocation3], %s4342_s0  ;;  %p5094_p6 = scmp.ne.s32.totalorder %s5083_s2, 0 }
 0x17d   : > { %s5092_s17 = smov %s5091_s20  ;;  %s4516_s4 = scalar_lea.hbm %s5091_s20, %s4356_s12 }
 0x17e   : > { %s4525_s16 = scalar_lea.hbm %s5093_s25, %s4356_s12  ;;  %s3830_s3 = scalar_lea.hbm %s4516_s4, 128 }
 0x17f   : > { %p3831_p8 = scmp.ne.s32.totalorder %s4516_s4, %s3830_s3  ;;  %s3835_s18 = scalar_lea.hbm %s5092_s17, 256 }
 0x180   : > { %p3836_p7 = scmp.lt.u32.totalorder %s4516_s4, %s5092_s17  ;;  %p3837_p11 = scmp.lt.u32.totalorder %s3835_s18, %s3830_s3 }
 0x181   : > { %p3833_p1 = pnand %p3831_p8, %p5094_p6  ;;  %p3839_p2 = scmp.lt.u32.totalorder %s3830_s3, %s4516_s4 }
 0x182   : > { %p3838_p12 = por %p3837_p11, %p3836_p7 }
 0x183   : > { %p3834_p13 = pneg %p3833_p1 }
 0x184   : > { %p3840_p4 = por %p3839_p2, %p3838_p12 }
 0x186   : > { %p3841_p10 = pnand %p3840_p4, %p3834_p13 }
 0x188   : > { %3844 = shalt.err (!%p3841_p10)
}
 0x189   : > { %s3845_s12 = scalar_lea.vmem %s4519_s28, 128  ;;  %s4036_s29 = smov [#allocation2]  }
 0x18a   : > { %p3846_p3 = scmp.ne.s32.totalorder %s4519_s28, %s3845_s12  ;;  %s3850_s1 = sshll.u32 %s4036_s29, 4  ;;  %s3851_s1 = int_to_ptr.vmem [resolvable:$false] %s3850_s1 }
 0x18b   : > { %s3852_s5 = scalar_lea.vmem %s3851_s1, 256  ;;  %p3853_p9 = scmp.lt.s32.totalorder %s4519_s28, %s3851_s1 }
 0x18c   : > { %p3848_p0 = pnand %p3846_p3, %p5094_p6  ;;  %p3854_p8 = scmp.lt.s32.totalorder %s3852_s5, %s3845_s12 }
 0x18e   : > { %p3849_p5 = pneg %p3848_p0  ;;  %p3855_p1 = por %p3854_p8, %p3853_p9 }
 0x190   : > { %p3856_p7 = pnand %p3855_p1, %p3849_p5 }
 0x192   : > { %3859 = shalt.err (!%p3856_p7)
}
 0x193   : > { %p5095_p13 = scmp.ne.s32.totalorder %s5081_s30, 0  ;;  %s605_s22 = scalar_lea.vmem [#allocation7], %s4353_s23 }
 0x194   : > { %s612_s3 = sshll.u32 %s605_s22, 4  ;;  %s2900_s7 = sshll.u32 %s4342_s0, 2  ;;  %s4550_s3 = int_to_ptr.vmem [resolvable:$true] %s612_s3 }
 0x195   : > { %3341 = dma.hbm_to_vmem [thread:$0]  (!%p5095_p13), %s4516_s4, 128, %s4519_s28, %s563_s6  }
 0x196   : > { %s3860_s26 = scalar_lea.hbm %s4525_s16, 128  ;;  %s3865_s12 = scalar_lea.hbm %s5093_s25, 256 }
 0x197   : > { %p3861_p11 = scmp.ne.s32.totalorder %s4525_s16, %s3860_s26  ;;  %p3866_p4 = scmp.lt.u32.totalorder %s4525_s16, %s5093_s25 }
 0x198   : > { %p3867_p10 = scmp.lt.u32.totalorder %s3865_s12, %s3860_s26  ;;  %p3869_p0 = scmp.lt.u32.totalorder %s3860_s26, %s4525_s16 }
 0x199   : > { %p3863_p12 = pnand %p3861_p11, %p5094_p6 }
 0x19a   : > { %p3868_p3 = por %p3867_p10, %p3866_p4 }
 0x19b   : > { %p3864_p2 = pneg %p3863_p12 }
 0x19c   : > { %p3870_p5 = por %p3869_p0, %p3868_p3 }
 0x19e   : > { %p3871_p9 = pnand %p3870_p5, %p3864_p2 }
 0x1a0   : > { %3874 = shalt.err (!%p3871_p9)
}
 0x1a1   : > { %s3875_s23 = scalar_lea.vmem %s4550_s3, 128  ;;  %s4037_s4 = smov [#allocation7]  }
 0x1a2   : > { %p3876_p8 = scmp.ne.s32.totalorder %s4550_s3, %s3875_s23  ;;  %s3880_s28 = sshll.u32 %s4037_s4, 4  ;;  %s3881_s28 = int_to_ptr.vmem [resolvable:$false] %s3880_s28 }
 0x1a3   : > { %s3882_s6 = scalar_lea.vmem %s3881_s28, 256  ;;  %p3883_p11 = scmp.lt.s32.totalorder %s4550_s3, %s3881_s28 }
 0x1a4   : > { %p3878_p1 = pnand %p3876_p8, %p5094_p6  ;;  %p3884_p12 = scmp.lt.s32.totalorder %s3882_s6, %s3875_s23 }
 0x1a6   : > { %p3879_p7 = pneg %p3878_p1  ;;  %p3885_p4 = por %p3884_p12, %p3883_p11 }
 0x1a8   : > { %p3886_p10 = pnand %p3885_p4, %p3879_p7 }
 0x1aa   : > { %3889 = shalt.err (!%p3886_p10)
}
 0x1ab   : > { %3347 = dma.hbm_to_vmem [thread:$0]  (!%p5095_p13), %s4525_s16, 128, %s4550_s3, %s4376_s9, %s5085_s13, %s5085_s13, %s5084_s11  }
 0x1ac   : > { %s2901_s5 = sshll.u32 %s4018_s21, 6  ;;  %s5096_s18 = sld [smem:[#allocation46_spill]] }
 0x1ad   : > { %s626_s29 = scalar_lea.vmem [#allocation8], %s2900_s7  ;;  %s5098_s23 = sand.u32 1, %s4018_s21  }
 0x1ae   : > { %s633_s1 = sshll.u32 %s626_s29, 4  ;;  %s623_s4 = scalar_lea.sflag [#allocation9], %s5098_s23  ;;  %s634_s1 = int_to_ptr.vmem [resolvable:$true] %s633_s1 }
 0x1b2   : > { %s5097_s12 = smov %s5096_s18  ;;  %s4582_s20 = scalar_lea.hbm %s5096_s18, %s2901_s5 }
 0x1b3   : > { %s3890_s28 = scalar_lea.hbm %s4582_s20, 64  ;;  %s3895_s13 = scalar_lea.hbm %s5097_s12, 128 }
 0x1b4   : > { %p3891_p2 = scmp.ne.s32.totalorder %s4582_s20, %s3890_s28  ;;  %p3896_p5 = scmp.lt.u32.totalorder %s4582_s20, %s5097_s12 }
 0x1b5   : > { %p3897_p9 = scmp.lt.u32.totalorder %s3895_s13, %s3890_s28  ;;  %p3899_p1 = scmp.lt.u32.totalorder %s3890_s28, %s4582_s20 }
 0x1b6   : > { %p3893_p3 = pnand %p3891_p2, %p5094_p6 }
 0x1b7   : > { %p3898_p8 = por %p3897_p9, %p3896_p5 }
 0x1b8   : > { %p3894_p0 = pneg %p3893_p3 }
 0x1b9   : > { %p3900_p7 = por %p3899_p1, %p3898_p8 }
 0x1bb   : > { %p3901_p11 = pnand %p3900_p7, %p3894_p0 }
 0x1bd   : > { %3904 = shalt.err (!%p3901_p11)
}
 0x1be   : > { %s3905_s3 = scalar_lea.vmem %s634_s1, 64  ;;  %s4038_s7 = smov [#allocation8]  }
 0x1bf   : > { %p3906_p12 = scmp.ne.s32.totalorder %s634_s1, %s3905_s3  ;;  %s3910_s6 = sshll.u32 %s4038_s7, 4  ;;  %s3911_s6 = int_to_ptr.vmem [resolvable:$false] %s3910_s6 }
 0x1c0   : > { %s3912_s5 = scalar_lea.vmem %s3911_s6, 128  ;;  %p3913_p2 = scmp.lt.s32.totalorder %s634_s1, %s3911_s6 }
 0x1c1   : > { %p3908_p4 = pnand %p3906_p12, %p5094_p6  ;;  %p3914_p3 = scmp.lt.s32.totalorder %s3912_s5, %s3905_s3 }
 0x1c3   : > { %p3909_p10 = pneg %p3908_p4  ;;  %p3915_p13 = por %p3914_p3, %p3913_p2 }
 0x1c5   : > { %p3916_p5 = pnand %p3915_p13, %p3909_p10 }
 0x1c7   : > { %3919 = shalt.err (!%p3916_p5)
}
 0x1c8   : > { %p5099_p9 = scmp.ne.s32.totalorder %s5081_s30, 0  ;;  %s5100_s22 = sld [smem:[#allocation39_spill]] }
 0x1ca   : > { %3350 = dma.hbm_to_vmem [thread:$0]  (!%p5099_p9), %s4582_s20, 64, %s634_s1, %s623_s4  }
 0x1ce   : > { %p5101_p0 = scmp.ne.s32.totalorder %s5100_s22, 0 }
 0x1cf   : > { %s4608_s2 = sand.u32 (!%p5101_p0), 1, %s4010_s19   ;;  %p5102_p6 = scmp.ne.s32.totalorder (!%p5101_p0), %s5077_s15, 0 }
 0x1d0   : > { %642 = sbr.rel (%p5101_p0) target bundleno = 7068 (0x1b9c), region = 80  ;;  %s4611_s26 = sshll.u32 (!%p5101_p0), %s4608_s2, 3 }
 0x1d1   : > { %s645_s18 = scalar_lea.sflag (!%p5101_p0), [#allocation3], %s4608_s2  ;;  %s648_s29 = scalar_lea.vmem (!%p5101_p0), [#allocation2], %s4611_s26 }
 0x1d7   : > { %3965 = dma.done.wait (%p5102_p6), %s645_s18, 128  }
 0x1d8   : > { %3967 = vsyncadd (%p5102_p6), %s645_s18, 4294967168  ;;  %s653_s30 = sand.u32 1, %s4150_s24   ;;  %s657_s1 = scalar_lea.vmem [#allocation5], %s4611_s26 }
 0x1d9   : > { %s654_s20 = scalar_lea.sflag [#allocation6], %s653_s30 }
 0x1da   : > { %3969 = dma.done.wait (%p5102_p6), %s654_s20, 256  }
 0x1db   : > { %3971 = vsyncadd (%p5102_p6), %s654_s20, 4294967040  ;;  %s2906_s23 = sshll.u32 %s4608_s2, 2  ;;  %s666_s4 = scalar_lea.vmem [#allocation7], %s4611_s26 }
 0x1dc   : > { %s672_s28 = scalar_lea.sflag [#allocation9], %s653_s30  ;;  %s675_s9 = scalar_lea.vmem [#allocation8], %s2906_s23 }
 0x1dd   : > { %3973 = dma.done.wait (%p5102_p6), %s672_s28, 64  }
 0x1de   : > { %3975 = vsyncadd (%p5102_p6), %s672_s28, 4294967232  ;;  %p5103_p13 = scmp.eq.s32.totalorder %s4150_s24, 0 }
 0x1e0   : > { %3977 = dma.done.wait (%p5103_p13), [#allocation9], 256   ;;  %p5104_p8 = pmov %p5103_p13 }
 0x1e2   : > { %3979 = vsyncadd (%p5104_p8), [#allocation9], 4294967040  ;;  %p5105_p1 = pmov %p5104_p8 }
 0x1e4   : > { %3981 = dma.done.wait (%p5105_p1), [#allocation12], 512   ;;  %p5106_p7 = pmov %p5105_p1 }
 0x1e5   : > { %p5107_p11 = pmov %p5105_p1 }
 0x1e6   : > { %3983 = vsyncadd (%p5106_p7), [#allocation12], 4294966784 }
 0x1e7   : > { %3985 = dma.done.wait (%p5107_p11), [#allocation15], 512   ;;  %p5108_p12 = pmov %p5105_p1 }
 0x1e8   : > { %p5109_p4 = pmov %p5105_p1 }
 0x1e9   : > { %3987 = vsyncadd (%p5108_p12), [#allocation15], 4294966784 }
 0x1ea   : > { %3989 = dma.done.wait (%p5109_p4), [#allocation18], 512   ;;  %p5110_p10 = pmov %p5105_p1 }
 0x1eb   : > { %p5111_p2 = pmov %p5105_p1 }
 0x1ec   : > { %3991 = vsyncadd (%p5110_p10), [#allocation18], 4294966784 }
 0x1ed   : > { %3993 = dma.done.wait (%p5111_p2), [#allocation21], 768   ;;  %p5112_p3 = pmov %p5105_p1 }
 0x1ee   : > { %p5113_p5 = pmov %p5105_p1 }
 0x1ef   : > { %3995 = vsyncadd (%p5112_p3), [#allocation21], 4294966528 }
 0x1f0   : > { %3997 = dma.done.wait (%p5113_p5), [#allocation24], 272   ;;  %p5114_p9 = pmov %p5105_p1 }
 0x1f1   : > { %v4039_v0 = vmov 0.0   ;;  %vm4040_vm0 = vmmov 0   ;;  %v3435_v1 = vld [vmem:[#allocation10] sm:$0xff]   ;;  %v3436_v2 = vld [vmem:[#allocation10 + $0x8] sm:$0xff]   ;;  %v4665_v4 = vld [vmem:[%s675_s9] sm:$0xf]  ;;  %v849_v8 = vlaneseq }
 0x1f2   : > { %3999 = vsyncadd (%p5114_p9), [#allocation24], 4294967024  ;;  %3046 = vmatprep.subr.bf16.mxu1 %v4039_v0  ;;  %3050 = vmatprep.mubr.msk.bf16.mxu1 %vm4040_vm0, %v4039_v0  ;;  %v4663_v3 = vld [vmem:[%s648_s29] sm:$0xff]  ;;  %v786_v5 = vunpack.c.l.bf16 %v4665_v4  ;;  %vm805_vm1 = vcmask 261120   ;;  %v4679_v11 = vld [vmem:[#allocation23] sm:$0xff]  ;;  %s4041_s15 = smov 96  }
 0x1f3   : > { %3062 = vmatprep.subr.bf16.mxu0 %v4039_v0  ;;  %3064 = vmatprep.mubr.msk.bf16.mxu0 %vm4040_vm0, %v4039_v0  ;;  %v4676_v9 = vshrl.u32 %v849_v8, 7  ;;  %s4042_s11 = smov 120   ;;  %v3437_v20 = vld [vmem:[#allocation11] sm:$0xff]   ;;  %s4043_s13 = smov 88   ;;  %v3438_v21 = vld [vmem:[#allocation11 + $0x8] sm:$0xff]   ;;  %v858_v22 = vpack.c.bf16 %v4663_v3, %v4663_v3  ;;  %vm924_vm2 = vcmask 64512  }
 0x1f4   : > { %3047 = vmatpush3.bf16.msra.mxu1 %v3435_v1  ;;  %v787_v6 = vadd.f32 %v786_v5, %v4663_v3  ;;  %vm986_vm3 = vcmask 1043456   ;;  %s4044_s16 = smov 80   ;;  %s4045_s0 = smov 112   ;;  %vm1841_vm4 = vcmask 130048   ;;  %vm2555_vm5 = vcmask 523264  }
 0x1f5   : > { %3048 = vmatprep.subr.bf16.mxu1 %v4039_v0  ;;  %v851_v10 = vsub.s32 0, %v4676_v9  ;;  %v861_v38 = vsub.s32 1, %v4676_v9  ;;  %s4046_s3 = smov 104   ;;  %s4047_s7 = smov 72  }
 0x1f6   : > { %v792_v7 = vpack.c.bf16 %v787_v6, %v787_v6  ;;  %s2970_s6 = sshll.u32 %s4150_s24, 7  ;;  %s780_s5 = scalar_lea.vmem [#allocation26], %s4611_s26 }
 0x1f7   : > { %v852_v12 = vrot.slane %v4679_v11, %v851_v10  ;;  %v862_v41 = vrot.slane %v4679_v11, %v861_v38  ;;  %s2638_s22 = sshll.u32 %s780_s5, 4  ;;  %s5115_s30 = sld [smem:[#allocation56_spill]]  ;;  %s4958_s22 = int_to_ptr.vmem [resolvable:$true] %s2638_s22 }
 0x1f8   : > { %3049 = vmatpush3.bf16.msra.mxu1 %v3436_v2  ;;  %s3920_s23 = scalar_lea.vmem %s4958_s22, 128  ;;  %p5116_p6 = scmp.ne.s32.totalorder %s5078_s27, 0 }
 0x1f9   : > { %3054 = vmatprep.subr.bf16.mxu1 %v4039_v0  ;;  %p3921_p0 = scmp.ne.s32.totalorder %s4958_s22, %s3920_s23  ;;  %s4048_s24 = smov [#allocation26]  }
 0x1fa   : > { %s3924_s26 = sshll.u32 %s4048_s24, 4  ;;  %s3925_s26 = int_to_ptr.vmem [resolvable:$false] %s3924_s26 }
 0x1fb   : > { %3051 = vmatmul.mubr.msk.bf16.vlgmr.msra.gmra.mrb[0].mxu1 %vm805_vm1, %v792_v7  ;;  %v1031_v7 = vld [vmem:[#allocation13] sm:$0xf]  ;;  %p3922_p13 = pnand %p3921_p0, %p5116_p6  ;;  %p3927_p1 = scmp.lt.s32.totalorder %s4958_s22, %s3925_s26 }
 0x1fc   : > { %3058 = vmatprep.mubr.msk.bf16.mxu1 %vm4040_vm0, %v4039_v0  ;;  %3055 = vmatpush3.bf16.msra.mxu1 %v3437_v20  ;;  %v1197_v8 = vsel %vm986_vm3, %v1031_v7, 0 }
 0x1fd   : > { %3056 = vmatprep.subr.bf16.mxu1 %v4039_v0  ;;  %s4956_s20 = scalar_lea.hbm %s5115_s30, %s2970_s6  ;;  %p3923_p8 = pneg %p3922_p13 }
 0x200   : > { %3057 = vmatpush3.bf16.msra.mxu1 %v3438_v21 }
 0x201   : > { %3068 = vmatprep.subr.bf16.mxu1 %v4039_v0 }
 0x203   : > { %3059 = vmatmul.mubr.msk.bf16.vlgmr.msra.gmra.mrb[4].mxu1 %vm805_vm1, %v858_v22 }
 0x204   : > { %3070 = vmatprep.mubr.msk.bf16.mxu1 %vm4040_vm0, %v4039_v0 }
 0x2ce   : > { %v843_v13 = vpop.f32.mrb[0].mxu1 }
 0x2cf   : > { %v853_v14 = vadd.f32 %v852_v12, %v843_v13  ;;  %v4684_v15 = vpack.c.bf16 %v843_v13, %v843_v13  ;;  %v3052_v16 = vpop.f32.mrb[1].mxu1  ;;  %v1146_v12 = vld [vmem:[#allocation13 + $0x4] sm:$0xf] }
 0x2d0   : > { %v846_v17 = vpop.f32.mrb[2].mxu1  ;;  %v1151_v13 = vsel %vm986_vm3, %v1146_v12, 0 }
 0x2d1   : > { %v4686_v18 = vpack.c.bf16 %v853_v14, %v853_v14  ;;  %922 = vrot.lane.b32.xlu0 %v4684_v15, %s4041_s15  ;;  %v3053_v19 = vpop.f32.mrb[3].mxu1 }
 0x2d3   : > { %1033 = vrot.lane.b32.xlu1 %v4686_v18, %s4042_s11 }
 0x2d5   : > { %1035 = vrot.lane.b32.xlu0 %v4684_v15, %s4043_s13 }
 0x2d6   : > { %v912_v39 = vpop.f32.mrb[4].mxu1 }
 0x2d7   : > { %v3060_v40 = vpop.f32.mrb[5].mxu1  ;;  %v913_v44 = vadd.f32 %v912_v39, %v862_v41 }
 0x2d8   : > { %v915_v42 = vpop.f32.mrb[6].mxu1 }
 0x2d9   : > { %v3061_v43 = vpop.f32.mrb[7].mxu1  ;;  %v4716_v45 = vpack.c.bf16 %v913_v44, %v913_v44 }
 0x2db   : > { %v988_v46 = vsel %vm986_vm3, %v4716_v45, 0 }
 0x2dc   : > { %3069 = vmatpush3.bf16.msra.mxu1 %v988_v46 }
 0x2dd   : > { %3080 = vmatprep.subr.bf16.mxu1 %v4039_v0 }
 0x343   : > { %v923_v23 = vpop.permute.xlu0 %922 }
 0x344   : > { %v929_v24 = vsel %vm924_vm2, %v923_v23, 0 }
 0x345   : > { %3063 = vmatpush3.bf16.xpose.msra.mxu0 %v929_v24  ;;  %v1034_v27 = vpop.permute.xlu1 %1033 }
 0x346   : > { %3074 = vmatprep.subr.bf16.mxu0 %v4039_v0 }
 0x347   : > { %v1036_v25 = vpop.permute.xlu0 %1035 }
 0x348   : > { %v1041_v26 = vsel %vm924_vm2, %v1036_v25, 0 }
 0x34c   : > { %3065 = vmatmul.mubr.msk.bf16.vlgmr.msra.gmra.mrb[0].mxu0 %vm924_vm2, %v4686_v18 }
 0x34d   : > { %3075 = vmatpush3.bf16.xpose.msra.mxu0 %v1041_v26  ;;  %3076 = vmatprep.mubr.msk.bf16.mxu0 %vm4040_vm0, %v4039_v0 }
 0x34e   : > { %3086 = vmatprep.subr.bf16.mxu0 %v4039_v0 }
 0x354   : > { %3077 = vmatmul.mubr.msk.bf16.vlgmr.msra.gmra.mrb[4].mxu0 %vm924_vm2, %v1034_v27 }
 0x355   : > { %3088 = vmatprep.mubr.msk.bf16.mxu0 %vm4040_vm0, %v4039_v0  ;;  %3087 = vmatpush3.bf16.msra.mxu0 %v1151_v13 }
 0x356   : > { %3098 = vmatprep.subr.bf16.mxu0 %v4039_v0 }
 0x41f   : > { %v965_v28 = vpop.f32.mrb[0].mxu0 }
 0x420   : > { %v3066_v29 = vpop.f32.mrb[1].mxu0  ;;  %v971_v30 = vsel %vm924_vm2, %v965_v28, -inf }
 0x421   : > { %972 = vmax.xlane.f32.xlu1 %v971_v30  ;;  %v968_v31 = vpop.f32.mrb[2].mxu0 }
 0x422   : > { %v3067_v32 = vpop.f32.mrb[3].mxu0 }
 0x427   : > { %v1077_v33 = vpop.f32.mrb[4].mxu0 }
 0x428   : > { %v3078_v34 = vpop.f32.mrb[5].mxu0  ;;  %v1083_v35 = vsel %vm924_vm2, %v1077_v33, -inf }
 0x429   : > { %1084 = vmax.xlane.f32.xlu0 %v1083_v35  ;;  %v1080_v36 = vpop.f32.mrb[6].mxu0 }
 0x42a   : > { %v3079_v37 = vpop.f32.mrb[7].mxu0 }
 0x4ae   : > { %v973_v47 = vpop.xlane.xlu1 %972 }
 0x4af   : > { %v974_v48 = vsub.f32 %v965_v28, %v973_v47 }
 0x4b1   : > { %v975_v49 = vmul.f32 1.442695, %v974_v48 }
 0x4b3   : > { %3453 = vpow2.f32 %v975_v49 }
 0x4b6   : > { %v1085_v50 = vpop.xlane.xlu0 %1084 }
 0x4b7   : > { %v1086_v51 = vsub.f32 %v1077_v33, %v1085_v50 }
 0x4b9   : > { %v1087_v52 = vmul.f32 1.442695, %v1086_v51 }
 0x4bb   : > { %3455 = vpow2.f32 %v1087_v52 }
 0x4bd   : > { %v3454_v53 = vpop.eup %3453 }
 0x4be   : > { %v977_v54 = vsel %vm924_vm2, %v3454_v53, 0.0 }
 0x4bf   : > { %978 = vadd.xlane.f32.xlu0 %v977_v54 }
 0x4c5   : > { %v3456_v55 = vpop.eup %3455 }
 0x4c6   : > { %v1089_v56 = vsel %vm924_vm2, %v3456_v55, 0.0 }
 0x4c7   : > { %1090 = vadd.xlane.f32.xlu1 %v1089_v56 }
 0x4d5   : > { %1096 = vrot.lane.b32.xlu0 %v4716_v45, %s4042_s11 }
 0x4d8   : > { %1241 = vrot.lane.b32.xlu1 %v4684_v15, %s4044_s16 }
 0x4dc   : > { %1239 = vrot.lane.b32.xlu1 %v4686_v18, %s4045_s0 }
 0x54c   : > { %v979_v57 = vpop.xlane.xlu0 %978 }
 0x54d   : > { %3457 = vrcp.f32 %v979_v57 }
 0x550   : > { %v1097_v60 = vpop.permute.xlu0 %1096 }
 0x551   : > { %v1102_v62 = vsel %vm986_vm3, %v1097_v60, 0 }
 0x554   : > { %v1091_v58 = vpop.xlane.xlu1 %1090 }
 0x555   : > { %3459 = vrcp.f32 %v1091_v58 }
 0x557   : > { %v3458_v59 = vpop.eup %3457 }
 0x558   : > { %v981_v61 = vmul.f32 %v3458_v59, %v3454_v53  ;;  %v1242_v21 = vpop.permute.xlu1 %1241 }
 0x559   : > { %v1247_v26 = vsel %vm924_vm2, %v1242_v21, 0 }
 0x55a   : > { %v982_v63 = vpack.c.bf16 %v981_v61, %v981_v61 }
 0x55c   : > { %3071 = vmatmul.mubr.msk.bf16.vlgmr.msra.gmra.mrb[8].mxu1 %vm924_vm2, %v982_v63  ;;  %v1240_v28 = vpop.permute.xlu1 %1239 }
 0x55d   : > { %3081 = vmatpush3.bf16.msra.mxu1 %v1102_v62  ;;  %3082 = vmatprep.mubr.msk.bf16.mxu1 %vm4040_vm0, %v4039_v0 }
 0x55e   : > { %3092 = vmatprep.subr.bf16.mxu1 %v4039_v0 }
 0x55f   : > { %v3460_v1 = vpop.eup %3459 }
 0x560   : > { %v1093_v2 = vmul.f32 %v3460_v1, %v3456_v55 }
 0x562   : > { %v1094_v6 = vpack.c.bf16 %v1093_v2, %v1093_v2 }
 0x564   : > { %3083 = vmatmul.mubr.msk.bf16.vlgmr.msra.gmra.mrb[12].mxu1 %vm924_vm2, %v1094_v6 }
 0x565   : > { %3094 = vmatprep.mubr.msk.bf16.mxu1 %vm4040_vm0, %v4039_v0  ;;  %3093 = vmatpush3.bf16.msra.mxu1 %v1197_v8 }
 0x566   : > { %3104 = vmatprep.subr.bf16.mxu1 %v4039_v0 }
 0x62f   : > { %v1024_v14 = vpop.f32.mrb[8].mxu1 }
 0x630   : > { %v1030_v16 = vpack.c.bf16 %v1024_v14, %v1024_v14  ;;  %v3072_v17 = vpop.f32.mrb[9].mxu1 }
 0x631   : > { %v1027_v19 = vpop.f32.mrb[10].mxu1 }
 0x632   : > { %v3073_v20 = vpop.f32.mrb[11].mxu1  ;;  %3095 = vmatmul.mubr.msk.bf16.vlgmr.msra.gmra.mrb[16].mxu1 %vm924_vm2, %v1030_v16  ;;  %v1511_v19 = vld [vmem:[#allocation13 + $0xc] sm:$0xf] }
 0x633   : > { %3106 = vmatprep.mubr.msk.bf16.mxu1 %vm4040_vm0, %v4039_v0  ;;  %v1516_v20 = vsel %vm986_vm3, %v1511_v19, 0  ;;  %v3445_v19 = vld [vmem:[#allocation17 + $0x8] sm:$0xff]  }
 0x637   : > { %v1138_v22 = vpop.f32.mrb[12].mxu1 }
 0x638   : > { %v1144_v23 = vpack.c.bf16 %v1138_v22, %v1138_v22  ;;  %v3084_v24 = vpop.f32.mrb[13].mxu1 }
 0x639   : > { %v1141_v25 = vpop.f32.mrb[14].mxu1 }
 0x63a   : > { %v3085_v27 = vpop.f32.mrb[15].mxu1  ;;  %3089 = vmatmul.mubr.msk.bf16.vlgmr.msra.gmra.mrb[8].mxu0 %vm924_vm2, %v1144_v23 }
 0x63b   : > { %3099 = vmatpush3.bf16.xpose.msra.mxu0 %v1247_v26  ;;  %3100 = vmatprep.mubr.msk.bf16.mxu0 %vm4040_vm0, %v4039_v0 }
 0x63c   : > { %3110 = vmatprep.subr.bf16.mxu0 %v4039_v0 }
 0x642   : > { %3101 = vmatmul.mubr.msk.bf16.vlgmr.msra.gmra.mrb[12].mxu0 %vm924_vm2, %v1240_v28 }
 0x643   : > { %3112 = vmatprep.mubr.msk.bf16.mxu0 %vm4040_vm0, %v4039_v0 }
 0x705   : > { %v1233_v29 = vpop.f32.mrb[16].mxu1 }
 0x706   : > { %v3096_v30 = vpop.f32.mrb[17].mxu1 }
 0x707   : > { %v1236_v31 = vpop.f32.mrb[18].mxu1 }
 0x708   : > { %v3097_v32 = vpop.f32.mrb[19].mxu1 }
 0x70d   : > { %v1187_v33 = vpop.f32.mrb[8].mxu0 }
 0x70e   : > { %v4751_v34 = vadd.f32 %v1233_v29, %v1187_v33  ;;  %v3090_v35 = vpop.f32.mrb[9].mxu0 }
 0x70f   : > { %v1190_v36 = vpop.f32.mrb[10].mxu0 }
 0x710   : > { %v3091_v37 = vpop.f32.mrb[11].mxu0  ;;  %v1561_v36 = vsub.s32 2, %v4676_v9 }
 0x712   : > { %v1562_v37 = vrot.slane %v4679_v11, %v1561_v36 }
 0x715   : > { %v1283_v39 = vpop.f32.mrb[12].mxu0 }
 0x716   : > { %v3102_v40 = vpop.f32.mrb[13].mxu0  ;;  %v1289_v41 = vsel %vm924_vm2, %v1283_v39, -inf }
 0x717   : > { %1290 = vmax.xlane.f32.xlu0 %v1289_v41  ;;  %v1286_v42 = vpop.f32.mrb[14].mxu0 }
 0x718   : > { %v3103_v43 = vpop.f32.mrb[15].mxu0 }
 0x72d   : > { %1301 = vrot.lane.b32.xlu0 %v4716_v45, %s4045_s0 }
 0x731   : > { %1399 = vrot.lane.b32.xlu0 %v4686_v18, %s4046_s3 }
 0x7a4   : > { %v1291_v44 = vpop.xlane.xlu0 %1290 }
 0x7a5   : > { %v1292_v46 = vsub.f32 %v1283_v39, %v1291_v44 }
 0x7a7   : > { %v1293_v47 = vmul.f32 1.442695, %v1292_v46 }
 0x7a8   : > { %v1302_v48 = vpop.permute.xlu0 %1301 }
 0x7a9   : > { %3461 = vpow2.f32 %v1293_v47  ;;  %v1307_v49 = vsel %vm986_vm3, %v1302_v48, 0 }
 0x7aa   : > { %3105 = vmatpush3.bf16.msra.mxu1 %v1307_v49 }
 0x7ab   : > { %3116 = vmatprep.subr.bf16.mxu1 %v4039_v0 }
 0x7ac   : > { %v1400_v57 = vpop.permute.xlu0 %1399 }
 0x7b3   : > { %v3462_v50 = vpop.eup %3461 }
 0x7b4   : > { %v1295_v51 = vsel %vm924_vm2, %v3462_v50, 0.0 }
 0x7b5   : > { %1296 = vadd.xlane.f32.xlu1 %v1295_v51 }
 0x7c6   : > { %1401 = vrot.lane.b32.xlu1 %v4684_v15, %s4047_s7  ;;  %v1351_v15 = vld [vmem:[#allocation13 + $0x8] sm:$0xf] }
 0x7c7   : > { %v1356_v58 = vsel %vm986_vm3, %v1351_v15, 0 }
 0x7c8   : > { %3111 = vmatpush3.bf16.msra.mxu0 %v1356_v58  ;;  %v1581_v58 = vsub.s32 7, %v4676_v9 }
 0x7c9   : > { %3122 = vmatprep.subr.bf16.mxu0 %v4039_v0 }
 0x842   : > { %v1297_v52 = vpop.xlane.xlu1 %1296 }
 0x843   : > { %3463 = vrcp.f32 %v1297_v52 }
 0x846   : > { %v1402_v54 = vpop.permute.xlu1 %1401 }
 0x847   : > { %v1407_v56 = vsel %vm924_vm2, %v1402_v54, 0  ;;  %v3441_v54 = vld [vmem:[%s657_s1] sm:$0xff]   ;;  %s2625_s1 = scalar_lea.sflag [#allocation4], %s4608_s2 }
 0x84d   : > { %v3464_v18 = vpop.eup %3463 }
 0x84e   : > { %v1299_v53 = vmul.f32 %v3464_v18, %v3462_v50  ;;  %v3439_v18 = vld [vmem:[#allocation16] sm:$0xff]  }
 0x850   : > { %v1300_v55 = vpack.c.bf16 %v1299_v53, %v1299_v53  ;;  %v3440_v53 = vld [vmem:[#allocation16 + $0x8] sm:$0xff]  }
 0x852   : > { %3107 = vmatmul.mubr.msk.bf16.vlgmr.msra.gmra.mrb[20].mxu1 %vm924_vm2, %v1300_v55  ;;  %v3443_v55 = vld [vmem:[#allocation14 + $0x8] sm:$0xff]  }
 0x853   : > { %3117 = vmatpush3.bf16.xpose.msra.mxu1 %v1407_v56  ;;  %3118 = vmatprep.mubr.msk.bf16.mxu1 %vm4040_vm0, %v4039_v0 }
 0x854   : > { %3128 = vmatprep.subr.bf16.mxu1 %v4039_v0 }
 0x85a   : > { %3119 = vmatmul.mubr.msk.bf16.vlgmr.msra.gmra.mrb[24].mxu1 %vm924_vm2, %v1400_v57 }
 0x85b   : > { %3130 = vmatprep.mubr.msk.bf16.mxu1 %vm4040_vm0, %v4039_v0  ;;  %3129 = vmatpush3.bf16.msra.mxu1 %v1516_v20 }
 0x85c   : > { %3142 = vmatprep.subr.bf16.mxu1 %v4039_v0 }
 0x925   : > { %v1343_v59 = vpop.f32.mrb[20].mxu1 }
 0x926   : > { %v1349_v60 = vpack.c.bf16 %v1343_v59, %v1343_v59  ;;  %v3108_v61 = vpop.f32.mrb[21].mxu1  ;;  %v4805_v59 = vld [vmem:[#allocation23 + $0x8] sm:$0x1f] }
 0x927   : > { %v1346_v62 = vpop.f32.mrb[22].mxu1 }
 0x928   : > { %v3109_v63 = vpop.f32.mrb[23].mxu1  ;;  %3113 = vmatmul.mubr.msk.bf16.vlgmr.msra.gmra.mrb[16].mxu0 %vm924_vm2, %v1349_v60  ;;  %v1582_v60 = vrot.slane %v4679_v11, %v1581_v58  ;;  %v1587_v62 = vrot.slane %v4805_v59, %v1561_v36 }
 0x929   : > { %3124 = vmatprep.mubr.msk.bf16.mxu0 %vm4040_vm0, %v4039_v0 }
 0x92d   : > { %v1443_v1 = vpop.f32.mrb[24].mxu1 }
 0x92e   : > { %v3120_v2 = vpop.f32.mrb[25].mxu1  ;;  %v1449_v6 = vsel %vm924_vm2, %v1443_v1, -inf }
 0x92f   : > { %1450 = vmax.xlane.f32.xlu1 %v1449_v6  ;;  %v1446_v7 = vpop.f32.mrb[26].mxu1 }
 0x930   : > { %v3121_v8 = vpop.f32.mrb[27].mxu1 }
 0x9bc   : > { %v1451_v12 = vpop.xlane.xlu1 %1450 }
 0x9bd   : > { %v1452_v13 = vsub.f32 %v1443_v1, %v1451_v12 }
 0x9bf   : > { %v1453_v14 = vmul.f32 1.442695, %v1452_v13 }
 0x9c1   : > { %3465 = vpow2.f32 %v1453_v14 }
 0x9cb   : > { %v3466_v16 = vpop.eup %3465 }
 0x9cc   : > { %v1455_v17 = vsel %vm924_vm2, %v3466_v16, 0.0 }
 0x9cd   : > { %1456 = vadd.xlane.f32.xlu0 %v1455_v17  ;;  %v1597_v17 = vsub.s32 3, %v4676_v9 }
 0x9cf   : > { %v1598_v20 = vrot.slane %v4679_v11, %v1597_v17 }
 0x9e3   : > { %1461 = vrot.lane.b32.xlu0 %v4716_v45, %s4046_s3 }
 0x9fb   : > { %v1392_v21 = vpop.f32.mrb[16].mxu0 }
 0x9fc   : > { %v1398_v22 = vadd.f32 %v1392_v21, %v4751_v34  ;;  %v3114_v23 = vpop.f32.mrb[17].mxu0  ;;  %v3446_v21 = vld [vmem:[%s666_s4] sm:$0xff]   ;;  %s3926_s4 = scalar_lea.vmem %s3925_s26, 256 }
 0x9fd   : > { %v1395_v24 = vpop.f32.mrb[18].mxu0  ;;  %p3928_p7 = scmp.lt.s32.totalorder %s3926_s4, %s3920_s23 }
 0x9fe   : > { %v3115_v25 = vpop.f32.mrb[19].mxu0 }
 0x9ff   : > { %p3929_p11 = por %p3928_p7, %p3927_p1 }
 0xa01   : > { %p3930_p12 = pnand %p3929_p11, %p3923_p8 }
 0xa5a   : > { %v1457_v26 = vpop.xlane.xlu0 %1456 }
 0xa5b   : > { %3467 = vrcp.f32 %v1457_v26 }
 0xa5e   : > { %v1462_v27 = vpop.permute.xlu0 %1461 }
 0xa5f   : > { %v1467_v28 = vsel %vm986_vm3, %v1462_v27, 0 }
 0xa60   : > { %3123 = vmatpush3.bf16.msra.mxu0 %v1467_v28 }
 0xa61   : > { %3134 = vmatprep.subr.bf16.mxu0 %v4039_v0 }
 0xa65   : > { %v3468_v45 = vpop.eup %3467 }
 0xa66   : > { %v1459_v29 = vmul.f32 %v3468_v45, %v3466_v16 }
 0xa68   : > { %v1460_v30 = vpack.c.bf16 %v1459_v29, %v1459_v29 }
 0xa6a   : > { %3125 = vmatmul.mubr.msk.bf16.vlgmr.msra.gmra.mrb[20].mxu0 %vm924_vm2, %v1460_v30  ;;  %v1729_v30 = vsub.s32 4, %v4676_v9 }
 0xa6b   : > { %3138 = vmatprep.mubr.msk.bf16.mxu0 %vm4040_vm0, %v4039_v0 }
 0xb3d   : > { %v1503_v31 = vpop.f32.mrb[20].mxu0 }
 0xb3e   : > { %v1509_v32 = vpack.c.bf16 %v1503_v31, %v1503_v31  ;;  %v3126_v33 = vpop.f32.mrb[21].mxu0  ;;  %v1730_v31 = vrot.slane %v4679_v11, %v1729_v30 }
 0xb3f   : > { %v1506_v34 = vpop.f32.mrb[22].mxu0 }
 0xb40   : > { %v3127_v35 = vpop.f32.mrb[23].mxu0  ;;  %3131 = vmatmul.mubr.msk.bf16.vlgmr.msra.gmra.mrb[28].mxu1 %vm924_vm2, %v1509_v32 }
 0xb41   : > { %3146 = vmatprep.mubr.msk.bf16.mxu1 %vm4040_vm0, %v4039_v0  ;;  %3143 = vmatpush3.bf16.msra.mxu1 %v3439_v18 }
 0xb42   : > { %3144 = vmatprep.subr.bf16.mxu1 %v4039_v0 }
 0xb45   : > { %3145 = vmatpush3.bf16.msra.mxu1 %v3440_v53 }
 0xb46   : > { %3158 = vmatprep.subr.bf16.mxu1 %v4039_v0 }
 0xb48   : > { %3147 = vmatmul.mubr.msk.bf16.vlgmr.msra.gmra.mrb[32].mxu1 %vm805_vm1, %v3441_v54 }
 0xb49   : > { %3160 = vmatprep.mubr.msk.bf16.mxu1 %vm4040_vm0, %v4039_v0 }
 0xc13   : > { %v1552_v39 = vpop.f32.mrb[28].mxu1 }
 0xc14   : > { %v1558_v40 = vadd.f32 %v1552_v39, %v1398_v22  ;;  %v3132_v41 = vpop.f32.mrb[29].mxu1 }
 0xc15   : > { %v1555_v42 = vpop.f32.mrb[30].mxu1 }
 0xc16   : > { %v1563_v43 = vadd.f32 %v1562_v37, %v1558_v40  ;;  %v3133_v44 = vpop.f32.mrb[31].mxu1 }
 0xc18   : > { %v1564_v46 = vadd.f32 %v1563_v43, %v4663_v3  ;;  %v3442_v3 = vld [vmem:[#allocation14] sm:$0xff]  }
 0xc19   : > { %3135 = vmatpush3.bf16.msra.mxu0 %v3442_v3 }
 0xc1a   : > { %v1565_v47 = vsel %vm805_vm1, %v1564_v46, 0.0  ;;  %3136 = vmatprep.subr.bf16.mxu0 %v4039_v0 }
 0xc1b   : > { %1566 = vadd.xlane.f32.xlu1 %v1565_v47  ;;  %v1714_v8 = vpop.f32.mrb[32].mxu1 }
 0xc1c   : > { %v3148_v12 = vpop.f32.mrb[33].mxu1 }
 0xc1d   : > { %3137 = vmatpush3.bf16.msra.mxu0 %v3443_v55  ;;  %v1717_v13 = vpop.f32.mrb[34].mxu1  ;;  %v1898_v12 = vld [vmem:[#allocation19] sm:$0xf] }
 0xc1e   : > { %3150 = vmatprep.subr.bf16.mxu0 %v4039_v0  ;;  %v4817_v14 = vpack.c.bf16 %v1717_v13, %v1714_v8  ;;  %v3149_v16 = vpop.f32.mrb[35].mxu1 }
 0xc20   : > { %v1799_v4 = vsel %vm924_vm2, %v4817_v14, 0 }
 0xc21   : > { %3159 = vmatpush3.bf16.xpose.msra.mxu1 %v1799_v4  ;;  %v2063_v4 = vsel %vm986_vm3, %v1898_v12, 0 }
 0xc22   : > { %3170 = vmatprep.subr.bf16.mxu1 %v4039_v0 }
 0xca8   : > { %v1567_v48 = vpop.xlane.xlu1 %1566 }
 0xca9   : > { %v1569_v49 = vmul.f32 0.03125, %v1567_v48 }
 0xcab   : > { %v1570_v50 = vsub.f32 %v1564_v46, %v1569_v49 }
 0xcad   : > { %v1571_v51 = vmul.f32 %v1570_v50, %v1570_v50 }
 0xcaf   : > { %v1572_v52 = vsel %vm805_vm1, %v1571_v51, 0.0 }
 0xcb0   : > { %1573 = vadd.xlane.f32.xlu1 %v1572_v52 }
 0xcc1   : > { %1903 = vrot.lane.b32.xlu1 %v4817_v14, %s4042_s11 }
 0xd3d   : > { %v1574_v56 = vpop.xlane.xlu1 %1573 }
 0xd3e   : > { %v1575_v57 = vmul.f32 0.03125, %v1574_v56 }
 0xd40   : > { %v1576_v15 = vadd.f32 1e-05, %v1575_v57 }
 0xd41   : > { %v1904_v23 = vpop.permute.xlu1 %1903 }
 0xd42   : > { %3469 = vrsqrt.f32 %v1576_v15  ;;  %v1909_v45 = vsel %vm924_vm2, %v1904_v23, 0 }
 0xd4c   : > { %v3470_v61 = vpop.eup %3469 }
 0xd4d   : > { %v1578_v63 = vmul.f32 %v3470_v61, %v1570_v50 }
 0xd4f   : > { %v1583_v1 = vmul.f32 %v1582_v60, %v1578_v63 }
 0xd51   : > { %v4809_v2 = vadd.f32 %v1587_v62, %v1583_v1  ;;  %v2012_v1 = vld [vmem:[#allocation19 + $0x4] sm:$0xf] }
 0xd53   : > { %v1589_v6 = vadd.f32 %v4809_v2, %v786_v5  ;;  %v3444_v5 = vld [vmem:[#allocation17] sm:$0xff]  }
 0xd55   : > { %v1594_v7 = vpack.c.bf16 %v1589_v6, %v1589_v6  ;;  %v2017_v6 = vsel %vm986_vm3, %v2012_v1, 0 }
 0xd57   : > { %3139 = vmatmul.mubr.msk.bf16.vlgmr.msra.gmra.mrb[24].mxu0 %vm805_vm1, %v1594_v7 }
 0xd58   : > { %3154 = vmatprep.mubr.msk.bf16.mxu0 %vm4040_vm0, %v4039_v0  ;;  %3151 = vmatpush3.bf16.msra.mxu0 %v3444_v5 }
 0xd59   : > { %3152 = vmatprep.subr.bf16.mxu0 %v4039_v0 }
 0xd5c   : > { %3153 = vmatpush3.bf16.msra.mxu0 %v3445_v19 }
 0xd5d   : > { %3164 = vmatprep.subr.bf16.mxu0 %v4039_v0 }
 0xd5f   : > { %3155 = vmatmul.mubr.msk.bf16.vlgmr.msra.gmra.mrb[28].mxu0 %vm805_vm1, %v3446_v21 }
 0xd60   : > { %3166 = vmatprep.mubr.msk.bf16.mxu0 %vm4040_vm0, %v4039_v0 }
 0xe2a   : > { %v1648_v22 = vpop.f32.mrb[24].mxu0 }
 0xe2b   : > { %v1649_v24 = vadd.f32 %v1648_v22, %v1598_v20  ;;  %v3140_v25 = vpop.f32.mrb[25].mxu0 }
 0xe2c   : > { %v1651_v26 = vpop.f32.mrb[26].mxu0 }
 0xe2d   : > { %v4835_v27 = vpack.c.bf16 %v1649_v24, %v1649_v24  ;;  %v3141_v28 = vpop.f32.mrb[27].mxu0 }
 0xe2f   : > { %1900 = vrot.lane.b32.xlu0 %v4835_v27, %s4042_s11  ;;  %3161 = vmatmul.mubr.msk.bf16.vlgmr.msra.gmra.mrb[36].mxu1 %vm924_vm2, %v4835_v27 }
 0xe30   : > { %3171 = vmatpush3.bf16.xpose.msra.mxu1 %v1909_v45  ;;  %3172 = vmatprep.mubr.msk.bf16.mxu1 %vm4040_vm0, %v4039_v0 }
 0xe31   : > { %3182 = vmatprep.subr.bf16.mxu1 %v4039_v0 }
 0xe32   : > { %v1785_v32 = vpop.f32.mrb[28].mxu0 }
 0xe33   : > { %v1786_v33 = vadd.f32 %v1785_v32, %v1730_v31  ;;  %v3156_v34 = vpop.f32.mrb[29].mxu0 }
 0xe34   : > { %v1788_v35 = vpop.f32.mrb[30].mxu0 }
 0xe35   : > { %v1789_v36 = vadd.f32 %v1788_v35, %v1730_v31  ;;  %v3157_v37 = vpop.f32.mrb[31].mxu0 }
 0xe37   : > { %v4853_v42 = vpack.c.bf16 %v1789_v36, %v1786_v33 }
 0xe39   : > { %3165 = vmatpush3.bf16.msra.mxu0 %v4853_v42 }
 0xe3a   : > { %3176 = vmatprep.subr.bf16.mxu0 %v4039_v0 }
 0xea1   : > { %v1901_v29 = vpop.permute.xlu0 %1900 }
 0xea2   : > { %3173 = vmatmul.mubr.msk.bf16.vlgmr.msra.gmra.mrb[40].mxu1 %vm924_vm2, %v1901_v29 }
 0xea3   : > { %3184 = vmatprep.mubr.msk.bf16.mxu1 %vm4040_vm0, %v4039_v0  ;;  %3183 = vmatpush3.bf16.msra.mxu1 %v2017_v6 }
 0xea4   : > { %3194 = vmatprep.subr.bf16.mxu1 %v4039_v0 }
 0xf02   : > { %v1835_v39 = vpop.f32.mrb[36].mxu1 }
 0xf03   : > { %v3162_v40 = vpop.f32.mrb[37].mxu1  ;;  %v1842_v41 = vsel %vm1841_vm4, %v1835_v39, -inf }
 0xf04   : > { %1843 = vmax.xlane.f32.xlu0 %v1842_v41  ;;  %v1838_v43 = vpop.f32.mrb[38].mxu1 }
 0xf05   : > { %v3163_v44 = vpop.f32.mrb[39].mxu1 }
 0xf75   : > { %v1945_v46 = vpop.f32.mrb[40].mxu1 }
 0xf76   : > { %v3174_v47 = vpop.f32.mrb[41].mxu1  ;;  %v1951_v48 = vsel %vm1841_vm4, %v1945_v46, -inf }
 0xf77   : > { %1952 = vmax.xlane.f32.xlu1 %v1951_v48  ;;  %v1948_v49 = vpop.f32.mrb[42].mxu1 }
 0xf78   : > { %v3175_v50 = vpop.f32.mrb[43].mxu1 }
 0xf88   : > { %1964 = vrot.lane.b32.xlu1 %v4853_v42, %s4042_s11 }
 0xf8c   : > { %2105 = vrot.lane.b32.xlu1 %v4835_v27, %s4045_s0 }
 0xf91   : > { %v1844_v51 = vpop.xlane.xlu0 %1843 }
 0xf92   : > { %v1845_v52 = vsub.f32 %v1835_v39, %v1844_v51 }
 0xf94   : > { %v1846_v18 = vmul.f32 1.442695, %v1845_v52 }
 0xf96   : > { %3471 = vpow2.f32 %v1846_v18 }
 0xfa0   : > { %v3472_v53 = vpop.eup %3471 }
 0xfa1   : > { %v1848_v54 = vsel %vm1841_vm4, %v3472_v53, 0.0 }
 0xfa2   : > { %1849 = vadd.xlane.f32.xlu0 %v1848_v54 }
0x1004   : > { %v1953_v3 = vpop.xlane.xlu1 %1952 }
0x1005   : > { %v1954_v55 = vsub.f32 %v1945_v46, %v1953_v3 }
0x1007   : > { %v1955_v56 = vmul.f32 1.442695, %v1954_v55 }
0x1008   : > { %v1965_v63 = vpop.permute.xlu1 %1964 }
0x1009   : > { %3473 = vpow2.f32 %v1955_v56 }
0x100c   : > { %v2106_v31 = vpop.permute.xlu1 %2105 }
0x1013   : > { %v3474_v57 = vpop.eup %3473 }
0x1014   : > { %v1957_v15 = vsel %vm1841_vm4, %v3474_v57, 0.0 }
0x1015   : > { %1958 = vadd.xlane.f32.xlu0 %v1957_v15  ;;  %v2215_v15 = vld [vmem:[#allocation19 + $0x8] sm:$0xf] }
0x102b   : > { %2107 = vrot.lane.b32.xlu0 %v4817_v14, %s4045_s0 }
0x102f   : > { %v1850_v58 = vpop.xlane.xlu0 %1849 }
0x1030   : > { %3475 = vrcp.f32 %v1850_v58  ;;  %v2220_v58 = vsel %vm986_vm3, %v2215_v15, 0 }
0x103a   : > { %v3476_v60 = vpop.eup %3475 }
0x103b   : > { %v1852_v61 = vmul.f32 %v3476_v60, %v3472_v53 }
0x103d   : > { %v1853_v62 = vpack.c.bf16 %v1852_v61, %v1852_v61 }
0x103f   : > { %3167 = vmatmul.mubr.msk.bf16.vlgmr.msra.gmra.mrb[32].mxu0 %vm1841_vm4, %v1853_v62 }
0x1040   : > { %3177 = vmatpush3.bf16.msra.mxu0 %v1965_v63  ;;  %3178 = vmatprep.mubr.msk.bf16.mxu0 %vm4040_vm0, %v4039_v0 }
0x1041   : > { %3188 = vmatprep.subr.bf16.mxu0 %v4039_v0 }
0x10a2   : > { %v1959_v7 = vpop.xlane.xlu0 %1958 }
0x10a3   : > { %3477 = vrcp.f32 %v1959_v7 }
0x10a6   : > { %v2108_v23 = vpop.permute.xlu0 %2107 }
0x10a7   : > { %v2113_v45 = vsel %vm924_vm2, %v2108_v23, 0 }
0x10ad   : > { %v3478_v8 = vpop.eup %3477 }
0x10ae   : > { %v1961_v13 = vmul.f32 %v3478_v8, %v3474_v57 }
0x10b0   : > { %v1962_v16 = vpack.c.bf16 %v1961_v13, %v1961_v13 }
0x10b2   : > { %3179 = vmatmul.mubr.msk.bf16.vlgmr.msra.gmra.mrb[36].mxu0 %vm1841_vm4, %v1962_v16 }
0x10b3   : > { %3189 = vmatpush3.bf16.msra.mxu0 %v2063_v4  ;;  %3190 = vmatprep.mubr.msk.bf16.mxu0 %vm4040_vm0, %v4039_v0 }
0x10b4   : > { %3200 = vmatprep.subr.bf16.mxu0 %v4039_v0 }
0x1112   : > { %v1891_v5 = vpop.f32.mrb[32].mxu0 }
0x1113   : > { %v1897_v19 = vpack.c.bf16 %v1891_v5, %v1891_v5  ;;  %v3168_v20 = vpop.f32.mrb[33].mxu0 }
0x1114   : > { %v1894_v21 = vpop.f32.mrb[34].mxu0 }
0x1115   : > { %v3169_v22 = vpop.f32.mrb[35].mxu0  ;;  %3191 = vmatmul.mubr.msk.bf16.vlgmr.msra.gmra.mrb[40].mxu0 %vm924_vm2, %v1897_v19 }
0x1116   : > { %3202 = vmatprep.mubr.msk.bf16.mxu0 %vm4040_vm0, %v4039_v0  ;;  %v2373_v22 = vld [vmem:[#allocation19 + $0xc] sm:$0xf] }
0x1117   : > { %v2378_v23 = vsel %vm986_vm3, %v2373_v22, 0 }
0x1185   : > { %v2004_v24 = vpop.f32.mrb[36].mxu0 }
0x1186   : > { %v2010_v25 = vpack.c.bf16 %v2004_v24, %v2004_v24  ;;  %v3180_v26 = vpop.f32.mrb[37].mxu0 }
0x1187   : > { %v2007_v28 = vpop.f32.mrb[38].mxu0 }
0x1188   : > { %v3181_v29 = vpop.f32.mrb[39].mxu0  ;;  %3185 = vmatmul.mubr.msk.bf16.vlgmr.msra.gmra.mrb[44].mxu1 %vm924_vm2, %v2010_v25 }
0x1189   : > { %3195 = vmatpush3.bf16.xpose.msra.mxu1 %v2113_v45  ;;  %3196 = vmatprep.mubr.msk.bf16.mxu1 %vm4040_vm0, %v4039_v0 }
0x118a   : > { %3206 = vmatprep.subr.bf16.mxu1 %v4039_v0 }
0x1190   : > { %3197 = vmatmul.mubr.msk.bf16.vlgmr.msra.gmra.mrb[48].mxu1 %vm924_vm2, %v2106_v31 }
0x1191   : > { %3208 = vmatprep.mubr.msk.bf16.mxu1 %vm4040_vm0, %v4039_v0  ;;  %3207 = vmatpush3.bf16.msra.mxu1 %v2220_v58  ;;  %v2448_v58 = vrot.slane %v4805_v59, %v1597_v17 }
0x1192   : > { %3218 = vmatprep.subr.bf16.mxu1 %v4039_v0 }
0x11e8   : > { %v2099_v32 = vpop.f32.mrb[40].mxu0 }
0x11e9   : > { %v3192_v33 = vpop.f32.mrb[41].mxu0 }
0x11ea   : > { %v2102_v34 = vpop.f32.mrb[42].mxu0 }
0x11eb   : > { %v3193_v35 = vpop.f32.mrb[43].mxu0 }
0x125b   : > { %v2053_v36 = vpop.f32.mrb[44].mxu1 }
0x125c   : > { %v4888_v37 = vadd.f32 %v2099_v32, %v2053_v36  ;;  %v3186_v39 = vpop.f32.mrb[45].mxu1 }
0x125d   : > { %v2056_v40 = vpop.f32.mrb[46].mxu1 }
0x125e   : > { %v3187_v41 = vpop.f32.mrb[47].mxu1 }
0x1263   : > { %v2149_v43 = vpop.f32.mrb[48].mxu1 }
0x1264   : > { %v3198_v44 = vpop.f32.mrb[49].mxu1  ;;  %v2155_v46 = vsel %vm1841_vm4, %v2149_v43, -inf }
0x1265   : > { %2156 = vmax.xlane.f32.xlu1 %v2155_v46  ;;  %v2152_v47 = vpop.f32.mrb[50].mxu1 }
0x1266   : > { %v3199_v48 = vpop.f32.mrb[51].mxu1 }
0x1276   : > { %2265 = vrot.lane.b32.xlu1 %v4817_v14, %s4046_s3 }
0x127a   : > { %2263 = vrot.lane.b32.xlu1 %v4835_v27, %s4046_s3 }
0x12f2   : > { %v2157_v49 = vpop.xlane.xlu1 %2156 }
0x12f3   : > { %v2158_v50 = vsub.f32 %v2149_v43, %v2157_v49 }
0x12f5   : > { %v2159_v51 = vmul.f32 1.442695, %v2158_v50 }
0x12f6   : > { %v2266_v27 = vpop.permute.xlu1 %2265 }
0x12f7   : > { %3479 = vpow2.f32 %v2159_v51  ;;  %v2271_v56 = vsel %vm924_vm2, %v2266_v27, 0  ;;  %v3450_v27 = vld [vmem:[#allocation22 + $0x8] sm:$0xff]  }
0x12fa   : > { %v2264_v57 = vpop.permute.xlu1 %2263 }
0x1301   : > { %v3480_v52 = vpop.eup %3479 }
0x1302   : > { %v2161_v18 = vsel %vm1841_vm4, %v3480_v52, 0.0 }
0x1303   : > { %2162 = vadd.xlane.f32.xlu0 %v2161_v18 }
0x1319   : > { %2167 = vrot.lane.b32.xlu0 %v4853_v42, %s4045_s0 }
0x1390   : > { %v2163_v53 = vpop.xlane.xlu0 %2162 }
0x1391   : > { %3481 = vrcp.f32 %v2163_v53 }
0x1394   : > { %v2168_v54 = vpop.permute.xlu0 %2167 }
0x1395   : > { %3201 = vmatpush3.bf16.msra.mxu0 %v2168_v54 }
0x1396   : > { %3212 = vmatprep.subr.bf16.mxu0 %v4039_v0 }
0x139b   : > { %v3482_v14 = vpop.eup %3481 }
0x139c   : > { %v2165_v3 = vmul.f32 %v3482_v14, %v3480_v52  ;;  %v3447_v14 = vld [vmem:[#allocation20] sm:$0xff]  }
0x139e   : > { %v2166_v55 = vpack.c.bf16 %v2165_v3, %v2165_v3  ;;  %v3449_v3 = vld [vmem:[#allocation22] sm:$0xff]  }
0x13a0   : > { %3203 = vmatmul.mubr.msk.bf16.vlgmr.msra.gmra.mrb[44].mxu0 %vm1841_vm4, %v2166_v55 }
0x13a1   : > { %3213 = vmatpush3.bf16.xpose.msra.mxu0 %v2271_v56  ;;  %3214 = vmatprep.mubr.msk.bf16.mxu0 %vm4040_vm0, %v4039_v0 }
0x13a2   : > { %3224 = vmatprep.subr.bf16.mxu0 %v4039_v0 }
0x13a8   : > { %3215 = vmatmul.mubr.msk.bf16.vlgmr.msra.gmra.mrb[48].mxu0 %vm924_vm2, %v2264_v57  ;;  %v2443_v57 = vrot.slane %v4805_v59, %v851_v10 }
0x13a9   : > { %3226 = vmatprep.mubr.msk.bf16.mxu0 %vm4040_vm0, %v4039_v0  ;;  %3225 = vmatpush3.bf16.msra.mxu0 %v2378_v23 }
0x13aa   : > { %3238 = vmatprep.subr.bf16.mxu0 %v4039_v0 }
0x1473   : > { %v2207_v60 = vpop.f32.mrb[44].mxu0 }
0x1474   : > { %v2213_v61 = vpack.c.bf16 %v2207_v60, %v2207_v60  ;;  %v3204_v62 = vpop.f32.mrb[45].mxu0 }
0x1475   : > { %v2210_v63 = vpop.f32.mrb[46].mxu0 }
0x1476   : > { %v3205_v1 = vpop.f32.mrb[47].mxu0  ;;  %3209 = vmatmul.mubr.msk.bf16.vlgmr.msra.gmra.mrb[52].mxu1 %vm924_vm2, %v2213_v61 }
0x1477   : > { %3220 = vmatprep.mubr.msk.bf16.mxu1 %vm4040_vm0, %v4039_v0  ;;  %v3451_v1 = vld [vmem:[#allocation22 + $0x10] sm:$0xff]  }
0x147b   : > { %v2307_v6 = vpop.f32.mrb[48].mxu0 }
0x147c   : > { %v3216_v7 = vpop.f32.mrb[49].mxu0  ;;  %v2313_v8 = vsel %vm1841_vm4, %v2307_v6, -inf }
0x147d   : > { %2314 = vmax.xlane.f32.xlu0 %v2313_v8  ;;  %v2310_v12 = vpop.f32.mrb[50].mxu0  ;;  %v2960_v7 = vld [vmem:[#allocation25] ss:$0 sm:$0xff] }
0x147e   : > { %v3217_v13 = vpop.f32.mrb[51].mxu0 }
0x1493   : > { %2325 = vrot.lane.b32.xlu0 %v4853_v42, %s4046_s3 }
0x150a   : > { %v2315_v16 = vpop.xlane.xlu0 %2314 }
0x150b   : > { %v2316_v4 = vsub.f32 %v2307_v6, %v2315_v16  ;;  %v3452_v6 = vld [vmem:[#allocation22 + $0x18] sm:$0xff]  }
0x150d   : > { %v2317_v5 = vmul.f32 1.442695, %v2316_v4 }
0x150e   : > { %v2326_v19 = vpop.permute.xlu0 %2325 }
0x150f   : > { %3483 = vpow2.f32 %v2317_v5  ;;  %3219 = vmatpush3.bf16.msra.mxu1 %v2326_v19  ;;  %v2529_v5 = vsub.s32 6, %v4676_v9  ;;  %v3491_v19 = vld [vmem:[#allocation23] sm:$0xff] }
0x1510   : > { %3230 = vmatprep.subr.bf16.mxu1 %v4039_v0 }
0x1519   : > { %v3484_v20 = vpop.eup %3483 }
0x151a   : > { %v2319_v21 = vsel %vm1841_vm4, %v3484_v20, 0.0 }
0x151b   : > { %2320 = vadd.xlane.f32.xlu1 %v2319_v21 }
0x1549   : > { %v2256_v24 = vpop.f32.mrb[52].mxu1 }
0x154a   : > { %v2262_v42 = vadd.f32 %v2256_v24, %v4888_v37  ;;  %v3210_v25 = vpop.f32.mrb[53].mxu1  ;;  %v2423_v37 = vsub.s32 5, %v4676_v9 }
0x154b   : > { %v2259_v26 = vpop.f32.mrb[54].mxu1 }
0x154c   : > { %v3211_v28 = vpop.f32.mrb[55].mxu1  ;;  %v2424_v40 = vrot.slane %v4679_v11, %v2423_v37  ;;  %v3448_v11 = vld [vmem:[#allocation20 + $0x8] sm:$0xff]  }
0x15a8   : > { %v2321_v45 = vpop.xlane.xlu1 %2320 }
0x15a9   : > { %3485 = vrcp.f32 %v2321_v45 }
0x15b3   : > { %v3486_v29 = vpop.eup %3485 }
0x15b4   : > { %v2323_v31 = vmul.f32 %v3486_v29, %v3484_v20  ;;  %v2530_v20 = vrot.slane %v3491_v19, %v2529_v5 }
0x15b6   : > { %v2324_v32 = vpack.c.bf16 %v2323_v31, %v2323_v31 }
0x15b8   : > { %3221 = vmatmul.mubr.msk.bf16.vlgmr.msra.gmra.mrb[56].mxu1 %vm1841_vm4, %v2324_v32 }
0x15b9   : > { %3234 = vmatprep.mubr.msk.bf16.mxu1 %vm4040_vm0, %v4039_v0  ;;  %3231 = vmatpush3.bf16.msra.mxu1 %v3447_v14 }
0x15ba   : > { %3232 = vmatprep.subr.bf16.mxu1 %v4039_v0 }
0x15bd   : > { %3233 = vmatpush3.bf16.msra.mxu1 %v3448_v11 }
0x168b   : > { %v2365_v33 = vpop.f32.mrb[56].mxu1 }
0x168c   : > { %v2371_v34 = vpack.c.bf16 %v2365_v33, %v2365_v33  ;;  %v3222_v35 = vpop.f32.mrb[57].mxu1 }
0x168d   : > { %v2368_v36 = vpop.f32.mrb[58].mxu1  ;;  %v2616_v35 = vrot.slane %v4805_v59, %v861_v38 }
0x168e   : > { %v3223_v39 = vpop.f32.mrb[59].mxu1  ;;  %3227 = vmatmul.mubr.msk.bf16.vlgmr.msra.gmra.mrb[52].mxu0 %vm924_vm2, %v2371_v34 }
0x168f   : > { %3246 = vmatprep.mubr.msk.bf16.mxu0 %vm4040_vm0, %v4039_v0  ;;  %3239 = vmatpush3.bf16.msra.mxu0 %v3449_v3  ;;  %v2621_v39 = vrot.slane %v4805_v59, %v1729_v30 }
0x1690   : > { %3240 = vmatprep.subr.bf16.mxu0 %v4039_v0 }
0x1693   : > { %3241 = vmatpush3.bf16.msra.mxu0 %v3450_v27 }
0x1694   : > { %3242 = vmatprep.subr.bf16.mxu0 %v4039_v0 }
0x1697   : > { %3243 = vmatpush3.bf16.msra.mxu0 %v3451_v1 }
0x1698   : > { %3244 = vmatprep.subr.bf16.mxu0 %v4039_v0 }
0x169b   : > { %3245 = vmatpush3.bf16.msra.mxu0 %v3452_v6 }
0x1761   : > { %v2414_v41 = vpop.f32.mrb[52].mxu0 }
0x1762   : > { %v2420_v43 = vadd.f32 %v2414_v41, %v2262_v42  ;;  %v3228_v44 = vpop.f32.mrb[53].mxu0 }
0x1763   : > { %v2417_v46 = vpop.f32.mrb[54].mxu0 }
0x1764   : > { %v2425_v47 = vadd.f32 %v2424_v40, %v2420_v43  ;;  %v3229_v48 = vpop.f32.mrb[55].mxu0 }
0x1766   : > { %v2426_v49 = vadd.f32 %v2425_v47, %v4809_v2 }
0x1768   : > { %v2427_v50 = vsel %vm805_vm1, %v2426_v49, 0.0 }
0x1769   : > { %2428 = vadd.xlane.f32.xlu1 %v2427_v50 }
0x17f6   : > { %v2429_v51 = vpop.xlane.xlu1 %2428 }
0x17f7   : > { %v2430_v52 = vmul.f32 0.03125, %v2429_v51 }
0x17f9   : > { %v2431_v18 = vsub.f32 %v2426_v49, %v2430_v52 }
0x17fb   : > { %v2432_v53 = vmul.f32 %v2431_v18, %v2431_v18 }
0x17fd   : > { %v2433_v54 = vsel %vm805_vm1, %v2432_v53, 0.0 }
0x17fe   : > { %2434 = vadd.xlane.f32.xlu1 %v2433_v54 }
0x188b   : > { %v2435_v2 = vpop.xlane.xlu1 %2434 }
0x188c   : > { %v2436_v55 = vmul.f32 0.03125, %v2435_v2 }
0x188e   : > { %v2437_v56 = vadd.f32 1e-05, %v2436_v55 }
0x1890   : > { %3487 = vrsqrt.f32 %v2437_v56 }
0x189a   : > { %v3488_v15 = vpop.eup %3487 }
0x189b   : > { %v2439_v60 = vmul.f32 %v3488_v15, %v2431_v18 }
0x189d   : > { %v2444_v61 = vmul.f32 %v2443_v57, %v2439_v60 }
0x189f   : > { %v2449_v62 = vadd.f32 %v2448_v58, %v2444_v61 }
0x18a1   : > { %v2454_v63 = vpack.c.bf16 %v2449_v62, %v2449_v62 }
0x18a3   : > { %3235 = vmatmul.mubr.msk.bf16.vlgmr.msra.gmra.mrb[60].mxu1 %vm805_vm1, %v2454_v63 }
0x1976   : > { %v2511_v8 = vpop.f32.mrb[60].mxu1 }
0x1977   : > { %v2512_v10 = vadd.f32 %v2960_v7, %v2511_v8  ;;  %v3236_v12 = vpop.f32.mrb[61].mxu1 }
0x1978   : > { %v2514_v13 = vpop.f32.mrb[62].mxu1 }
0x1979   : > { %v2517_v16 = vmax.f32 %v2512_v10, 0.0  ;;  %v3237_v4 = vpop.f32.mrb[63].mxu1 }
0x197b   : > { %v2526_v17 = vpack.c.bf16 %v2517_v16, %v2517_v16 }
0x197d   : > { %3247 = vmatmul.mubr.msk.bf16.vlgmr.msra.gmra.mrb[56].mxu0 %vm2555_vm5, %v2526_v17 }
0x1a50   : > { %v2593_v21 = vpop.f32.mrb[56].mxu0 }
0x1a51   : > { %v2594_v22 = vadd.f32 %v2593_v21, %v2530_v20  ;;  %v3248_v23 = vpop.f32.mrb[57].mxu0 }
0x1a52   : > { %v2596_v0 = vpop.f32.mrb[58].mxu0 }
0x1a53   : > { %v3249_v24 = vpop.f32.mrb[59].mxu0  ;;  %v2599_v42 = vadd.f32 %v2594_v22, %v2449_v62 }
0x1a55   : > { %v2600_v25 = vsel %vm805_vm1, %v2599_v42, 0.0 }
0x1a56   : > { %2601 = vadd.xlane.f32.xlu1 %v2600_v25 }
0x1ae3   : > { %v2602_v26 = vpop.xlane.xlu1 %2601 }
0x1ae4   : > { %v2603_v28 = vmul.f32 0.03125, %v2602_v26 }
0x1ae6   : > { %v2604_v45 = vsub.f32 %v2599_v42, %v2603_v28 }
0x1ae8   : > { %v2605_v29 = vmul.f32 %v2604_v45, %v2604_v45 }
0x1aea   : > { %v2606_v31 = vsel %vm805_vm1, %v2605_v29, 0.0 }
0x1aeb   : > { %2607 = vadd.xlane.f32.xlu1 %v2606_v31 }
0x1b78   : > { %v2608_v32 = vpop.xlane.xlu1 %2607 }
0x1b79   : > { %v2609_v33 = vmul.f32 0.03125, %v2608_v32 }
0x1b7b   : > { %v2610_v34 = vadd.f32 1e-05, %v2609_v33 }
0x1b7d   : > { %3489 = vrsqrt.f32 %v2610_v34 }
0x1b87   : > { %v3490_v36 = vpop.eup %3489 }
0x1b88   : > { %v2612_v37 = vmul.f32 %v3490_v36, %v2604_v45 }
0x1b8a   : > { %v2617_v40 = vmul.f32 %v2616_v35, %v2612_v37 }
0x1b8c   : > { %v2622_v41 = vadd.f32 %v2621_v39, %v2617_v40 }
0x1b8e   : > { %2623 = vst.msk [vmem:[%s780_s5] sm:$0xff] %vm805_vm1, %v2622_v41 }
0x1b8f   : > { %3933 = shalt.err (!%p3930_p12)
}
0x1b90   : > { %s3934_s2 = scalar_lea.hbm %s4956_s20, 128  ;;  %s3938_s15 = scalar_lea.hbm %s5115_s30, 256 }
0x1b91   : > { %p3935_p4 = scmp.ne.s32.totalorder %s4956_s20, %s3934_s2  ;;  %p3939_p3 = scmp.lt.u32.totalorder %s4956_s20, %s5115_s30 }
0x1b92   : > { %p3940_p5 = scmp.lt.u32.totalorder %s3938_s15, %s3934_s2  ;;  %p3942_p0 = scmp.lt.u32.totalorder %s3934_s2, %s4956_s20 }
0x1b93   : > { %p3936_p10 = pnand %p3935_p4, %p5116_p6 }
0x1b94   : > { %p3941_p9 = por %p3940_p5, %p3939_p3 }
0x1b95   : > { %p3937_p2 = pneg %p3936_p10 }
0x1b96   : > { %p3943_p13 = por %p3942_p0, %p3941_p9 }
0x1b98   : > { %p3944_p8 = pnand %p3943_p13, %p3937_p2 }
0x1b9a   : > { %3947 = shalt.err (!%p3944_p8)
}
0x1b9b   : > { %3302 = dma.vmem_to_hbm [thread:$0]  (%p5116_p6), %s4958_s22, 128, %s4956_s20, %s2625_s1  }
0x1b9c PF: > { %s5117_s16 = sld [smem:[#allocation37_spill]]  ;;  %s5118_s0 = sld [smem:[#allocation42_spill]] }
0x1b9d   : > { %p5120_p7 = scmp.ge.s32.totalorder %s4018_s21, 2 }
0x1ba2   : > { %s2650_s3 = sand.u32 1, %s5117_s16   ;;  %p5119_p1 = scmp.ne.s32.totalorder %s5118_s0, 0 }
0x1ba3   : > { %s2651_s7 = scalar_lea.sflag [#allocation4], %s2650_s3 }
0x1ba4   : > { %p3352_p11 = pnand %p5120_p7, %p5119_p1 }
0x1ba6   : > { %4001 = dma.done.wait (!%p3352_p11), %s2651_s7, 128  }
0x1ba7   : > { %4003 = vsyncadd (!%p3352_p11), %s2651_s7, 4294967168  ;;  %s5121_s21 = sld [smem:[#allocation40_spill]]  ;;  %s5122_s6 = sld [smem:[#allocation38_spill]] }
0x1ba8   : > { %s5123_s20 = sld [smem:[#allocation41_spill]]  ;;  %s5124_s18 = smov %s4010_s19 }
0x1bad   : > { %p39_p12 = scmp.ge.s32.totalorder %s5121_s21, 4   ;;  %s5125_s19 = smov %s5122_s6 }
0x1baf   :  { %41 = sbr.rel (!%p39_p12) target bundleno = 29 (0x1d), region = 212 }
0x1bb6   :  { %2656 = vsyncpa [#allocation3], 1 }
0x1bb7   :  { %2658 = vsyncpa [#allocation3 + $0x1], 1 }
0x1bb8   :  { %2659 = vsyncpa [#allocation6], 1 }
0x1bb9   :  { %2661 = vsyncpa [#allocation6 + $0x1], 1 }
0x1bba   :  { %2662 = vsyncpa [#allocation9], 1 }
0x1bbb   :  { %2664 = vsyncpa [#allocation9 + $0x1], 1 }
0x1bbc   :  { %2665 = vsyncpa [#allocation12], 1 }
0x1bbd   :  { %2666 = vsyncpa [#allocation15], 1 }
0x1bbe   :  { %2667 = vsyncpa [#allocation18], 1 }
0x1bbf   :  { %2668 = vsyncpa [#allocation21], 1 }
0x1bc0   :  { %2669 = vsyncpa [#allocation24], 1 }
0x1bc1   :  { %2670 = vsyncpa [#allocation4], 1 }
0x1bc2   :  { %2672 = vsyncpa [#allocation4 + $0x1], 1 }

// kernel: transformer_decoder.5
= control target key start
LH: loop header
LB: loop body
LE: loop exit
PB: predicated region body
PF: predicated region fallthrough
CT: control target
= control target key end

     0   :  { %s5145_s0 = inlined_call_operand.hbm [shape: f32[2,8,32], index: 0, kind: input, shape index: {}]   ;;  %s5146_s1 = inlined_call_operand.hbm [shape: bf16[2,16,32], index: 1, kind: input, shape index: {}]   ;;  %s5147_s2 = inlined_call_operand.hbm [shape: bf16[2,16,32], index: 2, kind: input, shape index: {}]   ;;  %s5148_s3 = inlined_call_operand.hbm [shape: bf16[2,8,32], index: 3, kind: input, shape index: {}]   ;;  %s5149_s4 = inlined_call_operand.hbm [shape: bf16[32,64], index: 4, kind: input, shape index: {}]   ;;  %s5150_s5 = inlined_call_operand.hbm [shape: bf16[32,32], index: 5, kind: input, shape index: {}]   ;;  %s5151_s6 = inlined_call_operand.hbm [shape: bf16[4,8,32], index: 6, kind: input, shape index: {}]   ;;  %s5152_s7 = inlined_call_operand.hbm [shape: bf16[32,32], index: 7, kind: input, shape index: {}]   ;;  %s5153_s8 = inlined_call_operand.hbm [shape: bf16[32,32], index: 8, kind: input, shape index: {}]   ;;  %s5154_s9 = inlined_call_operand.hbm [shape: bf16[32,32], index: 9, kind: input, shape index: {}]   ;;  %s5155_s10 = inlined_call_operand.hbm [shape: bf16[4,8,32], index: 10, kind: input, shape index: {}]   ;;  %s5156_s11 = inlined_call_operand.hbm [shape: bf16[32,64], index: 11, kind: input, shape index: {}]   ;;  %s5157_s12 = inlined_call_operand.hbm [shape: bf16[64,32], index: 12, kind: input, shape index: {}]   ;;  %s5158_s13 = inlined_call_operand.hbm [shape: f32[13,32], index: 13, kind: input, shape index: {}]   ;;  %s5159_s14 = inlined_call_operand.hbm [shape: f32[1,64], index: 14, kind: input, shape index: {}]   ;;  %s5160_s15 = inlined_call_operand.hbm [shape: f32[2,32], index: 15, kind: input, shape index: {}]   ;;  %s5161_s16 = inlined_call_operand.hbm [shape: f32[2,8,32], index: 16, kind: output, shape index: {}]  }
   0x1   :  { %5193 = sst [smem:[#allocation46_spill]] %s5145_s0 }
   0x2   :  { %5194 = sst [smem:[#allocation47_spill]] %s5146_s1 }
   0x3   :  { %5195 = sst [smem:[#allocation48_spill]] %s5147_s2 }
   0x4   :  { %5196 = sst [smem:[#allocation49_spill]] %s5148_s3 }
   0x5   :  { %5197 = sst [smem:[#allocation50_spill]] %s5149_s4 }
   0x6   :  { %5198 = sst [smem:[#allocation51_spill]] %s5150_s5 }
   0x7   :  { %5199 = sst [smem:[#allocation52_spill]] %s5151_s6 }
   0x8   :  { %5200 = sst [smem:[#allocation53_spill]] %s5152_s7 }
   0x9   :  { %5201 = sst [smem:[#allocation54_spill]] %s5153_s8 }
   0xa   :  { %5202 = sst [smem:[#allocation55_spill]] %s5154_s9 }
   0xb   :  { %5203 = sst [smem:[#allocation56_spill]] %s5156_s11 }
   0xc   :  { %5204 = sst [smem:[#allocation57_spill]] %s5157_s12 }
   0xd   :  { %5205 = sst [smem:[#allocation58_spill]] %s5158_s13 }
   0xe   :  { %5206 = sst [smem:[#allocation59_spill]] %s5159_s14 }
   0xf   :  { %5207 = sst [smem:[#allocation60_spill]] %s5160_s15 }
  0x10   :  { %5208 = sst [smem:[#allocation61_spill]] %s5161_s16 }
  0x11   :  { %21 = vsyncpa [#allocation3], 0 }
  0x12   :  { %23 = vsyncpa [#allocation3 + $0x1], 0 }
  0x13   :  { %24 = vsyncpa [#allocation6], 0 }
  0x14   :  { %26 = vsyncpa [#allocation6 + $0x1], 0 }
  0x15   :  { %27 = vsyncpa [#allocation9], 0 }
  0x16   :  { %29 = vsyncpa [#allocation9 + $0x1], 0 }
  0x17   :  { %30 = vsyncpa [#allocation12], 0 }
  0x18   :  { %31 = vsyncpa [#allocation15], 0 }
  0x19   :  { %32 = vsyncpa [#allocation18], 0 }
  0x1a   :  { %33 = vsyncpa [#allocation21], 0 }
  0x1b   :  { %34 = vsyncpa [#allocation24], 0 }
  0x1c   :  { %35 = vsyncpa [#allocation27], 0 }
  0x1d   :  { %36 = vsyncpa [#allocation4], 0 }
  0x1e   :  { %38 = vsyncpa [#allocation4 + $0x1], 0  ;;  %s4255_s21 = smov 0   ;;  %s4257_s22 = smov 0  }
  0x1f   :  { %s4259_s23 = smov 0   ;;  %s4261_s24 = smov 0  }
  0x20 LB: > { %5209 = sst [smem:[#allocation40_spill]] %s4126_s21  ;;  %s4140_s25 = smov [#allocation10]   ;;  %s4138_s24 = sphi %s4261_s24, %s5271_s24   ;;  %s4134_s23 = sphi %s4259_s23, %s5273_s23   ;;  %s4130_s22 = sphi %s4257_s22, %s5275_s22   ;;  %s4126_s21 = sphi %s4255_s21, %s5274_s21  }
  0x21   : > { %5210 = sst [smem:[#allocation41_spill]] %s4134_s23  ;;  %s443_s26 = sshll.u32 %s4140_s25, 4  ;;  %s4281_s26 = int_to_ptr.vmem [resolvable:$true] %s443_s26 }
  0x22   : > { %s4276_s27 = sadd.s32 4294967295, %s4138_s24   ;;  %p2953_p0 = scmp.ge.s32.totalorder %s4138_s24, 1 }
  0x23   : > { %p5170_p1 = scmp.eq.s32.totalorder %s4276_s27, 0  ;;  %p431_p2 = scmp.lt.s32.totalorder %s4138_s24, 3 }
  0x24   : > { %s4141_s29 = smov [#allocation11]   ;;  %s4142_s17 = smov [#allocation14]  }
  0x25   : > { %p4283_p3 = pnand %p2953_p0, %p431_p2  ;;  %s456_s30 = sshll.u32 %s4141_s29, 4  ;;  %s4296_s30 = int_to_ptr.vmem [resolvable:$true] %s456_s30 }
  0x26   : > { %s482_s18 = sshll.u32 %s4142_s17, 4  ;;  %s5214_s4 = sld [smem:[#allocation50_spill]]  ;;  %s4298_s18 = int_to_ptr.vmem [resolvable:$true] %s482_s18 }
  0x27   : > { %s5211_s28 = scalar_select %p4283_p3, 1, 0 }
  0x28   : > { %p3384_p5 = pneg %p4283_p3 }
  0x29   : > { %5212 = sst [smem:[#allocation42_spill]] %s5211_s28 }
  0x2a   : > { %p4292_p6 = pnand %p3384_p5, %p5170_p1 }
  0x2c   : > { %s5213_s0 = scalar_select %p4292_p6, 1, 0 }
  0x2d   : > { %s3580_s25 = scalar_lea.hbm %s5214_s4, 256  ;;  %p4308_p8 = pneg %p4292_p6 }
  0x2e   : > { %p3581_p7 = scmp.ne.s32.totalorder %s5214_s4, %s3580_s25  ;;  %p3587_p11 = scmp.lt.u32.totalorder %s3580_s25, %s5214_s4 }
  0x2f   : > { %s5215_s29 = scalar_select %p4308_p8, 1, 0 }
  0x30   : > { %p3583_p9 = pnand %p4308_p8, %p3581_p7 }
  0x32   : > { %p3584_p10 = pneg %p3583_p9 }
  0x34   : > { %p3589_p12 = pnand %p3587_p11, %p3584_p10 }
  0x36   : > { %3592 = shalt.err (!%p3589_p12)
}
  0x37   : > { %s3593_s16 = scalar_lea.vmem %s4281_s26, 256  ;;  %p3601_p5 = scmp.lt.s32.totalorder %s4281_s26, %s4281_s26 }
  0x38   : > { %p3594_p13 = scmp.ne.s32.totalorder %s4281_s26, %s3593_s16  ;;  %p3602_p4 = scmp.lt.s32.totalorder %s3593_s16, %s3593_s16 }
  0x3a   : > { %p3596_p0 = pnand %p3594_p13, %p4308_p8  ;;  %p3603_p7 = por %p3602_p4, %p3601_p5 }
  0x3c   : > { %p3597_p2 = pneg %p3596_p0 }
  0x3e   : > { %p3604_p9 = pnand %p3603_p7, %p3597_p2 }
  0x40   : > { %3607 = shalt.err (!%p3604_p9)
}
  0x41   : > { %s5172_s28 = smov 64   ;;  %s5174_s3 = smov 4  }
  0x42   : > { %3387 = dma.hbm_to_vmem [thread:$0]  (!%p4292_p6), %s5214_s4, 256, %s4281_s26, [#allocation9], %s5172_s28, %s5172_s28, %s5174_s3  }
  0x43   : > { %s5216_s5 = sld [smem:[#allocation51_spill]] }
  0x49   : > { %s3608_s16 = scalar_lea.hbm %s5216_s5, 256 }
  0x4a   : > { %p3609_p4 = scmp.ne.s32.totalorder %s5216_s5, %s3608_s16  ;;  %p3615_p12 = scmp.lt.u32.totalorder %s3608_s16, %s5216_s5 }
  0x4c   : > { %p3611_p10 = pnand %p3609_p4, %p4308_p8 }
  0x4e   : > { %p3612_p11 = pneg %p3611_p10 }
  0x50   : > { %p3617_p13 = pnand %p3615_p12, %p3612_p11 }
  0x52   : > { %3620 = shalt.err (!%p3617_p13)
}
  0x53   : > { %s3621_s26 = scalar_lea.vmem %s4296_s30, 256  ;;  %p3629_p7 = scmp.lt.s32.totalorder %s4296_s30, %s4296_s30 }
  0x54   : > { %p3622_p0 = scmp.ne.s32.totalorder %s4296_s30, %s3621_s26  ;;  %p3630_p9 = scmp.lt.s32.totalorder %s3621_s26, %s3621_s26 }
  0x56   : > { %p3624_p2 = pnand %p3622_p0, %p4308_p8  ;;  %p3631_p4 = por %p3630_p9, %p3629_p7 }
  0x58   : > { %p3625_p5 = pneg %p3624_p2 }
  0x5a   : > { %p3632_p10 = pnand %p3631_p4, %p3625_p5 }
  0x5c   : > { %3635 = shalt.err (!%p3632_p10)
}
  0x5d   : > { %3390 = dma.hbm_to_vmem [thread:$0]  (!%p4292_p6), %s5216_s5, 256, %s4296_s30, [#allocation12], %s5172_s28, %s5172_s28, %s5174_s3  }
  0x5e   : > { %s5217_s7 = sld [smem:[#allocation53_spill]] }
  0x64   : > { %s3636_s19 = scalar_lea.hbm %s5217_s7, 256 }
  0x65   : > { %p3637_p11 = scmp.ne.s32.totalorder %s5217_s7, %s3636_s19  ;;  %p3643_p0 = scmp.lt.u32.totalorder %s3636_s19, %s5217_s7 }
  0x67   : > { %p3639_p12 = pnand %p3637_p11, %p4308_p8 }
  0x69   : > { %p3640_p13 = pneg %p3639_p12 }
  0x6b   : > { %p3645_p2 = pnand %p3643_p0, %p3640_p13 }
  0x6d   : > { %3648 = shalt.err (!%p3645_p2)
}
  0x6e   : > { %s3649_s30 = scalar_lea.vmem %s4298_s18, 256  ;;  %p3657_p4 = scmp.lt.s32.totalorder %s4298_s18, %s4298_s18 }
  0x6f   : > { %p3650_p5 = scmp.ne.s32.totalorder %s4298_s18, %s3649_s30  ;;  %p3658_p10 = scmp.lt.s32.totalorder %s3649_s30, %s3649_s30 }
  0x71   : > { %p3652_p7 = pnand %p3650_p5, %p4308_p8  ;;  %p3659_p11 = por %p3658_p10, %p3657_p4 }
  0x73   : > { %p3653_p9 = pneg %p3652_p7 }
  0x75   : > { %p3660_p12 = pnand %p3659_p11, %p3653_p9 }
  0x77   : > { %3663 = shalt.err (!%p3660_p12)
}
  0x78   : > { %3396 = dma.hbm_to_vmem [thread:$0]  (!%p4292_p6), %s5217_s7, 256, %s4298_s18, [#allocation15], %s5172_s28, %s5172_s28, %s5174_s3  }
  0x79   : > { %s4145_s12 = smov [#allocation17]   ;;  %s4146_s15 = smov [#allocation20]  }
  0x7a   : > { %s508_s14 = sshll.u32 %s4145_s12, 4  ;;  %s534_s19 = sshll.u32 %s4146_s15, 4  ;;  %s509_s14 = int_to_ptr.vmem [resolvable:$true] %s508_s14  ;;  %s535_s19 = int_to_ptr.vmem [resolvable:$true] %s534_s19 }
  0x7b   : > { %s5218_s9 = sld [smem:[#allocation55_spill]] }
  0x81   : > { %s3664_s17 = scalar_lea.hbm %s5218_s9, 256 }
  0x82   : > { %p3665_p13 = scmp.ne.s32.totalorder %s5218_s9, %s3664_s17  ;;  %p3671_p5 = scmp.lt.u32.totalorder %s3664_s17, %s5218_s9 }
  0x84   : > { %p3667_p0 = pnand %p3665_p13, %p4308_p8 }
  0x86   : > { %p3668_p2 = pneg %p3667_p0 }
  0x88   : > { %p3673_p7 = pnand %p3671_p5, %p3668_p2 }
  0x8a   : > { %3676 = shalt.err (!%p3673_p7)
}
  0x8b   : > { %s3677_s18 = scalar_lea.vmem %s509_s14, 256  ;;  %p3685_p11 = scmp.lt.s32.totalorder %s509_s14, %s509_s14 }
  0x8c   : > { %p3678_p9 = scmp.ne.s32.totalorder %s509_s14, %s3677_s18  ;;  %p3686_p12 = scmp.lt.s32.totalorder %s3677_s18, %s3677_s18 }
  0x8e   : > { %p3680_p4 = pnand %p3678_p9, %p4308_p8  ;;  %p3687_p1 = por %p3686_p12, %p3685_p11 }
  0x90   : > { %p3681_p10 = pneg %p3680_p4 }
  0x92   : > { %p3688_p3 = pnand %p3687_p1, %p3681_p10 }
  0x94   : > { %3691 = shalt.err (!%p3688_p3)
}
  0x95   : > { %3402 = dma.hbm_to_vmem [thread:$0]  (!%p4292_p6), %s5218_s9, 256, %s509_s14, [#allocation18], %s5172_s28, %s5172_s28, %s5174_s3  }
  0x96   : > { %s5219_s11 = sld [smem:[#allocation56_spill]] }
  0x9c   : > { %s3692_s20 = scalar_lea.hbm %s5219_s11, 256 }
  0x9d   : > { %p3693_p1 = scmp.ne.s32.totalorder %s5219_s11, %s3692_s20  ;;  %p3699_p0 = scmp.lt.u32.totalorder %s3692_s20, %s5219_s11 }
  0x9f   : > { %p3695_p3 = pnand %p3693_p1, %p4308_p8 }
  0xa1   : > { %p3696_p13 = pneg %p3695_p3 }
  0xa3   : > { %p3701_p2 = pnand %p3699_p0, %p3696_p13 }
  0xa5   : > { %3704 = shalt.err (!%p3701_p2)
}
  0xa6   : > { %s3705_s26 = scalar_lea.vmem %s535_s19, 256  ;;  %p3713_p4 = scmp.lt.s32.totalorder %s535_s19, %s535_s19 }
  0xa7   : > { %p3706_p5 = scmp.ne.s32.totalorder %s535_s19, %s3705_s26  ;;  %p3714_p10 = scmp.lt.s32.totalorder %s3705_s26, %s3705_s26 }
  0xa9   : > { %p3708_p7 = pnand %p3706_p5, %p4308_p8  ;;  %p3715_p11 = por %p3714_p10, %p3713_p4 }
  0xab   : > { %p3709_p9 = pneg %p3708_p7 }
  0xad   : > { %p3716_p12 = pnand %p3715_p11, %p3709_p9 }
  0xaf   : > { %3719 = shalt.err (!%p3716_p12)
}
  0xb0   : > { %3408 = dma.hbm_to_vmem [thread:$0]  (!%p4292_p6), %s5219_s11, 256, %s535_s19, [#allocation21], %s5172_s28, %s5172_s28, %s5174_s3  }
  0xb1   : > { %s4147_s4 = smov [#allocation23]   ;;  %s5220_s13 = sld [smem:[#allocation58_spill]] }
  0xb2   : > { %s560_s2 = sshll.u32 %s4147_s4, 4  ;;  %s561_s2 = int_to_ptr.vmem [resolvable:$true] %s560_s2 }
  0xb7   : > { %s3720_s20 = scalar_lea.hbm %s5220_s13, 256 }
  0xb8   : > { %p3721_p1 = scmp.ne.s32.totalorder %s5220_s13, %s3720_s20  ;;  %p3727_p0 = scmp.lt.u32.totalorder %s3720_s20, %s5220_s13 }
  0xba   : > { %p3723_p3 = pnand %p3721_p1, %p4308_p8 }
  0xbc   : > { %p3724_p13 = pneg %p3723_p3 }
  0xbe   : > { %p3729_p2 = pnand %p3727_p0, %p3724_p13 }
  0xc0   : > { %3732 = shalt.err (!%p3729_p2)
}
  0xc1   : > { %s3733_s19 = scalar_lea.vmem %s561_s2, 256  ;;  %p3741_p4 = scmp.lt.s32.totalorder %s561_s2, %s561_s2 }
  0xc2   : > { %p3734_p5 = scmp.ne.s32.totalorder %s561_s2, %s3733_s19  ;;  %p3742_p10 = scmp.lt.s32.totalorder %s3733_s19, %s3733_s19 }
  0xc4   : > { %p3736_p7 = pnand %p3734_p5, %p4308_p8  ;;  %p3743_p11 = por %p3742_p10, %p3741_p4 }
  0xc6   : > { %p3737_p9 = pneg %p3736_p7 }
  0xc8   : > { %p3744_p12 = pnand %p3743_p11, %p3737_p9 }
  0xca   : > { %3747 = shalt.err (!%p3744_p12)
}
  0xcb   : > { %s4148_s26 = smov 128   ;;  %s4149_s14 = smov 8  }
  0xcc   : > { %3414 = dma.hbm_to_vmem [thread:$0]  (!%p4292_p6), %s5220_s13, 256, %s561_s2, [#allocation24], %s4148_s26, %s4148_s26, %s4149_s14  }
  0xcd   : > { %s2952_s12 = sadd.s32 4294967294, %s4138_s24   ;;  %s4446_s15 = sadd.s32 1, %s4138_s24  }
  0xce   : > { %5221 = sst [smem:[#allocation43_spill]] %s4446_s15  ;;  %s48_s20 = ssub.s32 %s4138_s24, %s4446_s15 }
  0xcf   : > { %s51_s25 = sadd.s32 1, %s4134_s23  ;;  %p49_p1 = scmp.eq.s32.totalorder %s48_s20, 0 }
  0xd0   : > { %p58_p3 = scmp.ne.s32.totalorder %s4134_s23, %s4130_s22  ;;  %p59_p13 = scmp.eq.s32.totalorder %s4138_s24, 0 }
  0xd1   : > { %p64_p0 = scmp.ne.s32.totalorder %s4130_s22, %s4126_s21  ;;  %p5223_p5 = scmp.eq.s32.totalorder %s4276_s27, 0 }
  0xd2   : > { %s4457_s17 = scalar_select %p49_p1, %s4134_s23, %s51_s25  }
  0xd3   : > { %p60_p2 = por %p59_p13, %p58_p3  ;;  %p4461_p7 = por %p5223_p5, %p64_p0 }
  0xd4   : > { %5222 = sst [smem:[#allocation44_spill]] %s4457_s17  ;;  %p418_p9 = scmp.eq.s32.totalorder %s4276_s27, 1 }
  0xd5   : > { %s5224_s16 = scalar_select %p4461_p7, 1, 0 }
  0xd6   : > { %p424_p4 = scmp.eq.s32.totalorder %s2952_s12, 1  ;;  %p3450_p10 = scmp.lt.s32.totalorder %s4138_s24, 2 }
  0xd7   : > { %s4468_s2 = sand.u32 1, %s4134_s23   ;;  %p4470_p11 = por %p418_p9, %p58_p3 }
  0xd8   : > { %p4474_p12 = por %p424_p4, %p64_p0  ;;  %s4479_s26 = sshll.u32 %s4468_s2, 3 }
  0xd9   : > { %s5225_s30 = scalar_select %p4470_p11, 1, 0 }
  0xda   : > { %s5226_s19 = scalar_select %p4474_p12, 1, 0 }
  0xdb   : > { %s4482_s14 = sshll.u32 %s4138_s24, 7  ;;  %p4484_p1 = pnand %p3450_p10, %p60_p2 }
  0xdc   : > { %5227 = sst [smem:[#allocation45_spill]] %s5226_s19  ;;  %s5177_s4 = sand.u32 1, %s4138_s24  }
  0xdd   : > { %s5228_s18 = scalar_select %p4484_p1, 1, 0 }
  0xde   : > { %s5229_s1 = sld [smem:[#allocation47_spill]]  ;;  %s618_s28 = scalar_lea.vmem [#allocation5], %s4479_s26 }
  0xdf   : > { %s625_s3 = sshll.u32 %s618_s28, 4  ;;  %s4150_s5 = smov [#allocation13]   ;;  %s4496_s3 = int_to_ptr.vmem [resolvable:$true] %s625_s3 }
  0xe0   : > { %s4498_s7 = sshll.u32 %s4150_s5, 4  ;;  %s4502_s9 = scalar_lea.sflag [#allocation6], %s5177_s4  ;;  %s470_s7 = int_to_ptr.vmem [resolvable:$true] %s4498_s7 }
  0xe1   : > { %p4508_p13 = pneg %p4484_p1 }
  0xe3   : > { %s5230_s12 = scalar_select %p4508_p13, 1, 0 }
  0xe4   : > { %s4493_s25 = scalar_lea.hbm %s5229_s1, %s4482_s14  ;;  %s3753_s13 = scalar_lea.hbm %s5229_s1, 256 }
  0xe5   : > { %s3748_s11 = scalar_lea.hbm %s4493_s25, 128  ;;  %p3754_p5 = scmp.lt.u32.totalorder %s4493_s25, %s5229_s1 }
  0xe6   : > { %p3749_p3 = scmp.ne.s32.totalorder %s4493_s25, %s3748_s11  ;;  %p3755_p9 = scmp.lt.u32.totalorder %s3753_s13, %s3748_s11 }
  0xe7   : > { %p3757_p10 = scmp.lt.u32.totalorder %s3748_s11, %s4493_s25 }
  0xe8   : > { %p3751_p0 = pnand %p4508_p13, %p3749_p3  ;;  %p3756_p4 = por %p3755_p9, %p3754_p5 }
  0xea   : > { %p3752_p2 = pneg %p3751_p0  ;;  %p3758_p12 = por %p3757_p10, %p3756_p4 }
  0xec   : > { %p3759_p11 = pnand %p3758_p12, %p3752_p2 }
  0xee   : > { %3762 = shalt.err (!%p3759_p11)
}
  0xef   : > { %s3763_s4 = scalar_lea.vmem %s4496_s3, 128  ;;  %s4151_s28 = smov [#allocation5]  }
  0xf0   : > { %p3764_p3 = scmp.ne.s32.totalorder %s4496_s3, %s3763_s4  ;;  %s3768_s20 = sshll.u32 %s4151_s28, 4  ;;  %s3769_s20 = int_to_ptr.vmem [resolvable:$false] %s3768_s20 }
  0xf1   : > { %s3770_s17 = scalar_lea.vmem %s3769_s20, 256  ;;  %p3771_p6 = scmp.lt.s32.totalorder %s4496_s3, %s3769_s20 }
  0xf2   : > { %p3766_p0 = pnand %p3764_p3, %p4508_p13  ;;  %p3772_p8 = scmp.lt.s32.totalorder %s3770_s17, %s3763_s4 }
  0xf4   : > { %p3767_p7 = pneg %p3766_p0  ;;  %p3773_p5 = por %p3772_p8, %p3771_p6 }
  0xf6   : > { %p3774_p9 = pnand %p3773_p5, %p3767_p7 }
  0xf8   : > { %3777 = shalt.err (!%p3774_p9)
}
  0xf9   : > { %s5231_s11 = smov 4   ;;  %s5232_s13 = smov 64  }
  0xfa   : > { %3427 = dma.hbm_to_vmem [thread:$0]  (!%p4484_p1), %s4493_s25, 128, %s4496_s3, %s4502_s9, %s5232_s13, %s5232_s13, %s5231_s11  }
  0xfb   : > { %s5233_s6 = sld [smem:[#allocation52_spill]]  ;;  %p5234_p8 = scmp.ne.s32.totalorder %s5215_s29, 0 }
 0x101   : > { %s3778_s20 = scalar_lea.hbm %s5233_s6, 256 }
 0x102   : > { %p3779_p6 = scmp.ne.s32.totalorder %s5233_s6, %s3778_s20  ;;  %p3785_p12 = scmp.lt.u32.totalorder %s3778_s20, %s5233_s6 }
 0x104   : > { %p3781_p7 = pnand %p3779_p6, %p5234_p8 }
 0x106   : > { %p3782_p11 = pneg %p3781_p7 }
 0x108   : > { %p3787_p2 = pnand %p3785_p12, %p3782_p11 }
 0x10a   : > { %3790 = shalt.err (!%p3787_p2)
}
 0x10b   : > { %s3791_s15 = scalar_lea.vmem %s470_s7, 256  ;;  %p3799_p0 = scmp.lt.s32.totalorder %s470_s7, %s470_s7 }
 0x10c   : > { %p3792_p4 = scmp.ne.s32.totalorder %s470_s7, %s3791_s15  ;;  %p3800_p5 = scmp.lt.s32.totalorder %s3791_s15, %s3791_s15 }
 0x10e   : > { %p3794_p10 = pnand %p3792_p4, %p5234_p8  ;;  %p3801_p9 = por %p3800_p5, %p3799_p0 }
 0x110   : > { %p3795_p3 = pneg %p3794_p10 }
 0x112   : > { %p3802_p1 = pnand %p3801_p9, %p3795_p3 }
 0x114   : > { %3805 = shalt.err (!%p3802_p1)
}
 0x115   : > { %p5235_p6 = scmp.ne.s32.totalorder %s5213_s0, 0  ;;  %s4152_s3 = smov [#allocation16]  }
 0x116   : > { %s495_s25 = sshll.u32 %s4152_s3, 4  ;;  %s4153_s5 = smov [#allocation19]   ;;  %s496_s25 = int_to_ptr.vmem [resolvable:$true] %s495_s25 }
 0x117   : > { %3393 = dma.hbm_to_vmem [thread:$0]  (!%p5235_p6), %s5233_s6, 256, %s470_s7, [#allocation12], %s5232_s13, %s5232_s13, %s5231_s11  }
 0x118   : > { %s521_s28 = sshll.u32 %s4153_s5, 4  ;;  %s5236_s8 = sld [smem:[#allocation54_spill]]  ;;  %s522_s28 = int_to_ptr.vmem [resolvable:$true] %s521_s28 }
 0x11e   : > { %s3806_s4 = scalar_lea.hbm %s5236_s8, 256 }
 0x11f   : > { %p3807_p1 = scmp.ne.s32.totalorder %s5236_s8, %s3806_s4  ;;  %p3813_p12 = scmp.lt.u32.totalorder %s3806_s4, %s5236_s8 }
 0x121   : > { %p3809_p7 = pnand %p3807_p1, %p5234_p8 }
 0x123   : > { %p3810_p11 = pneg %p3809_p7 }
 0x125   : > { %p3815_p2 = pnand %p3813_p12, %p3810_p11 }
 0x127   : > { %3818 = shalt.err (!%p3815_p2)
}
 0x128   : > { %s3819_s7 = scalar_lea.vmem %s496_s25, 256  ;;  %p3827_p0 = scmp.lt.s32.totalorder %s496_s25, %s496_s25 }
 0x129   : > { %p3820_p4 = scmp.ne.s32.totalorder %s496_s25, %s3819_s7  ;;  %p3828_p5 = scmp.lt.s32.totalorder %s3819_s7, %s3819_s7 }
 0x12b   : > { %p3822_p10 = pnand %p3820_p4, %p5234_p8  ;;  %p3829_p9 = por %p3828_p5, %p3827_p0 }
 0x12d   : > { %p3823_p3 = pneg %p3822_p10 }
 0x12f   : > { %p3830_p13 = pnand %p3829_p9, %p3823_p3 }
 0x131   : > { %3833 = shalt.err (!%p3830_p13)
}
 0x132   : > { %3399 = dma.hbm_to_vmem [thread:$0]  (!%p5235_p6), %s5236_s8, 256, %s496_s25, [#allocation15], %s5232_s13, %s5232_s13, %s5231_s11  }
 0x133   : > { %s3834_s5 = scalar_lea.hbm %s5155_s10, 256 }
 0x134   : > { %p3835_p1 = scmp.ne.s32.totalorder %s5155_s10, %s3834_s5  ;;  %p3841_p11 = scmp.lt.u32.totalorder %s3834_s5, %s5155_s10 }
 0x136   : > { %p3837_p13 = pnand %p3835_p1, %p5234_p8 }
 0x138   : > { %p3838_p7 = pneg %p3837_p13 }
 0x13a   : > { %p3843_p12 = pnand %p3841_p11, %p3838_p7 }
 0x13c   : > { %3846 = shalt.err (!%p3843_p12)
}
 0x13d   : > { %s3847_s1 = scalar_lea.vmem %s522_s28, 256  ;;  %p3855_p3 = scmp.lt.s32.totalorder %s522_s28, %s522_s28 }
 0x13e   : > { %p3848_p2 = scmp.ne.s32.totalorder %s522_s28, %s3847_s1  ;;  %p3856_p0 = scmp.lt.s32.totalorder %s3847_s1, %s3847_s1 }
 0x140   : > { %p3850_p4 = pnand %p3848_p2, %p5234_p8  ;;  %p3857_p5 = por %p3856_p0, %p3855_p3 }
 0x142   : > { %p3851_p10 = pneg %p3850_p4 }
 0x144   : > { %p3858_p9 = pnand %p3857_p5, %p3851_p10 }
 0x146   : > { %3861 = shalt.err (!%p3858_p9)
}
 0x147   : > { %3405 = dma.hbm_to_vmem [thread:$0]  (!%p5235_p6), %s5155_s10, 256, %s522_s28, [#allocation18], %s5232_s13, %s5232_s13, %s5231_s11  }
 0x148   : > { %s4154_s21 = smov [#allocation22]   ;;  %s4155_s23 = smov [#allocation25]  }
 0x149   : > { %s547_s19 = sshll.u32 %s4154_s21, 4  ;;  %s574_s3 = sshll.u32 %s4155_s23, 4  ;;  %s548_s19 = int_to_ptr.vmem [resolvable:$true] %s547_s19  ;;  %s575_s3 = int_to_ptr.vmem [resolvable:$true] %s574_s3 }
 0x14a   : > { %s5237_s15 = sld [smem:[#allocation57_spill]] }
 0x150   : > { %s3862_s4 = scalar_lea.hbm %s5237_s15, 512 }
 0x151   : > { %p3863_p1 = scmp.ne.s32.totalorder %s5237_s15, %s3862_s4  ;;  %p3869_p11 = scmp.lt.u32.totalorder %s3862_s4, %s5237_s15 }
 0x153   : > { %p3865_p13 = pnand %p3863_p1, %p5234_p8 }
 0x155   : > { %p3866_p7 = pneg %p3865_p13 }
 0x157   : > { %p3871_p12 = pnand %p3869_p11, %p3866_p7 }
 0x159   : > { %3874 = shalt.err (!%p3871_p12)
}
 0x15a   : > { %s3875_s28 = scalar_lea.vmem %s548_s19, 512  ;;  %p3883_p3 = scmp.lt.s32.totalorder %s548_s19, %s548_s19 }
 0x15b   : > { %p3876_p2 = scmp.ne.s32.totalorder %s548_s19, %s3875_s28  ;;  %p3884_p0 = scmp.lt.s32.totalorder %s3875_s28, %s3875_s28 }
 0x15d   : > { %p3878_p4 = pnand %p3876_p2, %p5234_p8  ;;  %p3885_p5 = por %p3884_p0, %p3883_p3 }
 0x15f   : > { %p3879_p10 = pneg %p3878_p4 }
 0x161   : > { %p3886_p9 = pnand %p3885_p5, %p3879_p10 }
 0x163   : > { %3889 = shalt.err (!%p3886_p9)
}
 0x164   : > { %3411 = dma.hbm_to_vmem [thread:$0]  (!%p5235_p6), %s5237_s15, 512, %s548_s19, [#allocation21], %s5232_s13, %s5232_s13, %s5231_s11  }
 0x165   : > { %s5238_s5 = sld [smem:[#allocation59_spill]] }
 0x16b   : > { %s3890_s20 = scalar_lea.hbm %s5238_s5, 16 }
 0x16c   : > { %p3891_p1 = scmp.ne.s32.totalorder %s5238_s5, %s3890_s20  ;;  %p3897_p11 = scmp.lt.u32.totalorder %s3890_s20, %s5238_s5 }
 0x16e   : > { %p3893_p13 = pnand %p3891_p1, %p5234_p8 }
 0x170   : > { %p3894_p7 = pneg %p3893_p13 }
 0x172   : > { %p3899_p12 = pnand %p3897_p11, %p3894_p7 }
 0x174   : > { %3902 = shalt.err (!%p3899_p12)
}
 0x175   : > { %s3903_s28 = scalar_lea.vmem %s575_s3, 16  ;;  %s3910_s19 = scalar_lea.vmem %s575_s3, 32 }
 0x176   : > { %p3904_p2 = scmp.ne.s32.totalorder %s575_s3, %s3903_s28  ;;  %p3911_p3 = scmp.lt.s32.totalorder %s575_s3, %s575_s3 }
 0x177   : > { %p3912_p0 = scmp.lt.s32.totalorder %s3910_s19, %s3903_s28 }
 0x178   : > { %p3906_p4 = pnand %p3904_p2, %p5234_p8 }
 0x179   : > { %p3913_p5 = por %p3912_p0, %p3911_p3 }
 0x17a   : > { %p3907_p10 = pneg %p3906_p4 }
 0x17c   : > { %p3914_p9 = pnand %p3913_p5, %p3907_p10 }
 0x17e   : > { %3917 = shalt.err (!%p3914_p9)
}
 0x17f   : > { %3417 = dma.hbm_to_vmem [thread:$0]  (!%p5235_p6), %s5238_s5, 16, %s575_s3, [#allocation24]  }
 0x180   : > { %s4156_s21 = smov [#allocation26]   ;;  %s5239_s17 = sld [smem:[#allocation60_spill]] }
 0x181   : > { %s585_s23 = sshll.u32 %s4156_s21, 4  ;;  %s586_s23 = int_to_ptr.vmem [resolvable:$true] %s585_s23 }
 0x186   : > { %s3918_s1 = scalar_lea.hbm %s5239_s17, 32 }
 0x187   : > { %p3919_p1 = scmp.ne.s32.totalorder %s5239_s17, %s3918_s1  ;;  %p3925_p11 = scmp.lt.u32.totalorder %s3918_s1, %s5239_s17 }
 0x189   : > { %p3921_p13 = pnand %p3919_p1, %p5234_p8 }
 0x18b   : > { %p3922_p7 = pneg %p3921_p13 }
 0x18d   : > { %p3927_p12 = pnand %p3925_p11, %p3922_p7 }
 0x18f   : > { %3930 = shalt.err (!%p3927_p12)
}
 0x190   : > { %s3931_s3 = scalar_lea.vmem %s586_s23, 32  ;;  %p3939_p3 = scmp.lt.s32.totalorder %s586_s23, %s586_s23 }
 0x191   : > { %p3932_p2 = scmp.ne.s32.totalorder %s586_s23, %s3931_s3  ;;  %p3940_p0 = scmp.lt.s32.totalorder %s3931_s3, %s3931_s3 }
 0x193   : > { %p3934_p4 = pnand %p3932_p2, %p5234_p8  ;;  %p3941_p5 = por %p3940_p0, %p3939_p3 }
 0x195   : > { %p3935_p10 = pneg %p3934_p4 }
 0x197   : > { %p3942_p9 = pnand %p3941_p5, %p3935_p10 }
 0x199   : > { %3945 = shalt.err (!%p3942_p9)
}
 0x19a   : > { %3420 = dma.hbm_to_vmem [thread:$0]  (!%p5235_p6), %s5239_s17, 32, %s586_s23, [#allocation27]  }
 0x19b   : > { %s5240_s29 = sld [smem:[#allocation46_spill]]  ;;  %s600_s4 = scalar_lea.vmem [#allocation2], %s4479_s26 }
 0x19c   : > { %s607_s1 = sshll.u32 %s600_s4, 4  ;;  %s597_s0 = scalar_lea.sflag [#allocation3], %s4468_s2  ;;  %s608_s1 = int_to_ptr.vmem [resolvable:$true] %s607_s1 }
 0x19d   : > { %p5241_p1 = scmp.ne.s32.totalorder %s5230_s12, 0 }
 0x1a1   : > { %s4660_s20 = scalar_lea.hbm %s5240_s29, %s4482_s14  ;;  %s3951_s19 = scalar_lea.hbm %s5240_s29, 256 }
 0x1a2   : > { %s3946_s25 = scalar_lea.hbm %s4660_s20, 128  ;;  %p3952_p6 = scmp.lt.u32.totalorder %s4660_s20, %s5240_s29 }
 0x1a3   : > { %p3947_p8 = scmp.ne.s32.totalorder %s4660_s20, %s3946_s25  ;;  %p3953_p11 = scmp.lt.u32.totalorder %s3951_s19, %s3946_s25 }
 0x1a4   : > { %p3955_p2 = scmp.lt.u32.totalorder %s3946_s25, %s4660_s20 }
 0x1a5   : > { %p3949_p13 = pnand %p3947_p8, %p5241_p1  ;;  %p3954_p12 = por %p3953_p11, %p3952_p6 }
 0x1a7   : > { %p3950_p7 = pneg %p3949_p13  ;;  %p3956_p4 = por %p3955_p2, %p3954_p12 }
 0x1a9   : > { %p3957_p10 = pnand %p3956_p4, %p3950_p7 }
 0x1ab   : > { %3960 = shalt.err (!%p3957_p10)
}
 0x1ac   : > { %s3961_s6 = scalar_lea.vmem %s608_s1, 128  ;;  %s4157_s7 = smov [#allocation2]  }
 0x1ad   : > { %p3962_p3 = scmp.ne.s32.totalorder %s608_s1, %s3961_s6  ;;  %s3966_s21 = sshll.u32 %s4157_s7, 4  ;;  %s3967_s21 = int_to_ptr.vmem [resolvable:$false] %s3966_s21 }
 0x1ae   : > { %s3968_s4 = scalar_lea.vmem %s3967_s21, 256  ;;  %p3969_p9 = scmp.lt.s32.totalorder %s608_s1, %s3967_s21 }
 0x1af   : > { %p3964_p0 = pnand %p3962_p3, %p5241_p1  ;;  %p3970_p8 = scmp.lt.s32.totalorder %s3968_s4, %s3961_s6 }
 0x1b1   : > { %p3965_p5 = pneg %p3964_p0  ;;  %p3971_p13 = por %p3970_p8, %p3969_p9 }
 0x1b3   : > { %p3972_p6 = pnand %p3971_p13, %p3965_p5 }
 0x1b5   : > { %3975 = shalt.err (!%p3972_p6)
}
 0x1b6   : > { %p5242_p11 = scmp.ne.s32.totalorder %s5228_s18, 0  ;;  %s5243_s23 = sld [smem:[#allocation48_spill]] }
 0x1b7   : > { %s639_s8 = scalar_lea.vmem [#allocation7], %s4479_s26 }
 0x1b8   : > { %3424 = dma.hbm_to_vmem [thread:$0]  (!%p5242_p11), %s4660_s20, 128, %s608_s1, %s597_s0  }
 0x1b9   : > { %s646_s6 = sshll.u32 %s639_s8, 4  ;;  %s4688_s6 = int_to_ptr.vmem [resolvable:$true] %s646_s6 }
 0x1bc   : > { %s5244_s19 = smov %s5243_s23  ;;  %s4685_s3 = scalar_lea.hbm %s5243_s23, %s4482_s14 }
 0x1bd   : > { %s3976_s7 = scalar_lea.hbm %s4685_s3, 128  ;;  %s3981_s1 = scalar_lea.hbm %s5244_s19, 256 }
 0x1be   : > { %p3977_p7 = scmp.ne.s32.totalorder %s4685_s3, %s3976_s7  ;;  %p3982_p4 = scmp.lt.u32.totalorder %s4685_s3, %s5244_s19 }
 0x1bf   : > { %p3983_p10 = scmp.lt.u32.totalorder %s3981_s1, %s3976_s7  ;;  %p3985_p0 = scmp.lt.u32.totalorder %s3976_s7, %s4685_s3 }
 0x1c0   : > { %p3979_p12 = pnand %p3977_p7, %p5241_p1 }
 0x1c1   : > { %p3984_p3 = por %p3983_p10, %p3982_p4 }
 0x1c2   : > { %p3980_p2 = pneg %p3979_p12 }
 0x1c3   : > { %p3986_p5 = por %p3985_p0, %p3984_p3 }
 0x1c5   : > { %p3987_p9 = pnand %p3986_p5, %p3980_p2 }
 0x1c7   : > { %3990 = shalt.err (!%p3987_p9)
}
 0x1c8   : > { %s3991_s26 = scalar_lea.vmem %s4688_s6, 128  ;;  %s4158_s4 = smov [#allocation7]  }
 0x1c9   : > { %p3992_p8 = scmp.ne.s32.totalorder %s4688_s6, %s3991_s26  ;;  %s3996_s25 = sshll.u32 %s4158_s4, 4  ;;  %s3997_s25 = int_to_ptr.vmem [resolvable:$false] %s3996_s25 }
 0x1ca   : > { %s3998_s28 = scalar_lea.vmem %s3997_s25, 256  ;;  %p3999_p7 = scmp.lt.s32.totalorder %s4688_s6, %s3997_s25 }
 0x1cb   : > { %p3994_p13 = pnand %p3992_p8, %p5241_p1  ;;  %p4000_p12 = scmp.lt.s32.totalorder %s3998_s28, %s3991_s26 }
 0x1cd   : > { %p3995_p6 = pneg %p3994_p13  ;;  %p4001_p4 = por %p4000_p12, %p3999_p7 }
 0x1cf   : > { %p4002_p10 = pnand %p4001_p4, %p3995_p6 }
 0x1d1   : > { %4005 = shalt.err (!%p4002_p10)
}
 0x1d2   : > { %3430 = dma.hbm_to_vmem [thread:$0]  (!%p5242_p11), %s4685_s3, 128, %s4688_s6, %s4502_s9, %s5232_s13, %s5232_s13, %s5231_s11  }
 0x1d3   : > { %s2975_s23 = sshll.u32 %s4468_s2, 2  ;;  %s2976_s8 = sshll.u32 %s4138_s24, 6 }
 0x1d4   : > { %s5245_s20 = sld [smem:[#allocation49_spill]]  ;;  %s660_s0 = scalar_lea.vmem [#allocation8], %s2975_s23 }
 0x1d5   : > { %s667_s14 = sshll.u32 %s660_s0, 4  ;;  %s5246_s26 = sand.u32 1, %s4138_s24   ;;  %s668_s14 = int_to_ptr.vmem [resolvable:$true] %s667_s14 }
 0x1d6   : > { %s657_s4 = scalar_lea.sflag [#allocation9], %s5246_s26 }
 0x1da   : > { %s4720_s1 = scalar_lea.hbm %s5245_s20, %s2976_s8  ;;  %s4011_s11 = scalar_lea.hbm %s5245_s20, 128 }
 0x1db   : > { %s4006_s25 = scalar_lea.hbm %s4720_s1, 64  ;;  %p4012_p5 = scmp.lt.u32.totalorder %s4720_s1, %s5245_s20 }
 0x1dc   : > { %p4007_p2 = scmp.ne.s32.totalorder %s4720_s1, %s4006_s25  ;;  %p4013_p9 = scmp.lt.u32.totalorder %s4011_s11, %s4006_s25 }
 0x1dd   : > { %p4015_p13 = scmp.lt.u32.totalorder %s4006_s25, %s4720_s1 }
 0x1de   : > { %p4009_p3 = pnand %p4007_p2, %p5241_p1  ;;  %p4014_p8 = por %p4013_p9, %p4012_p5 }
 0x1e0   : > { %p4010_p0 = pneg %p4009_p3  ;;  %p4016_p6 = por %p4015_p13, %p4014_p8 }
 0x1e2   : > { %p4017_p7 = pnand %p4016_p6, %p4010_p0 }
 0x1e4   : > { %4020 = shalt.err (!%p4017_p7)
}
 0x1e5   : > { %s4021_s6 = scalar_lea.vmem %s668_s14, 64  ;;  %s4159_s28 = smov [#allocation8]  }
 0x1e6   : > { %p4022_p12 = scmp.ne.s32.totalorder %s668_s14, %s4021_s6  ;;  %s4026_s23 = sshll.u32 %s4159_s28, 4  ;;  %s4027_s23 = int_to_ptr.vmem [resolvable:$false] %s4026_s23 }
 0x1e7   : > { %s4028_s8 = scalar_lea.vmem %s4027_s23, 128  ;;  %p4029_p2 = scmp.lt.s32.totalorder %s668_s14, %s4027_s23 }
 0x1e8   : > { %p4024_p4 = pnand %p4022_p12, %p5241_p1  ;;  %p4030_p3 = scmp.lt.s32.totalorder %s4028_s8, %s4021_s6 }
 0x1ea   : > { %p4025_p10 = pneg %p4024_p4  ;;  %p4031_p11 = por %p4030_p3, %p4029_p2 }
 0x1ec   : > { %p4032_p5 = pnand %p4031_p11, %p4025_p10 }
 0x1ee   : > { %4035 = shalt.err (!%p4032_p5)
}
 0x1ef   : > { %p5247_p9 = scmp.ne.s32.totalorder %s5228_s18, 0  ;;  %s5248_s7 = sld [smem:[#allocation42_spill]] }
 0x1f1   : > { %3433 = dma.hbm_to_vmem [thread:$0]  (!%p5247_p9), %s4720_s1, 64, %s668_s14, %s657_s4  }
 0x1f5   : > { %p5249_p0 = scmp.ne.s32.totalorder %s5248_s7, 0 }
 0x1f6   : > { %s4744_s12 = sand.u32 (!%p5249_p0), 1, %s4130_s22   ;;  %p5250_p1 = scmp.ne.s32.totalorder (!%p5249_p0), %s5224_s16, 0 }
 0x1f7   : > { %676 = sbr.rel (%p5249_p0) target bundleno = 7423 (0x1cff), region = 84  ;;  %s4747_s21 = sshll.u32 (!%p5249_p0), %s4744_s12, 3 }
 0x1f8   : > { %s679_s0 = scalar_lea.sflag (!%p5249_p0), [#allocation3], %s4744_s12  ;;  %s682_s26 = scalar_lea.vmem (!%p5249_p0), [#allocation2], %s4747_s21 }
 0x1fe   : > { %4081 = dma.done.wait (%p5250_p1), %s679_s0, 128  }
 0x1ff   : > { %4083 = vsyncadd (%p5250_p1), %s679_s0, 4294967168  ;;  %s687_s18 = sand.u32 1, %s4276_s27   ;;  %s691_s14 = scalar_lea.vmem [#allocation5], %s4747_s21 }
 0x200   : > { %s688_s1 = scalar_lea.sflag [#allocation6], %s687_s18 }
 0x201   : > { %4085 = dma.done.wait (%p5250_p1), %s688_s1, 256  }
 0x202   : > { %4087 = vsyncadd (%p5250_p1), %s688_s1, 4294967040  ;;  %s2981_s4 = sshll.u32 %s4744_s12, 2  ;;  %s700_s25 = scalar_lea.vmem [#allocation7], %s4747_s21 }
 0x203   : > { %s706_s9 = scalar_lea.sflag [#allocation9], %s687_s18  ;;  %s709_s2 = scalar_lea.vmem [#allocation8], %s2981_s4 }
 0x204   : > { %4089 = dma.done.wait (%p5250_p1), %s706_s9, 64  }
 0x205   : > { %4091 = vsyncadd (%p5250_p1), %s706_s9, 4294967232  ;;  %p5251_p11 = scmp.eq.s32.totalorder %s4276_s27, 0 }
 0x207   : > { %4093 = dma.done.wait (%p5251_p11), [#allocation9], 256   ;;  %p5252_p8 = pmov %p5251_p11 }
 0x209   : > { %4095 = vsyncadd (%p5252_p8), [#allocation9], 4294967040  ;;  %p5253_p13 = pmov %p5252_p8 }
 0x20a   : > { %p5254_p6 = pmov %p5252_p8 }
 0x20b   : > { %4097 = dma.done.wait (%p5253_p13), [#allocation12], 512  }
 0x20c   : > { %4099 = vsyncadd (%p5254_p6), [#allocation12], 4294966784  ;;  %p5255_p7 = pmov %p5254_p6 }
 0x20d   : > { %p5256_p12 = pmov %p5254_p6 }
 0x20e   : > { %4101 = dma.done.wait (%p5255_p7), [#allocation15], 512  }
 0x20f   : > { %4103 = vsyncadd (%p5256_p12), [#allocation15], 4294966784  ;;  %p5257_p4 = pmov %p5254_p6 }
 0x211   : > { %4105 = dma.done.wait (%p5257_p4), [#allocation18], 512   ;;  %p5258_p10 = pmov %p5257_p4 }
 0x212   : > { %p5259_p2 = pmov %p5257_p4 }
 0x213   : > { %4107 = vsyncadd (%p5258_p10), [#allocation18], 4294966784 }
 0x214   : > { %4109 = dma.done.wait (%p5259_p2), [#allocation21], 768   ;;  %p5260_p3 = pmov %p5259_p2 }
 0x215   : > { %p5261_p5 = pmov %p5259_p2 }
 0x216   : > { %4111 = vsyncadd (%p5260_p3), [#allocation21], 4294966528 }
 0x217   : > { %4113 = dma.done.wait (%p5261_p5), [#allocation24], 272   ;;  %p5262_p9 = pmov %p5259_p2 }
 0x218   : > { %p5263_p0 = pmov %p5259_p2 }
 0x219   : > { %4115 = vsyncadd (%p5262_p9), [#allocation24], 4294967024 }
 0x21a   : > { %4117 = dma.done.wait (%p5263_p0), [#allocation27], 32   ;;  %p5264_p1 = pmov %p5263_p0 }
 0x21b   : > { %v4160_v0 = vmov 0.0   ;;  %vm4161_vm0 = vmmov 0   ;;  %v3521_v1 = vld [vmem:[#allocation10] sm:$0xff]   ;;  %v3522_v2 = vld [vmem:[#allocation10 + $0x8] sm:$0xff]   ;;  %v4805_v4 = vld [vmem:[%s709_s2] sm:$0xf]  ;;  %v889_v8 = vlaneseq }
 0x21c   : > { %4119 = vsyncadd (%p5264_p1), [#allocation27], 4294967264  ;;  %3122 = vmatprep.subr.bf16.mxu1 %v4160_v0  ;;  %3126 = vmatprep.mubr.msk.bf16.mxu1 %vm4161_vm0, %v4160_v0  ;;  %v4803_v3 = vld [vmem:[%s682_s26] sm:$0xff]  ;;  %v826_v5 = vunpack.c.l.bf16 %v4805_v4  ;;  %vm845_vm1 = vcmask 261120   ;;  %v4821_v11 = vld [vmem:[#allocation23] sm:$0xff]  ;;  %s4162_s16 = smov 96  }
 0x21d   : > { %3138 = vmatprep.subr.bf16.mxu0 %v4160_v0  ;;  %3140 = vmatprep.mubr.msk.bf16.mxu0 %vm4161_vm0, %v4160_v0  ;;  %v4816_v9 = vshrl.u32 %v889_v8, 7  ;;  %s4163_s11 = smov 120   ;;  %v3523_v20 = vld [vmem:[#allocation11] sm:$0xff]   ;;  %s4164_s13 = smov 88   ;;  %v3524_v21 = vld [vmem:[#allocation11 + $0x8] sm:$0xff]   ;;  %v898_v22 = vpack.c.bf16 %v4803_v3, %v4803_v3  ;;  %vm964_vm2 = vcmask 64512  }
 0x21e   : > { %3123 = vmatpush3.bf16.msra.mxu1 %v3521_v1  ;;  %v827_v6 = vadd.f32 %v826_v5, %v4803_v3  ;;  %vm1026_vm3 = vcmask 1043456   ;;  %s4165_s3 = smov 80   ;;  %s4166_s6 = smov 112   ;;  %vm1881_vm4 = vcmask 130048   ;;  %vm2595_vm5 = vcmask 523264  }
 0x21f   : > { %3124 = vmatprep.subr.bf16.mxu1 %v4160_v0  ;;  %v4819_v10 = vsub.s32 0, %v4816_v9  ;;  %v4854_v38 = vsub.s32 1, %v4816_v9  ;;  %s4167_s28 = smov 104   ;;  %s4168_s23 = smov 72  }
 0x220   : > { %v832_v7 = vpack.c.bf16 %v827_v6, %v827_v6  ;;  %s3046_s8 = sshll.u32 %s4276_s27, 7  ;;  %s820_s7 = scalar_lea.vmem [#allocation28], %s4747_s21 }
 0x221   : > { %v892_v12 = vrot.slane %v4821_v11, %v4819_v10  ;;  %v902_v41 = vrot.slane %v4821_v11, %v4854_v38  ;;  %s2702_s0 = sshll.u32 %s820_s7, 4  ;;  %s5265_s1 = sld [smem:[#allocation61_spill]]  ;;  %s5102_s0 = int_to_ptr.vmem [resolvable:$true] %s2702_s0 }
 0x222   : > { %3125 = vmatpush3.bf16.msra.mxu1 %v3522_v2  ;;  %s2689_s4 = scalar_lea.sflag [#allocation4], %s4744_s12  ;;  %p5266_p8 = scmp.ne.s32.totalorder %s5225_s30, 0 }
 0x223   : > { %3130 = vmatprep.subr.bf16.mxu1 %v4160_v0  ;;  %s4169_s27 = smov [#allocation28]  }
 0x224   : > { %s4040_s21 = sshll.u32 %s4169_s27, 4  ;;  %s4041_s21 = int_to_ptr.vmem [resolvable:$false] %s4040_s21 }
 0x225   : > { %3127 = vmatmul.mubr.msk.bf16.vlgmr.msra.gmra.mrb[0].mxu1 %vm845_vm1, %v832_v7  ;;  %v1071_v7 = vld [vmem:[#allocation13] sm:$0xf]  ;;  %s4042_s9 = scalar_lea.vmem %s4041_s21, 256  ;;  %p4043_p7 = scmp.lt.s32.totalorder %s5102_s0, %s4041_s21 }
 0x226   : > { %3134 = vmatprep.mubr.msk.bf16.mxu1 %vm4161_vm0, %v4160_v0  ;;  %3131 = vmatpush3.bf16.msra.mxu1 %v3523_v20  ;;  %v1237_v8 = vsel %vm1026_vm3, %v1071_v7, 0 }
 0x227   : > { %3132 = vmatprep.subr.bf16.mxu1 %v4160_v0 }
 0x22a   : > { %3133 = vmatpush3.bf16.msra.mxu1 %v3524_v21 }
 0x22b   : > { %3144 = vmatprep.subr.bf16.mxu1 %v4160_v0 }
 0x22d   : > { %3135 = vmatmul.mubr.msk.bf16.vlgmr.msra.gmra.mrb[4].mxu1 %vm845_vm1, %v898_v22 }
 0x22e   : > { %3146 = vmatprep.mubr.msk.bf16.mxu1 %vm4161_vm0, %v4160_v0 }
 0x2f8   : > { %v883_v13 = vpop.f32.mrb[0].mxu1 }
 0x2f9   : > { %v893_v14 = vadd.f32 %v892_v12, %v883_v13  ;;  %v4825_v15 = vpack.c.bf16 %v883_v13, %v883_v13  ;;  %v3128_v16 = vpop.f32.mrb[1].mxu1  ;;  %v1186_v12 = vld [vmem:[#allocation13 + $0x4] sm:$0xf] }
 0x2fa   : > { %v886_v17 = vpop.f32.mrb[2].mxu1  ;;  %v1191_v13 = vsel %vm1026_vm3, %v1186_v12, 0 }
 0x2fb   : > { %v4827_v18 = vpack.c.bf16 %v893_v14, %v893_v14  ;;  %962 = vrot.lane.b32.xlu0 %v4825_v15, %s4162_s16  ;;  %v3129_v19 = vpop.f32.mrb[3].mxu1 }
 0x2fd   : > { %1073 = vrot.lane.b32.xlu1 %v4827_v18, %s4163_s11 }
 0x2ff   : > { %1075 = vrot.lane.b32.xlu0 %v4825_v15, %s4164_s13 }
 0x300   : > { %v952_v39 = vpop.f32.mrb[4].mxu1 }
 0x301   : > { %v3136_v40 = vpop.f32.mrb[5].mxu1  ;;  %v953_v44 = vadd.f32 %v952_v39, %v902_v41 }
 0x302   : > { %v955_v42 = vpop.f32.mrb[6].mxu1 }
 0x303   : > { %v3137_v43 = vpop.f32.mrb[7].mxu1  ;;  %v4858_v45 = vpack.c.bf16 %v953_v44, %v953_v44 }
 0x305   : > { %v1028_v46 = vsel %vm1026_vm3, %v4858_v45, 0 }
 0x306   : > { %3145 = vmatpush3.bf16.msra.mxu1 %v1028_v46 }
 0x307   : > { %3156 = vmatprep.subr.bf16.mxu1 %v4160_v0 }
 0x36d   : > { %v963_v23 = vpop.permute.xlu0 %962 }
 0x36e   : > { %v969_v24 = vsel %vm964_vm2, %v963_v23, 0 }
 0x36f   : > { %3139 = vmatpush3.bf16.xpose.msra.mxu0 %v969_v24  ;;  %v1074_v27 = vpop.permute.xlu1 %1073 }
 0x370   : > { %3150 = vmatprep.subr.bf16.mxu0 %v4160_v0 }
 0x371   : > { %v1076_v25 = vpop.permute.xlu0 %1075 }
 0x372   : > { %v1081_v26 = vsel %vm964_vm2, %v1076_v25, 0 }
 0x376   : > { %3141 = vmatmul.mubr.msk.bf16.vlgmr.msra.gmra.mrb[0].mxu0 %vm964_vm2, %v4827_v18 }
 0x377   : > { %3151 = vmatpush3.bf16.xpose.msra.mxu0 %v1081_v26  ;;  %3152 = vmatprep.mubr.msk.bf16.mxu0 %vm4161_vm0, %v4160_v0 }
 0x378   : > { %3162 = vmatprep.subr.bf16.mxu0 %v4160_v0 }
 0x37e   : > { %3153 = vmatmul.mubr.msk.bf16.vlgmr.msra.gmra.mrb[4].mxu0 %vm964_vm2, %v1074_v27 }
 0x37f   : > { %3164 = vmatprep.mubr.msk.bf16.mxu0 %vm4161_vm0, %v4160_v0  ;;  %3163 = vmatpush3.bf16.msra.mxu0 %v1191_v13 }
 0x380   : > { %3174 = vmatprep.subr.bf16.mxu0 %v4160_v0 }
 0x449   : > { %v1005_v28 = vpop.f32.mrb[0].mxu0 }
 0x44a   : > { %v3142_v29 = vpop.f32.mrb[1].mxu0  ;;  %v1011_v30 = vsel %vm964_vm2, %v1005_v28, -inf }
 0x44b   : > { %1012 = vmax.xlane.f32.xlu1 %v1011_v30  ;;  %v1008_v31 = vpop.f32.mrb[2].mxu0 }
 0x44c   : > { %v3143_v32 = vpop.f32.mrb[3].mxu0 }
 0x451   : > { %v1117_v33 = vpop.f32.mrb[4].mxu0 }
 0x452   : > { %v3154_v34 = vpop.f32.mrb[5].mxu0  ;;  %v1123_v35 = vsel %vm964_vm2, %v1117_v33, -inf }
 0x453   : > { %1124 = vmax.xlane.f32.xlu0 %v1123_v35  ;;  %v1120_v36 = vpop.f32.mrb[6].mxu0 }
 0x454   : > { %v3155_v37 = vpop.f32.mrb[7].mxu0 }
 0x4d8   : > { %v1013_v47 = vpop.xlane.xlu1 %1012 }
 0x4d9   : > { %v1014_v48 = vsub.f32 %v1005_v28, %v1013_v47 }
 0x4db   : > { %v1015_v49 = vmul.f32 1.442695, %v1014_v48 }
 0x4dd   : > { %3539 = vpow2.f32 %v1015_v49 }
 0x4e0   : > { %v1125_v50 = vpop.xlane.xlu0 %1124 }
 0x4e1   : > { %v1126_v51 = vsub.f32 %v1117_v33, %v1125_v50 }
 0x4e3   : > { %v1127_v52 = vmul.f32 1.442695, %v1126_v51 }
 0x4e5   : > { %3541 = vpow2.f32 %v1127_v52 }
 0x4e7   : > { %v3540_v53 = vpop.eup %3539 }
 0x4e8   : > { %v1017_v54 = vsel %vm964_vm2, %v3540_v53, 0.0 }
 0x4e9   : > { %1018 = vadd.xlane.f32.xlu0 %v1017_v54 }
 0x4ef   : > { %v3542_v55 = vpop.eup %3541 }
 0x4f0   : > { %v1129_v56 = vsel %vm964_vm2, %v3542_v55, 0.0 }
 0x4f1   : > { %1130 = vadd.xlane.f32.xlu1 %v1129_v56 }
 0x4ff   : > { %1136 = vrot.lane.b32.xlu0 %v4858_v45, %s4163_s11 }
 0x502   : > { %1281 = vrot.lane.b32.xlu1 %v4825_v15, %s4165_s3 }
 0x506   : > { %1279 = vrot.lane.b32.xlu1 %v4827_v18, %s4166_s6 }
 0x576   : > { %v1019_v57 = vpop.xlane.xlu0 %1018 }
 0x577   : > { %3543 = vrcp.f32 %v1019_v57 }
 0x57a   : > { %v1137_v60 = vpop.permute.xlu0 %1136 }
 0x57b   : > { %v1142_v62 = vsel %vm1026_vm3, %v1137_v60, 0 }
 0x57e   : > { %v1131_v58 = vpop.xlane.xlu1 %1130 }
 0x57f   : > { %3545 = vrcp.f32 %v1131_v58 }
 0x581   : > { %v3544_v59 = vpop.eup %3543 }
 0x582   : > { %v1021_v61 = vmul.f32 %v3544_v59, %v3540_v53  ;;  %v1282_v21 = vpop.permute.xlu1 %1281 }
 0x583   : > { %v1287_v26 = vsel %vm964_vm2, %v1282_v21, 0 }
 0x584   : > { %v1022_v63 = vpack.c.bf16 %v1021_v61, %v1021_v61 }
 0x586   : > { %3147 = vmatmul.mubr.msk.bf16.vlgmr.msra.gmra.mrb[8].mxu1 %vm964_vm2, %v1022_v63  ;;  %v1280_v28 = vpop.permute.xlu1 %1279 }
 0x587   : > { %3157 = vmatpush3.bf16.msra.mxu1 %v1142_v62  ;;  %3158 = vmatprep.mubr.msk.bf16.mxu1 %vm4161_vm0, %v4160_v0 }
 0x588   : > { %3168 = vmatprep.subr.bf16.mxu1 %v4160_v0 }
 0x589   : > { %v3546_v1 = vpop.eup %3545 }
 0x58a   : > { %v1133_v2 = vmul.f32 %v3546_v1, %v3542_v55 }
 0x58c   : > { %v1134_v6 = vpack.c.bf16 %v1133_v2, %v1133_v2 }
 0x58e   : > { %3159 = vmatmul.mubr.msk.bf16.vlgmr.msra.gmra.mrb[12].mxu1 %vm964_vm2, %v1134_v6 }
 0x58f   : > { %3170 = vmatprep.mubr.msk.bf16.mxu1 %vm4161_vm0, %v4160_v0  ;;  %3169 = vmatpush3.bf16.msra.mxu1 %v1237_v8 }
 0x590   : > { %3180 = vmatprep.subr.bf16.mxu1 %v4160_v0 }
 0x659   : > { %v1064_v14 = vpop.f32.mrb[8].mxu1 }
 0x65a   : > { %v1070_v16 = vpack.c.bf16 %v1064_v14, %v1064_v14  ;;  %v3148_v17 = vpop.f32.mrb[9].mxu1 }
 0x65b   : > { %v1067_v19 = vpop.f32.mrb[10].mxu1 }
 0x65c   : > { %v3149_v20 = vpop.f32.mrb[11].mxu1  ;;  %3171 = vmatmul.mubr.msk.bf16.vlgmr.msra.gmra.mrb[16].mxu1 %vm964_vm2, %v1070_v16  ;;  %v1551_v19 = vld [vmem:[#allocation13 + $0xc] sm:$0xf] }
 0x65d   : > { %3182 = vmatprep.mubr.msk.bf16.mxu1 %vm4161_vm0, %v4160_v0  ;;  %v1556_v20 = vsel %vm1026_vm3, %v1551_v19, 0  ;;  %v3531_v19 = vld [vmem:[#allocation17 + $0x8] sm:$0xff]  }
 0x661   : > { %v1178_v22 = vpop.f32.mrb[12].mxu1 }
 0x662   : > { %v1184_v23 = vpack.c.bf16 %v1178_v22, %v1178_v22  ;;  %v3160_v24 = vpop.f32.mrb[13].mxu1 }
 0x663   : > { %v1181_v25 = vpop.f32.mrb[14].mxu1 }
 0x664   : > { %v3161_v27 = vpop.f32.mrb[15].mxu1  ;;  %3165 = vmatmul.mubr.msk.bf16.vlgmr.msra.gmra.mrb[8].mxu0 %vm964_vm2, %v1184_v23 }
 0x665   : > { %3175 = vmatpush3.bf16.xpose.msra.mxu0 %v1287_v26  ;;  %3176 = vmatprep.mubr.msk.bf16.mxu0 %vm4161_vm0, %v4160_v0 }
 0x666   : > { %3186 = vmatprep.subr.bf16.mxu0 %v4160_v0 }
 0x66c   : > { %3177 = vmatmul.mubr.msk.bf16.vlgmr.msra.gmra.mrb[12].mxu0 %vm964_vm2, %v1280_v28 }
 0x66d   : > { %3188 = vmatprep.mubr.msk.bf16.mxu0 %vm4161_vm0, %v4160_v0 }
 0x72f   : > { %v1273_v29 = vpop.f32.mrb[16].mxu1 }
 0x730   : > { %v3172_v30 = vpop.f32.mrb[17].mxu1 }
 0x731   : > { %v1276_v31 = vpop.f32.mrb[18].mxu1 }
 0x732   : > { %v3173_v32 = vpop.f32.mrb[19].mxu1 }
 0x737   : > { %v1227_v33 = vpop.f32.mrb[8].mxu0 }
 0x738   : > { %v4893_v34 = vadd.f32 %v1273_v29, %v1227_v33  ;;  %v3166_v35 = vpop.f32.mrb[9].mxu0 }
 0x739   : > { %v1230_v36 = vpop.f32.mrb[10].mxu0 }
 0x73a   : > { %v3167_v37 = vpop.f32.mrb[11].mxu0  ;;  %v1601_v36 = vsub.s32 2, %v4816_v9 }
 0x73c   : > { %v1602_v37 = vrot.slane %v4821_v11, %v1601_v36 }
 0x73f   : > { %v1323_v39 = vpop.f32.mrb[12].mxu0 }
 0x740   : > { %v3178_v40 = vpop.f32.mrb[13].mxu0  ;;  %v1329_v41 = vsel %vm964_vm2, %v1323_v39, -inf }
 0x741   : > { %1330 = vmax.xlane.f32.xlu0 %v1329_v41  ;;  %v1326_v42 = vpop.f32.mrb[14].mxu0 }
 0x742   : > { %v3179_v43 = vpop.f32.mrb[15].mxu0 }
 0x757   : > { %1341 = vrot.lane.b32.xlu0 %v4858_v45, %s4166_s6 }
 0x75b   : > { %1439 = vrot.lane.b32.xlu0 %v4827_v18, %s4167_s28 }
 0x7ce   : > { %v1331_v44 = vpop.xlane.xlu0 %1330 }
 0x7cf   : > { %v1332_v46 = vsub.f32 %v1323_v39, %v1331_v44 }
 0x7d1   : > { %v1333_v47 = vmul.f32 1.442695, %v1332_v46 }
 0x7d2   : > { %v1342_v48 = vpop.permute.xlu0 %1341 }
 0x7d3   : > { %3547 = vpow2.f32 %v1333_v47  ;;  %v1347_v49 = vsel %vm1026_vm3, %v1342_v48, 0 }
 0x7d4   : > { %3181 = vmatpush3.bf16.msra.mxu1 %v1347_v49 }
 0x7d5   : > { %3192 = vmatprep.subr.bf16.mxu1 %v4160_v0 }
 0x7d6   : > { %v1440_v57 = vpop.permute.xlu0 %1439 }
 0x7dd   : > { %v3548_v50 = vpop.eup %3547 }
 0x7de   : > { %v1335_v51 = vsel %vm964_vm2, %v3548_v50, 0.0 }
 0x7df   : > { %1336 = vadd.xlane.f32.xlu1 %v1335_v51 }
 0x7f0   : > { %1441 = vrot.lane.b32.xlu1 %v4825_v15, %s4168_s23  ;;  %v1391_v15 = vld [vmem:[#allocation13 + $0x8] sm:$0xf] }
 0x7f1   : > { %v1396_v58 = vsel %vm1026_vm3, %v1391_v15, 0 }
 0x7f2   : > { %3187 = vmatpush3.bf16.msra.mxu0 %v1396_v58  ;;  %v1621_v58 = vsub.s32 7, %v4816_v9 }
 0x7f3   : > { %3198 = vmatprep.subr.bf16.mxu0 %v4160_v0 }
 0x86c   : > { %v1337_v52 = vpop.xlane.xlu1 %1336 }
 0x86d   : > { %3549 = vrcp.f32 %v1337_v52 }
 0x870   : > { %v1442_v54 = vpop.permute.xlu1 %1441 }
 0x871   : > { %v1447_v56 = vsel %vm964_vm2, %v1442_v54, 0  ;;  %v3527_v54 = vld [vmem:[%s691_s14] sm:$0xff]   ;;  %s5100_s14 = scalar_lea.hbm %s5265_s1, %s3046_s8 }
 0x877   : > { %v3550_v18 = vpop.eup %3549 }
 0x878   : > { %v1339_v53 = vmul.f32 %v3550_v18, %v3548_v50  ;;  %v3525_v18 = vld [vmem:[#allocation16] sm:$0xff]  }
 0x87a   : > { %v1340_v55 = vpack.c.bf16 %v1339_v53, %v1339_v53  ;;  %v3526_v53 = vld [vmem:[#allocation16 + $0x8] sm:$0xff]  }
 0x87c   : > { %3183 = vmatmul.mubr.msk.bf16.vlgmr.msra.gmra.mrb[20].mxu1 %vm964_vm2, %v1340_v55  ;;  %v3529_v55 = vld [vmem:[#allocation14 + $0x8] sm:$0xff]  }
 0x87d   : > { %3193 = vmatpush3.bf16.xpose.msra.mxu1 %v1447_v56  ;;  %3194 = vmatprep.mubr.msk.bf16.mxu1 %vm4161_vm0, %v4160_v0 }
 0x87e   : > { %3204 = vmatprep.subr.bf16.mxu1 %v4160_v0 }
 0x884   : > { %3195 = vmatmul.mubr.msk.bf16.vlgmr.msra.gmra.mrb[24].mxu1 %vm964_vm2, %v1440_v57 }
 0x885   : > { %3206 = vmatprep.mubr.msk.bf16.mxu1 %vm4161_vm0, %v4160_v0  ;;  %3205 = vmatpush3.bf16.msra.mxu1 %v1556_v20 }
 0x886   : > { %3218 = vmatprep.subr.bf16.mxu1 %v4160_v0 }
 0x94f   : > { %v1383_v59 = vpop.f32.mrb[20].mxu1 }
 0x950   : > { %v1389_v60 = vpack.c.bf16 %v1383_v59, %v1383_v59  ;;  %v3184_v61 = vpop.f32.mrb[21].mxu1  ;;  %v4947_v59 = vld [vmem:[#allocation23 + $0x8] sm:$0x1f] }
 0x951   : > { %v1386_v62 = vpop.f32.mrb[22].mxu1 }
 0x952   : > { %v3185_v63 = vpop.f32.mrb[23].mxu1  ;;  %3189 = vmatmul.mubr.msk.bf16.vlgmr.msra.gmra.mrb[16].mxu0 %vm964_vm2, %v1389_v60  ;;  %v1622_v60 = vrot.slane %v4821_v11, %v1621_v58  ;;  %v1627_v62 = vrot.slane %v4947_v59, %v1601_v36 }
 0x953   : > { %3200 = vmatprep.mubr.msk.bf16.mxu0 %vm4161_vm0, %v4160_v0 }
 0x957   : > { %v1483_v1 = vpop.f32.mrb[24].mxu1 }
 0x958   : > { %v3196_v2 = vpop.f32.mrb[25].mxu1  ;;  %v1489_v6 = vsel %vm964_vm2, %v1483_v1, -inf }
 0x959   : > { %1490 = vmax.xlane.f32.xlu1 %v1489_v6  ;;  %v1486_v7 = vpop.f32.mrb[26].mxu1 }
 0x95a   : > { %v3197_v8 = vpop.f32.mrb[27].mxu1 }
 0x9e6   : > { %v1491_v12 = vpop.xlane.xlu1 %1490 }
 0x9e7   : > { %v1492_v13 = vsub.f32 %v1483_v1, %v1491_v12 }
 0x9e9   : > { %v1493_v14 = vmul.f32 1.442695, %v1492_v13 }
 0x9eb   : > { %3551 = vpow2.f32 %v1493_v14 }
 0x9f5   : > { %v3552_v16 = vpop.eup %3551 }
 0x9f6   : > { %v1495_v17 = vsel %vm964_vm2, %v3552_v16, 0.0 }
 0x9f7   : > { %1496 = vadd.xlane.f32.xlu0 %v1495_v17  ;;  %v1637_v17 = vsub.s32 3, %v4816_v9 }
 0x9f9   : > { %v1638_v20 = vrot.slane %v4821_v11, %v1637_v17 }
 0xa0d   : > { %1501 = vrot.lane.b32.xlu0 %v4858_v45, %s4167_s28 }
 0xa25   : > { %v1432_v21 = vpop.f32.mrb[16].mxu0 }
 0xa26   : > { %v1438_v22 = vadd.f32 %v1432_v21, %v4893_v34  ;;  %v3190_v23 = vpop.f32.mrb[17].mxu0  ;;  %v3532_v21 = vld [vmem:[%s700_s25] sm:$0xff]   ;;  %s4036_s25 = scalar_lea.vmem %s5102_s0, 128 }
 0xa27   : > { %v1435_v24 = vpop.f32.mrb[18].mxu0  ;;  %p4037_p11 = scmp.ne.s32.totalorder %s5102_s0, %s4036_s25  ;;  %p4044_p12 = scmp.lt.s32.totalorder %s4042_s9, %s4036_s25 }
 0xa28   : > { %v3191_v25 = vpop.f32.mrb[19].mxu0 }
 0xa29   : > { %p4038_p13 = pnand %p4037_p11, %p5266_p8  ;;  %p4045_p4 = por %p4044_p12, %p4043_p7 }
 0xa2b   : > { %p4039_p6 = pneg %p4038_p13 }
 0xa2d   : > { %p4046_p10 = pnand %p4045_p4, %p4039_p6 }
 0xa84   : > { %v1497_v26 = vpop.xlane.xlu0 %1496 }
 0xa85   : > { %3553 = vrcp.f32 %v1497_v26 }
 0xa88   : > { %v1502_v27 = vpop.permute.xlu0 %1501 }
 0xa89   : > { %v1507_v28 = vsel %vm1026_vm3, %v1502_v27, 0 }
 0xa8a   : > { %3199 = vmatpush3.bf16.msra.mxu0 %v1507_v28 }
 0xa8b   : > { %3210 = vmatprep.subr.bf16.mxu0 %v4160_v0 }
 0xa8f   : > { %v3554_v45 = vpop.eup %3553 }
 0xa90   : > { %v1499_v29 = vmul.f32 %v3554_v45, %v3552_v16 }
 0xa92   : > { %v1500_v30 = vpack.c.bf16 %v1499_v29, %v1499_v29 }
 0xa94   : > { %3201 = vmatmul.mubr.msk.bf16.vlgmr.msra.gmra.mrb[20].mxu0 %vm964_vm2, %v1500_v30  ;;  %v1769_v30 = vsub.s32 4, %v4816_v9 }
 0xa95   : > { %3214 = vmatprep.mubr.msk.bf16.mxu0 %vm4161_vm0, %v4160_v0 }
 0xb67   : > { %v1543_v31 = vpop.f32.mrb[20].mxu0 }
 0xb68   : > { %v1549_v32 = vpack.c.bf16 %v1543_v31, %v1543_v31  ;;  %v3202_v33 = vpop.f32.mrb[21].mxu0  ;;  %v1770_v31 = vrot.slane %v4821_v11, %v1769_v30 }
 0xb69   : > { %v1546_v34 = vpop.f32.mrb[22].mxu0 }
 0xb6a   : > { %v3203_v35 = vpop.f32.mrb[23].mxu0  ;;  %3207 = vmatmul.mubr.msk.bf16.vlgmr.msra.gmra.mrb[28].mxu1 %vm964_vm2, %v1549_v32 }
 0xb6b   : > { %3222 = vmatprep.mubr.msk.bf16.mxu1 %vm4161_vm0, %v4160_v0  ;;  %3219 = vmatpush3.bf16.msra.mxu1 %v3525_v18 }
 0xb6c   : > { %3220 = vmatprep.subr.bf16.mxu1 %v4160_v0 }
 0xb6f   : > { %3221 = vmatpush3.bf16.msra.mxu1 %v3526_v53 }
 0xb70   : > { %3234 = vmatprep.subr.bf16.mxu1 %v4160_v0 }
 0xb72   : > { %3223 = vmatmul.mubr.msk.bf16.vlgmr.msra.gmra.mrb[32].mxu1 %vm845_vm1, %v3527_v54 }
 0xb73   : > { %3236 = vmatprep.mubr.msk.bf16.mxu1 %vm4161_vm0, %v4160_v0 }
 0xc3d   : > { %v1592_v39 = vpop.f32.mrb[28].mxu1 }
 0xc3e   : > { %v1598_v40 = vadd.f32 %v1592_v39, %v1438_v22  ;;  %v3208_v41 = vpop.f32.mrb[29].mxu1 }
 0xc3f   : > { %v1595_v42 = vpop.f32.mrb[30].mxu1 }
 0xc40   : > { %v1603_v43 = vadd.f32 %v1602_v37, %v1598_v40  ;;  %v3209_v44 = vpop.f32.mrb[31].mxu1 }
 0xc42   : > { %v1604_v46 = vadd.f32 %v1603_v43, %v4803_v3  ;;  %v3528_v3 = vld [vmem:[#allocation14] sm:$0xff]  }
 0xc43   : > { %3211 = vmatpush3.bf16.msra.mxu0 %v3528_v3 }
 0xc44   : > { %v1605_v47 = vsel %vm845_vm1, %v1604_v46, 0.0  ;;  %3212 = vmatprep.subr.bf16.mxu0 %v4160_v0 }
 0xc45   : > { %1606 = vadd.xlane.f32.xlu1 %v1605_v47  ;;  %v1754_v8 = vpop.f32.mrb[32].mxu1 }
 0xc46   : > { %v3224_v12 = vpop.f32.mrb[33].mxu1 }
 0xc47   : > { %3213 = vmatpush3.bf16.msra.mxu0 %v3529_v55  ;;  %v1757_v13 = vpop.f32.mrb[34].mxu1  ;;  %v1938_v12 = vld [vmem:[#allocation19] sm:$0xf] }
 0xc48   : > { %3226 = vmatprep.subr.bf16.mxu0 %v4160_v0  ;;  %v4959_v14 = vpack.c.bf16 %v1757_v13, %v1754_v8  ;;  %v3225_v16 = vpop.f32.mrb[35].mxu1 }
 0xc4a   : > { %v1839_v4 = vsel %vm964_vm2, %v4959_v14, 0 }
 0xc4b   : > { %3235 = vmatpush3.bf16.xpose.msra.mxu1 %v1839_v4  ;;  %v2103_v4 = vsel %vm1026_vm3, %v1938_v12, 0 }
 0xc4c   : > { %3246 = vmatprep.subr.bf16.mxu1 %v4160_v0 }
 0xcd2   : > { %v1607_v48 = vpop.xlane.xlu1 %1606 }
 0xcd3   : > { %v1609_v49 = vmul.f32 0.03125, %v1607_v48 }
 0xcd5   : > { %v1610_v50 = vsub.f32 %v1604_v46, %v1609_v49 }
 0xcd7   : > { %v1611_v51 = vmul.f32 %v1610_v50, %v1610_v50 }
 0xcd9   : > { %v1612_v52 = vsel %vm845_vm1, %v1611_v51, 0.0 }
 0xcda   : > { %1613 = vadd.xlane.f32.xlu1 %v1612_v52 }
 0xceb   : > { %1943 = vrot.lane.b32.xlu1 %v4959_v14, %s4163_s11 }
 0xd67   : > { %v1614_v56 = vpop.xlane.xlu1 %1613 }
 0xd68   : > { %v1615_v57 = vmul.f32 0.03125, %v1614_v56 }
 0xd6a   : > { %v1616_v15 = vadd.f32 1e-05, %v1615_v57 }
 0xd6b   : > { %v1944_v23 = vpop.permute.xlu1 %1943 }
 0xd6c   : > { %3555 = vrsqrt.f32 %v1616_v15  ;;  %v1949_v45 = vsel %vm964_vm2, %v1944_v23, 0 }
 0xd76   : > { %v3556_v61 = vpop.eup %3555 }
 0xd77   : > { %v1618_v63 = vmul.f32 %v3556_v61, %v1610_v50 }
 0xd79   : > { %v1623_v1 = vmul.f32 %v1622_v60, %v1618_v63 }
 0xd7b   : > { %v4951_v2 = vadd.f32 %v1627_v62, %v1623_v1  ;;  %v2052_v1 = vld [vmem:[#allocation19 + $0x4] sm:$0xf] }
 0xd7d   : > { %v1629_v6 = vadd.f32 %v4951_v2, %v826_v5  ;;  %v3530_v5 = vld [vmem:[#allocation17] sm:$0xff]  }
 0xd7f   : > { %v1634_v7 = vpack.c.bf16 %v1629_v6, %v1629_v6  ;;  %v2057_v6 = vsel %vm1026_vm3, %v2052_v1, 0 }
 0xd81   : > { %3215 = vmatmul.mubr.msk.bf16.vlgmr.msra.gmra.mrb[24].mxu0 %vm845_vm1, %v1634_v7 }
 0xd82   : > { %3230 = vmatprep.mubr.msk.bf16.mxu0 %vm4161_vm0, %v4160_v0  ;;  %3227 = vmatpush3.bf16.msra.mxu0 %v3530_v5 }
 0xd83   : > { %3228 = vmatprep.subr.bf16.mxu0 %v4160_v0 }
 0xd86   : > { %3229 = vmatpush3.bf16.msra.mxu0 %v3531_v19 }
 0xd87   : > { %3240 = vmatprep.subr.bf16.mxu0 %v4160_v0 }
 0xd89   : > { %3231 = vmatmul.mubr.msk.bf16.vlgmr.msra.gmra.mrb[28].mxu0 %vm845_vm1, %v3532_v21 }
 0xd8a   : > { %3242 = vmatprep.mubr.msk.bf16.mxu0 %vm4161_vm0, %v4160_v0 }
 0xe54   : > { %v1688_v22 = vpop.f32.mrb[24].mxu0 }
 0xe55   : > { %v1689_v24 = vadd.f32 %v1688_v22, %v1638_v20  ;;  %v3216_v25 = vpop.f32.mrb[25].mxu0 }
 0xe56   : > { %v1691_v26 = vpop.f32.mrb[26].mxu0 }
 0xe57   : > { %v4977_v27 = vpack.c.bf16 %v1689_v24, %v1689_v24  ;;  %v3217_v28 = vpop.f32.mrb[27].mxu0 }
 0xe59   : > { %1940 = vrot.lane.b32.xlu0 %v4977_v27, %s4163_s11  ;;  %3237 = vmatmul.mubr.msk.bf16.vlgmr.msra.gmra.mrb[36].mxu1 %vm964_vm2, %v4977_v27 }
 0xe5a   : > { %3247 = vmatpush3.bf16.xpose.msra.mxu1 %v1949_v45  ;;  %3248 = vmatprep.mubr.msk.bf16.mxu1 %vm4161_vm0, %v4160_v0 }
 0xe5b   : > { %3258 = vmatprep.subr.bf16.mxu1 %v4160_v0 }
 0xe5c   : > { %v1825_v32 = vpop.f32.mrb[28].mxu0 }
 0xe5d   : > { %v1826_v33 = vadd.f32 %v1825_v32, %v1770_v31  ;;  %v3232_v34 = vpop.f32.mrb[29].mxu0 }
 0xe5e   : > { %v1828_v35 = vpop.f32.mrb[30].mxu0 }
 0xe5f   : > { %v1829_v36 = vadd.f32 %v1828_v35, %v1770_v31  ;;  %v3233_v37 = vpop.f32.mrb[31].mxu0 }
 0xe61   : > { %v4995_v42 = vpack.c.bf16 %v1829_v36, %v1826_v33 }
 0xe63   : > { %3241 = vmatpush3.bf16.msra.mxu0 %v4995_v42 }
 0xe64   : > { %3252 = vmatprep.subr.bf16.mxu0 %v4160_v0 }
 0xecb   : > { %v1941_v29 = vpop.permute.xlu0 %1940 }
 0xecc   : > { %3249 = vmatmul.mubr.msk.bf16.vlgmr.msra.gmra.mrb[40].mxu1 %vm964_vm2, %v1941_v29 }
 0xecd   : > { %3260 = vmatprep.mubr.msk.bf16.mxu1 %vm4161_vm0, %v4160_v0  ;;  %3259 = vmatpush3.bf16.msra.mxu1 %v2057_v6 }
 0xece   : > { %3270 = vmatprep.subr.bf16.mxu1 %v4160_v0 }
 0xf2c   : > { %v1875_v39 = vpop.f32.mrb[36].mxu1 }
 0xf2d   : > { %v3238_v40 = vpop.f32.mrb[37].mxu1  ;;  %v1882_v41 = vsel %vm1881_vm4, %v1875_v39, -inf }
 0xf2e   : > { %1883 = vmax.xlane.f32.xlu0 %v1882_v41  ;;  %v1878_v43 = vpop.f32.mrb[38].mxu1 }
 0xf2f   : > { %v3239_v44 = vpop.f32.mrb[39].mxu1 }
 0xf9f   : > { %v1985_v46 = vpop.f32.mrb[40].mxu1 }
 0xfa0   : > { %v3250_v47 = vpop.f32.mrb[41].mxu1  ;;  %v1991_v48 = vsel %vm1881_vm4, %v1985_v46, -inf }
 0xfa1   : > { %1992 = vmax.xlane.f32.xlu1 %v1991_v48  ;;  %v1988_v49 = vpop.f32.mrb[42].mxu1 }
 0xfa2   : > { %v3251_v50 = vpop.f32.mrb[43].mxu1 }
 0xfb2   : > { %2004 = vrot.lane.b32.xlu1 %v4995_v42, %s4163_s11 }
 0xfb6   : > { %2145 = vrot.lane.b32.xlu1 %v4977_v27, %s4166_s6 }
 0xfbb   : > { %v1884_v51 = vpop.xlane.xlu0 %1883 }
 0xfbc   : > { %v1885_v52 = vsub.f32 %v1875_v39, %v1884_v51 }
 0xfbe   : > { %v1886_v18 = vmul.f32 1.442695, %v1885_v52 }
 0xfc0   : > { %3557 = vpow2.f32 %v1886_v18 }
 0xfca   : > { %v3558_v53 = vpop.eup %3557 }
 0xfcb   : > { %v1888_v54 = vsel %vm1881_vm4, %v3558_v53, 0.0 }
 0xfcc   : > { %1889 = vadd.xlane.f32.xlu0 %v1888_v54 }
0x102e   : > { %v1993_v3 = vpop.xlane.xlu1 %1992 }
0x102f   : > { %v1994_v55 = vsub.f32 %v1985_v46, %v1993_v3 }
0x1031   : > { %v1995_v56 = vmul.f32 1.442695, %v1994_v55 }
0x1032   : > { %v2005_v63 = vpop.permute.xlu1 %2004 }
0x1033   : > { %3559 = vpow2.f32 %v1995_v56 }
0x1036   : > { %v2146_v31 = vpop.permute.xlu1 %2145 }
0x103d   : > { %v3560_v57 = vpop.eup %3559 }
0x103e   : > { %v1997_v15 = vsel %vm1881_vm4, %v3560_v57, 0.0 }
0x103f   : > { %1998 = vadd.xlane.f32.xlu0 %v1997_v15  ;;  %v2255_v15 = vld [vmem:[#allocation19 + $0x8] sm:$0xf] }
0x1055   : > { %2147 = vrot.lane.b32.xlu0 %v4959_v14, %s4166_s6 }
0x1059   : > { %v1890_v58 = vpop.xlane.xlu0 %1889 }
0x105a   : > { %3561 = vrcp.f32 %v1890_v58  ;;  %v2260_v58 = vsel %vm1026_vm3, %v2255_v15, 0 }
0x1064   : > { %v3562_v60 = vpop.eup %3561 }
0x1065   : > { %v1892_v61 = vmul.f32 %v3562_v60, %v3558_v53 }
0x1067   : > { %v1893_v62 = vpack.c.bf16 %v1892_v61, %v1892_v61 }
0x1069   : > { %3243 = vmatmul.mubr.msk.bf16.vlgmr.msra.gmra.mrb[32].mxu0 %vm1881_vm4, %v1893_v62 }
0x106a   : > { %3253 = vmatpush3.bf16.msra.mxu0 %v2005_v63  ;;  %3254 = vmatprep.mubr.msk.bf16.mxu0 %vm4161_vm0, %v4160_v0 }
0x106b   : > { %3264 = vmatprep.subr.bf16.mxu0 %v4160_v0 }
0x10cc   : > { %v1999_v7 = vpop.xlane.xlu0 %1998 }
0x10cd   : > { %3563 = vrcp.f32 %v1999_v7 }
0x10d0   : > { %v2148_v23 = vpop.permute.xlu0 %2147 }
0x10d1   : > { %v2153_v45 = vsel %vm964_vm2, %v2148_v23, 0 }
0x10d7   : > { %v3564_v8 = vpop.eup %3563 }
0x10d8   : > { %v2001_v13 = vmul.f32 %v3564_v8, %v3560_v57 }
0x10da   : > { %v2002_v16 = vpack.c.bf16 %v2001_v13, %v2001_v13 }
0x10dc   : > { %3255 = vmatmul.mubr.msk.bf16.vlgmr.msra.gmra.mrb[36].mxu0 %vm1881_vm4, %v2002_v16 }
0x10dd   : > { %3265 = vmatpush3.bf16.msra.mxu0 %v2103_v4  ;;  %3266 = vmatprep.mubr.msk.bf16.mxu0 %vm4161_vm0, %v4160_v0 }
0x10de   : > { %3276 = vmatprep.subr.bf16.mxu0 %v4160_v0 }
0x113c   : > { %v1931_v5 = vpop.f32.mrb[32].mxu0 }
0x113d   : > { %v1937_v19 = vpack.c.bf16 %v1931_v5, %v1931_v5  ;;  %v3244_v20 = vpop.f32.mrb[33].mxu0 }
0x113e   : > { %v1934_v21 = vpop.f32.mrb[34].mxu0 }
0x113f   : > { %v3245_v22 = vpop.f32.mrb[35].mxu0  ;;  %3267 = vmatmul.mubr.msk.bf16.vlgmr.msra.gmra.mrb[40].mxu0 %vm964_vm2, %v1937_v19 }
0x1140   : > { %3278 = vmatprep.mubr.msk.bf16.mxu0 %vm4161_vm0, %v4160_v0  ;;  %v2413_v22 = vld [vmem:[#allocation19 + $0xc] sm:$0xf] }
0x1141   : > { %v2418_v23 = vsel %vm1026_vm3, %v2413_v22, 0 }
0x11af   : > { %v2044_v24 = vpop.f32.mrb[36].mxu0 }
0x11b0   : > { %v2050_v25 = vpack.c.bf16 %v2044_v24, %v2044_v24  ;;  %v3256_v26 = vpop.f32.mrb[37].mxu0 }
0x11b1   : > { %v2047_v28 = vpop.f32.mrb[38].mxu0 }
0x11b2   : > { %v3257_v29 = vpop.f32.mrb[39].mxu0  ;;  %3261 = vmatmul.mubr.msk.bf16.vlgmr.msra.gmra.mrb[44].mxu1 %vm964_vm2, %v2050_v25 }
0x11b3   : > { %3271 = vmatpush3.bf16.xpose.msra.mxu1 %v2153_v45  ;;  %3272 = vmatprep.mubr.msk.bf16.mxu1 %vm4161_vm0, %v4160_v0 }
0x11b4   : > { %3282 = vmatprep.subr.bf16.mxu1 %v4160_v0 }
0x11ba   : > { %3273 = vmatmul.mubr.msk.bf16.vlgmr.msra.gmra.mrb[48].mxu1 %vm964_vm2, %v2146_v31 }
0x11bb   : > { %3284 = vmatprep.mubr.msk.bf16.mxu1 %vm4161_vm0, %v4160_v0  ;;  %3283 = vmatpush3.bf16.msra.mxu1 %v2260_v58  ;;  %v2488_v58 = vrot.slane %v4947_v59, %v1637_v17 }
0x11bc   : > { %3294 = vmatprep.subr.bf16.mxu1 %v4160_v0 }
0x1212   : > { %v2139_v32 = vpop.f32.mrb[40].mxu0 }
0x1213   : > { %v3268_v33 = vpop.f32.mrb[41].mxu0 }
0x1214   : > { %v2142_v34 = vpop.f32.mrb[42].mxu0 }
0x1215   : > { %v3269_v35 = vpop.f32.mrb[43].mxu0 }
0x1285   : > { %v2093_v36 = vpop.f32.mrb[44].mxu1 }
0x1286   : > { %v5030_v37 = vadd.f32 %v2139_v32, %v2093_v36  ;;  %v3262_v39 = vpop.f32.mrb[45].mxu1 }
0x1287   : > { %v2096_v40 = vpop.f32.mrb[46].mxu1 }
0x1288   : > { %v3263_v41 = vpop.f32.mrb[47].mxu1 }
0x128d   : > { %v2189_v43 = vpop.f32.mrb[48].mxu1 }
0x128e   : > { %v3274_v44 = vpop.f32.mrb[49].mxu1  ;;  %v2195_v46 = vsel %vm1881_vm4, %v2189_v43, -inf }
0x128f   : > { %2196 = vmax.xlane.f32.xlu1 %v2195_v46  ;;  %v2192_v47 = vpop.f32.mrb[50].mxu1 }
0x1290   : > { %v3275_v48 = vpop.f32.mrb[51].mxu1 }
0x12a0   : > { %2305 = vrot.lane.b32.xlu1 %v4959_v14, %s4167_s28 }
0x12a4   : > { %2303 = vrot.lane.b32.xlu1 %v4977_v27, %s4167_s28 }
0x131c   : > { %v2197_v49 = vpop.xlane.xlu1 %2196 }
0x131d   : > { %v2198_v50 = vsub.f32 %v2189_v43, %v2197_v49 }
0x131f   : > { %v2199_v51 = vmul.f32 1.442695, %v2198_v50 }
0x1320   : > { %v2306_v27 = vpop.permute.xlu1 %2305 }
0x1321   : > { %3565 = vpow2.f32 %v2199_v51  ;;  %v2311_v56 = vsel %vm964_vm2, %v2306_v27, 0  ;;  %v3536_v27 = vld [vmem:[#allocation22 + $0x8] sm:$0xff]  }
0x1324   : > { %v2304_v57 = vpop.permute.xlu1 %2303 }
0x132b   : > { %v3566_v52 = vpop.eup %3565 }
0x132c   : > { %v2201_v18 = vsel %vm1881_vm4, %v3566_v52, 0.0 }
0x132d   : > { %2202 = vadd.xlane.f32.xlu0 %v2201_v18 }
0x1343   : > { %2207 = vrot.lane.b32.xlu0 %v4995_v42, %s4166_s6 }
0x13ba   : > { %v2203_v53 = vpop.xlane.xlu0 %2202 }
0x13bb   : > { %3567 = vrcp.f32 %v2203_v53 }
0x13be   : > { %v2208_v54 = vpop.permute.xlu0 %2207 }
0x13bf   : > { %3277 = vmatpush3.bf16.msra.mxu0 %v2208_v54 }
0x13c0   : > { %3288 = vmatprep.subr.bf16.mxu0 %v4160_v0 }
0x13c5   : > { %v3568_v14 = vpop.eup %3567 }
0x13c6   : > { %v2205_v3 = vmul.f32 %v3568_v14, %v3566_v52  ;;  %v3533_v14 = vld [vmem:[#allocation20] sm:$0xff]  }
0x13c8   : > { %v2206_v55 = vpack.c.bf16 %v2205_v3, %v2205_v3  ;;  %v3535_v3 = vld [vmem:[#allocation22] sm:$0xff]  }
0x13ca   : > { %3279 = vmatmul.mubr.msk.bf16.vlgmr.msra.gmra.mrb[44].mxu0 %vm1881_vm4, %v2206_v55 }
0x13cb   : > { %3289 = vmatpush3.bf16.xpose.msra.mxu0 %v2311_v56  ;;  %3290 = vmatprep.mubr.msk.bf16.mxu0 %vm4161_vm0, %v4160_v0 }
0x13cc   : > { %3300 = vmatprep.subr.bf16.mxu0 %v4160_v0 }
0x13d2   : > { %3291 = vmatmul.mubr.msk.bf16.vlgmr.msra.gmra.mrb[48].mxu0 %vm964_vm2, %v2304_v57  ;;  %v2483_v57 = vrot.slane %v4947_v59, %v4819_v10 }
0x13d3   : > { %3302 = vmatprep.mubr.msk.bf16.mxu0 %vm4161_vm0, %v4160_v0  ;;  %3301 = vmatpush3.bf16.msra.mxu0 %v2418_v23 }
0x13d4   : > { %3314 = vmatprep.subr.bf16.mxu0 %v4160_v0 }
0x149d   : > { %v2247_v60 = vpop.f32.mrb[44].mxu0 }
0x149e   : > { %v2253_v61 = vpack.c.bf16 %v2247_v60, %v2247_v60  ;;  %v3280_v62 = vpop.f32.mrb[45].mxu0 }
0x149f   : > { %v2250_v63 = vpop.f32.mrb[46].mxu0 }
0x14a0   : > { %v3281_v1 = vpop.f32.mrb[47].mxu0  ;;  %3285 = vmatmul.mubr.msk.bf16.vlgmr.msra.gmra.mrb[52].mxu1 %vm964_vm2, %v2253_v61 }
0x14a1   : > { %3296 = vmatprep.mubr.msk.bf16.mxu1 %vm4161_vm0, %v4160_v0  ;;  %v3537_v1 = vld [vmem:[#allocation22 + $0x10] sm:$0xff]  }
0x14a5   : > { %v2347_v6 = vpop.f32.mrb[48].mxu0 }
0x14a6   : > { %v3292_v7 = vpop.f32.mrb[49].mxu0  ;;  %v2353_v8 = vsel %vm1881_vm4, %v2347_v6, -inf }
0x14a7   : > { %2354 = vmax.xlane.f32.xlu0 %v2353_v8  ;;  %v2350_v12 = vpop.f32.mrb[50].mxu0  ;;  %v3036_v7 = vld [vmem:[#allocation25] ss:$0 sm:$0xff] }
0x14a8   : > { %v3293_v13 = vpop.f32.mrb[51].mxu0 }
0x14bd   : > { %2365 = vrot.lane.b32.xlu0 %v4995_v42, %s4167_s28 }
0x1534   : > { %v2355_v16 = vpop.xlane.xlu0 %2354 }
0x1535   : > { %v2356_v4 = vsub.f32 %v2347_v6, %v2355_v16  ;;  %v3538_v6 = vld [vmem:[#allocation22 + $0x18] sm:$0xff]  }
0x1537   : > { %v2357_v5 = vmul.f32 1.442695, %v2356_v4 }
0x1538   : > { %v2366_v19 = vpop.permute.xlu0 %2365 }
0x1539   : > { %3569 = vpow2.f32 %v2357_v5  ;;  %3295 = vmatpush3.bf16.msra.mxu1 %v2366_v19  ;;  %v2569_v19 = vsub.s32 6, %v4816_v9 }
0x153a   : > { %3306 = vmatprep.subr.bf16.mxu1 %v4160_v0 }
0x1543   : > { %v3570_v20 = vpop.eup %3569 }
0x1544   : > { %v2359_v21 = vsel %vm1881_vm4, %v3570_v20, 0.0 }
0x1545   : > { %2360 = vadd.xlane.f32.xlu1 %v2359_v21 }
0x1573   : > { %v2296_v24 = vpop.f32.mrb[52].mxu1 }
0x1574   : > { %v2302_v42 = vadd.f32 %v2296_v24, %v5030_v37  ;;  %v3286_v25 = vpop.f32.mrb[53].mxu1  ;;  %v2463_v37 = vsub.s32 5, %v4816_v9 }
0x1575   : > { %v2299_v26 = vpop.f32.mrb[54].mxu1 }
0x1576   : > { %v3287_v28 = vpop.f32.mrb[55].mxu1  ;;  %v2464_v40 = vrot.slane %v4821_v11, %v2463_v37  ;;  %v3534_v11 = vld [vmem:[#allocation20 + $0x8] sm:$0xff]  }
0x15d2   : > { %v2361_v45 = vpop.xlane.xlu1 %2360 }
0x15d3   : > { %3571 = vrcp.f32 %v2361_v45 }
0x15dd   : > { %v3572_v29 = vpop.eup %3571 }
0x15de   : > { %v2363_v31 = vmul.f32 %v3572_v29, %v3570_v20  ;;  %v3579_v20 = vld [vmem:[#allocation23] sm:$0xff] }
0x15df   : > { %v2570_v21 = vrot.slane %v3579_v20, %v2569_v19 }
0x15e0   : > { %v2364_v32 = vpack.c.bf16 %v2363_v31, %v2363_v31 }
0x15e2   : > { %3297 = vmatmul.mubr.msk.bf16.vlgmr.msra.gmra.mrb[56].mxu1 %vm1881_vm4, %v2364_v32 }
0x15e3   : > { %3310 = vmatprep.mubr.msk.bf16.mxu1 %vm4161_vm0, %v4160_v0  ;;  %3307 = vmatpush3.bf16.msra.mxu1 %v3533_v14 }
0x15e4   : > { %3308 = vmatprep.subr.bf16.mxu1 %v4160_v0 }
0x15e7   : > { %3309 = vmatpush3.bf16.msra.mxu1 %v3534_v11 }
0x16b5   : > { %v2405_v33 = vpop.f32.mrb[56].mxu1 }
0x16b6   : > { %v2411_v34 = vpack.c.bf16 %v2405_v33, %v2405_v33  ;;  %v3298_v35 = vpop.f32.mrb[57].mxu1 }
0x16b7   : > { %v2408_v36 = vpop.f32.mrb[58].mxu1 }
0x16b8   : > { %v3299_v39 = vpop.f32.mrb[59].mxu1  ;;  %3303 = vmatmul.mubr.msk.bf16.vlgmr.msra.gmra.mrb[52].mxu0 %vm964_vm2, %v2411_v34  ;;  %v2656_v36 = vrot.slane %v4947_v59, %v4854_v38 }
0x16b9   : > { %3322 = vmatprep.mubr.msk.bf16.mxu0 %vm4161_vm0, %v4160_v0  ;;  %3315 = vmatpush3.bf16.msra.mxu0 %v3535_v3 }
0x16ba   : > { %3316 = vmatprep.subr.bf16.mxu0 %v4160_v0 }
0x16bd   : > { %3317 = vmatpush3.bf16.msra.mxu0 %v3536_v27 }
0x16be   : > { %3318 = vmatprep.subr.bf16.mxu0 %v4160_v0 }
0x16c1   : > { %3319 = vmatpush3.bf16.msra.mxu0 %v3537_v1 }
0x16c2   : > { %3320 = vmatprep.subr.bf16.mxu0 %v4160_v0 }
0x16c5   : > { %3321 = vmatpush3.bf16.msra.mxu0 %v3538_v6 }
0x178b   : > { %v2454_v41 = vpop.f32.mrb[52].mxu0 }
0x178c   : > { %v2460_v43 = vadd.f32 %v2454_v41, %v2302_v42  ;;  %v3304_v44 = vpop.f32.mrb[53].mxu0 }
0x178d   : > { %v2457_v46 = vpop.f32.mrb[54].mxu0 }
0x178e   : > { %v2465_v47 = vadd.f32 %v2464_v40, %v2460_v43  ;;  %v3305_v48 = vpop.f32.mrb[55].mxu0  ;;  %v2661_v40 = vrot.slane %v4947_v59, %v1769_v30  ;;  %v2663_v59 = vld [vmem:[#allocation26] sm:$0x3] }
0x178f   : > { %v2680_v30 = vrot.slane %v2663_v59, %v4819_v10 }
0x1790   : > { %v2466_v49 = vadd.f32 %v2465_v47, %v4951_v2 }
0x1792   : > { %v2467_v50 = vsel %vm845_vm1, %v2466_v49, 0.0 }
0x1793   : > { %2468 = vadd.xlane.f32.xlu1 %v2467_v50 }
0x1820   : > { %v2469_v51 = vpop.xlane.xlu1 %2468 }
0x1821   : > { %v2470_v52 = vmul.f32 0.03125, %v2469_v51 }
0x1823   : > { %v2471_v18 = vsub.f32 %v2466_v49, %v2470_v52 }
0x1825   : > { %v2472_v53 = vmul.f32 %v2471_v18, %v2471_v18 }
0x1827   : > { %v2473_v54 = vsel %vm845_vm1, %v2472_v53, 0.0  ;;  %v2685_v53 = vrot.slane %v2663_v59, %v4854_v38 }
0x1828   : > { %2474 = vadd.xlane.f32.xlu1 %v2473_v54 }
0x18b5   : > { %v2475_v2 = vpop.xlane.xlu1 %2474 }
0x18b6   : > { %v2476_v55 = vmul.f32 0.03125, %v2475_v2 }
0x18b8   : > { %v2477_v56 = vadd.f32 1e-05, %v2476_v55 }
0x18ba   : > { %3573 = vrsqrt.f32 %v2477_v56 }
0x18c4   : > { %v3574_v15 = vpop.eup %3573 }
0x18c5   : > { %v2479_v60 = vmul.f32 %v3574_v15, %v2471_v18 }
0x18c7   : > { %v2484_v61 = vmul.f32 %v2483_v57, %v2479_v60 }
0x18c9   : > { %v2489_v62 = vadd.f32 %v2488_v58, %v2484_v61 }
0x18cb   : > { %v2494_v63 = vpack.c.bf16 %v2489_v62, %v2489_v62 }
0x18cd   : > { %3311 = vmatmul.mubr.msk.bf16.vlgmr.msra.gmra.mrb[60].mxu1 %vm845_vm1, %v2494_v63 }
0x19a0   : > { %v2551_v8 = vpop.f32.mrb[60].mxu1 }
0x19a1   : > { %v2552_v12 = vadd.f32 %v3036_v7, %v2551_v8  ;;  %v3312_v13 = vpop.f32.mrb[61].mxu1 }
0x19a2   : > { %v2554_v16 = vpop.f32.mrb[62].mxu1 }
0x19a3   : > { %v2557_v4 = vmax.f32 %v2552_v12, 0.0  ;;  %v3313_v5 = vpop.f32.mrb[63].mxu1 }
0x19a5   : > { %v2566_v17 = vpack.c.bf16 %v2557_v4, %v2557_v4 }
0x19a7   : > { %3323 = vmatmul.mubr.msk.bf16.vlgmr.msra.gmra.mrb[56].mxu0 %vm2595_vm5, %v2566_v17 }
0x1a7a   : > { %v2633_v22 = vpop.f32.mrb[56].mxu0 }
0x1a7b   : > { %v2634_v23 = vadd.f32 %v2633_v22, %v2570_v21  ;;  %v3324_v24 = vpop.f32.mrb[57].mxu0 }
0x1a7c   : > { %v2636_v0 = vpop.f32.mrb[58].mxu0 }
0x1a7d   : > { %v3325_v42 = vpop.f32.mrb[59].mxu0  ;;  %v2639_v25 = vadd.f32 %v2634_v23, %v2489_v62 }
0x1a7f   : > { %v2640_v26 = vsel %vm845_vm1, %v2639_v25, 0.0 }
0x1a80   : > { %2641 = vadd.xlane.f32.xlu1 %v2640_v26 }
0x1b0d   : > { %v2642_v28 = vpop.xlane.xlu1 %2641 }
0x1b0e   : > { %v2643_v45 = vmul.f32 0.03125, %v2642_v28 }
0x1b10   : > { %v2644_v29 = vsub.f32 %v2639_v25, %v2643_v45 }
0x1b12   : > { %v2645_v31 = vmul.f32 %v2644_v29, %v2644_v29 }
0x1b14   : > { %v2646_v32 = vsel %vm845_vm1, %v2645_v31, 0.0 }
0x1b15   : > { %2647 = vadd.xlane.f32.xlu1 %v2646_v32 }
0x1ba2   : > { %v2648_v33 = vpop.xlane.xlu1 %2647 }
0x1ba3   : > { %v2649_v34 = vmul.f32 0.03125, %v2648_v33 }
0x1ba5   : > { %v2650_v35 = vadd.f32 1e-05, %v2649_v34 }
0x1ba7   : > { %3575 = vrsqrt.f32 %v2650_v35 }
0x1bb1   : > { %v3576_v39 = vpop.eup %3575 }
0x1bb2   : > { %v2652_v37 = vmul.f32 %v3576_v39, %v2644_v29 }
0x1bb4   : > { %v2657_v41 = vmul.f32 %v2656_v36, %v2652_v37 }
0x1bb6   : > { %v2662_v43 = vadd.f32 %v2661_v40, %v2657_v41 }
0x1bb8   : > { %v2664_v44 = vsel %vm845_vm1, %v2662_v43, 0.0 }
0x1bb9   : > { %2665 = vadd.xlane.f32.xlu1 %v2664_v44 }
0x1c46   : > { %v2666_v46 = vpop.xlane.xlu1 %2665 }
0x1c47   : > { %v2667_v47 = vmul.f32 0.03125, %v2666_v46 }
0x1c49   : > { %v2668_v48 = vsub.f32 %v2662_v43, %v2667_v47 }
0x1c4b   : > { %v2669_v49 = vmul.f32 %v2668_v48, %v2668_v48 }
0x1c4d   : > { %v2670_v50 = vsel %vm845_vm1, %v2669_v49, 0.0 }
0x1c4e   : > { %2671 = vadd.xlane.f32.xlu0 %v2670_v50 }
0x1cdb   : > { %v2672_v51 = vpop.xlane.xlu0 %2671 }
0x1cdc   : > { %v2673_v52 = vmul.f32 0.03125, %v2672_v51 }
0x1cde   : > { %v2674_v9 = vadd.f32 1e-05, %v2673_v52 }
0x1ce0   : > { %3577 = vrsqrt.f32 %v2674_v9 }
0x1cea   : > { %v3578_v18 = vpop.eup %3577 }
0x1ceb   : > { %v2676_v54 = vmul.f32 %v3578_v18, %v2668_v48 }
0x1ced   : > { %v2681_v14 = vmul.f32 %v2680_v30, %v2676_v54 }
0x1cef   : > { %v2686_v11 = vadd.f32 %v2685_v53, %v2681_v14 }
0x1cf1   : > { %2687 = vst.msk [vmem:[%s820_s7] sm:$0xff] %vm845_vm1, %v2686_v11 }
0x1cf2   : > { %4049 = shalt.err (!%p4046_p10)
}
0x1cf3   : > { %s4050_s12 = scalar_lea.hbm %s5100_s14, 128  ;;  %s4054_s11 = scalar_lea.hbm %s5265_s1, 256 }
0x1cf4   : > { %p4051_p2 = scmp.ne.s32.totalorder %s5100_s14, %s4050_s12  ;;  %p4055_p9 = scmp.lt.u32.totalorder %s5100_s14, %s5265_s1 }
0x1cf5   : > { %p4056_p0 = scmp.lt.u32.totalorder %s4054_s11, %s4050_s12  ;;  %p4058_p11 = scmp.lt.u32.totalorder %s4050_s12, %s5100_s14 }
0x1cf6   : > { %p4052_p3 = pnand %p4051_p2, %p5266_p8 }
0x1cf7   : > { %p4057_p1 = por %p4056_p0, %p4055_p9 }
0x1cf8   : > { %p4053_p5 = pneg %p4052_p3 }
0x1cf9   : > { %p4059_p13 = por %p4058_p11, %p4057_p1 }
0x1cfb   : > { %p4060_p6 = pnand %p4059_p13, %p4053_p5 }
0x1cfd   : > { %4063 = shalt.err (!%p4060_p6)
}
0x1cfe   : > { %3382 = dma.vmem_to_hbm [thread:$0]  (%p5266_p8), %s5102_s0, 128, %s5100_s14, %s2689_s4  }
0x1cff PF: > { %s5267_s6 = sld [smem:[#allocation40_spill]]  ;;  %s5268_s28 = sld [smem:[#allocation45_spill]] }
0x1d00   : > { %p5270_p12 = scmp.ge.s32.totalorder %s4138_s24, 2 }
0x1d05   : > { %s2714_s23 = sand.u32 1, %s5267_s6   ;;  %p5269_p7 = scmp.ne.s32.totalorder %s5268_s28, 0 }
0x1d06   : > { %s2715_s8 = scalar_lea.sflag [#allocation4], %s2714_s23 }
0x1d07   : > { %p3435_p4 = pnand %p5270_p12, %p5269_p7 }
0x1d09   : > { %4121 = dma.done.wait (!%p3435_p4), %s2715_s8, 128  }
0x1d0a   : > { %4123 = vsyncadd (!%p3435_p4), %s2715_s8, 4294967168  ;;  %s5271_s24 = sld [smem:[#allocation43_spill]]  ;;  %s5272_s7 = sld [smem:[#allocation41_spill]] }
0x1d0b   : > { %s5273_s23 = sld [smem:[#allocation44_spill]]  ;;  %s5274_s21 = smov %s4130_s22 }
0x1d10   : > { %p41_p10 = scmp.ge.s32.totalorder %s5271_s24, 4   ;;  %s5275_s22 = smov %s5272_s7 }
0x1d12   :  { %43 = sbr.rel (!%p41_p10) target bundleno = 32 (0x20), region = 220 }
0x1d19   :  { %2720 = vsyncpa [#allocation3], 1 }
0x1d1a   :  { %2722 = vsyncpa [#allocation3 + $0x1], 1 }
0x1d1b   :  { %2723 = vsyncpa [#allocation6], 1 }
0x1d1c   :  { %2725 = vsyncpa [#allocation6 + $0x1], 1 }
0x1d1d   :  { %2726 = vsyncpa [#allocation9], 1 }
0x1d1e   :  { %2728 = vsyncpa [#allocation9 + $0x1], 1 }
0x1d1f   :  { %2729 = vsyncpa [#allocation12], 1 }
0x1d20   :  { %2730 = vsyncpa [#allocation15], 1 }
0x1d21   :  { %2731 = vsyncpa [#allocation18], 1 }
0x1d22   :  { %2732 = vsyncpa [#allocation21], 1 }
0x1d23   :  { %2733 = vsyncpa [#allocation24], 1 }
0x1d24   :  { %2734 = vsyncpa [#allocation27], 1 }
0x1d25   :  { %2735 = vsyncpa [#allocation4], 1 }
0x1d26   :  { %2737 = vsyncpa [#allocation4 + $0x1], 1 }

</bundles_post_ra>
